<compile_context>
chip_gen: v7x
topology: tpu7x:2x2x1
jax: 0.10.0
libtpu: 0.0.40
codegen_flags: <defaults>
</compile_context>

<pallas_src>
import functools

import jax
import jax.numpy as jnp
from jax.experimental import pallas as pl
from jax.experimental.pallas import tpu as pltpu

C = 128  # fixed by the module

_VMEM_LIMIT = 64 * 1024 * 1024
_PAR = pltpu.CompilerParams(dimension_semantics=("parallel",),
                            vmem_limit_bytes=_VMEM_LIMIT)


# ----------------------------- in-kernel helpers ---------------------------- #
# Padded-scratch layout: shape (Hc + 2, Wc + 4, C); the image interior lives at
# [1:Hc+1, 2:Wc+2, :].  The extra W-left-pad keeps the (possibly bf16-packed)
# interior store word-aligned; a 3x3 conv tap (dy, dx) reads the (Hc, Wc)
# window starting at row dy, column 1 + dx.  Assumes even Wc (true for BiSeNet).

def _pad_into(pad_ref, x, Hc, Wc):
    """Zero the 1-pixel border (O(H+W) stores) and write the interior."""
    dt = pad_ref.dtype
    zrow = jnp.zeros((1, Wc + 4, C), dt)
    pad_ref[pl.ds(0, 1), :, :] = zrow
    pad_ref[pl.ds(Hc + 1, 1), :, :] = zrow
    zcol = jnp.zeros((Hc, 2, C), dt)
    pad_ref[pl.ds(1, Hc), pl.ds(0, 2), :] = zcol
    pad_ref[pl.ds(1, Hc), pl.ds(Wc + 2, 2), :] = zcol
    pad_ref[pl.ds(1, Hc), pl.ds(2, Wc), :] = x


def _tap_getter(pad_ref, Ho, Wo, stride=1):
    """Returns get(dy, dx) -> (Ho, Wo, C) window of the padded scratch."""
    if stride == 1:
        return lambda dy, dx: pad_ref[pl.ds(dy, Ho), pl.ds(1 + dx, Wo), :]
    return lambda dy, dx: pad_ref[pl.ds(dy, Ho, stride=stride),
                                  pl.ds(1 + dx, Wo, stride=stride), :]


def _conv3x3_acc(get_tap, w3_ref, Ho, Wo):
    """Dense 3x3 conv as 3 bf16 MXU matmuls with K=3*C (dx-concatenated taps)."""
    acc = None
    for dy in range(3):
        xt = jnp.concatenate([get_tap(dy, dx) for dx in range(3)], axis=-1)
        xt = xt.reshape(Ho * Wo, 3 * C)
        if xt.dtype != jnp.bfloat16:
            xt = xt.astype(jnp.bfloat16)
        part = jnp.dot(xt, w3_ref[dy], preferred_element_type=jnp.float32)
        acc = part if acc is None else acc + part
    return acc  # (Ho*Wo, C) f32


def _dw3x3_acc(get_tap, dw, Ho, Wo):
    """Depthwise 3x3 conv on the VPU with f32 accumulation."""
    acc = None
    for dy in range(3):
        for dx in range(3):
            term = get_tap(dy, dx) * dw[dy * 3 + dx].reshape(1, 1, C)
            acc = term if acc is None else acc + term
    return acc  # (Ho, Wo, C) f32


def _up4(a, h, w):
    """Nearest-neighbor x4 upsample of a (h, w, C) value, in VMEM."""
    a = jnp.broadcast_to(a[:, :, None, :], (h, w, 4, C)).reshape(h, 4 * w, C)
    a = jnp.broadcast_to(a[:, None, :, :], (h, 4, 4 * w, C)).reshape(4 * h, 4 * w, C)
    return a


# ----------------------------- Pallas kernels ------------------------------ #

def _left_kernel(x_ref, l1dw_ref, l1pw_ref, l1b_ref, l2w3_ref, l2s_ref, l2b_ref,
                 l1o_ref, l2o_ref, pad_ref, ypad_ref, *, H, W):
    """Merged detail branch: left1 and left2 share one padded copy of x.

    left1: depthwise3x3 (VPU, f32) + [BN folded into] 1x1 pointwise (MXU bf16).
    left2: stride-2 conv3x3 (MXU) + BN + stride-2 avgpool3x3, emitted directly
           at its final 1/4 resolution via strided tap reads.
    """
    H2, W2, H4, W4 = H // 2, W // 2, H // 4, W // 4
    _pad_into(pad_ref, x_ref[0].astype(jnp.float32), H, W)

    # ---- left1 ----
    get = _tap_getter(pad_ref, H, W)
    dacc = _dw3x3_acc(get, l1dw_ref[...], H, W)                      # (H, W, C) f32
    y1 = jnp.dot(dacc.reshape(H * W, C).astype(jnp.bfloat16), l1pw_ref[...],
                 preferred_element_type=jnp.float32) + l1b_ref[...]
    l1o_ref[0] = y1.reshape(H, W, C).astype(l1o_ref.dtype)

    # ---- left2 (stride-2 conv taps read the same padded scratch) ----
    get2 = _tap_getter(pad_ref, H2, W2, stride=2)
    cacc = _conv3x3_acc(get2, l2w3_ref, H2, W2)                      # (H2*W2, C) f32
    y2 = cacc * l2s_ref[...] + l2b_ref[...]
    # 3x3 avg pool, stride 2, padding 1, count_include_pad=True (divide by 9)
    _pad_into(ypad_ref, y2.reshape(H2, W2, C), H2, W2)
    getp = _tap_getter(ypad_ref, H4, W4, stride=2)
    pacc = None
    for dy in range(3):
        for dx in range(3):
            blk = getp(dy, dx)
            pacc = blk if pacc is None else pacc + blk
    l2o_ref[0] = (pacc * (1.0 / 9.0)).astype(l2o_ref.dtype)


def _sem_kernel(x_ref, r1w_ref, r1s_ref, r1b_ref, r2dw_ref, r2pw_ref, r2b_ref,
                r1o_ref, r2o_ref, pad_ref, *, h, w):
    """Semantic branch (one image per grid step, bf16 pad scratch).

    right1: conv3x3 + BN.   right2: dw3x3 + [BN folded into] 1x1 pointwise.
    """
    _pad_into(pad_ref, x_ref[0], h, w)                    # x is already bf16
    get = _tap_getter(pad_ref, h, w)
    # right1
    acc = _conv3x3_acc(get, r1w_ref, h, w)
    r1 = acc * r1s_ref[...] + r1b_ref[...]
    r1o_ref[0] = r1.reshape(h, w, C).astype(r1o_ref.dtype)
    # right2
    dacc = _dw3x3_acc(get, r2dw_ref[...], h, w)
    y = jnp.dot(dacc.reshape(h * w, C).astype(jnp.bfloat16), r2pw_ref[...],
                preferred_element_type=jnp.float32) + r2b_ref[...]
    r2o_ref[0] = y.reshape(h, w, C).astype(r2o_ref.dtype)


def _fuse_conv_kernel(l1_ref, r1_ref, l2_ref, r2_ref, w3_ref, scale_ref, bias_ref,
                      o_ref, pad_ref, *, H, W):
    """fused = left1*sigmoid(up4(right1)) + up4(left2*sigmoid(right2));
       out = ReLU(BN(conv3x3(fused))).  Gating in f32 on the VPU/EUP (v5e has
       no bf16 VALU); fused is written as bf16 into the pad scratch that feeds
       the MXU; output is emitted in bf16."""
    h, w = H // 4, W // 4
    sig_r1 = jax.nn.sigmoid(r1_ref[0].astype(jnp.float32))                  # (h, w, C)
    rprod = l2_ref[0].astype(jnp.float32) * jax.nn.sigmoid(r2_ref[0].astype(jnp.float32))
    fused = l1_ref[0].astype(jnp.float32) * _up4(sig_r1, h, w) + _up4(rprod, h, w)
    _pad_into(pad_ref, fused.astype(jnp.bfloat16), H, W)
    get = _tap_getter(pad_ref, H, W)
    acc = _conv3x3_acc(get, w3_ref, H, W)
    y = jnp.maximum(acc * scale_ref[...] + bias_ref[...], 0.0)
    o_ref[0] = y.reshape(H, W, C).astype(o_ref.dtype)


# --------------------------- pallas_call wrappers --------------------------- #

def left_pallas(det, l1_dw, l1_pw, l1_bias, l2_w3, l2_scale, l2_bias):
    N, H, W, _ = det.shape
    kern = functools.partial(_left_kernel, H=H, W=W)
    return pl.pallas_call(
        kern,
        out_shape=(jax.ShapeDtypeStruct((N, H, W, C), jnp.bfloat16),
                   jax.ShapeDtypeStruct((N, H // 4, W // 4, C), jnp.bfloat16)),
        grid=(N,),
        in_specs=[
            pl.BlockSpec((1, H, W, C), lambda b: (b, 0, 0, 0)),
            pl.BlockSpec((9, C), lambda b: (0, 0)),
            pl.BlockSpec((C, C), lambda b: (0, 0)),
            pl.BlockSpec((1, C), lambda b: (0, 0)),
            pl.BlockSpec((3, 3 * C, C), lambda b: (0, 0, 0)),
            pl.BlockSpec((1, C), lambda b: (0, 0)),
            pl.BlockSpec((1, C), lambda b: (0, 0)),
        ],
        out_specs=(pl.BlockSpec((1, H, W, C), lambda b: (b, 0, 0, 0)),
                   pl.BlockSpec((1, H // 4, W // 4, C), lambda b: (b, 0, 0, 0))),
        scratch_shapes=[pltpu.VMEM((H + 2, W + 4, C), jnp.float32),
                        pltpu.VMEM((H // 2 + 2, W // 2 + 4, C), jnp.float32)],
        compiler_params=_PAR,
    )(det, l1_dw, l1_pw, l1_bias, l2_w3, l2_scale, l2_bias)


def sem_pallas(sem, r1_w3, r1_scale, r1_bias, r2_dw, r2_pw, r2_bias):
    N, h, w, _ = sem.shape
    kern = functools.partial(_sem_kernel, h=h, w=w)
    return pl.pallas_call(
        kern,
        out_shape=(jax.ShapeDtypeStruct((N, h, w, C), jnp.bfloat16),
                   jax.ShapeDtypeStruct((N, h, w, C), jnp.bfloat16)),
        grid=(N,),
        in_specs=[
            pl.BlockSpec((1, h, w, C), lambda b: (b, 0, 0, 0)),
            pl.BlockSpec((3, 3 * C, C), lambda b: (0, 0, 0)),
            pl.BlockSpec((1, C), lambda b: (0, 0)),
            pl.BlockSpec((1, C), lambda b: (0, 0)),
            pl.BlockSpec((9, C), lambda b: (0, 0)),
            pl.BlockSpec((C, C), lambda b: (0, 0)),
            pl.BlockSpec((1, C), lambda b: (0, 0)),
        ],
        out_specs=(pl.BlockSpec((1, h, w, C), lambda b: (b, 0, 0, 0)),
                   pl.BlockSpec((1, h, w, C), lambda b: (b, 0, 0, 0))),
        scratch_shapes=[pltpu.VMEM((h + 2, w + 4, C), jnp.bfloat16)],
        compiler_params=_PAR,
    )(sem, r1_w3, r1_scale, r1_bias, r2_dw, r2_pw, r2_bias)


def fuse_conv_pallas(left1, right1, left2, right2, w3, scale, bias):
    N, H, W, _ = left1.shape
    h, w = H // 4, W // 4
    kern = functools.partial(_fuse_conv_kernel, H=H, W=W)
    return pl.pallas_call(
        kern,
        out_shape=jax.ShapeDtypeStruct((N, H, W, C), jnp.bfloat16),
        grid=(N,),
        in_specs=[
            pl.BlockSpec((1, H, W, C), lambda b: (b, 0, 0, 0)),
            pl.BlockSpec((1, h, w, C), lambda b: (b, 0, 0, 0)),
            pl.BlockSpec((1, h, w, C), lambda b: (b, 0, 0, 0)),
            pl.BlockSpec((1, h, w, C), lambda b: (b, 0, 0, 0)),
            pl.BlockSpec((3, 3 * C, C), lambda b: (0, 0, 0)),
            pl.BlockSpec((1, C), lambda b: (0, 0)),
            pl.BlockSpec((1, C), lambda b: (0, 0)),
        ],
        out_specs=pl.BlockSpec((1, H, W, C), lambda b: (b, 0, 0, 0)),
        scratch_shapes=[pltpu.VMEM((H + 2, W + 4, C), jnp.bfloat16)],
        compiler_params=_PAR,
    )(left1, right1, left2, right2, w3, scale, bias)


# ------------------------------- parameters -------------------------------- #

def _fold_bn(key):
    k1, k2, k3 = jax.random.split(key, 3)
    gamma = 1.0 + 0.1 * jax.random.normal(k1, (C,), jnp.float32)
    beta = 0.1 * jax.random.normal(k2, (C,), jnp.float32)
    mean = 0.1 * jax.random.normal(k3, (C,), jnp.float32)
    var = jnp.ones((C,), jnp.float32)
    scale = gamma / jnp.sqrt(var + 1e-5)
    bias = beta - mean * scale
    return scale, bias                                   # (C,), (C,) f32


def _dense3x3(key):
    # torch layout (Cout, Cin, 3, 3) -> (dy, dx*C + cin, cout), bf16 for the MXU
    w = jax.random.normal(key, (C, C, 3, 3), jnp.float32) * (1.0 / float(C * 9) ** 0.5)
    return jnp.transpose(w, (2, 3, 1, 0)).reshape(3, 3 * C, C).astype(jnp.bfloat16)


def _depthwise3x3(key):
    # torch layout (C, 1, 3, 3) -> (tap, C), kept f32 for the VPU
    w = jax.random.normal(key, (C, 1, 3, 3), jnp.float32) * (1.0 / 3.0)
    return jnp.transpose(w[:, 0], (1, 2, 0)).reshape(9, C)


def _pointwise(key):
    # torch layout (Cout, Cin, 1, 1) -> (Cin, Cout), kept f32 (BN folded later)
    w = jax.random.normal(key, (C, C, 1, 1), jnp.float32) * (1.0 / float(C) ** 0.5)
    return jnp.transpose(w[:, :, 0, 0], (1, 0))


def init_params(key):
    ks = jax.random.split(key, 12)
    p = {}
    # left1: dw3x3 -> BN -> 1x1  (BN folded into the 1x1: scale into W_pw rows,
    # bias becomes a post-matmul per-output-channel bias).
    l1_s, l1_b = _fold_bn(ks[1])
    l1_pw = _pointwise(ks[2])
    p["l1_dw"] = _depthwise3x3(ks[0])
    p["l1_pw"] = (l1_s.reshape(C, 1) * l1_pw).astype(jnp.bfloat16)
    p["l1_bias"] = l1_b.reshape(1, C) @ l1_pw                         # (1, C) f32
    # left2: conv3x3 s2 -> BN -> avgpool3x3 s2
    p["l2_w3"] = _dense3x3(ks[3])
    l2_s, l2_b = _fold_bn(ks[4])
    p["l2_scale"], p["l2_bias"] = l2_s.reshape(1, C), l2_b.reshape(1, C)
    # right1: conv3x3 -> BN
    p["r1_w3"] = _dense3x3(ks[5])
    r1_s, r1_b = _fold_bn(ks[6])
    p["r1_scale"], p["r1_bias"] = r1_s.reshape(1, C), r1_b.reshape(1, C)
    # right2: dw3x3 -> BN -> 1x1  (BN folded into the 1x1)
    r2_s, r2_b = _fold_bn(ks[8])
    r2_pw = _pointwise(ks[9])
    p["r2_dw"] = _depthwise3x3(ks[7])
    p["r2_pw"] = (r2_s.reshape(C, 1) * r2_pw).astype(jnp.bfloat16)
    p["r2_bias"] = r2_b.reshape(1, C) @ r2_pw
    # final ConvLayer (assumed Conv3x3 no-bias + BN + ReLU)
    p["f_w3"] = _dense3x3(ks[10])
    f_s, f_b = _fold_bn(ks[11])
    p["f_scale"], p["f_bias"] = f_s.reshape(1, C), f_b.reshape(1, C)
    return p


# --------------------------------- forward --------------------------------- #

def bga_forward(t_det_nchw, t_sem_nchw, p):
    det = jnp.transpose(t_det_nchw, (0, 2, 3, 1)).astype(jnp.bfloat16)   # NHWC bf16
    sem = jnp.transpose(t_sem_nchw, (0, 2, 3, 1)).astype(jnp.bfloat16)   # NHWC bf16

    # detail branch: left1 (full res) + left2 (1/4 res) from ONE padded copy
    left1, left2 = left_pallas(det, p["l1_dw"], p["l1_pw"], p["l1_bias"],
                               p["l2_w3"], p["l2_scale"], p["l2_bias"])
    # semantic branch: right1, right2 (both at 1/4 res)
    right1, right2 = sem_pallas(sem, p["r1_w3"], p["r1_scale"], p["r1_bias"],
                                p["r2_dw"], p["r2_pw"], p["r2_bias"])
    # fuse (sigmoid gating + x4 nearest upsample) + final conv3x3 + BN + ReLU
    out = fuse_conv_pallas(left1, right1, left2, right2,
                           p["f_w3"], p["f_scale"], p["f_bias"])
    return jnp.transpose(out, (0, 3, 1, 2))                              # NCHW bf16


# ----------------------------------- main ----------------------------------- #

if __name__ == "__main__":
    key = jax.random.PRNGKey(0)
    kp, kd, ks = jax.random.split(key, 3)
    params = init_params(kp)

    N, H, W = 2, 16, 16                    # detail branch: (N, 128, 16, 16)
    t_det = jax.random.normal(kd, (N, C, H, W), jnp.float32)
    t_sem = jax.random.normal(ks, (N, C, H // 4, W // 4), jnp.float32)  # 1/4 res

    out = jax.jit(bga_forward)(t_det, t_sem, params)
    out = jax.block_until_ready(out)
    assert out.shape == (N, C, H, W), out.shape
    assert bool(jnp.all(jnp.isfinite(out.astype(jnp.float32))))
    print("KERNEL_OK")
</pallas_src>

<mosaic_0001>
module attributes {stable_mosaic.version = 11 : i64} {
  func.func @_left_kernel(%arg0: i32, %arg1: memref<1x16x16x128xbf16, #tpu.memory_space<vmem>>, %arg2: memref<9x128xf32, #tpu.memory_space<vmem>>, %arg3: memref<128x128xbf16, #tpu.memory_space<vmem>>, %arg4: memref<1x128xf32, #tpu.memory_space<vmem>>, %arg5: memref<3x384x128xbf16, #tpu.memory_space<vmem>>, %arg6: memref<1x128xf32, #tpu.memory_space<vmem>>, %arg7: memref<1x128xf32, #tpu.memory_space<vmem>>, %arg8: memref<1x16x16x128xbf16, #tpu.memory_space<vmem>>, %arg9: memref<1x4x4x128xbf16, #tpu.memory_space<vmem>>, %arg10: memref<18x20x128xf32, #tpu.memory_space<vmem>>, %arg11: memref<10x12x128xf32, #tpu.memory_space<vmem>>) attributes {dimension_semantics = [#tpu.dimension_semantics<parallel>], iteration_bounds = array<i64: 2>, scalar_prefetch = 0 : i64, scratch_operands = 2 : i64, tpu.core_type = #tpu.core_type<tc>, window_params = [{transform_indices = @transform_0, window_bounds = array<i64: 1, 16, 16, 128>}, {pipeline_mode = #tpu.pipeline_mode<synchronous>, transform_indices = @transform_1, window_bounds = array<i64: 9, 128>}, {pipeline_mode = #tpu.pipeline_mode<synchronous>, transform_indices = @transform_2, window_bounds = array<i64: 128, 128>}, {pipeline_mode = #tpu.pipeline_mode<synchronous>, transform_indices = @transform_3, window_bounds = array<i64: 1, 128>}, {pipeline_mode = #tpu.pipeline_mode<synchronous>, transform_indices = @transform_4, window_bounds = array<i64: 3, 384, 128>}, {pipeline_mode = #tpu.pipeline_mode<synchronous>, transform_indices = @transform_5, window_bounds = array<i64: 1, 128>}, {pipeline_mode = #tpu.pipeline_mode<synchronous>, transform_indices = @transform_6, window_bounds = array<i64: 1, 128>}, {transform_indices = @transform_7, window_bounds = array<i64: 1, 16, 16, 128>}, {transform_indices = @transform_8, window_bounds = array<i64: 1, 4, 4, 128>}]} {
    %c0 = arith.constant 0 : index
    %c0_0 = arith.constant 0 : index
    %c0_1 = arith.constant 0 : index
    %c0_2 = arith.constant 0 : index
    %0 = vector.load %arg1[%c0, %c0_0, %c0_1, %c0_2] : memref<1x16x16x128xbf16, #tpu.memory_space<vmem>>, vector<1x16x16x128xbf16>
    %1 = vector.shape_cast %0 : vector<1x16x16x128xbf16> to vector<16x16x128xbf16>
    %2 = arith.extf %1 : vector<16x16x128xbf16> to vector<16x16x128xf32>
    %cst = arith.constant 0.000000e+00 : f32
    %3 = vector.broadcast %cst : f32 to vector<1x20x128xf32>
    %c0_3 = arith.constant 0 : index
    %c0_4 = arith.constant 0 : index
    %c0_5 = arith.constant 0 : index
    %4 = vector.load %arg10[%c0_3, %c0_4, %c0_5] : memref<18x20x128xf32, #tpu.memory_space<vmem>>, vector<1x20x128xf32>
    tpu.vector_store %arg10[%c0_3, %c0_4, %c0_5], %3 {strides = array<i32>} : memref<18x20x128xf32, #tpu.memory_space<vmem>>, vector<1x20x128xf32>,
    %c17 = arith.constant 17 : index
    %c0_6 = arith.constant 0 : index
    %c0_7 = arith.constant 0 : index
    %5 = vector.load %arg10[%c17, %c0_6, %c0_7] : memref<18x20x128xf32, #tpu.memory_space<vmem>>, vector<1x20x128xf32>
    tpu.vector_store %arg10[%c17, %c0_6, %c0_7], %3 {strides = array<i32>} : memref<18x20x128xf32, #tpu.memory_space<vmem>>, vector<1x20x128xf32>,
    %cst_8 = arith.constant 0.000000e+00 : f32
    %6 = vector.broadcast %cst_8 : f32 to vector<16x2x128xf32>
    %c1 = arith.constant 1 : index
    %c0_9 = arith.constant 0 : index
    %c0_10 = arith.constant 0 : index
    %7 = vector.load %arg10[%c1, %c0_9, %c0_10] : memref<18x20x128xf32, #tpu.memory_space<vmem>>, vector<16x2x128xf32>
    tpu.vector_store %arg10[%c1, %c0_9, %c0_10], %6 {strides = array<i32>} : memref<18x20x128xf32, #tpu.memory_space<vmem>>, vector<16x2x128xf32>,
    %c1_11 = arith.constant 1 : index
    %c18 = arith.constant 18 : index
    %c0_12 = arith.constant 0 : index
    %8 = vector.load %arg10[%c1_11, %c18, %c0_12] : memref<18x20x128xf32, #tpu.memory_space<vmem>>, vector<16x2x128xf32>
    tpu.vector_store %arg10[%c1_11, %c18, %c0_12], %6 {strides = array<i32>} : memref<18x20x128xf32, #tpu.memory_space<vmem>>, vector<16x2x128xf32>,
    %c1_13 = arith.constant 1 : index
    %c2 = arith.constant 2 : index
    %c0_14 = arith.constant 0 : index
    %9 = vector.load %arg10[%c1_13, %c2, %c0_14] : memref<18x20x128xf32, #tpu.memory_space<vmem>>, vector<16x16x128xf32>
    tpu.vector_store %arg10[%c1_13, %c2, %c0_14], %2 {strides = array<i32>} : memref<18x20x128xf32, #tpu.memory_space<vmem>>, vector<16x16x128xf32>,
    %c0_15 = arith.constant 0 : index
    %c0_16 = arith.constant 0 : index
    %10 = vector.load %arg2[%c0_15, %c0_16] : memref<9x128xf32, #tpu.memory_space<vmem>>, vector<9x128xf32>
    %c0_17 = arith.constant 0 : index
    %c1_18 = arith.constant 1 : index
    %c0_19 = arith.constant 0 : index
    %11 = vector.load %arg10[%c0_17, %c1_18, %c0_19] : memref<18x20x128xf32, #tpu.memory_space<vmem>>, vector<16x16x128xf32>
    %12 = vector.extract_strided_slice %10 {offsets = [0, 0], sizes = [1, 128], strides = [1, 1]} : vector<9x128xf32> to vector<1x128xf32>
    %13 = vector.shape_cast %12 : vector<1x128xf32> to vector<128xf32>
    %14 = vector.shape_cast %13 : vector<128xf32> to vector<1x1x128xf32>
    %15 = vector.broadcast %14 : vector<1x1x128xf32> to vector<16x16x128xf32>
    %16 = arith.mulf %11, %15 : vector<16x16x128xf32>
    %c0_20 = arith.constant 0 : index
    %c2_21 = arith.constant 2 : index
    %c0_22 = arith.constant 0 : index
    %17 = vector.load %arg10[%c0_20, %c2_21, %c0_22] : memref<18x20x128xf32, #tpu.memory_space<vmem>>, vector<16x16x128xf32>
    %18 = vector.extract_strided_slice %10 {offsets = [1, 0], sizes = [1, 128], strides = [1, 1]} : vector<9x128xf32> to vector<1x128xf32>
    %19 = vector.shape_cast %18 : vector<1x128xf32> to vector<128xf32>
    %20 = vector.shape_cast %19 : vector<128xf32> to vector<1x1x128xf32>
    %21 = vector.broadcast %20 : vector<1x1x128xf32> to vector<16x16x128xf32>
    %22 = arith.mulf %17, %21 : vector<16x16x128xf32>
    %23 = arith.addf %16, %22 : vector<16x16x128xf32>
    %c0_23 = arith.constant 0 : index
    %c3 = arith.constant 3 : index
    %c0_24 = arith.constant 0 : index
    %24 = vector.load %arg10[%c0_23, %c3, %c0_24] : memref<18x20x128xf32, #tpu.memory_space<vmem>>, vector<16x16x128xf32>
    %25 = vector.extract_strided_slice %10 {offsets = [2, 0], sizes = [1, 128], strides = [1, 1]} : vector<9x128xf32> to vector<1x128xf32>
    %26 = vector.shape_cast %25 : vector<1x128xf32> to vector<128xf32>
    %27 = vector.shape_cast %26 : vector<128xf32> to vector<1x1x128xf32>
    %28 = vector.broadcast %27 : vector<1x1x128xf32> to vector<16x16x128xf32>
    %29 = arith.mulf %24, %28 : vector<16x16x128xf32>
    %30 = arith.addf %23, %29 : vector<16x16x128xf32>
    %c1_25 = arith.constant 1 : index
    %c1_26 = arith.constant 1 : index
    %c0_27 = arith.constant 0 : index
    %31 = vector.load %arg10[%c1_25, %c1_26, %c0_27] : memref<18x20x128xf32, #tpu.memory_space<vmem>>, vector<16x16x128xf32>
    %32 = vector.extract_strided_slice %10 {offsets = [3, 0], sizes = [1, 128], strides = [1, 1]} : vector<9x128xf32> to vector<1x128xf32>
    %33 = vector.shape_cast %32 : vector<1x128xf32> to vector<128xf32>
    %34 = vector.shape_cast %33 : vector<128xf32> to vector<1x1x128xf32>
    %35 = vector.broadcast %34 : vector<1x1x128xf32> to vector<16x16x128xf32>
    %36 = arith.mulf %31, %35 : vector<16x16x128xf32>
    %37 = arith.addf %30, %36 : vector<16x16x128xf32>
    %c1_28 = arith.constant 1 : index
    %c2_29 = arith.constant 2 : index
    %c0_30 = arith.constant 0 : index
    %38 = vector.load %arg10[%c1_28, %c2_29, %c0_30] : memref<18x20x128xf32, #tpu.memory_space<vmem>>, vector<16x16x128xf32>
    %39 = vector.extract_strided_slice %10 {offsets = [4, 0], sizes = [1, 128], strides = [1, 1]} : vector<9x128xf32> to vector<1x128xf32>
    %40 = vector.shape_cast %39 : vector<1x128xf32> to vector<128xf32>
    %41 = vector.shape_cast %40 : vector<128xf32> to vector<1x1x128xf32>
    %42 = vector.broadcast %41 : vector<1x1x128xf32> to vector<16x16x128xf32>
    %43 = arith.mulf %38, %42 : vector<16x16x128xf32>
    %44 = arith.addf %37, %43 : vector<16x16x128xf32>
    %c1_31 = arith.constant 1 : index
    %c3_32 = arith.constant 3 : index
    %c0_33 = arith.constant 0 : index
    %45 = vector.load %arg10[%c1_31, %c3_32, %c0_33] : memref<18x20x128xf32, #tpu.memory_space<vmem>>, vector<16x16x128xf32>
    %46 = vector.extract_strided_slice %10 {offsets = [5, 0], sizes = [1, 128], strides = [1, 1]} : vector<9x128xf32> to vector<1x128xf32>
    %47 = vector.shape_cast %46 : vector<1x128xf32> to vector<128xf32>
    %48 = vector.shape_cast %47 : vector<128xf32> to vector<1x1x128xf32>
    %49 = vector.broadcast %48 : vector<1x1x128xf32> to vector<16x16x128xf32>
    %50 = arith.mulf %45, %49 : vector<16x16x128xf32>
    %51 = arith.addf %44, %50 : vector<16x16x128xf32>
    %c2_34 = arith.constant 2 : index
    %c1_35 = arith.constant 1 : index
    %c0_36 = arith.constant 0 : index
    %52 = vector.load %arg10[%c2_34, %c1_35, %c0_36] : memref<18x20x128xf32, #tpu.memory_space<vmem>>, vector<16x16x128xf32>
    %53 = vector.extract_strided_slice %10 {offsets = [6, 0], sizes = [1, 128], strides = [1, 1]} : vector<9x128xf32> to vector<1x128xf32>
    %54 = vector.shape_cast %53 : vector<1x128xf32> to vector<128xf32>
    %55 = vector.shape_cast %54 : vector<128xf32> to vector<1x1x128xf32>
    %56 = vector.broadcast %55 : vector<1x1x128xf32> to vector<16x16x128xf32>
    %57 = arith.mulf %52, %56 : vector<16x16x128xf32>
    %58 = arith.addf %51, %57 : vector<16x16x128xf32>
    %c2_37 = arith.constant 2 : index
    %c2_38 = arith.constant 2 : index
    %c0_39 = arith.constant 0 : index
    %59 = vector.load %arg10[%c2_37, %c2_38, %c0_39] : memref<18x20x128xf32, #tpu.memory_space<vmem>>, vector<16x16x128xf32>
    %60 = vector.extract_strided_slice %10 {offsets = [7, 0], sizes = [1, 128], strides = [1, 1]} : vector<9x128xf32> to vector<1x128xf32>
    %61 = vector.shape_cast %60 : vector<1x128xf32> to vector<128xf32>
    %62 = vector.shape_cast %61 : vector<128xf32> to vector<1x1x128xf32>
    %63 = vector.broadcast %62 : vector<1x1x128xf32> to vector<16x16x128xf32>
    %64 = arith.mulf %59, %63 : vector<16x16x128xf32>
    %65 = arith.addf %58, %64 : vector<16x16x128xf32>
    %c2_40 = arith.constant 2 : index
    %c3_41 = arith.constant 3 : index
    %c0_42 = arith.constant 0 : index
    %66 = vector.load %arg10[%c2_40, %c3_41, %c0_42] : memref<18x20x128xf32, #tpu.memory_space<vmem>>, vector<16x16x128xf32>
    %67 = vector.extract_strided_slice %10 {offsets = [8, 0], sizes = [1, 128], strides = [1, 1]} : vector<9x128xf32> to vector<1x128xf32>
    %68 = vector.shape_cast %67 : vector<1x128xf32> to vector<128xf32>
    %69 = vector.shape_cast %68 : vector<128xf32> to vector<1x1x128xf32>
    %70 = vector.broadcast %69 : vector<1x1x128xf32> to vector<16x16x128xf32>
    %71 = arith.mulf %66, %70 : vector<16x16x128xf32>
    %72 = arith.addf %65, %71 : vector<16x16x128xf32>
    %73 = vector.shape_cast %72 : vector<16x16x128xf32> to vector<256x128xf32>
    %74 = arith.truncf %73 : vector<256x128xf32> to vector<256x128xbf16>
    %c0_43 = arith.constant 0 : index
    %c0_44 = arith.constant 0 : index
    %75 = vector.load %arg3[%c0_43, %c0_44] : memref<128x128xbf16, #tpu.memory_space<vmem>>, vector<128x128xbf16>
    %cst_45 = arith.constant dense<0.000000e+00> : vector<256x128xf32>
    %76 = tpu.matmul %74, %75, %cst_45 {dimension_numbers = #tpu.dot_dimension_numbers<[1], [0], [0], [1], [0, 0, 1, 1], [], []>} : vector<256x128xbf16>, vector<128x128xbf16>, vector<256x128xf32> -> vector<256x128xf32>
    %c0_46 = arith.constant 0 : index
    %c0_47 = arith.constant 0 : index
    %77 = vector.load %arg4[%c0_46, %c0_47] : memref<1x128xf32, #tpu.memory_space<vmem>>, vector<1x128xf32>
    %78 = vector.broadcast %77 : vector<1x128xf32> to vector<256x128xf32>
    %79 = arith.addf %76, %78 : vector<256x128xf32>
    %80 = vector.shape_cast %79 : vector<256x128xf32> to vector<16x16x128xf32>
    %81 = arith.truncf %80 : vector<16x16x128xf32> to vector<16x16x128xbf16>
    %c0_48 = arith.constant 0 : index
    %c0_49 = arith.constant 0 : index
    %c0_50 = arith.constant 0 : index
    %c0_51 = arith.constant 0 : index
    %82 = vector.load %arg8[%c0_48, %c0_49, %c0_50, %c0_51] : memref<1x16x16x128xbf16, #tpu.memory_space<vmem>>, vector<1x16x16x128xbf16>
    %83 = vector.shape_cast %82 : vector<1x16x16x128xbf16> to vector<16x16x128xbf16>
    %84 = vector.shape_cast %81 : vector<16x16x128xbf16> to vector<1x16x16x128xbf16>
    tpu.vector_store %arg8[%c0_48, %c0_49, %c0_50, %c0_51], %84 {strides = array<i32>} : memref<1x16x16x128xbf16, #tpu.memory_space<vmem>>, vector<1x16x16x128xbf16>,
    %c0_52 = arith.constant 0 : index
    %c1_53 = arith.constant 1 : index
    %c0_54 = arith.constant 0 : index
    %85 = tpu.strided_load %arg10[%c0_52, %c1_53, %c0_54] {strides = array<i32: 2, 2, 1>} : memref<18x20x128xf32, #tpu.memory_space<vmem>>, vector<8x8x128xf32>
    %c0_55 = arith.constant 0 : index
    %c2_56 = arith.constant 2 : index
    %c0_57 = arith.constant 0 : index
    %86 = tpu.strided_load %arg10[%c0_55, %c2_56, %c0_57] {strides = array<i32: 2, 2, 1>} : memref<18x20x128xf32, #tpu.memory_space<vmem>>, vector<8x8x128xf32>
    %c0_58 = arith.constant 0 : index
    %c3_59 = arith.constant 3 : index
    %c0_60 = arith.constant 0 : index
    %87 = tpu.strided_load %arg10[%c0_58, %c3_59, %c0_60] {strides = array<i32: 2, 2, 1>} : memref<18x20x128xf32, #tpu.memory_space<vmem>>, vector<8x8x128xf32>
    %88 = tpu.concatenate %85, %86, %87 in 2 : vector<8x8x128xf32>, vector<8x8x128xf32>, vector<8x8x128xf32> -> vector<8x8x384xf32>
    %89 = vector.shape_cast %88 : vector<8x8x384xf32> to vector<64x384xf32>
    %90 = arith.truncf %89 : vector<64x384xf32> to vector<64x384xbf16>
    %c0_61 = arith.constant 0 : index
    %c0_62 = arith.constant 0 : index
    %c0_63 = arith.constant 0 : index
    %91 = vector.load %arg5[%c0_61, %c0_62, %c0_63] : memref<3x384x128xbf16, #tpu.memory_space<vmem>>, vector<1x384x128xbf16>
    %92 = vector.shape_cast %91 : vector<1x384x128xbf16> to vector<384x128xbf16>
    %cst_64 = arith.constant dense<0.000000e+00> : vector<64x128xf32>
    %93 = tpu.matmul %90, %92, %cst_64 {dimension_numbers = #tpu.dot_dimension_numbers<[1], [0], [0], [1], [0, 0, 1, 1], [], []>} : vector<64x384xbf16>, vector<384x128xbf16>, vector<64x128xf32> -> vector<64x128xf32>
    %c1_65 = arith.constant 1 : index
    %c1_66 = arith.constant 1 : index
    %c0_67 = arith.constant 0 : index
    %94 = tpu.strided_load %arg10[%c1_65, %c1_66, %c0_67] {strides = array<i32: 2, 2, 1>} : memref<18x20x128xf32, #tpu.memory_space<vmem>>, vector<8x8x128xf32>
    %c1_68 = arith.constant 1 : index
    %c2_69 = arith.constant 2 : index
    %c0_70 = arith.constant 0 : index
    %95 = tpu.strided_load %arg10[%c1_68, %c2_69, %c0_70] {strides = array<i32: 2, 2, 1>} : memref<18x20x128xf32, #tpu.memory_space<vmem>>, vector<8x8x128xf32>
    %c1_71 = arith.constant 1 : index
    %c3_72 = arith.constant 3 : index
    %c0_73 = arith.constant 0 : index
    %96 = tpu.strided_load %arg10[%c1_71, %c3_72, %c0_73] {strides = array<i32: 2, 2, 1>} : memref<18x20x128xf32, #tpu.memory_space<vmem>>, vector<8x8x128xf32>
    %97 = tpu.concatenate %94, %95, %96 in 2 : vector<8x8x128xf32>, vector<8x8x128xf32>, vector<8x8x128xf32> -> vector<8x8x384xf32>
    %98 = vector.shape_cast %97 : vector<8x8x384xf32> to vector<64x384xf32>
    %99 = arith.truncf %98 : vector<64x384xf32> to vector<64x384xbf16>
    %c1_74 = arith.constant 1 : index
    %c0_75 = arith.constant 0 : index
    %c0_76 = arith.constant 0 : index
    %100 = vector.load %arg5[%c1_74, %c0_75, %c0_76] : memref<3x384x128xbf16, #tpu.memory_space<vmem>>, vector<1x384x128xbf16>
    %101 = vector.shape_cast %100 : vector<1x384x128xbf16> to vector<384x128xbf16>
    %cst_77 = arith.constant dense<0.000000e+00> : vector<64x128xf32>
    %102 = tpu.matmul %99, %101, %cst_77 {dimension_numbers = #tpu.dot_dimension_numbers<[1], [0], [0], [1], [0, 0, 1, 1], [], []>} : vector<64x384xbf16>, vector<384x128xbf16>, vector<64x128xf32> -> vector<64x128xf32>
    %103 = arith.addf %93, %102 : vector<64x128xf32>
    %c2_78 = arith.constant 2 : index
    %c1_79 = arith.constant 1 : index
    %c0_80 = arith.constant 0 : index
    %104 = tpu.strided_load %arg10[%c2_78, %c1_79, %c0_80] {strides = array<i32: 2, 2, 1>} : memref<18x20x128xf32, #tpu.memory_space<vmem>>, vector<8x8x128xf32>
    %c2_81 = arith.constant 2 : index
    %c2_82 = arith.constant 2 : index
    %c0_83 = arith.constant 0 : index
    %105 = tpu.strided_load %arg10[%c2_81, %c2_82, %c0_83] {strides = array<i32: 2, 2, 1>} : memref<18x20x128xf32, #tpu.memory_space<vmem>>, vector<8x8x128xf32>
    %c2_84 = arith.constant 2 : index
    %c3_85 = arith.constant 3 : index
    %c0_86 = arith.constant 0 : index
    %106 = tpu.strided_load %arg10[%c2_84, %c3_85, %c0_86] {strides = array<i32: 2, 2, 1>} : memref<18x20x128xf32, #tpu.memory_space<vmem>>, vector<8x8x128xf32>
    %107 = tpu.concatenate %104, %105, %106 in 2 : vector<8x8x128xf32>, vector<8x8x128xf32>, vector<8x8x128xf32> -> vector<8x8x384xf32>
    %108 = vector.shape_cast %107 : vector<8x8x384xf32> to vector<64x384xf32>
    %109 = arith.truncf %108 : vector<64x384xf32> to vector<64x384xbf16>
    %c2_87 = arith.constant 2 : index
    %c0_88 = arith.constant 0 : index
    %c0_89 = arith.constant 0 : index
    %110 = vector.load %arg5[%c2_87, %c0_88, %c0_89] : memref<3x384x128xbf16, #tpu.memory_space<vmem>>, vector<1x384x128xbf16>
    %111 = vector.shape_cast %110 : vector<1x384x128xbf16> to vector<384x128xbf16>
    %cst_90 = arith.constant dense<0.000000e+00> : vector<64x128xf32>
    %112 = tpu.matmul %109, %111, %cst_90 {dimension_numbers = #tpu.dot_dimension_numbers<[1], [0], [0], [1], [0, 0, 1, 1], [], []>} : vector<64x384xbf16>, vector<384x128xbf16>, vector<64x128xf32> -> vector<64x128xf32>
    %113 = arith.addf %103, %112 : vector<64x128xf32>
    %c0_91 = arith.constant 0 : index
    %c0_92 = arith.constant 0 : index
    %114 = vector.load %arg6[%c0_91, %c0_92] : memref<1x128xf32, #tpu.memory_space<vmem>>, vector<1x128xf32>
    %115 = vector.broadcast %114 : vector<1x128xf32> to vector<64x128xf32>
    %116 = arith.mulf %113, %115 : vector<64x128xf32>
    %c0_93 = arith.constant 0 : index
    %c0_94 = arith.constant 0 : index
    %117 = vector.load %arg7[%c0_93, %c0_94] : memref<1x128xf32, #tpu.memory_space<vmem>>, vector<1x128xf32>
    %118 = vector.broadcast %117 : vector<1x128xf32> to vector<64x128xf32>
    %119 = arith.addf %116, %118 : vector<64x128xf32>
    %120 = vector.shape_cast %119 : vector<64x128xf32> to vector<8x8x128xf32>
    %cst_95 = arith.constant 0.000000e+00 : f32
    %121 = vector.broadcast %cst_95 : f32 to vector<1x12x128xf32>
    %c0_96 = arith.constant 0 : index
    %c0_97 = arith.constant 0 : index
    %c0_98 = arith.constant 0 : index
    %122 = vector.load %arg11[%c0_96, %c0_97, %c0_98] : memref<10x12x128xf32, #tpu.memory_space<vmem>>, vector<1x12x128xf32>
    tpu.vector_store %arg11[%c0_96, %c0_97, %c0_98], %121 {strides = array<i32>} : memref<10x12x128xf32, #tpu.memory_space<vmem>>, vector<1x12x128xf32>,
    %c9 = arith.constant 9 : index
    %c0_99 = arith.constant 0 : index
    %c0_100 = arith.constant 0 : index
    %123 = vector.load %arg11[%c9, %c0_99, %c0_100] : memref<10x12x128xf32, #tpu.memory_space<vmem>>, vector<1x12x128xf32>
    tpu.vector_store %arg11[%c9, %c0_99, %c0_100], %121 {strides = array<i32>} : memref<10x12x128xf32, #tpu.memory_space<vmem>>, vector<1x12x128xf32>,
    %cst_101 = arith.constant 0.000000e+00 : f32
    %124 = vector.broadcast %cst_101 : f32 to vector<8x2x128xf32>
    %c1_102 = arith.constant 1 : index
    %c0_103 = arith.constant 0 : index
    %c0_104 = arith.constant 0 : index
    %125 = vector.load %arg11[%c1_102, %c0_103, %c0_104] : memref<10x12x128xf32, #tpu.memory_space<vmem>>, vector<8x2x128xf32>
    tpu.vector_store %arg11[%c1_102, %c0_103, %c0_104], %124 {strides = array<i32>} : memref<10x12x128xf32, #tpu.memory_space<vmem>>, vector<8x2x128xf32>,
    %c1_105 = arith.constant 1 : index
    %c10 = arith.constant 10 : index
    %c0_106 = arith.constant 0 : index
    %126 = vector.load %arg11[%c1_105, %c10, %c0_106] : memref<10x12x128xf32, #tpu.memory_space<vmem>>, vector<8x2x128xf32>
    tpu.vector_store %arg11[%c1_105, %c10, %c0_106], %124 {strides = array<i32>} : memref<10x12x128xf32, #tpu.memory_space<vmem>>, vector<8x2x128xf32>,
    %c1_107 = arith.constant 1 : index
    %c2_108 = arith.constant 2 : index
    %c0_109 = arith.constant 0 : index
    %127 = vector.load %arg11[%c1_107, %c2_108, %c0_109] : memref<10x12x128xf32, #tpu.memory_space<vmem>>, vector<8x8x128xf32>
    tpu.vector_store %arg11[%c1_107, %c2_108, %c0_109], %120 {strides = array<i32>} : memref<10x12x128xf32, #tpu.memory_space<vmem>>, vector<8x8x128xf32>,
    %c0_110 = arith.constant 0 : index
    %c1_111 = arith.constant 1 : index
    %c0_112 = arith.constant 0 : index
    %128 = tpu.strided_load %arg11[%c0_110, %c1_111, %c0_112] {strides = array<i32: 2, 2, 1>} : memref<10x12x128xf32, #tpu.memory_space<vmem>>, vector<4x4x128xf32>
    %c0_113 = arith.constant 0 : index
    %c2_114 = arith.constant 2 : index
    %c0_115 = arith.constant 0 : index
    %129 = tpu.strided_load %arg11[%c0_113, %c2_114, %c0_115] {strides = array<i32: 2, 2, 1>} : memref<10x12x128xf32, #tpu.memory_space<vmem>>, vector<4x4x128xf32>
    %130 = arith.addf %128, %129 : vector<4x4x128xf32>
    %c0_116 = arith.constant 0 : index
    %c3_117 = arith.constant 3 : index
    %c0_118 = arith.constant 0 : index
    %131 = tpu.strided_load %arg11[%c0_116, %c3_117, %c0_118] {strides = array<i32: 2, 2, 1>} : memref<10x12x128xf32, #tpu.memory_space<vmem>>, vector<4x4x128xf32>
    %132 = arith.addf %130, %131 : vector<4x4x128xf32>
    %c1_119 = arith.constant 1 : index
    %c1_120 = arith.constant 1 : index
    %c0_121 = arith.constant 0 : index
    %133 = tpu.strided_load %arg11[%c1_119, %c1_120, %c0_121] {strides = array<i32: 2, 2, 1>} : memref<10x12x128xf32, #tpu.memory_space<vmem>>, vector<4x4x128xf32>
    %134 = arith.addf %132, %133 : vector<4x4x128xf32>
    %c1_122 = arith.constant 1 : index
    %c2_123 = arith.constant 2 : index
    %c0_124 = arith.constant 0 : index
    %135 = tpu.strided_load %arg11[%c1_122, %c2_123, %c0_124] {strides = array<i32: 2, 2, 1>} : memref<10x12x128xf32, #tpu.memory_space<vmem>>, vector<4x4x128xf32>
    %136 = arith.addf %134, %135 : vector<4x4x128xf32>
    %c1_125 = arith.constant 1 : index
    %c3_126 = arith.constant 3 : index
    %c0_127 = arith.constant 0 : index
    %137 = tpu.strided_load %arg11[%c1_125, %c3_126, %c0_127] {strides = array<i32: 2, 2, 1>} : memref<10x12x128xf32, #tpu.memory_space<vmem>>, vector<4x4x128xf32>
    %138 = arith.addf %136, %137 : vector<4x4x128xf32>
    %c2_128 = arith.constant 2 : index
    %c1_129 = arith.constant 1 : index
    %c0_130 = arith.constant 0 : index
    %139 = tpu.strided_load %arg11[%c2_128, %c1_129, %c0_130] {strides = array<i32: 2, 2, 1>} : memref<10x12x128xf32, #tpu.memory_space<vmem>>, vector<4x4x128xf32>
    %140 = arith.addf %138, %139 : vector<4x4x128xf32>
    %c2_131 = arith.constant 2 : index
    %c2_132 = arith.constant 2 : index
    %c0_133 = arith.constant 0 : index
    %141 = tpu.strided_load %arg11[%c2_131, %c2_132, %c0_133] {strides = array<i32: 2, 2, 1>} : memref<10x12x128xf32, #tpu.memory_space<vmem>>, vector<4x4x128xf32>
    %142 = arith.addf %140, %141 : vector<4x4x128xf32>
    %c2_134 = arith.constant 2 : index
    %c3_135 = arith.constant 3 : index
    %c0_136 = arith.constant 0 : index
    %143 = tpu.strided_load %arg11[%c2_134, %c3_135, %c0_136] {strides = array<i32: 2, 2, 1>} : memref<10x12x128xf32, #tpu.memory_space<vmem>>, vector<4x4x128xf32>
    %144 = arith.addf %142, %143 : vector<4x4x128xf32>
    %cst_137 = arith.constant 0.111111112 : f32
    %145 = vector.broadcast %cst_137 : f32 to vector<4x4x128xf32>
    %146 = arith.mulf %144, %145 : vector<4x4x128xf32>
    %147 = arith.truncf %146 : vector<4x4x128xf32> to vector<4x4x128xbf16>
    %c0_138 = arith.constant 0 : index
    %c0_139 = arith.constant 0 : index
    %c0_140 = arith.constant 0 : index
    %c0_141 = arith.constant 0 : index
    %148 = vector.load %arg9[%c0_138, %c0_139, %c0_140, %c0_141] : memref<1x4x4x128xbf16, #tpu.memory_space<vmem>>, vector<1x4x4x128xbf16>
    %149 = vector.shape_cast %148 : vector<1x4x4x128xbf16> to vector<4x4x128xbf16>
    %150 = vector.shape_cast %147 : vector<4x4x128xbf16> to vector<1x4x4x128xbf16>
    tpu.vector_store %arg9[%c0_138, %c0_139, %c0_140, %c0_141], %150 {strides = array<i32>} : memref<1x4x4x128xbf16, #tpu.memory_space<vmem>>, vector<1x4x4x128xbf16>,
    return
  }
  func.func @transform_0(%arg0: i32) -> (i32, i32, i32, i32) {
    %c0_i32 = arith.constant 0 : i32
    %c0_i32_0 = arith.constant 0 : i32
    %c0_i32_1 = arith.constant 0 : i32
    %c0_i32_2 = arith.constant 0 : i32
    return %arg0, %c0_i32, %c0_i32_0, %c0_i32_1 : i32, i32, i32, i32
  }
  func.func @transform_1(%arg0: i32) -> (i32, i32) {
    %c0_i32 = arith.constant 0 : i32
    %c0_i32_0 = arith.constant 0 : i32
    %c0_i32_1 = arith.constant 0 : i32
    return %c0_i32, %c0_i32_0 : i32, i32
  }
  func.func @transform_2(%arg0: i32) -> (i32, i32) {
    %c0_i32 = arith.constant 0 : i32
    %c0_i32_0 = arith.constant 0 : i32
    %c0_i32_1 = arith.constant 0 : i32
    return %c0_i32, %c0_i32_0 : i32, i32
  }
  func.func @transform_3(%arg0: i32) -> (i32, i32) {
    %c0_i32 = arith.constant 0 : i32
    %c0_i32_0 = arith.constant 0 : i32
    %c0_i32_1 = arith.constant 0 : i32
    return %c0_i32, %c0_i32_0 : i32, i32
  }
  func.func @transform_4(%arg0: i32) -> (i32, i32, i32) {
    %c0_i32 = arith.constant 0 : i32
    %c0_i32_0 = arith.constant 0 : i32
    %c0_i32_1 = arith.constant 0 : i32
    %c0_i32_2 = arith.constant 0 : i32
    return %c0_i32, %c0_i32_0, %c0_i32_1 : i32, i32, i32
  }
  func.func @transform_5(%arg0: i32) -> (i32, i32) {
    %c0_i32 = arith.constant 0 : i32
    %c0_i32_0 = arith.constant 0 : i32
    %c0_i32_1 = arith.constant 0 : i32
    return %c0_i32, %c0_i32_0 : i32, i32
  }
  func.func @transform_6(%arg0: i32) -> (i32, i32) {
    %c0_i32 = arith.constant 0 : i32
    %c0_i32_0 = arith.constant 0 : i32
    %c0_i32_1 = arith.constant 0 : i32
    return %c0_i32, %c0_i32_0 : i32, i32
  }
  func.func @transform_7(%arg0: i32) -> (i32, i32, i32, i32) {
    %c0_i32 = arith.constant 0 : i32
    %c0_i32_0 = arith.constant 0 : i32
    %c0_i32_1 = arith.constant 0 : i32
    %c0_i32_2 = arith.constant 0 : i32
    return %arg0, %c0_i32, %c0_i32_0, %c0_i32_1 : i32, i32, i32, i32
  }
  func.func @transform_8(%arg0: i32) -> (i32, i32, i32, i32) {
    %c0_i32 = arith.constant 0 : i32
    %c0_i32_0 = arith.constant 0 : i32
    %c0_i32_1 = arith.constant 0 : i32
    %c0_i32_2 = arith.constant 0 : i32
    return %arg0, %c0_i32, %c0_i32_0, %c0_i32_1 : i32, i32, i32, i32
  }
}

module attributes {stable_mosaic.version = 11 : i64} {
  func.func @_sem_kernel(%arg0: i32, %arg1: memref<1x4x4x128xbf16, #tpu.memory_space<vmem>>, %arg2: memref<3x384x128xbf16, #tpu.memory_space<vmem>>, %arg3: memref<1x128xf32, #tpu.memory_space<vmem>>, %arg4: memref<1x128xf32, #tpu.memory_space<vmem>>, %arg5: memref<9x128xf32, #tpu.memory_space<vmem>>, %arg6: memref<128x128xbf16, #tpu.memory_space<vmem>>, %arg7: memref<1x128xf32, #tpu.memory_space<vmem>>, %arg8: memref<1x4x4x128xbf16, #tpu.memory_space<vmem>>, %arg9: memref<1x4x4x128xbf16, #tpu.memory_space<vmem>>, %arg10: memref<6x8x128xbf16, #tpu.memory_space<vmem>>) attributes {dimension_semantics = [#tpu.dimension_semantics<parallel>], iteration_bounds = array<i64: 2>, scalar_prefetch = 0 : i64, scratch_operands = 1 : i64, tpu.core_type = #tpu.core_type<tc>, window_params = [{transform_indices = @transform_0, window_bounds = array<i64: 1, 4, 4, 128>}, {pipeline_mode = #tpu.pipeline_mode<synchronous>, transform_indices = @transform_1, window_bounds = array<i64: 3, 384, 128>}, {pipeline_mode = #tpu.pipeline_mode<synchronous>, transform_indices = @transform_2, window_bounds = array<i64: 1, 128>}, {pipeline_mode = #tpu.pipeline_mode<synchronous>, transform_indices = @transform_3, window_bounds = array<i64: 1, 128>}, {pipeline_mode = #tpu.pipeline_mode<synchronous>, transform_indices = @transform_4, window_bounds = array<i64: 9, 128>}, {pipeline_mode = #tpu.pipeline_mode<synchronous>, transform_indices = @transform_5, window_bounds = array<i64: 128, 128>}, {pipeline_mode = #tpu.pipeline_mode<synchronous>, transform_indices = @transform_6, window_bounds = array<i64: 1, 128>}, {transform_indices = @transform_7, window_bounds = array<i64: 1, 4, 4, 128>}, {transform_indices = @transform_8, window_bounds = array<i64: 1, 4, 4, 128>}]} {
    %c0 = arith.constant 0 : index
    %c0_0 = arith.constant 0 : index
    %c0_1 = arith.constant 0 : index
    %c0_2 = arith.constant 0 : index
    %0 = vector.load %arg1[%c0, %c0_0, %c0_1, %c0_2] : memref<1x4x4x128xbf16, #tpu.memory_space<vmem>>, vector<1x4x4x128xbf16>
    %1 = vector.shape_cast %0 : vector<1x4x4x128xbf16> to vector<4x4x128xbf16>
    %cst = arith.constant 0.000000e+00 : bf16
    %2 = vector.broadcast %cst : bf16 to vector<1x8x128xbf16>
    %c0_3 = arith.constant 0 : index
    %c0_4 = arith.constant 0 : index
    %c0_5 = arith.constant 0 : index
    %3 = vector.load %arg10[%c0_3, %c0_4, %c0_5] : memref<6x8x128xbf16, #tpu.memory_space<vmem>>, vector<1x8x128xbf16>
    tpu.vector_store %arg10[%c0_3, %c0_4, %c0_5], %2 {strides = array<i32>} : memref<6x8x128xbf16, #tpu.memory_space<vmem>>, vector<1x8x128xbf16>,
    %c5 = arith.constant 5 : index
    %c0_6 = arith.constant 0 : index
    %c0_7 = arith.constant 0 : index
    %4 = vector.load %arg10[%c5, %c0_6, %c0_7] : memref<6x8x128xbf16, #tpu.memory_space<vmem>>, vector<1x8x128xbf16>
    tpu.vector_store %arg10[%c5, %c0_6, %c0_7], %2 {strides = array<i32>} : memref<6x8x128xbf16, #tpu.memory_space<vmem>>, vector<1x8x128xbf16>,
    %cst_8 = arith.constant 0.000000e+00 : bf16
    %5 = vector.broadcast %cst_8 : bf16 to vector<4x2x128xbf16>
    %c1 = arith.constant 1 : index
    %c0_9 = arith.constant 0 : index
    %c0_10 = arith.constant 0 : index
    %6 = vector.load %arg10[%c1, %c0_9, %c0_10] : memref<6x8x128xbf16, #tpu.memory_space<vmem>>, vector<4x2x128xbf16>
    tpu.vector_store %arg10[%c1, %c0_9, %c0_10], %5 {strides = array<i32>} : memref<6x8x128xbf16, #tpu.memory_space<vmem>>, vector<4x2x128xbf16>,
    %c1_11 = arith.constant 1 : index
    %c6 = arith.constant 6 : index
    %c0_12 = arith.constant 0 : index
    %7 = vector.load %arg10[%c1_11, %c6, %c0_12] : memref<6x8x128xbf16, #tpu.memory_space<vmem>>, vector<4x2x128xbf16>
    tpu.vector_store %arg10[%c1_11, %c6, %c0_12], %5 {strides = array<i32>} : memref<6x8x128xbf16, #tpu.memory_space<vmem>>, vector<4x2x128xbf16>,
    %c1_13 = arith.constant 1 : index
    %c2 = arith.constant 2 : index
    %c0_14 = arith.constant 0 : index
    %8 = vector.load %arg10[%c1_13, %c2, %c0_14] : memref<6x8x128xbf16, #tpu.memory_space<vmem>>, vector<4x4x128xbf16>
    tpu.vector_store %arg10[%c1_13, %c2, %c0_14], %1 {strides = array<i32>} : memref<6x8x128xbf16, #tpu.memory_space<vmem>>, vector<4x4x128xbf16>,
    %c0_15 = arith.constant 0 : index
    %c1_16 = arith.constant 1 : index
    %c0_17 = arith.constant 0 : index
    %9 = vector.load %arg10[%c0_15, %c1_16, %c0_17] : memref<6x8x128xbf16, #tpu.memory_space<vmem>>, vector<4x4x128xbf16>
    %c0_18 = arith.constant 0 : index
    %c2_19 = arith.constant 2 : index
    %c0_20 = arith.constant 0 : index
    %10 = vector.load %arg10[%c0_18, %c2_19, %c0_20] : memref<6x8x128xbf16, #tpu.memory_space<vmem>>, vector<4x4x128xbf16>
    %c0_21 = arith.constant 0 : index
    %c3 = arith.constant 3 : index
    %c0_22 = arith.constant 0 : index
    %11 = vector.load %arg10[%c0_21, %c3, %c0_22] : memref<6x8x128xbf16, #tpu.memory_space<vmem>>, vector<4x4x128xbf16>
    %12 = tpu.concatenate %9, %10, %11 in 2 : vector<4x4x128xbf16>, vector<4x4x128xbf16>, vector<4x4x128xbf16> -> vector<4x4x384xbf16>
    %13 = vector.shape_cast %12 : vector<4x4x384xbf16> to vector<16x384xbf16>
    %c0_23 = arith.constant 0 : index
    %c0_24 = arith.constant 0 : index
    %c0_25 = arith.constant 0 : index
    %14 = vector.load %arg2[%c0_23, %c0_24, %c0_25] : memref<3x384x128xbf16, #tpu.memory_space<vmem>>, vector<1x384x128xbf16>
    %15 = vector.shape_cast %14 : vector<1x384x128xbf16> to vector<384x128xbf16>
    %cst_26 = arith.constant dense<0.000000e+00> : vector<16x128xf32>
    %16 = tpu.matmul %13, %15, %cst_26 {dimension_numbers = #tpu.dot_dimension_numbers<[1], [0], [0], [1], [0, 0, 1, 1], [], []>} : vector<16x384xbf16>, vector<384x128xbf16>, vector<16x128xf32> -> vector<16x128xf32>
    %c1_27 = arith.constant 1 : index
    %c1_28 = arith.constant 1 : index
    %c0_29 = arith.constant 0 : index
    %17 = vector.load %arg10[%c1_27, %c1_28, %c0_29] : memref<6x8x128xbf16, #tpu.memory_space<vmem>>, vector<4x4x128xbf16>
    %c1_30 = arith.constant 1 : index
    %c2_31 = arith.constant 2 : index
    %c0_32 = arith.constant 0 : index
    %18 = vector.load %arg10[%c1_30, %c2_31, %c0_32] : memref<6x8x128xbf16, #tpu.memory_space<vmem>>, vector<4x4x128xbf16>
    %c1_33 = arith.constant 1 : index
    %c3_34 = arith.constant 3 : index
    %c0_35 = arith.constant 0 : index
    %19 = vector.load %arg10[%c1_33, %c3_34, %c0_35] : memref<6x8x128xbf16, #tpu.memory_space<vmem>>, vector<4x4x128xbf16>
    %20 = tpu.concatenate %17, %18, %19 in 2 : vector<4x4x128xbf16>, vector<4x4x128xbf16>, vector<4x4x128xbf16> -> vector<4x4x384xbf16>
    %21 = vector.shape_cast %20 : vector<4x4x384xbf16> to vector<16x384xbf16>
    %c1_36 = arith.constant 1 : index
    %c0_37 = arith.constant 0 : index
    %c0_38 = arith.constant 0 : index
    %22 = vector.load %arg2[%c1_36, %c0_37, %c0_38] : memref<3x384x128xbf16, #tpu.memory_space<vmem>>, vector<1x384x128xbf16>
    %23 = vector.shape_cast %22 : vector<1x384x128xbf16> to vector<384x128xbf16>
    %cst_39 = arith.constant dense<0.000000e+00> : vector<16x128xf32>
    %24 = tpu.matmul %21, %23, %cst_39 {dimension_numbers = #tpu.dot_dimension_numbers<[1], [0], [0], [1], [0, 0, 1, 1], [], []>} : vector<16x384xbf16>, vector<384x128xbf16>, vector<16x128xf32> -> vector<16x128xf32>
    %25 = arith.addf %16, %24 : vector<16x128xf32>
    %c2_40 = arith.constant 2 : index
    %c1_41 = arith.constant 1 : index
    %c0_42 = arith.constant 0 : index
    %26 = vector.load %arg10[%c2_40, %c1_41, %c0_42] : memref<6x8x128xbf16, #tpu.memory_space<vmem>>, vector<4x4x128xbf16>
    %c2_43 = arith.constant 2 : index
    %c2_44 = arith.constant 2 : index
    %c0_45 = arith.constant 0 : index
    %27 = vector.load %arg10[%c2_43, %c2_44, %c0_45] : memref<6x8x128xbf16, #tpu.memory_space<vmem>>, vector<4x4x128xbf16>
    %c2_46 = arith.constant 2 : index
    %c3_47 = arith.constant 3 : index
    %c0_48 = arith.constant 0 : index
    %28 = vector.load %arg10[%c2_46, %c3_47, %c0_48] : memref<6x8x128xbf16, #tpu.memory_space<vmem>>, vector<4x4x128xbf16>
    %29 = tpu.concatenate %26, %27, %28 in 2 : vector<4x4x128xbf16>, vector<4x4x128xbf16>, vector<4x4x128xbf16> -> vector<4x4x384xbf16>
    %30 = vector.shape_cast %29 : vector<4x4x384xbf16> to vector<16x384xbf16>
    %c2_49 = arith.constant 2 : index
    %c0_50 = arith.constant 0 : index
    %c0_51 = arith.constant 0 : index
    %31 = vector.load %arg2[%c2_49, %c0_50, %c0_51] : memref<3x384x128xbf16, #tpu.memory_space<vmem>>, vector<1x384x128xbf16>
    %32 = vector.shape_cast %31 : vector<1x384x128xbf16> to vector<384x128xbf16>
    %cst_52 = arith.constant dense<0.000000e+00> : vector<16x128xf32>
    %33 = tpu.matmul %30, %32, %cst_52 {dimension_numbers = #tpu.dot_dimension_numbers<[1], [0], [0], [1], [0, 0, 1, 1], [], []>} : vector<16x384xbf16>, vector<384x128xbf16>, vector<16x128xf32> -> vector<16x128xf32>
    %34 = arith.addf %25, %33 : vector<16x128xf32>
    %c0_53 = arith.constant 0 : index
    %c0_54 = arith.constant 0 : index
    %35 = vector.load %arg3[%c0_53, %c0_54] : memref<1x128xf32, #tpu.memory_space<vmem>>, vector<1x128xf32>
    %36 = vector.broadcast %35 : vector<1x128xf32> to vector<16x128xf32>
    %37 = arith.mulf %34, %36 : vector<16x128xf32>
    %c0_55 = arith.constant 0 : index
    %c0_56 = arith.constant 0 : index
    %38 = vector.load %arg4[%c0_55, %c0_56] : memref<1x128xf32, #tpu.memory_space<vmem>>, vector<1x128xf32>
    %39 = vector.broadcast %38 : vector<1x128xf32> to vector<16x128xf32>
    %40 = arith.addf %37, %39 : vector<16x128xf32>
    %41 = vector.shape_cast %40 : vector<16x128xf32> to vector<4x4x128xf32>
    %42 = arith.truncf %41 : vector<4x4x128xf32> to vector<4x4x128xbf16>
    %c0_57 = arith.constant 0 : index
    %c0_58 = arith.constant 0 : index
    %c0_59 = arith.constant 0 : index
    %c0_60 = arith.constant 0 : index
    %43 = vector.load %arg8[%c0_57, %c0_58, %c0_59, %c0_60] : memref<1x4x4x128xbf16, #tpu.memory_space<vmem>>, vector<1x4x4x128xbf16>
    %44 = vector.shape_cast %43 : vector<1x4x4x128xbf16> to vector<4x4x128xbf16>
    %45 = vector.shape_cast %42 : vector<4x4x128xbf16> to vector<1x4x4x128xbf16>
    tpu.vector_store %arg8[%c0_57, %c0_58, %c0_59, %c0_60], %45 {strides = array<i32>} : memref<1x4x4x128xbf16, #tpu.memory_space<vmem>>, vector<1x4x4x128xbf16>,
    %c0_61 = arith.constant 0 : index
    %c0_62 = arith.constant 0 : index
    %46 = vector.load %arg5[%c0_61, %c0_62] : memref<9x128xf32, #tpu.memory_space<vmem>>, vector<9x128xf32>
    %c0_63 = arith.constant 0 : index
    %c1_64 = arith.constant 1 : index
    %c0_65 = arith.constant 0 : index
    %47 = vector.load %arg10[%c0_63, %c1_64, %c0_65] : memref<6x8x128xbf16, #tpu.memory_space<vmem>>, vector<4x4x128xbf16>
    %48 = vector.extract_strided_slice %46 {offsets = [0, 0], sizes = [1, 128], strides = [1, 1]} : vector<9x128xf32> to vector<1x128xf32>
    %49 = vector.shape_cast %48 : vector<1x128xf32> to vector<128xf32>
    %50 = vector.shape_cast %49 : vector<128xf32> to vector<1x1x128xf32>
    %51 = arith.extf %47 : vector<4x4x128xbf16> to vector<4x4x128xf32>
    %52 = vector.broadcast %50 : vector<1x1x128xf32> to vector<4x4x128xf32>
    %53 = arith.mulf %51, %52 : vector<4x4x128xf32>
    %c0_66 = arith.constant 0 : index
    %c2_67 = arith.constant 2 : index
    %c0_68 = arith.constant 0 : index
    %54 = vector.load %arg10[%c0_66, %c2_67, %c0_68] : memref<6x8x128xbf16, #tpu.memory_space<vmem>>, vector<4x4x128xbf16>
    %55 = vector.extract_strided_slice %46 {offsets = [1, 0], sizes = [1, 128], strides = [1, 1]} : vector<9x128xf32> to vector<1x128xf32>
    %56 = vector.shape_cast %55 : vector<1x128xf32> to vector<128xf32>
    %57 = vector.shape_cast %56 : vector<128xf32> to vector<1x1x128xf32>
    %58 = arith.extf %54 : vector<4x4x128xbf16> to vector<4x4x128xf32>
    %59 = vector.broadcast %57 : vector<1x1x128xf32> to vector<4x4x128xf32>
    %60 = arith.mulf %58, %59 : vector<4x4x128xf32>
    %61 = arith.addf %53, %60 : vector<4x4x128xf32>
    %c0_69 = arith.constant 0 : index
    %c3_70 = arith.constant 3 : index
    %c0_71 = arith.constant 0 : index
    %62 = vector.load %arg10[%c0_69, %c3_70, %c0_71] : memref<6x8x128xbf16, #tpu.memory_space<vmem>>, vector<4x4x128xbf16>
    %63 = vector.extract_strided_slice %46 {offsets = [2, 0], sizes = [1, 128], strides = [1, 1]} : vector<9x128xf32> to vector<1x128xf32>
    %64 = vector.shape_cast %63 : vector<1x128xf32> to vector<128xf32>
    %65 = vector.shape_cast %64 : vector<128xf32> to vector<1x1x128xf32>
    %66 = arith.extf %62 : vector<4x4x128xbf16> to vector<4x4x128xf32>
    %67 = vector.broadcast %65 : vector<1x1x128xf32> to vector<4x4x128xf32>
    %68 = arith.mulf %66, %67 : vector<4x4x128xf32>
    %69 = arith.addf %61, %68 : vector<4x4x128xf32>
    %c1_72 = arith.constant 1 : index
    %c1_73 = arith.constant 1 : index
    %c0_74 = arith.constant 0 : index
    %70 = vector.load %arg10[%c1_72, %c1_73, %c0_74] : memref<6x8x128xbf16, #tpu.memory_space<vmem>>, vector<4x4x128xbf16>
    %71 = vector.extract_strided_slice %46 {offsets = [3, 0], sizes = [1, 128], strides = [1, 1]} : vector<9x128xf32> to vector<1x128xf32>
    %72 = vector.shape_cast %71 : vector<1x128xf32> to vector<128xf32>
    %73 = vector.shape_cast %72 : vector<128xf32> to vector<1x1x128xf32>
    %74 = arith.extf %70 : vector<4x4x128xbf16> to vector<4x4x128xf32>
    %75 = vector.broadcast %73 : vector<1x1x128xf32> to vector<4x4x128xf32>
    %76 = arith.mulf %74, %75 : vector<4x4x128xf32>
    %77 = arith.addf %69, %76 : vector<4x4x128xf32>
    %c1_75 = arith.constant 1 : index
    %c2_76 = arith.constant 2 : index
    %c0_77 = arith.constant 0 : index
    %78 = vector.load %arg10[%c1_75, %c2_76, %c0_77] : memref<6x8x128xbf16, #tpu.memory_space<vmem>>, vector<4x4x128xbf16>
    %79 = vector.extract_strided_slice %46 {offsets = [4, 0], sizes = [1, 128], strides = [1, 1]} : vector<9x128xf32> to vector<1x128xf32>
    %80 = vector.shape_cast %79 : vector<1x128xf32> to vector<128xf32>
    %81 = vector.shape_cast %80 : vector<128xf32> to vector<1x1x128xf32>
    %82 = arith.extf %78 : vector<4x4x128xbf16> to vector<4x4x128xf32>
    %83 = vector.broadcast %81 : vector<1x1x128xf32> to vector<4x4x128xf32>
    %84 = arith.mulf %82, %83 : vector<4x4x128xf32>
    %85 = arith.addf %77, %84 : vector<4x4x128xf32>
    %c1_78 = arith.constant 1 : index
    %c3_79 = arith.constant 3 : index
    %c0_80 = arith.constant 0 : index
    %86 = vector.load %arg10[%c1_78, %c3_79, %c0_80] : memref<6x8x128xbf16, #tpu.memory_space<vmem>>, vector<4x4x128xbf16>
    %87 = vector.extract_strided_slice %46 {offsets = [5, 0], sizes = [1, 128], strides = [1, 1]} : vector<9x128xf32> to vector<1x128xf32>
    %88 = vector.shape_cast %87 : vector<1x128xf32> to vector<128xf32>
    %89 = vector.shape_cast %88 : vector<128xf32> to vector<1x1x128xf32>
    %90 = arith.extf %86 : vector<4x4x128xbf16> to vector<4x4x128xf32>
    %91 = vector.broadcast %89 : vector<1x1x128xf32> to vector<4x4x128xf32>
    %92 = arith.mulf %90, %91 : vector<4x4x128xf32>
    %93 = arith.addf %85, %92 : vector<4x4x128xf32>
    %c2_81 = arith.constant 2 : index
    %c1_82 = arith.constant 1 : index
    %c0_83 = arith.constant 0 : index
    %94 = vector.load %arg10[%c2_81, %c1_82, %c0_83] : memref<6x8x128xbf16, #tpu.memory_space<vmem>>, vector<4x4x128xbf16>
    %95 = vector.extract_strided_slice %46 {offsets = [6, 0], sizes = [1, 128], strides = [1, 1]} : vector<9x128xf32> to vector<1x128xf32>
    %96 = vector.shape_cast %95 : vector<1x128xf32> to vector<128xf32>
    %97 = vector.shape_cast %96 : vector<128xf32> to vector<1x1x128xf32>
    %98 = arith.extf %94 : vector<4x4x128xbf16> to vector<4x4x128xf32>
    %99 = vector.broadcast %97 : vector<1x1x128xf32> to vector<4x4x128xf32>
    %100 = arith.mulf %98, %99 : vector<4x4x128xf32>
    %101 = arith.addf %93, %100 : vector<4x4x128xf32>
    %c2_84 = arith.constant 2 : index
    %c2_85 = arith.constant 2 : index
    %c0_86 = arith.constant 0 : index
    %102 = vector.load %arg10[%c2_84, %c2_85, %c0_86] : memref<6x8x128xbf16, #tpu.memory_space<vmem>>, vector<4x4x128xbf16>
    %103 = vector.extract_strided_slice %46 {offsets = [7, 0], sizes = [1, 128], strides = [1, 1]} : vector<9x128xf32> to vector<1x128xf32>
    %104 = vector.shape_cast %103 : vector<1x128xf32> to vector<128xf32>
    %105 = vector.shape_cast %104 : vector<128xf32> to vector<1x1x128xf32>
    %106 = arith.extf %102 : vector<4x4x128xbf16> to vector<4x4x128xf32>
    %107 = vector.broadcast %105 : vector<1x1x128xf32> to vector<4x4x128xf32>
    %108 = arith.mulf %106, %107 : vector<4x4x128xf32>
    %109 = arith.addf %101, %108 : vector<4x4x128xf32>
    %c2_87 = arith.constant 2 : index
    %c3_88 = arith.constant 3 : index
    %c0_89 = arith.constant 0 : index
    %110 = vector.load %arg10[%c2_87, %c3_88, %c0_89] : memref<6x8x128xbf16, #tpu.memory_space<vmem>>, vector<4x4x128xbf16>
    %111 = vector.extract_strided_slice %46 {offsets = [8, 0], sizes = [1, 128], strides = [1, 1]} : vector<9x128xf32> to vector<1x128xf32>
    %112 = vector.shape_cast %111 : vector<1x128xf32> to vector<128xf32>
    %113 = vector.shape_cast %112 : vector<128xf32> to vector<1x1x128xf32>
    %114 = arith.extf %110 : vector<4x4x128xbf16> to vector<4x4x128xf32>
    %115 = vector.broadcast %113 : vector<1x1x128xf32> to vector<4x4x128xf32>
    %116 = arith.mulf %114, %115 : vector<4x4x128xf32>
    %117 = arith.addf %109, %116 : vector<4x4x128xf32>
    %118 = vector.shape_cast %117 : vector<4x4x128xf32> to vector<16x128xf32>
    %119 = arith.truncf %118 : vector<16x128xf32> to vector<16x128xbf16>
    %c0_90 = arith.constant 0 : index
    %c0_91 = arith.constant 0 : index
    %120 = vector.load %arg6[%c0_90, %c0_91] : memref<128x128xbf16, #tpu.memory_space<vmem>>, vector<128x128xbf16>
    %cst_92 = arith.constant dense<0.000000e+00> : vector<16x128xf32>
    %121 = tpu.matmul %119, %120, %cst_92 {dimension_numbers = #tpu.dot_dimension_numbers<[1], [0], [0], [1], [0, 0, 1, 1], [], []>} : vector<16x128xbf16>, vector<128x128xbf16>, vector<16x128xf32> -> vector<16x128xf32>
    %c0_93 = arith.constant 0 : index
    %c0_94 = arith.constant 0 : index
    %122 = vector.load %arg7[%c0_93, %c0_94] : memref<1x128xf32, #tpu.memory_space<vmem>>, vector<1x128xf32>
    %123 = vector.broadcast %122 : vector<1x128xf32> to vector<16x128xf32>
    %124 = arith.addf %121, %123 : vector<16x128xf32>
    %125 = vector.shape_cast %124 : vector<16x128xf32> to vector<4x4x128xf32>
    %126 = arith.truncf %125 : vector<4x4x128xf32> to vector<4x4x128xbf16>
    %c0_95 = arith.constant 0 : index
    %c0_96 = arith.constant 0 : index
    %c0_97 = arith.constant 0 : index
    %c0_98 = arith.constant 0 : index
    %127 = vector.load %arg9[%c0_95, %c0_96, %c0_97, %c0_98] : memref<1x4x4x128xbf16, #tpu.memory_space<vmem>>, vector<1x4x4x128xbf16>
    %128 = vector.shape_cast %127 : vector<1x4x4x128xbf16> to vector<4x4x128xbf16>
    %129 = vector.shape_cast %126 : vector<4x4x128xbf16> to vector<1x4x4x128xbf16>
    tpu.vector_store %arg9[%c0_95, %c0_96, %c0_97, %c0_98], %129 {strides = array<i32>} : memref<1x4x4x128xbf16, #tpu.memory_space<vmem>>, vector<1x4x4x128xbf16>,
    return
  }
  func.func @transform_0(%arg0: i32) -> (i32, i32, i32, i32) {
    %c0_i32 = arith.constant 0 : i32
    %c0_i32_0 = arith.constant 0 : i32
    %c0_i32_1 = arith.constant 0 : i32
    %c0_i32_2 = arith.constant 0 : i32
    return %arg0, %c0_i32, %c0_i32_0, %c0_i32_1 : i32, i32, i32, i32
  }
  func.func @transform_1(%arg0: i32) -> (i32, i32, i32) {
    %c0_i32 = arith.constant 0 : i32
    %c0_i32_0 = arith.constant 0 : i32
    %c0_i32_1 = arith.constant 0 : i32
    %c0_i32_2 = arith.constant 0 : i32
    return %c0_i32, %c0_i32_0, %c0_i32_1 : i32, i32, i32
  }
  func.func @transform_2(%arg0: i32) -> (i32, i32) {
    %c0_i32 = arith.constant 0 : i32
    %c0_i32_0 = arith.constant 0 : i32
    %c0_i32_1 = arith.constant 0 : i32
    return %c0_i32, %c0_i32_0 : i32, i32
  }
  func.func @transform_3(%arg0: i32) -> (i32, i32) {
    %c0_i32 = arith.constant 0 : i32
    %c0_i32_0 = arith.constant 0 : i32
    %c0_i32_1 = arith.constant 0 : i32
    return %c0_i32, %c0_i32_0 : i32, i32
  }
  func.func @transform_4(%arg0: i32) -> (i32, i32) {
    %c0_i32 = arith.constant 0 : i32
    %c0_i32_0 = arith.constant 0 : i32
    %c0_i32_1 = arith.constant 0 : i32
    return %c0_i32, %c0_i32_0 : i32, i32
  }
  func.func @transform_5(%arg0: i32) -> (i32, i32) {
    %c0_i32 = arith.constant 0 : i32
    %c0_i32_0 = arith.constant 0 : i32
    %c0_i32_1 = arith.constant 0 : i32
    return %c0_i32, %c0_i32_0 : i32, i32
  }
  func.func @transform_6(%arg0: i32) -> (i32, i32) {
    %c0_i32 = arith.constant 0 : i32
    %c0_i32_0 = arith.constant 0 : i32
    %c0_i32_1 = arith.constant 0 : i32
    return %c0_i32, %c0_i32_0 : i32, i32
  }
  func.func @transform_7(%arg0: i32) -> (i32, i32, i32, i32) {
    %c0_i32 = arith.constant 0 : i32
    %c0_i32_0 = arith.constant 0 : i32
    %c0_i32_1 = arith.constant 0 : i32
    %c0_i32_2 = arith.constant 0 : i32
    return %arg0, %c0_i32, %c0_i32_0, %c0_i32_1 : i32, i32, i32, i32
  }
  func.func @transform_8(%arg0: i32) -> (i32, i32, i32, i32) {
    %c0_i32 = arith.constant 0 : i32
    %c0_i32_0 = arith.constant 0 : i32
    %c0_i32_1 = arith.constant 0 : i32
    %c0_i32_2 = arith.constant 0 : i32
    return %arg0, %c0_i32, %c0_i32_0, %c0_i32_1 : i32, i32, i32, i32
  }
}

module attributes {stable_mosaic.version = 11 : i64} {
  func.func @_fuse_conv_kernel(%arg0: i32, %arg1: memref<1x16x16x128xbf16, #tpu.memory_space<vmem>>, %arg2: memref<1x4x4x128xbf16, #tpu.memory_space<vmem>>, %arg3: memref<1x4x4x128xbf16, #tpu.memory_space<vmem>>, %arg4: memref<1x4x4x128xbf16, #tpu.memory_space<vmem>>, %arg5: memref<3x384x128xbf16, #tpu.memory_space<vmem>>, %arg6: memref<1x128xf32, #tpu.memory_space<vmem>>, %arg7: memref<1x128xf32, #tpu.memory_space<vmem>>, %arg8: memref<1x16x16x128xbf16, #tpu.memory_space<vmem>>, %arg9: memref<18x20x128xbf16, #tpu.memory_space<vmem>>) attributes {dimension_semantics = [#tpu.dimension_semantics<parallel>], iteration_bounds = array<i64: 2>, scalar_prefetch = 0 : i64, scratch_operands = 1 : i64, tpu.core_type = #tpu.core_type<tc>, window_params = [{transform_indices = @transform_0, window_bounds = array<i64: 1, 16, 16, 128>}, {transform_indices = @transform_1, window_bounds = array<i64: 1, 4, 4, 128>}, {transform_indices = @transform_2, window_bounds = array<i64: 1, 4, 4, 128>}, {transform_indices = @transform_3, window_bounds = array<i64: 1, 4, 4, 128>}, {pipeline_mode = #tpu.pipeline_mode<synchronous>, transform_indices = @transform_4, window_bounds = array<i64: 3, 384, 128>}, {pipeline_mode = #tpu.pipeline_mode<synchronous>, transform_indices = @transform_5, window_bounds = array<i64: 1, 128>}, {pipeline_mode = #tpu.pipeline_mode<synchronous>, transform_indices = @transform_6, window_bounds = array<i64: 1, 128>}, {transform_indices = @transform_7, window_bounds = array<i64: 1, 16, 16, 128>}]} {
    %c0 = arith.constant 0 : index
    %c0_0 = arith.constant 0 : index
    %c0_1 = arith.constant 0 : index
    %c0_2 = arith.constant 0 : index
    %0 = vector.load %arg2[%c0, %c0_0, %c0_1, %c0_2] : memref<1x4x4x128xbf16, #tpu.memory_space<vmem>>, vector<1x4x4x128xbf16>
    %1 = vector.shape_cast %0 : vector<1x4x4x128xbf16> to vector<4x4x128xbf16>
    %2 = arith.extf %1 : vector<4x4x128xbf16> to vector<4x4x128xf32>
    %3 = arith.negf %2 : vector<4x4x128xf32>
    %4 = math.exp %3 : vector<4x4x128xf32>
    %cst = arith.constant 1.000000e+00 : f32
    %5 = vector.broadcast %cst : f32 to vector<4x4x128xf32>
    %6 = arith.addf %5, %4 : vector<4x4x128xf32>
    %7 = arith.divf %5, %6 : vector<4x4x128xf32>
    %c0_3 = arith.constant 0 : index
    %c0_4 = arith.constant 0 : index
    %c0_5 = arith.constant 0 : index
    %c0_6 = arith.constant 0 : index
    %8 = vector.load %arg3[%c0_3, %c0_4, %c0_5, %c0_6] : memref<1x4x4x128xbf16, #tpu.memory_space<vmem>>, vector<1x4x4x128xbf16>
    %9 = vector.shape_cast %8 : vector<1x4x4x128xbf16> to vector<4x4x128xbf16>
    %10 = arith.extf %9 : vector<4x4x128xbf16> to vector<4x4x128xf32>
    %c0_7 = arith.constant 0 : index
    %c0_8 = arith.constant 0 : index
    %c0_9 = arith.constant 0 : index
    %c0_10 = arith.constant 0 : index
    %11 = vector.load %arg4[%c0_7, %c0_8, %c0_9, %c0_10] : memref<1x4x4x128xbf16, #tpu.memory_space<vmem>>, vector<1x4x4x128xbf16>
    %12 = vector.shape_cast %11 : vector<1x4x4x128xbf16> to vector<4x4x128xbf16>
    %13 = arith.extf %12 : vector<4x4x128xbf16> to vector<4x4x128xf32>
    %14 = arith.negf %13 : vector<4x4x128xf32>
    %15 = math.exp %14 : vector<4x4x128xf32>
    %cst_11 = arith.constant 1.000000e+00 : f32
    %16 = vector.broadcast %cst_11 : f32 to vector<4x4x128xf32>
    %17 = arith.addf %16, %15 : vector<4x4x128xf32>
    %18 = arith.divf %16, %17 : vector<4x4x128xf32>
    %19 = arith.mulf %10, %18 : vector<4x4x128xf32>
    %c0_12 = arith.constant 0 : index
    %c0_13 = arith.constant 0 : index
    %c0_14 = arith.constant 0 : index
    %c0_15 = arith.constant 0 : index
    %20 = vector.load %arg1[%c0_12, %c0_13, %c0_14, %c0_15] : memref<1x16x16x128xbf16, #tpu.memory_space<vmem>>, vector<1x16x16x128xbf16>
    %21 = vector.shape_cast %20 : vector<1x16x16x128xbf16> to vector<16x16x128xbf16>
    %22 = arith.extf %21 : vector<16x16x128xbf16> to vector<16x16x128xf32>
    %23 = vector.shape_cast %7 : vector<4x4x128xf32> to vector<4x4x1x128xf32>
    %24 = vector.shape_cast %23 : vector<4x4x1x128xf32> to vector<4x4x1x128xf32>
    %25 = vector.broadcast %24 : vector<4x4x1x128xf32> to vector<4x4x4x128xf32>
    %26 = vector.shape_cast %25 : vector<4x4x4x128xf32> to vector<4x16x128xf32>
    %27 = vector.shape_cast %26 : vector<4x16x128xf32> to vector<4x1x16x128xf32>
    %28 = vector.shape_cast %27 : vector<4x1x16x128xf32> to vector<4x1x16x128xf32>
    %29 = vector.broadcast %28 : vector<4x1x16x128xf32> to vector<4x4x16x128xf32>
    %30 = vector.shape_cast %29 : vector<4x4x16x128xf32> to vector<16x16x128xf32>
    %31 = arith.mulf %22, %30 : vector<16x16x128xf32>
    %32 = vector.shape_cast %19 : vector<4x4x128xf32> to vector<4x4x1x128xf32>
    %33 = vector.shape_cast %32 : vector<4x4x1x128xf32> to vector<4x4x1x128xf32>
    %34 = vector.broadcast %33 : vector<4x4x1x128xf32> to vector<4x4x4x128xf32>
    %35 = vector.shape_cast %34 : vector<4x4x4x128xf32> to vector<4x16x128xf32>
    %36 = vector.shape_cast %35 : vector<4x16x128xf32> to vector<4x1x16x128xf32>
    %37 = vector.shape_cast %36 : vector<4x1x16x128xf32> to vector<4x1x16x128xf32>
    %38 = vector.broadcast %37 : vector<4x1x16x128xf32> to vector<4x4x16x128xf32>
    %39 = vector.shape_cast %38 : vector<4x4x16x128xf32> to vector<16x16x128xf32>
    %40 = arith.addf %31, %39 : vector<16x16x128xf32>
    %41 = arith.truncf %40 : vector<16x16x128xf32> to vector<16x16x128xbf16>
    %cst_16 = arith.constant 0.000000e+00 : bf16
    %42 = vector.broadcast %cst_16 : bf16 to vector<1x20x128xbf16>
    %c0_17 = arith.constant 0 : index
    %c0_18 = arith.constant 0 : index
    %c0_19 = arith.constant 0 : index
    %43 = vector.load %arg9[%c0_17, %c0_18, %c0_19] : memref<18x20x128xbf16, #tpu.memory_space<vmem>>, vector<1x20x128xbf16>
    tpu.vector_store %arg9[%c0_17, %c0_18, %c0_19], %42 {strides = array<i32>} : memref<18x20x128xbf16, #tpu.memory_space<vmem>>, vector<1x20x128xbf16>,
    %c17 = arith.constant 17 : index
    %c0_20 = arith.constant 0 : index
    %c0_21 = arith.constant 0 : index
    %44 = vector.load %arg9[%c17, %c0_20, %c0_21] : memref<18x20x128xbf16, #tpu.memory_space<vmem>>, vector<1x20x128xbf16>
    tpu.vector_store %arg9[%c17, %c0_20, %c0_21], %42 {strides = array<i32>} : memref<18x20x128xbf16, #tpu.memory_space<vmem>>, vector<1x20x128xbf16>,
    %cst_22 = arith.constant 0.000000e+00 : bf16
    %45 = vector.broadcast %cst_22 : bf16 to vector<16x2x128xbf16>
    %c1 = arith.constant 1 : index
    %c0_23 = arith.constant 0 : index
    %c0_24 = arith.constant 0 : index
    %46 = vector.load %arg9[%c1, %c0_23, %c0_24] : memref<18x20x128xbf16, #tpu.memory_space<vmem>>, vector<16x2x128xbf16>
    tpu.vector_store %arg9[%c1, %c0_23, %c0_24], %45 {strides = array<i32>} : memref<18x20x128xbf16, #tpu.memory_space<vmem>>, vector<16x2x128xbf16>,
    %c1_25 = arith.constant 1 : index
    %c18 = arith.constant 18 : index
    %c0_26 = arith.constant 0 : index
    %47 = vector.load %arg9[%c1_25, %c18, %c0_26] : memref<18x20x128xbf16, #tpu.memory_space<vmem>>, vector<16x2x128xbf16>
    tpu.vector_store %arg9[%c1_25, %c18, %c0_26], %45 {strides = array<i32>} : memref<18x20x128xbf16, #tpu.memory_space<vmem>>, vector<16x2x128xbf16>,
    %c1_27 = arith.constant 1 : index
    %c2 = arith.constant 2 : index
    %c0_28 = arith.constant 0 : index
    %48 = vector.load %arg9[%c1_27, %c2, %c0_28] : memref<18x20x128xbf16, #tpu.memory_space<vmem>>, vector<16x16x128xbf16>
    tpu.vector_store %arg9[%c1_27, %c2, %c0_28], %41 {strides = array<i32>} : memref<18x20x128xbf16, #tpu.memory_space<vmem>>, vector<16x16x128xbf16>,
    %c0_29 = arith.constant 0 : index
    %c1_30 = arith.constant 1 : index
    %c0_31 = arith.constant 0 : index
    %49 = vector.load %arg9[%c0_29, %c1_30, %c0_31] : memref<18x20x128xbf16, #tpu.memory_space<vmem>>, vector<16x16x128xbf16>
    %c0_32 = arith.constant 0 : index
    %c2_33 = arith.constant 2 : index
    %c0_34 = arith.constant 0 : index
    %50 = vector.load %arg9[%c0_32, %c2_33, %c0_34] : memref<18x20x128xbf16, #tpu.memory_space<vmem>>, vector<16x16x128xbf16>
    %c0_35 = arith.constant 0 : index
    %c3 = arith.constant 3 : index
    %c0_36 = arith.constant 0 : index
    %51 = vector.load %arg9[%c0_35, %c3, %c0_36] : memref<18x20x128xbf16, #tpu.memory_space<vmem>>, vector<16x16x128xbf16>
    %52 = tpu.concatenate %49, %50, %51 in 2 : vector<16x16x128xbf16>, vector<16x16x128xbf16>, vector<16x16x128xbf16> -> vector<16x16x384xbf16>
    %53 = vector.shape_cast %52 : vector<16x16x384xbf16> to vector<256x384xbf16>
    %c0_37 = arith.constant 0 : index
    %c0_38 = arith.constant 0 : index
    %c0_39 = arith.constant 0 : index
    %54 = vector.load %arg5[%c0_37, %c0_38, %c0_39] : memref<3x384x128xbf16, #tpu.memory_space<vmem>>, vector<1x384x128xbf16>
    %55 = vector.shape_cast %54 : vector<1x384x128xbf16> to vector<384x128xbf16>
    %cst_40 = arith.constant dense<0.000000e+00> : vector<256x128xf32>
    %56 = tpu.matmul %53, %55, %cst_40 {dimension_numbers = #tpu.dot_dimension_numbers<[1], [0], [0], [1], [0, 0, 1, 1], [], []>} : vector<256x384xbf16>, vector<384x128xbf16>, vector<256x128xf32> -> vector<256x128xf32>
    %c1_41 = arith.constant 1 : index
    %c1_42 = arith.constant 1 : index
    %c0_43 = arith.constant 0 : index
    %57 = vector.load %arg9[%c1_41, %c1_42, %c0_43] : memref<18x20x128xbf16, #tpu.memory_space<vmem>>, vector<16x16x128xbf16>
    %c1_44 = arith.constant 1 : index
    %c2_45 = arith.constant 2 : index
    %c0_46 = arith.constant 0 : index
    %58 = vector.load %arg9[%c1_44, %c2_45, %c0_46] : memref<18x20x128xbf16, #tpu.memory_space<vmem>>, vector<16x16x128xbf16>
    %c1_47 = arith.constant 1 : index
    %c3_48 = arith.constant 3 : index
    %c0_49 = arith.constant 0 : index
    %59 = vector.load %arg9[%c1_47, %c3_48, %c0_49] : memref<18x20x128xbf16, #tpu.memory_space<vmem>>, vector<16x16x128xbf16>
    %60 = tpu.concatenate %57, %58, %59 in 2 : vector<16x16x128xbf16>, vector<16x16x128xbf16>, vector<16x16x128xbf16> -> vector<16x16x384xbf16>
    %61 = vector.shape_cast %60 : vector<16x16x384xbf16> to vector<256x384xbf16>
    %c1_50 = arith.constant 1 : index
    %c0_51 = arith.constant 0 : index
    %c0_52 = arith.constant 0 : index
    %62 = vector.load %arg5[%c1_50, %c0_51, %c0_52] : memref<3x384x128xbf16, #tpu.memory_space<vmem>>, vector<1x384x128xbf16>
    %63 = vector.shape_cast %62 : vector<1x384x128xbf16> to vector<384x128xbf16>
    %cst_53 = arith.constant dense<0.000000e+00> : vector<256x128xf32>
    %64 = tpu.matmul %61, %63, %cst_53 {dimension_numbers = #tpu.dot_dimension_numbers<[1], [0], [0], [1], [0, 0, 1, 1], [], []>} : vector<256x384xbf16>, vector<384x128xbf16>, vector<256x128xf32> -> vector<256x128xf32>
    %65 = arith.addf %56, %64 : vector<256x128xf32>
    %c2_54 = arith.constant 2 : index
    %c1_55 = arith.constant 1 : index
    %c0_56 = arith.constant 0 : index
    %66 = vector.load %arg9[%c2_54, %c1_55, %c0_56] : memref<18x20x128xbf16, #tpu.memory_space<vmem>>, vector<16x16x128xbf16>
    %c2_57 = arith.constant 2 : index
    %c2_58 = arith.constant 2 : index
    %c0_59 = arith.constant 0 : index
    %67 = vector.load %arg9[%c2_57, %c2_58, %c0_59] : memref<18x20x128xbf16, #tpu.memory_space<vmem>>, vector<16x16x128xbf16>
    %c2_60 = arith.constant 2 : index
    %c3_61 = arith.constant 3 : index
    %c0_62 = arith.constant 0 : index
    %68 = vector.load %arg9[%c2_60, %c3_61, %c0_62] : memref<18x20x128xbf16, #tpu.memory_space<vmem>>, vector<16x16x128xbf16>
    %69 = tpu.concatenate %66, %67, %68 in 2 : vector<16x16x128xbf16>, vector<16x16x128xbf16>, vector<16x16x128xbf16> -> vector<16x16x384xbf16>
    %70 = vector.shape_cast %69 : vector<16x16x384xbf16> to vector<256x384xbf16>
    %c2_63 = arith.constant 2 : index
    %c0_64 = arith.constant 0 : index
    %c0_65 = arith.constant 0 : index
    %71 = vector.load %arg5[%c2_63, %c0_64, %c0_65] : memref<3x384x128xbf16, #tpu.memory_space<vmem>>, vector<1x384x128xbf16>
    %72 = vector.shape_cast %71 : vector<1x384x128xbf16> to vector<384x128xbf16>
    %cst_66 = arith.constant dense<0.000000e+00> : vector<256x128xf32>
    %73 = tpu.matmul %70, %72, %cst_66 {dimension_numbers = #tpu.dot_dimension_numbers<[1], [0], [0], [1], [0, 0, 1, 1], [], []>} : vector<256x384xbf16>, vector<384x128xbf16>, vector<256x128xf32> -> vector<256x128xf32>
    %74 = arith.addf %65, %73 : vector<256x128xf32>
    %c0_67 = arith.constant 0 : index
    %c0_68 = arith.constant 0 : index
    %75 = vector.load %arg6[%c0_67, %c0_68] : memref<1x128xf32, #tpu.memory_space<vmem>>, vector<1x128xf32>
    %76 = vector.broadcast %75 : vector<1x128xf32> to vector<256x128xf32>
    %77 = arith.mulf %74, %76 : vector<256x128xf32>
    %c0_69 = arith.constant 0 : index
    %c0_70 = arith.constant 0 : index
    %78 = vector.load %arg7[%c0_69, %c0_70] : memref<1x128xf32, #tpu.memory_space<vmem>>, vector<1x128xf32>
    %79 = vector.broadcast %78 : vector<1x128xf32> to vector<256x128xf32>
    %80 = arith.addf %77, %79 : vector<256x128xf32>
    %cst_71 = arith.constant 0.000000e+00 : f32
    %81 = vector.broadcast %cst_71 : f32 to vector<256x128xf32>
    %82 = arith.maximumf %80, %81 : vector<256x128xf32>
    %83 = vector.shape_cast %82 : vector<256x128xf32> to vector<16x16x128xf32>
    %84 = arith.truncf %83 : vector<16x16x128xf32> to vector<16x16x128xbf16>
    %c0_72 = arith.constant 0 : index
    %c0_73 = arith.constant 0 : index
    %c0_74 = arith.constant 0 : index
    %c0_75 = arith.constant 0 : index
    %85 = vector.load %arg8[%c0_72, %c0_73, %c0_74, %c0_75] : memref<1x16x16x128xbf16, #tpu.memory_space<vmem>>, vector<1x16x16x128xbf16>
    %86 = vector.shape_cast %85 : vector<1x16x16x128xbf16> to vector<16x16x128xbf16>
    %87 = vector.shape_cast %84 : vector<16x16x128xbf16> to vector<1x16x16x128xbf16>
    tpu.vector_store %arg8[%c0_72, %c0_73, %c0_74, %c0_75], %87 {strides = array<i32>} : memref<1x16x16x128xbf16, #tpu.memory_space<vmem>>, vector<1x16x16x128xbf16>,
    return
  }
  func.func @transform_0(%arg0: i32) -> (i32, i32, i32, i32) {
    %c0_i32 = arith.constant 0 : i32
    %c0_i32_0 = arith.constant 0 : i32
    %c0_i32_1 = arith.constant 0 : i32
    %c0_i32_2 = arith.constant 0 : i32
    return %arg0, %c0_i32, %c0_i32_0, %c0_i32_1 : i32, i32, i32, i32
  }
  func.func @transform_1(%arg0: i32) -> (i32, i32, i32, i32) {
    %c0_i32 = arith.constant 0 : i32
    %c0_i32_0 = arith.constant 0 : i32
    %c0_i32_1 = arith.constant 0 : i32
    %c0_i32_2 = arith.constant 0 : i32
    return %arg0, %c0_i32, %c0_i32_0, %c0_i32_1 : i32, i32, i32, i32
  }
  func.func @transform_2(%arg0: i32) -> (i32, i32, i32, i32) {
    %c0_i32 = arith.constant 0 : i32
    %c0_i32_0 = arith.constant 0 : i32
    %c0_i32_1 = arith.constant 0 : i32
    %c0_i32_2 = arith.constant 0 : i32
    return %arg0, %c0_i32, %c0_i32_0, %c0_i32_1 : i32, i32, i32, i32
  }
  func.func @transform_3(%arg0: i32) -> (i32, i32, i32, i32) {
    %c0_i32 = arith.constant 0 : i32
    %c0_i32_0 = arith.constant 0 : i32
    %c0_i32_1 = arith.constant 0 : i32
    %c0_i32_2 = arith.constant 0 : i32
    return %arg0, %c0_i32, %c0_i32_0, %c0_i32_1 : i32, i32, i32, i32
  }
  func.func @transform_4(%arg0: i32) -> (i32, i32, i32) {
    %c0_i32 = arith.constant 0 : i32
    %c0_i32_0 = arith.constant 0 : i32
    %c0_i32_1 = arith.constant 0 : i32
    %c0_i32_2 = arith.constant 0 : i32
    return %c0_i32, %c0_i32_0, %c0_i32_1 : i32, i32, i32
  }
  func.func @transform_5(%arg0: i32) -> (i32, i32) {
    %c0_i32 = arith.constant 0 : i32
    %c0_i32_0 = arith.constant 0 : i32
    %c0_i32_1 = arith.constant 0 : i32
    return %c0_i32, %c0_i32_0 : i32, i32
  }
  func.func @transform_6(%arg0: i32) -> (i32, i32) {
    %c0_i32 = arith.constant 0 : i32
    %c0_i32_0 = arith.constant 0 : i32
    %c0_i32_1 = arith.constant 0 : i32
    return %c0_i32, %c0_i32_0 : i32, i32
  }
  func.func @transform_7(%arg0: i32) -> (i32, i32, i32, i32) {
    %c0_i32 = arith.constant 0 : i32
    %c0_i32_0 = arith.constant 0 : i32
    %c0_i32_1 = arith.constant 0 : i32
    %c0_i32_2 = arith.constant 0 : i32
    return %arg0, %c0_i32, %c0_i32_0, %c0_i32_1 : i32, i32, i32, i32
  }
}

</mosaic_0001>

<bundles_post_ra>
// kernel: bga_forward.4
= control target key start
LH: loop header
LB: loop body
LE: loop exit
PB: predicated region body
PF: predicated region fallthrough
CT: control target
= control target key end

     0   :  { %s4130_s0 = inlined_call_operand.hbm [shape: bf16[2,4,4,128], index: 0, kind: input, shape index: {}]   ;;  %s4131_s1 = inlined_call_operand.hbm [shape: bf16[3,384,128], index: 1, kind: input, shape index: {}]   ;;  %s4132_s2 = inlined_call_operand.hbm [shape: f32[1,128], index: 2, kind: input, shape index: {}]   ;;  %s4133_s3 = inlined_call_operand.hbm [shape: f32[1,128], index: 3, kind: input, shape index: {}]   ;;  %s4134_s4 = inlined_call_operand.hbm [shape: f32[9,128], index: 4, kind: input, shape index: {}]   ;;  %s4135_s5 = inlined_call_operand.hbm [shape: bf16[128,128], index: 5, kind: input, shape index: {}]   ;;  %s4136_s6 = inlined_call_operand.hbm [shape: f32[1,128], index: 6, kind: input, shape index: {}]   ;;  %s4137_s7 = inlined_call_operand.hbm [shape: bf16[2,4,4,128], index: 7, kind: output, shape index: {0}]   ;;  %s4138_s8 = inlined_call_operand.hbm [shape: bf16[2,4,4,128], index: 8, kind: output, shape index: {1}]  }
   0x1   :  { %4142 = sst [smem:[#allocation24_spill]] %s4131_s1 }
   0x2   :  { %14 = vsyncpa [#allocation4], 0 }
   0x3   :  { %16 = vsyncpa [#allocation4 + $0x1], 0 }
   0x4   :  { %17 = vsyncpa [#allocation7], 0 }
   0x5   :  { %18 = vsyncpa [#allocation10], 0 }
   0x6   :  { %19 = vsyncpa [#allocation13], 0 }
   0x7   :  { %20 = vsyncpa [#allocation5], 0 }
   0x8   :  { %22 = vsyncpa [#allocation5 + $0x1], 0 }
   0x9   :  { %23 = vsyncpa [#allocation17], 0 }
   0xa   :  { %25 = vsyncpa [#allocation17 + $0x1], 0  ;;  %s3599_s27 = smov 0   ;;  %s3601_s28 = smov 0  }
   0xb   :  { %s3603_s29 = smov 0   ;;  %s3605_s30 = smov 0  }
   0xc LB: > { %s3533_s9 = smov [#allocation6]   ;;  %s3620_s11 = sadd.s32 4294967295, %s3531_s30   ;;  %s3531_s30 = sphi %s3605_s30, %s4168_s30   ;;  %s3527_s29 = sphi %s3603_s29, %s4167_s29   ;;  %s3523_s28 = sphi %s3601_s28, %s4166_s28   ;;  %s3519_s27 = sphi %s3599_s27, %s4165_s27  }
   0xd   : > { %s252_s10 = sshll.u32 %s3533_s9, 4  ;;  %p2651_p0 = scmp.ge.s32.totalorder %s3531_s30, 1  ;;  %s3625_s10 = int_to_ptr.vmem [resolvable:$true] %s252_s10 }
   0xe   : > { %p4139_p1 = scmp.eq.s32.totalorder %s3620_s11, 0  ;;  %p240_p2 = scmp.lt.s32.totalorder %s3531_s30, 3 }
   0xf   : > { %s3534_s13 = smov [#allocation9]   ;;  %s3535_s16 = smov [#allocation12]  }
  0x10   : > { %p3627_p3 = pnand %p2651_p0, %p240_p2  ;;  %s277_s14 = sshll.u32 %s3534_s13, 4  ;;  %s3640_s14 = int_to_ptr.vmem [resolvable:$true] %s277_s14 }
  0x11   : > { %s300_s17 = sshll.u32 %s3535_s16, 4  ;;  %s4145_s1 = sld [smem:[#allocation24_spill]]  ;;  %s3642_s17 = int_to_ptr.vmem [resolvable:$true] %s300_s17 }
  0x12   : > { %s4143_s12 = scalar_select %p3627_p3, 1, 0 }
  0x13   : > { %p3025_p5 = pneg %p3627_p3 }
  0x15   : > { %p3636_p6 = pnand %p3025_p5, %p4139_p1 }
  0x17   : > { %s3223_s20 = scalar_lea.hbm %s4145_s1, 9216  ;;  %p3652_p8 = pneg %p3636_p6 }
  0x18   : > { %p3224_p7 = scmp.ne.s32.totalorder %s4145_s1, %s3223_s20  ;;  %p3230_p11 = scmp.lt.u32.totalorder %s3223_s20, %s4145_s1 }
  0x1a   : > { %p3226_p9 = pnand %p3652_p8, %p3224_p7 }
  0x1c   : > { %p3227_p10 = pneg %p3226_p9 }
  0x1e   : > { %p3232_p12 = pnand %p3230_p11, %p3227_p10 }
  0x20   : > { %3235 = shalt.err (!%p3232_p12)
}
  0x21   : > { %s3236_s26 = scalar_lea.vmem %s3625_s10, 9216  ;;  %p3244_p5 = scmp.lt.s32.totalorder %s3625_s10, %s3625_s10 }
  0x22   : > { %p3237_p13 = scmp.ne.s32.totalorder %s3625_s10, %s3236_s26  ;;  %p3245_p4 = scmp.lt.s32.totalorder %s3236_s26, %s3236_s26 }
  0x24   : > { %p3239_p0 = pnand %p3237_p13, %p3652_p8  ;;  %p3246_p7 = por %p3245_p4, %p3244_p5 }
  0x26   : > { %p3240_p2 = pneg %p3239_p0 }
  0x28   : > { %p3247_p9 = pnand %p3246_p7, %p3240_p2 }
  0x2a   : > { %3250 = shalt.err (!%p3247_p9)
}
  0x2b   : > { %s3536_s9 = smov 64   ;;  %s3537_s13 = smov 4  }
  0x2c   : > { %3028 = dma.hbm_to_vmem [thread:$0]  (!%p3636_p6), %s4145_s1, 9216, %s3625_s10, [#allocation7], %s3536_s9, %s3536_s9, %s3537_s13  }
  0x2d   : > { %s3251_s21 = scalar_lea.hbm %s4133_s3, 16 }
  0x2e   : > { %p3252_p4 = scmp.ne.s32.totalorder %s4133_s3, %s3251_s21  ;;  %p3258_p12 = scmp.lt.u32.totalorder %s3251_s21, %s4133_s3 }
  0x30   : > { %p3254_p10 = pnand %p3252_p4, %p3652_p8 }
  0x32   : > { %p3255_p11 = pneg %p3254_p10 }
  0x34   : > { %p3260_p13 = pnand %p3258_p12, %p3255_p11 }
  0x36   : > { %3263 = shalt.err (!%p3260_p13)
}
  0x37   : > { %s3264_s10 = scalar_lea.vmem %s3640_s14, 16  ;;  %s3271_s16 = scalar_lea.vmem %s3640_s14, 32 }
  0x38   : > { %p3265_p0 = scmp.ne.s32.totalorder %s3640_s14, %s3264_s10  ;;  %p3272_p7 = scmp.lt.s32.totalorder %s3640_s14, %s3640_s14 }
  0x39   : > { %p3273_p9 = scmp.lt.s32.totalorder %s3271_s16, %s3264_s10 }
  0x3a   : > { %p3267_p2 = pnand %p3265_p0, %p3652_p8 }
  0x3b   : > { %p3274_p4 = por %p3273_p9, %p3272_p7 }
  0x3c   : > { %p3268_p5 = pneg %p3267_p2 }
  0x3e   : > { %p3275_p10 = pnand %p3274_p4, %p3268_p5 }
  0x40   : > { %3278 = shalt.err (!%p3275_p10)
}
  0x41   : > { %3034 = dma.hbm_to_vmem [thread:$0]  (!%p3636_p6), %s4133_s3, 16, %s3640_s14, [#allocation10]  }
  0x42   : > { %s3279_s22 = scalar_lea.hbm %s4135_s5, 1024 }
  0x43   : > { %p3280_p11 = scmp.ne.s32.totalorder %s4135_s5, %s3279_s22  ;;  %p3286_p0 = scmp.lt.u32.totalorder %s3279_s22, %s4135_s5 }
  0x45   : > { %p3282_p12 = pnand %p3280_p11, %p3652_p8 }
  0x47   : > { %p3283_p13 = pneg %p3282_p12 }
  0x49   : > { %p3288_p2 = pnand %p3286_p0, %p3283_p13 }
  0x4b   : > { %3291 = shalt.err (!%p3288_p2)
}
  0x4c   : > { %s3292_s14 = scalar_lea.vmem %s3642_s17, 1024  ;;  %p3300_p4 = scmp.lt.s32.totalorder %s3642_s17, %s3642_s17 }
  0x4d   : > { %p3293_p5 = scmp.ne.s32.totalorder %s3642_s17, %s3292_s14  ;;  %p3301_p10 = scmp.lt.s32.totalorder %s3292_s14, %s3292_s14 }
  0x4f   : > { %p3295_p7 = pnand %p3293_p5, %p3652_p8  ;;  %p3302_p11 = por %p3301_p10, %p3300_p4 }
  0x51   : > { %p3296_p9 = pneg %p3295_p7 }
  0x53   : > { %p3303_p12 = pnand %p3302_p11, %p3296_p9 }
  0x55   : > { %3306 = shalt.err (!%p3303_p12)
}
  0x56   : > { %3040 = dma.hbm_to_vmem [thread:$0]  (!%p3636_p6), %s4135_s5, 1024, %s3642_s17, [#allocation13], %s3536_s9, %s3536_s9, %s3537_s13  }
  0x57   : > { %s3538_s19 = smov [#allocation8]   ;;  %s3539_s21 = smov [#allocation11]  }
  0x58   : > { %s266_s20 = sshll.u32 %s3538_s19, 4  ;;  %s287_s22 = sshll.u32 %s3539_s21, 4  ;;  %s267_s20 = int_to_ptr.vmem [resolvable:$true] %s266_s20  ;;  %s288_s22 = int_to_ptr.vmem [resolvable:$true] %s287_s22 }
  0x59   : > { %s3307_s26 = scalar_lea.hbm %s4132_s2, 16 }
  0x5a   : > { %p3308_p13 = scmp.ne.s32.totalorder %s4132_s2, %s3307_s26  ;;  %p3314_p5 = scmp.lt.u32.totalorder %s3307_s26, %s4132_s2 }
  0x5c   : > { %p3310_p0 = pnand %p3308_p13, %p3652_p8 }
  0x5e   : > { %p3311_p2 = pneg %p3310_p0 }
  0x60   : > { %p3316_p7 = pnand %p3314_p5, %p3311_p2 }
  0x62   : > { %3319 = shalt.err (!%p3316_p7)
}
  0x63   : > { %s3320_s17 = scalar_lea.vmem %s267_s20, 16  ;;  %s3327_s9 = scalar_lea.vmem %s267_s20, 32 }
  0x64   : > { %p3321_p9 = scmp.ne.s32.totalorder %s267_s20, %s3320_s17  ;;  %p3328_p11 = scmp.lt.s32.totalorder %s267_s20, %s267_s20 }
  0x65   : > { %p3329_p12 = scmp.lt.s32.totalorder %s3327_s9, %s3320_s17 }
  0x66   : > { %p3323_p4 = pnand %p3321_p9, %p3652_p8 }
  0x67   : > { %p3330_p1 = por %p3329_p12, %p3328_p11 }
  0x68   : > { %p3324_p10 = pneg %p3323_p4 }
  0x6a   : > { %p3331_p3 = pnand %p3330_p1, %p3324_p10 }
  0x6c   : > { %3334 = shalt.err (!%p3331_p3)
}
  0x6d   : > { %3031 = dma.hbm_to_vmem [thread:$0]  (!%p3636_p6), %s4132_s2, 16, %s267_s20, [#allocation7]  }
  0x6e   : > { %s3335_s21 = scalar_lea.hbm %s4134_s4, 256 }
  0x6f   : > { %p3336_p13 = scmp.ne.s32.totalorder %s4134_s4, %s3335_s21  ;;  %p3342_p3 = scmp.lt.u32.totalorder %s3335_s21, %s4134_s4 }
  0x71   : > { %p3338_p0 = pnand %p3336_p13, %p3652_p8 }
  0x73   : > { %p3339_p1 = pneg %p3338_p0 }
  0x75   : > { %p3344_p2 = pnand %p3342_p3, %p3339_p1 }
  0x77   : > { %3347 = shalt.err (!%p3344_p2)
}
  0x78   : > { %s3348_s14 = scalar_lea.vmem %s288_s22, 256  ;;  %p3356_p4 = scmp.lt.s32.totalorder %s288_s22, %s288_s22 }
  0x79   : > { %p3349_p5 = scmp.ne.s32.totalorder %s288_s22, %s3348_s14  ;;  %p3357_p10 = scmp.lt.s32.totalorder %s3348_s14, %s3348_s14 }
  0x7b   : > { %p3351_p7 = pnand %p3349_p5, %p3652_p8  ;;  %p3358_p11 = por %p3357_p10, %p3356_p4 }
  0x7d   : > { %p3352_p9 = pneg %p3351_p7 }
  0x7f   : > { %p3359_p12 = pnand %p3358_p11, %p3352_p9 }
  0x81   : > { %3362 = shalt.err (!%p3359_p12)
}
  0x82   : > { %s3540_s20 = smov 128   ;;  %s3541_s16 = smov 8  }
  0x83   : > { %3037 = dma.hbm_to_vmem [thread:$0]  (!%p3636_p6), %s4134_s4, 256, %s288_s22, [#allocation10], %s3540_s20, %s3540_s20, %s3541_s16  }
  0x84   : > { %s3542_s13 = smov [#allocation14]   ;;  %s3363_s21 = scalar_lea.hbm %s4136_s6, 16 }
  0x85   : > { %s314_s18 = sshll.u32 %s3542_s13, 4  ;;  %p3364_p13 = scmp.ne.s32.totalorder %s4136_s6, %s3363_s21  ;;  %s315_s18 = int_to_ptr.vmem [resolvable:$true] %s314_s18 }
  0x86   : > { %p3370_p3 = scmp.lt.u32.totalorder %s3363_s21, %s4136_s6 }
  0x87   : > { %p3366_p0 = pnand %p3364_p13, %p3652_p8 }
  0x89   : > { %p3367_p1 = pneg %p3366_p0 }
  0x8b   : > { %p3372_p2 = pnand %p3370_p3, %p3367_p1 }
  0x8d   : > { %3375 = shalt.err (!%p3372_p2)
}
  0x8e   : > { %s3376_s22 = scalar_lea.vmem %s315_s18, 16  ;;  %s3383_s14 = scalar_lea.vmem %s315_s18, 32 }
  0x8f   : > { %p3377_p5 = scmp.ne.s32.totalorder %s315_s18, %s3376_s22  ;;  %p3384_p4 = scmp.lt.s32.totalorder %s315_s18, %s315_s18 }
  0x90   : > { %p3385_p10 = scmp.lt.s32.totalorder %s3383_s14, %s3376_s22 }
  0x91   : > { %p3379_p7 = pnand %p3377_p5, %p3652_p8 }
  0x92   : > { %p3386_p11 = por %p3385_p10, %p3384_p4 }
  0x93   : > { %p3380_p9 = pneg %p3379_p7 }
  0x95   : > { %p3387_p12 = pnand %p3386_p11, %p3380_p9 }
  0x97   : > { %3390 = shalt.err (!%p3387_p12)
}
  0x98   : > { %3043 = dma.hbm_to_vmem [thread:$0]  (!%p3636_p6), %s4136_s6, 16, %s315_s18, [#allocation13]  }
  0x99   : > { %s2650_s23 = sadd.s32 4294967294, %s3531_s30   ;;  %s3782_s15 = sadd.s32 1, %s3531_s30  }
  0x9a   : > { %s35_s17 = ssub.s32 %s3531_s30, %s3782_s15  ;;  %s38_s9 = sadd.s32 1, %s3527_s29 }
  0x9b   : > { %p36_p8 = scmp.eq.s32.totalorder %s35_s17, 0  ;;  %p45_p13 = scmp.ne.s32.totalorder %s3527_s29, %s3523_s28 }
  0x9c   : > { %p46_p0 = scmp.eq.s32.totalorder %s3531_s30, 0  ;;  %p51_p1 = scmp.ne.s32.totalorder %s3523_s28, %s3519_s27 }
  0x9d   : > { %s3793_s13 = scalar_select %p36_p8, %s3527_s29, %s38_s9  }
  0x9e   : > { %p3795_p3 = por %p46_p0, %p45_p13  ;;  %p4148_p2 = scmp.eq.s32.totalorder %s3620_s11, 0 }
  0x9f   : > { %p201_p5 = scmp.eq.s32.totalorder %s3620_s11, 1  ;;  %p207_p7 = scmp.eq.s32.totalorder %s2650_s23, 1 }
  0xa0   : > { %p3801_p6 = por %p4148_p2, %p51_p1  ;;  %p3061_p9 = scmp.lt.s32.totalorder %s3531_s30, 2 }
  0xa1   : > { %s325_s19 = sand.u32 1, %s3527_s29   ;;  %p3808_p4 = por %p201_p5, %p45_p13 }
  0xa2   : > { %p3812_p10 = por %p207_p7, %p51_p1  ;;  %s2659_s25 = sshll.u32 %s325_s19, 3 }
  0xa3   : > { %s4150_s21 = scalar_select %p3808_p4, 1, 0 }
  0xa4   : > { %s4151_s24 = scalar_select %p3812_p10, 1, 0 }
  0xa5   : > { %s2796_s26 = sshll.u32 %s3531_s30, 7  ;;  %s329_s20 = scalar_lea.vmem [#allocation3], %s2659_s25 }
  0xa6   : > { %s3820_s14 = scalar_lea.hbm %s4130_s0, %s2796_s26  ;;  %s336_s16 = sshll.u32 %s329_s20, 4  ;;  %s3822_s16 = int_to_ptr.vmem [resolvable:$true] %s336_s16 }
  0xa7   : > { %p3826_p11 = pnand %p3061_p9, %p3795_p3  ;;  %s3830_s17 = scalar_lea.sflag [#allocation4], %s325_s19 }
  0xa8   : > { %s3391_s9 = scalar_lea.hbm %s3820_s14, 128  ;;  %s3396_s1 = scalar_lea.hbm %s4130_s0, 256 }
  0xa9   : > { %p3392_p12 = scmp.ne.s32.totalorder %s3820_s14, %s3391_s9  ;;  %p3393_p8 = pneg %p3826_p11 }
  0xaa   : > { %p3397_p1 = scmp.lt.u32.totalorder %s3820_s14, %s4130_s0  ;;  %p3398_p3 = scmp.lt.u32.totalorder %s3396_s1, %s3391_s9 }
  0xab   : > { %p3394_p13 = pnand %p3393_p8, %p3392_p12  ;;  %p3400_p5 = scmp.lt.u32.totalorder %s3391_s9, %s3820_s14 }
  0xac   : > { %p3399_p2 = por %p3398_p3, %p3397_p1 }
  0xad   : > { %p3395_p0 = pneg %p3394_p13 }
  0xae   : > { %p3401_p7 = por %p3400_p5, %p3399_p2 }
  0xb0   : > { %p3402_p9 = pnand %p3401_p7, %p3395_p0 }
  0xb2   : > { %3405 = shalt.err (!%p3402_p9)
}
  0xb3   : > { %s3406_s19 = scalar_lea.vmem %s3822_s16, 128  ;;  %s3543_s20 = smov [#allocation3]  }
  0xb4   : > { %p3407_p12 = scmp.ne.s32.totalorder %s3822_s16, %s3406_s19  ;;  %s3411_s25 = sshll.u32 %s3543_s20, 4  ;;  %s3412_s25 = int_to_ptr.vmem [resolvable:$false] %s3411_s25 }
  0xb5   : > { %s3413_s26 = scalar_lea.vmem %s3412_s25, 256  ;;  %p3414_p4 = scmp.lt.s32.totalorder %s3822_s16, %s3412_s25 }
  0xb6   : > { %p3409_p13 = pnand %p3407_p12, %p3393_p8  ;;  %p3415_p1 = scmp.lt.s32.totalorder %s3413_s26, %s3406_s19 }
  0xb8   : > { %p3410_p10 = pneg %p3409_p13  ;;  %p3416_p3 = por %p3415_p1, %p3414_p4 }
  0xba   : > { %p3417_p2 = pnand %p3416_p3, %p3410_p10 }
  0xbc   : > { %3420 = shalt.err (!%p3417_p2)
}
  0xbd   : > { %s3544_s9 = smov 32   ;;  %s3545_s1 = smov 2  }
  0xbe   : > { %3047 = dma.hbm_to_vmem [thread:$0]  (!%p3826_p11), %s3820_s14, 128, %s3822_s16, %s3830_s17, %s3544_s9, %s3544_s9, %s3545_s1  }
  0xbf   : > { %p4153_p8 = scmp.ne.s32.totalorder %s4143_s12, 0 }
  0xc0   : > { %s3861_s10 = sand.u32 (!%p4153_p8), 1, %s3523_s28  }
  0xc1   : > { %348 = sbr.rel (%p4153_p8) target bundleno = 594 (0x252), region = 48  ;;  %s3864_s22 = sshll.u32 (!%p4153_p8), %s3861_s10, 3 }
  0xc2   : > { %s351_s19 = scalar_lea.sflag (!%p4153_p8), [#allocation4], %s3861_s10  ;;  %s3868_s20 = scalar_lea.vmem (!%p4153_p8), [#allocation3], %s3864_s22 }
  0xc8   : > { %3494 = dma.done.wait (%p3801_p6), %s351_s19, 128  }
  0xc9   : > { %3496 = vsyncadd (%p3801_p6), %s351_s19, 4294967168  ;;  %p4154_p4 = scmp.eq.s32.totalorder %s3620_s11, 0 }
  0xcb   : > { %3498 = dma.done.wait (%p4154_p4), [#allocation7], 9232   ;;  %p4155_p10 = pmov %p4154_p4 }
  0xcc   : > { %p4156_p11 = pmov %p4154_p4 }
  0xcd   : > { %3500 = vsyncadd (%p4155_p10), [#allocation7], 4294958064 }
  0xce   : > { %3502 = dma.done.wait (%p4156_p11), [#allocation10], 272   ;;  %p4157_p0 = pmov %p4154_p4 }
  0xd0   : > { %3504 = vsyncadd (%p4157_p0), [#allocation10], 4294967024  ;;  %p4158_p5 = pmov %p4157_p0 }
  0xd1   : > { %p4159_p7 = pmov %p4157_p0 }
  0xd2   : > { %3506 = dma.done.wait (%p4158_p5), [#allocation13], 1040  }
  0xd3   : > { %3508 = vsyncadd (%p4159_p7), [#allocation13], 4294966256  ;;  %v3546_v0 = vmov 0.0   ;;  %vm3547_vm0 = vmmov 0   ;;  %v3548_v1 = vmov 0   ;;  %v3119_v2 = vld [vmem:[#allocation6 + $0x100] sm:$0xff]   ;;  %v553_v35 = vlaneseq }
  0xd4   : > { %2901 = vmatprep.subr.bf16.mxu1 %v3546_v0  ;;  %2917 = vmatprep.mubr.msk.bf16.mxu1 %vm3547_vm0, %v3546_v0  ;;  %425 = vst [vmem:[#allocation2 + $0x4] sm:$0x1] %v3548_v1  ;;  %426 = vst [vmem:[#allocation2 + $0x8] sm:$0x1] %v3548_v1  ;;  %v3120_v3 = vld [vmem:[#allocation6 + $0x140] sm:$0xff]   ;;  %v3122_v5 = vld [vmem:[#allocation6 + $0x108] sm:$0xff]  }
  0xd5   : > { %427 = vst [vmem:[#allocation2 + $0xc] sm:$0x1] %v3548_v1  ;;  %428 = vst [vmem:[#allocation2 + $0x10] sm:$0x1] %v3548_v1  ;;  %2799 = vmatprep.subr.bf16.mxu0 %v3119_v2  ;;  %v3121_v4 = vld [vmem:[#allocation6 + $0xc0] sm:$0xff]   ;;  %2902 = vmatpush3.bf16.msra.mxu1 %v3120_v3  ;;  %v3123_v6 = vld [vmem:[#allocation6 + $0x148] sm:$0xff]  }
  0xd6   : > { %429 = vst [vmem:[#allocation2 + $0x4] sm:$0x8] %v3548_v1  ;;  %430 = vst [vmem:[#allocation2 + $0x8] sm:$0x8] %v3548_v1  ;;  %2800 = vmatpush3.bf16.msra.mxu0 %v3121_v4  ;;  %2903 = vmatprep.subr.bf16.mxu1 %v3546_v0  ;;  %v3124_v7 = vld [vmem:[#allocation6 + $0xc8] sm:$0xff]   ;;  %v3125_v8 = vld [vmem:[#allocation6 + $0x110] sm:$0xff]  }
  0xd7   : > { %431 = vst [vmem:[#allocation2 + $0xc] sm:$0x8] %v3548_v1  ;;  %432 = vst [vmem:[#allocation2 + $0x10] sm:$0x8] %v3548_v1  ;;  %2801 = vmatprep.subr.bf16.mxu0 %v3122_v5  ;;  %v3126_v9 = vld [vmem:[#allocation6 + $0x150] sm:$0xff]   ;;  %v3128_v11 = vld [vmem:[#allocation6 + $0x118] sm:$0xff]  }
  0xd8   : > { %421 = vst [vmem:[#allocation2] sm:$0xf] %v3548_v1  ;;  %423 = vst [vmem:[#allocation2 + $0x14] sm:$0xf] %v3548_v1  ;;  %v3127_v10 = vld [vmem:[#allocation6 + $0xd0] sm:$0xff]   ;;  %v3129_v12 = vld [vmem:[#allocation6 + $0x158] sm:$0xff]  }
  0xd9   : > { %2904 = vmatpush3.bf16.msra.mxu1 %v3123_v6  ;;  %v3130_v13 = vld [vmem:[#allocation6 + $0xd8] sm:$0xff]   ;;  %v3131_v14 = vld [vmem:[#allocation6 + $0x120] sm:$0xff]   ;;  %v3134_v17 = vld [vmem:[#allocation6 + $0x128] sm:$0xff]   ;;  %v3549_v36 = vmov 1983009808   ;;  %v3901_v38 = vshrl.u32 %v553_v35, 7 }
  0xda   : > { %2802 = vmatpush3.bf16.msra.mxu0 %v3124_v7  ;;  %2905 = vmatprep.subr.bf16.mxu1 %v3546_v0  ;;  %v3132_v15 = vld [vmem:[#allocation6 + $0x160] sm:$0xff]   ;;  %v3135_v18 = vld [vmem:[#allocation6 + $0x168] sm:$0xff]   ;;  %v3137_v20 = vld [vmem:[#allocation6 + $0x130] sm:$0xff]   ;;  %v551_v37 = vunpack.c.l.s4 %v3549_v36  ;;  %vm617_vm1 = vsmask.f32 1280  ;;  %vm2303_vm8 = vcmask 1042432  }
  0xdb   : > { %2803 = vmatprep.subr.bf16.mxu0 %v3125_v8  ;;  %v3133_v16 = vld [vmem:[#allocation6 + $0xe0] sm:$0xff]   ;;  %v3136_v19 = vld [vmem:[#allocation6 + $0xe8] sm:$0xff]   ;;  %v3138_v21 = vld [vmem:[#allocation6 + $0x170] sm:$0xff]   ;;  %vm618_vm2 = vsmask.f32 3336  ;;  %vm2304_vm9 = vcmask 1046532  }
  0xdc   : > { %v3139_v22 = vld [vmem:[#allocation6 + $0xf0] sm:$0xff]   ;;  %v3140_v24 = vld [vmem:[#allocation6 + $0x138] sm:$0xff]   ;;  %v3151_v34 = vld [vmem:[#allocation6 + $0x40] sm:$0xff]   ;;  %v552_v41 = vunpack.c.0.s8 %v551_v37  ;;  %vm620_vm3 = vsmask.f32 5392  ;;  %s2797_s12 = sshll.u32 %s3620_s11, 7 }
  0xdd   : > { %2906 = vmatpush3.bf16.msra.mxu1 %v3126_v9  ;;  %v2672_v23 = vld.sshfl [vmem:[%s3868_s20] sm:$0x3 pattern:$0x76325410]  ;;  %vm622_vm4 = vsmask.f32 7448  ;;  %vm619_vm5 = vmor %vm617_vm1, %vm618_vm2  ;;  %s4044_s17 = scalar_lea.hbm %s4137_s7, %s2797_s12 }
  0xde   : > { %2804 = vmatpush3.bf16.msra.mxu0 %v3127_v10  ;;  %2907 = vmatprep.subr.bf16.mxu1 %v3546_v0  ;;  %v2673_v25 = vld.sshfl [vmem:[%s3868_s20 + $0x2] sm:$0x3 pattern:$0x76325410]  ;;  %v465_v26 = vrot.slane %v2672_v23, 7  ;;  %v3904_v59 = vsub.s32 %v552_v41, %v3901_v38  ;;  %vm621_vm6 = vmor %vm619_vm5, %vm620_vm3  ;;  %s408_s18 = scalar_lea.vmem [#allocation15], %s3864_s22 }
  0xdf   : > { %2805 = vmatprep.subr.bf16.mxu0 %v3128_v11  ;;  %v3141_v27 = vld [vmem:[#allocation6 + $0x178] sm:$0xff]   ;;  %v466_v29 = vrot.slane %v2673_v25, 7  ;;  %v3144_v40 = vld [vmem:[#allocation2 + $0x8] ss:$0 sps:$4 sm:$0x66]   ;;  %vm3918_vm7 = vmor %vm621_vm6, %vm622_vm4  ;;  %s2472_s14 = sshll.u32 %s408_s18, 4  ;;  %s4046_s14 = int_to_ptr.vmem [resolvable:$true] %s2472_s14 }
  0xe0   : > { %v2674_v28 = vld.sshfl [vmem:[%s3868_s20 + $0x4] sm:$0x3 pattern:$0x76325410]  ;;  %473 = vst [vmem:[#allocation2 + $0x4] sm:$0x6] %v465_v26  ;;  %vm2305_vm10 = vmor %vm2303_vm8, %vm2304_vm9 }
  0xe1   : > { %2908 = vmatpush3.bf16.msra.mxu1 %v3129_v12  ;;  %v3142_v30 = vld [vmem:[#allocation6 + $0xf8] sm:$0xff]   ;;  %v467_v32 = vrot.slane %v2674_v28, 7  ;;  %474 = vst [vmem:[#allocation2 + $0x8] sm:$0x6] %v466_v29  ;;  %v760_v46 = vshrl.u32 %v3144_v40, 16  ;;  %v762_v47 = vshll.u32 %v3144_v40, 16 }
  0xe2   : > { %2806 = vmatpush3.bf16.msra.mxu0 %v3130_v13  ;;  %2909 = vmatprep.subr.bf16.mxu1 %v3546_v0  ;;  %v2675_v31 = vld.sshfl [vmem:[%s3868_s20 + $0x6] sm:$0x3 pattern:$0x76325410]  ;;  %s2454_s25 = scalar_lea.sflag [#allocation5], %s3861_s10  ;;  %s3421_s26 = scalar_lea.vmem %s4046_s14, 128 }
  0xe3   : > { %2807 = vmatprep.subr.bf16.mxu0 %v3131_v14  ;;  %v468_v33 = vrot.slane %v2675_v31, 7  ;;  %475 = vst [vmem:[#allocation2 + $0xc] sm:$0x6] %v467_v32  ;;  %v3143_v39 = vld [vmem:[#allocation2 + $0x4] ss:$0 sps:$4 sm:$0x66]   ;;  %p3422_p6 = scmp.ne.s32.totalorder %s4046_s14, %s3421_s26 }
  0xe4   : > { %v3145_v42 = vld [vmem:[#allocation2 + $0xc] ss:$0 sps:$4 sm:$0x66]   ;;  %v3146_v43 = vld [vmem:[#allocation2 + $0x10] ss:$0 sps:$4 sm:$0x66]  }
  0xe5   : > { %2910 = vmatpush3.bf16.msra.mxu1 %v3132_v15  ;;  %476 = vst [vmem:[#allocation2 + $0x10] sm:$0x6] %v468_v33  ;;  %v753_v44 = vshrl.u32 %v3143_v39, 16  ;;  %v755_v45 = vshll.u32 %v3143_v39, 16  ;;  %v767_v50 = vshrl.u32 %v3145_v42, 16  ;;  %v769_v51 = vshll.u32 %v3145_v42, 16 }
  0xe6   : > { %2808 = vmatpush3.bf16.msra.mxu0 %v3133_v16  ;;  %2911 = vmatprep.subr.bf16.mxu1 %v3546_v0  ;;  %v774_v52 = vshrl.u32 %v3146_v43, 16  ;;  %v776_v53 = vshll.u32 %v3146_v43, 16  ;;  %v764_v57 = vrot.slane %v762_v47, 1  ;;  %v3147_v58 = vld [vmem:[#allocation2 + $0x4] ss:$0 sps:$4 sm:$0xee]  }
  0xe7   : > { %2809 = vmatprep.subr.bf16.mxu0 %v3134_v17  ;;  %v728_v48 = vld [vmem:[#allocation2 + $0x4] sm:$0x7]  ;;  %v757_v56 = vrot.slane %v755_v45, 1  ;;  %v771_v60 = vrot.slane %v769_v51, 1  ;;  %v792_v6 = vrot.slane %v3147_v58, 1  ;;  %p4162_p9 = scmp.ne.s32.totalorder %s4150_s21, 0 }
  0xe8   : > { %v729_v49 = vld [vmem:[#allocation2 + $0x8] sm:$0x7]  ;;  %v778_v61 = vrot.slane %v776_v53, 1  ;;  %v765_v1 = vor.u32 %v764_v57, %v760_v46  ;;  %v3149_v2 = vld [vmem:[#allocation2 + $0xc] ss:$0 sps:$4 sm:$0xee]  }
  0xe9   : > { %2912 = vmatpush3.bf16.msra.mxu1 %v3135_v18  ;;  %v3148_v62 = vld [vmem:[#allocation2 + $0x8] ss:$0 sps:$4 sm:$0xee]   ;;  %v758_v63 = vor.u32 %v757_v56, %v753_v44  ;;  %v3150_v3 = vld [vmem:[#allocation2 + $0x10] ss:$0 sps:$4 sm:$0xee]   ;;  %v772_v4 = vor.u32 %v771_v60, %v767_v50  ;;  %v814_v12 = vrot.slane %v792_v6, %v3904_v59  ;;  %p3423_p12 = pnand %p3422_p6, %p4162_p9 }
  0xea   : > { %2810 = vmatpush3.bf16.msra.mxu0 %v3136_v19  ;;  %2913 = vmatprep.subr.bf16.mxu1 %v3546_v0  ;;  %v730_v54 = vld [vmem:[#allocation2 + $0xc] sm:$0x7]  ;;  %v779_v5 = vor.u32 %v778_v61, %v774_v52  ;;  %v793_v7 = vrot.slane %v3148_v62, 1  ;;  %v794_v8 = vrot.slane %v3149_v2, 1  ;;  %v795_v9 = vrot.slane %v3150_v3, 1  ;;  %s3550_s9 = smov [#allocation15]  }
  0xeb   : > { %2811 = vmatprep.subr.bf16.mxu0 %v3137_v20  ;;  %v800_v10 = vcombine.low %v728_v48, %v758_v63  ;;  %v817_v11 = vcombine.low %v729_v49, %v765_v1  ;;  %v834_v14 = vcombine.low %v730_v54, %v772_v4  ;;  %p3424_p13 = pneg %p3423_p12  ;;  %s3425_s1 = sshll.u32 %s3550_s9, 4  ;;  %s3426_s1 = int_to_ptr.vmem [resolvable:$false] %s3425_s1 }
  0xec   : > { %v731_v55 = vld [vmem:[#allocation2 + $0x10] sm:$0x7]  ;;  %v831_v13 = vrot.slane %v793_v7, %v3904_v59  ;;  %v848_v18 = vrot.slane %v794_v8, %v3904_v59  ;;  %v865_v19 = vrot.slane %v795_v9, %v3904_v59  ;;  %s3427_s19 = scalar_lea.vmem %s3426_s1, 256  ;;  %p3428_p1 = scmp.lt.s32.totalorder %s4046_s14, %s3426_s1 }
  0xed   : > { %2914 = vmatpush3.bf16.msra.mxu1 %v3138_v21  ;;  %v851_v15 = vcombine.low %v731_v55, %v779_v5  ;;  %v807_v16 = vrot.slane %v800_v10, %v3904_v59  ;;  %v824_v17 = vrot.slane %v817_v11, %v3904_v59  ;;  %v841_v20 = vrot.slane %v834_v14, %v3904_v59  ;;  %p3429_p3 = scmp.lt.s32.totalorder %s3427_s19, %s3421_s26 }
  0xee   : > { %2812 = vmatpush3.bf16.msra.mxu0 %v3139_v22  ;;  %2915 = vmatprep.subr.bf16.mxu1 %v3546_v0 }
  0xef   : > { %2813 = vmatprep.subr.bf16.mxu0 %v3140_v24  ;;  %v858_v21 = vrot.slane %v851_v15, %v3904_v59  ;;  %v815_v22 = vcombine.low %v807_v16, %v814_v12  ;;  %v816_v23 = vcombine.high %v807_v16, %v814_v12  ;;  %v832_v24 = vcombine.low %v824_v17, %v831_v13  ;;  %v3152_v12 = vld [vmem:[#allocation6 + $0x80] sm:$0xff]   ;;  %v3154_v16 = vld [vmem:[#allocation6 + $0x48] sm:$0xff]   ;;  %p3430_p2 = por %p3429_p3, %p3428_p1 }
  0xf0   : > { %v833_v25 = vcombine.high %v824_v17, %v831_v13  ;;  %v849_v26 = vcombine.low %v841_v20, %v848_v18  ;;  %v3153_v15 = vld [vmem:[#allocation6] sm:$0xff]   ;;  %v3175_v17 = vld [vmem:[#allocation2] ss:$0 sps:$4 sm:$0x66]  }
  0xf1   : > { %2916 = vmatpush3.bf16.msra.mxu1 %v3141_v27  ;;  %v850_v27 = vcombine.high %v841_v20, %v848_v18  ;;  %v866_v28 = vcombine.low %v858_v21, %v865_v19  ;;  %v867_v29 = vcombine.high %v858_v21, %v865_v19  ;;  %v872_v31 = vshll.u32 %v815_v22, 16  ;;  %v3176_v21 = vld [vmem:[#allocation2 + $0x4] ss:$0 sps:$4 sm:$0x66]   ;;  %p3431_p8 = pnand %p3430_p2, %p3424_p13 }
  0xf2   : > { %2814 = vmatpush3.bf16.msra.mxu0 %v3142_v30  ;;  %2921 = vmatprep.subr.bf16.mxu1 %v3546_v0  ;;  %v869_v30 = vshrl.u32 %v815_v22, 16  ;;  %v878_v32 = vshll.u32 %v816_v23, 16  ;;  %v883_v33 = vshrl.u32 %v832_v24, 16  ;;  %v892_v35 = vshll.u32 %v833_v25, 16  ;;  %v3155_v23 = vld [vmem:[#allocation6 + $0x88] sm:$0xff]  }
  0xf3   : > { %2830 = vmatprep.subr.bf16.mxu0 %v3151_v34  ;;  %v886_v34 = vshll.u32 %v832_v24, 16  ;;  %v897_v36 = vshrl.u32 %v849_v26, 16  ;;  %v900_v37 = vshll.u32 %v849_v26, 16  ;;  %v874_v40 = vrot.slane %v872_v31, 7 }
  0xf4   : > { %v871_v39 = vrot.slane %v869_v30, 6  ;;  %v885_v41 = vrot.slane %v883_v33, 6  ;;  %v880_v42 = vrot.slane %v878_v32, 7  ;;  %v906_v47 = vshll.u32 %v850_v27, 16  ;;  %v3156_v27 = vld [vmem:[#allocation6 + $0x8] sm:$0xff]  }
  0xf5   : > { %v888_v43 = vrot.slane %v886_v34, 7  ;;  %v899_v44 = vrot.slane %v897_v36, 6  ;;  %v902_v45 = vrot.slane %v900_v37, 7  ;;  %v911_v48 = vshrl.u32 %v866_v28, 16  ;;  %v478_v33 = vld [vmem:[#allocation2 + $0x4] sm:$0x7] }
  0xf6   : > { %v875_v46 = vor.u32 %v874_v40, %v871_v39  ;;  %v914_v49 = vshll.u32 %v866_v28, 16  ;;  %v894_v52 = vrot.slane %v892_v35, 7  ;;  %v920_v54 = vshll.u32 %v867_v29, 16  ;;  %v3177_v22 = vld [vmem:[#allocation2 + $0x8] ss:$0 sps:$4 sm:$0x66]  }
  0xf7   : > { %v889_v51 = vor.u32 %v888_v43, %v885_v41  ;;  %v903_v53 = vor.u32 %v902_v45, %v899_v44  ;;  %v908_v56 = vrot.slane %v906_v47, 7  ;;  %v913_v57 = vrot.slane %v911_v48, 6  ;;  %v3178_v24 = vld [vmem:[#allocation2 + $0xc] ss:$0 sps:$4 sm:$0x66]   ;;  %v3157_v40 = vld [vmem:[#allocation6 + $0x50] sm:$0xff]  }
  0xf8   : > { %v876_v55 = vrot.slane %v875_v46, 2  ;;  %v916_v58 = vrot.slane %v914_v49, 7  ;;  %v922_v62 = vrot.slane %v920_v54, 7  ;;  %v502_v25 = vshrl.u32 %v3175_v17, 16  ;;  %v477_v28 = vld [vmem:[#allocation2] sm:$0x7] }
  0xf9   : > { %v890_v60 = vrot.slane %v889_v51, 2  ;;  %v904_v61 = vrot.slane %v903_v53, 2  ;;  %v504_v26 = vshll.u32 %v3175_v17, 16  ;;  %v509_v29 = vshrl.u32 %v3176_v21, 16  ;;  %v479_v34 = vld [vmem:[#allocation2 + $0x8] sm:$0x7] }
  0xfa   : > { %v881_v63 = vsel %vm3918_vm7, %v876_v55, %v880_v42  ;;  %v917_v1 = vor.u32 %v916_v58, %v913_v57  ;;  %v511_v30 = vshll.u32 %v3176_v21, 16  ;;  %v516_v31 = vshrl.u32 %v3177_v22, 16  ;;  %v3179_v39 = vld [vmem:[#allocation2] ss:$0 sps:$4 sm:$0xee]   ;;  %v3158_v45 = vld [vmem:[#allocation6 + $0x90] sm:$0xff]  }
  0xfb   : > { %v895_v2 = vsel %vm3918_vm7, %v890_v60, %v894_v52  ;;  %v909_v3 = vsel %vm3918_vm7, %v904_v61, %v908_v56  ;;  %v518_v32 = vshll.u32 %v3177_v22, 16  ;;  %v506_v35 = vrot.slane %v504_v26, 1  ;;  %v480_v41 = vld [vmem:[#allocation2 + $0xc] sm:$0x7]  ;;  %v3159_v55 = vld [vmem:[#allocation6 + $0x10] sm:$0xff]   ;;  %v3160_v61 = vld [vmem:[#allocation6 + $0x58] sm:$0xff]  }
  0xfc   : > { %v918_v4 = vrot.slane %v917_v1, 2  ;;  %v973_v5 = vcombine.low %v881_v63, %v895_v2  ;;  %v974_v6 = vcombine.high %v881_v63, %v895_v2  ;;  %v523_v36 = vshrl.u32 %v3178_v24, 16  ;;  %v3180_v44 = vld [vmem:[#allocation2 + $0x4] ss:$0 sps:$4 sm:$0xee]  }
  0xfd   : > { %v525_v37 = vshll.u32 %v3178_v24, 16  ;;  %v513_v42 = vrot.slane %v511_v30, 1  ;;  %v520_v43 = vrot.slane %v518_v32, 1  ;;  %v507_v46 = vor.u32 %v506_v35, %v502_v25  ;;  %v3181_v48 = vld [vmem:[#allocation2 + $0x8] ss:$0 sps:$4 sm:$0xee]  }
  0xfe   : > { %v923_v7 = vsel %vm3918_vm7, %v918_v4, %v922_v62  ;;  %v983_v10 = vrot.slane %v973_v5, %v3904_v59  ;;  %v990_v11 = vrot.slane %v974_v6, %v3904_v59  ;;  %v541_v49 = vrot.slane %v3179_v39, 1  ;;  %v3182_v53 = vld [vmem:[#allocation2 + $0xc] ss:$0 sps:$4 sm:$0xee]   ;;  %v3166_v32 = vld [vmem:[#allocation6 + $0x68] sm:$0xff]  }
  0xff   : > { %v975_v8 = vcombine.low %v909_v3, %v923_v7  ;;  %v976_v9 = vcombine.high %v909_v3, %v923_v7  ;;  %v527_v47 = vrot.slane %v525_v37, 1  ;;  %v514_v51 = vor.u32 %v513_v42, %v509_v29  ;;  %v3161_v3 = vld [vmem:[#allocation6 + $0x98] sm:$0xff]  }
 0x100   : > { %v521_v52 = vor.u32 %v520_v43, %v516_v31  ;;  %v542_v54 = vrot.slane %v3180_v44, 1  ;;  %v543_v57 = vrot.slane %v3181_v48, 1  ;;  %v549_v58 = vcombine.low %v477_v28, %v507_v46  ;;  %v3165_v31 = vld [vmem:[#allocation6 + $0x20] sm:$0xff]   ;;  %v3167_v46 = vld [vmem:[#allocation6 + $0xa8] sm:$0xff]  }
 0x101   : > { %v997_v13 = vrot.slane %v975_v8, %v3904_v59  ;;  %v1004_v14 = vrot.slane %v976_v9, %v3904_v59  ;;  %v528_v56 = vor.u32 %v527_v47, %v523_v36  ;;  %v563_v60 = vrot.slane %v541_v49, %v3904_v59  ;;  %v3168_v47 = vld [vmem:[#allocation6 + $0x28] sm:$0xff]  }
 0x102   : > { %v544_v62 = vrot.slane %v3182_v53, 1  ;;  %v566_v63 = vcombine.low %v478_v33, %v514_v51  ;;  %v580_v1 = vrot.slane %v542_v54, %v3904_v59  ;;  %v583_v2 = vcombine.low %v479_v34, %v521_v52 }
 0x103   : > { %v1006_v18 = vcombine.high %v983_v10, %v997_v13  ;;  %v1007_v19 = vcombine.low %v990_v11, %v1004_v14  ;;  %v1005_v20 = vcombine.low %v983_v10, %v997_v13  ;;  %v556_v4 = vrot.slane %v549_v58, %v3904_v59  ;;  %v3162_v10 = vld [vmem:[#allocation6 + $0x18] sm:$0xff]   ;;  %v3163_v14 = vld [vmem:[#allocation6 + $0x60] sm:$0xff]  }
 0x104   : > { %v597_v5 = vrot.slane %v543_v57, %v3904_v59  ;;  %v600_v6 = vcombine.low %v480_v41, %v528_v56  ;;  %v573_v7 = vrot.slane %v566_v63, %v3904_v59  ;;  %v590_v8 = vrot.slane %v583_v2, %v3904_v59  ;;  %v3169_v56 = vld [vmem:[#allocation6 + $0x70] sm:$0xff]  }
 0x105   : > { %1187 = vmatprep.mubr.bf16.mxu0 %v1006_v18  ;;  %2918 = vmatmul.mubr.bf16.vlgmr.msra.gmra.mrb[0].mxu1 %v1007_v19  ;;  %v614_v9 = vrot.slane %v544_v62, %v3904_v59  ;;  %v564_v11 = vcombine.low %v556_v4, %v563_v60  ;;  %v3164_v18 = vld [vmem:[#allocation6 + $0xa0] sm:$0xff]   ;;  %v3170_v63 = vld [vmem:[#allocation6 + $0xb0] sm:$0xff]  }
 0x106   : > { %2922 = vmatpush3.bf16.msra.mxu1 %v3152_v12  ;;  %1188 = vmatmul.mubr.bf16.vlgmr.msra.gmra.mrb[0].mxu0 %v1005_v20  ;;  %v565_v12 = vcombine.high %v556_v4, %v563_v60  ;;  %v607_v13 = vrot.slane %v600_v6, %v3904_v59  ;;  %v598_v17 = vcombine.low %v590_v8, %v597_v5  ;;  %v3172_v6 = vld [vmem:[#allocation6 + $0x78] sm:$0xff]  }
 0x107   : > { %2831 = vmatpush3.bf16.msra.mxu0 %v3153_v15  ;;  %2923 = vmatprep.subr.bf16.mxu1 %v3546_v0  ;;  %v581_v15 = vcombine.low %v573_v7, %v580_v1  ;;  %v599_v19 = vcombine.high %v590_v8, %v597_v5  ;;  %v625_v22 = vshrl.u32 %v564_v11, 16  ;;  %v3173_v8 = vld [vmem:[#allocation6 + $0xb8] sm:$0xff]  }
 0x108   : > { %2832 = vmatprep.subr.bf16.mxu0 %v3154_v16  ;;  %2937 = vmatprep.mubr.msk.bf16.mxu1 %vm3547_vm0, %v3546_v0  ;;  %v582_v16 = vcombine.high %v573_v7, %v580_v1  ;;  %v615_v20 = vcombine.low %v607_v13, %v614_v9  ;;  %v616_v21 = vcombine.high %v607_v13, %v614_v9  ;;  %v634_v24 = vshll.u32 %v565_v12, 16  ;;  %v3174_v13 = vld [vmem:[#allocation6 + $0x38] sm:$0xff]  }
 0x109   : > { %v639_v25 = vshrl.u32 %v581_v15, 16  ;;  %v642_v26 = vshll.u32 %v581_v15, 16  ;;  %v653_v29 = vshrl.u32 %v598_v17, 16  ;;  %v656_v30 = vshll.u32 %v598_v17, 16 }
 0x10a   : > { %2924 = vmatpush3.bf16.msra.mxu1 %v3155_v23  ;;  %v628_v23 = vshll.u32 %v564_v11, 16  ;;  %v648_v28 = vshll.u32 %v582_v16, 16  ;;  %v636_v34 = vrot.slane %v634_v24, 7  ;;  %v662_v41 = vshll.u32 %v599_v19, 16  ;;  %v3183_v16 = vld [vmem:[#allocation6 + $0x1c0] sm:$0xff]  }
 0x10b   : > { %2833 = vmatpush3.bf16.msra.mxu0 %v3156_v27  ;;  %2925 = vmatprep.subr.bf16.mxu1 %v3546_v0  ;;  %v627_v27 = vrot.slane %v625_v22, 6  ;;  %v641_v35 = vrot.slane %v639_v25, 6  ;;  %v644_v36 = vrot.slane %v642_v26, 7  ;;  %v655_v39 = vrot.slane %v653_v29, 6  ;;  %v3186_v25 = vld [vmem:[#allocation6 + $0x1c8] sm:$0xff]  }
 0x10c   : > { %2834 = vmatprep.subr.bf16.mxu0 %v3157_v40  ;;  %v630_v33 = vrot.slane %v628_v23, 7  ;;  %v650_v37 = vrot.slane %v648_v28, 7  ;;  %v658_v40 = vrot.slane %v656_v30, 7  ;;  %v667_v44 = vshrl.u32 %v615_v20, 16  ;;  %v3187_v26 = vld [vmem:[#allocation6 + $0x208] sm:$0xff]  }
 0x10d   : > { %v645_v43 = vor.u32 %v644_v36, %v641_v35  ;;  %v664_v49 = vrot.slane %v662_v41, 7  ;;  %v676_v51 = vshll.u32 %v616_v21, 16  ;;  %v3185_v21 = vld [vmem:[#allocation6 + $0x180] sm:$0xff]   ;;  %v2057_v22 = vsub.s32 0, %v3901_v38  ;;  %v3191_v36 = vld [vmem:[#allocation6 + $0x190] sm:$0xff]  }
 0x10e   : > { %2926 = vmatpush3.bf16.msra.mxu1 %v3158_v45  ;;  %v631_v42 = vor.u32 %v630_v33, %v627_v27  ;;  %v670_v45 = vshll.u32 %v615_v20, 16  ;;  %v659_v48 = vor.u32 %v658_v40, %v655_v39  ;;  %v669_v54 = vrot.slane %v667_v44, 6  ;;  %v3184_v20 = vld [vmem:[#allocation6 + $0x200] sm:$0xff]   ;;  %v3190_v33 = vld [vmem:[#allocation6 + $0x210] sm:$0xff]   ;;  %v3192_v40 = vld [vmem:[#allocation6 + $0x1d8] sm:$0xff]  }
 0x10f   : > { %2835 = vmatpush3.bf16.msra.mxu0 %v3159_v55  ;;  %2927 = vmatprep.subr.bf16.mxu1 %v3546_v0  ;;  %v646_v53 = vrot.slane %v645_v43, 2  ;;  %v678_v62 = vrot.slane %v676_v51, 7  ;;  %v2073_v23 = vsub.s32 1, %v3901_v38  ;;  %v2105_v24 = vsub.s32 2, %v3901_v38 }
 0x110   : > { %2836 = vmatprep.subr.bf16.mxu0 %v3160_v61  ;;  %v632_v52 = vrot.slane %v631_v42, 2  ;;  %v672_v55 = vrot.slane %v670_v45, 7  ;;  %v660_v57 = vrot.slane %v659_v48, 2  ;;  %v2137_v27 = vsub.s32 3, %v3901_v38  ;;  %v1502_v45 = vld [vmem:[#allocation2 + $0x8] sm:$0x7] }
 0x111   : > { %v651_v60 = vsel %vm3918_vm7, %v646_v53, %v650_v37  ;;  %v2157_v28 = vsub.s32 4, %v3901_v38  ;;  %v2189_v29 = vsub.s32 5, %v3901_v38  ;;  %v2221_v30 = vsub.s32 6, %v3901_v38  ;;  %v3208_v35 = vld [vmem:[#allocation2 + $0xc] ss:$0 sps:$4 sm:$0x66]  }
 0x112   : > { %2928 = vmatpush3.bf16.msra.mxu1 %v3161_v3  ;;  %v637_v58 = vsel %vm3918_vm7, %v632_v52, %v636_v34  ;;  %v673_v61 = vor.u32 %v672_v55, %v669_v54  ;;  %v3171_v3 = vld [vmem:[#allocation6 + $0x30] sm:$0xff]   ;;  %v665_v4 = vsel %vm3918_vm7, %v660_v57, %v664_v49  ;;  %v3207_v34 = vld [vmem:[#allocation2 + $0x8] ss:$0 sps:$4 sm:$0x66]   ;;  %v1534_v43 = vshrl.u32 %v3208_v35, 16  ;;  %v3193_v52 = vld [vmem:[#allocation6 + $0x218] sm:$0xff]  }
 0x113   : > { %2837 = vmatpush3.bf16.msra.mxu0 %v3162_v10  ;;  %2929 = vmatprep.subr.bf16.mxu1 %v3546_v0  ;;  %v1237_v1 = vcombine.low %v637_v58, %v651_v60  ;;  %v1238_v2 = vcombine.high %v637_v58, %v651_v60  ;;  %v3209_v37 = vld [vmem:[#allocation2 + $0x10] ss:$0 sps:$4 sm:$0x66]   ;;  %v3210_v39 = vld [vmem:[#allocation2 + $0x14] ss:$0 sps:$4 sm:$0x66]  }
 0x114   : > { %2838 = vmatprep.subr.bf16.mxu0 %v3163_v14  ;;  %v674_v5 = vrot.slane %v673_v61, 2  ;;  %v1527_v41 = vshrl.u32 %v3207_v34, 16  ;;  %v1529_v42 = vshll.u32 %v3207_v34, 16  ;;  %v1536_v44 = vshll.u32 %v3208_v35, 16  ;;  %v1504_v53 = vld [vmem:[#allocation2 + $0x10] sm:$0x7] }
 0x115   : > { %v1247_v11 = vrot.slane %v1237_v1, %v3904_v59  ;;  %v1254_v12 = vrot.slane %v1238_v2, %v3904_v59  ;;  %v1543_v48 = vshll.u32 %v3209_v37, 16  ;;  %v1548_v49 = vshrl.u32 %v3210_v39, 16  ;;  %v1505_v54 = vld [vmem:[#allocation2 + $0x14] sm:$0x7]  ;;  %v3194_v58 = vld [vmem:[#allocation6 + $0x198] sm:$0xff]  }
 0x116   : > { %2930 = vmatpush3.bf16.msra.mxu1 %v3164_v18  ;;  %v679_v7 = vsel %vm3918_vm7, %v674_v5, %v678_v62  ;;  %v1550_v51 = vshll.u32 %v3210_v39, 16  ;;  %v1531_v55 = vrot.slane %v1529_v42, 1  ;;  %v3211_v57 = vld [vmem:[#allocation2 + $0x8] ss:$0 sps:$4 sm:$0xee]  }
 0x117   : > { %2839 = vmatpush3.bf16.msra.mxu0 %v3165_v31  ;;  %2931 = vmatprep.subr.bf16.mxu1 %v3546_v0  ;;  %v1239_v9 = vcombine.low %v665_v4, %v679_v7  ;;  %v1240_v10 = vcombine.high %v665_v4, %v679_v7  ;;  %v3188_v31 = vld [vmem:[#allocation6 + $0x188] sm:$0xff]   ;;  %v1545_v60 = vrot.slane %v1543_v48, 1  ;;  %v3212_v62 = vld [vmem:[#allocation2 + $0xc] ss:$0 sps:$4 sm:$0xee]   ;;  %v1566_v7 = vrot.slane %v3211_v57, 1 }
 0x118   : > { %2840 = vmatprep.subr.bf16.mxu0 %v3166_v32  ;;  %v3189_v32 = vld [vmem:[#allocation6 + $0x1d0] sm:$0xff]   ;;  %v1552_v61 = vrot.slane %v1550_v51, 1  ;;  %v1532_v1 = vor.u32 %v1531_v55, %v1527_v41  ;;  %v3214_v4 = vld [vmem:[#allocation2 + $0x14] ss:$0 sps:$4 sm:$0xee]  }
 0x119   : > { %v1261_v14 = vrot.slane %v1239_v9, %v3904_v59  ;;  %v1268_v15 = vrot.slane %v1240_v10, %v3904_v59  ;;  %v1569_v10 = vrot.slane %v3214_v4, 1  ;;  %v3200_v48 = vld [vmem:[#allocation6 + $0x1a8] sm:$0xff]  }
 0x11a   : > { %2932 = vmatpush3.bf16.msra.mxu1 %v3167_v46  ;;  %v1503_v46 = vld [vmem:[#allocation2 + $0xc] sm:$0x7] }
 0x11b   : > { %2841 = vmatpush3.bf16.msra.mxu0 %v3168_v47  ;;  %2933 = vmatprep.subr.bf16.mxu1 %v3546_v0  ;;  %v1270_v17 = vcombine.high %v1247_v11, %v1261_v14  ;;  %v1269_v18 = vcombine.low %v1247_v11, %v1261_v14  ;;  %v1271_v19 = vcombine.low %v1254_v12, %v1268_v15  ;;  %v1541_v47 = vshrl.u32 %v3209_v37, 16 }
 0x11c   : > { %2842 = vmatprep.subr.bf16.mxu0 %v3169_v56  ;;  %v1538_v56 = vrot.slane %v1536_v44, 1  ;;  %v1574_v11 = vcombine.low %v1502_v45, %v1532_v1 }
 0x11d   : > { %1451 = vmatprep.mubr.bf16.mxu0 %v1270_v17  ;;  %v1546_v5 = vor.u32 %v1545_v60, %v1541_v47  ;;  %v3196_v17 = vld [vmem:[#allocation6 + $0x220] sm:$0xff]   ;;  %v2047_v60 = vld [vmem:[#allocation2] sm:$0x7] }
 0x11e   : > { %2934 = vmatpush3.bf16.msra.mxu1 %v3170_v63  ;;  %v3195_v63 = vld [vmem:[#allocation6 + $0x1e0] sm:$0xff]   ;;  %v1539_v2 = vor.u32 %v1538_v56, %v1534_v43  ;;  %v3199_v43 = vld [vmem:[#allocation6 + $0x228] sm:$0xff]  }
 0x11f   : > { %2843 = vmatpush3.bf16.msra.mxu0 %v3171_v3  ;;  %2935 = vmatprep.subr.bf16.mxu1 %v3546_v0  ;;  %v3213_v3 = vld [vmem:[#allocation2 + $0x10] ss:$0 sps:$4 sm:$0xee]   ;;  %v1608_v15 = vcombine.low %v1504_v53, %v1546_v5 }
 0x120   : > { %2844 = vmatprep.subr.bf16.mxu0 %v3172_v6  ;;  %v1553_v6 = vor.u32 %v1552_v61, %v1548_v49  ;;  %v1568_v9 = vrot.slane %v3213_v3, 1  ;;  %v1591_v12 = vcombine.low %v1503_v46, %v1539_v2  ;;  %v3201_v49 = vld [vmem:[#allocation6 + $0x1f0] sm:$0xff]  }
 0x121   : > { %v3202_v61 = vld [vmem:[#allocation6 + $0x230] sm:$0xff]  }
 0x122   : > { %2936 = vmatpush3.bf16.msra.mxu1 %v3173_v8  ;;  %v1567_v8 = vrot.slane %v3212_v62, 1  ;;  %v3203_v3 = vld [vmem:[#allocation6 + $0x1b0] sm:$0xff]  }
 0x123   : > { %2845 = vmatpush3.bf16.msra.mxu0 %v3174_v13  ;;  %2941 = vmatprep.subr.bf16.mxu1 %v3546_v0  ;;  %v1588_v13 = vrot.slane %v1566_v7, %v3904_v59 }
 0x124   : > { %2861 = vmatprep.subr.bf16.mxu0 %v3183_v16  ;;  %v1605_v14 = vrot.slane %v1567_v8, %v3904_v59  ;;  %v1625_v16 = vcombine.low %v1505_v54, %v1553_v6  ;;  %v2048_v8 = vld [vmem:[#allocation2 + $0x4] sm:$0x7] }
 0x125   : > { %2938 = vmatmul.mubr.bf16.vlgmr.msra.gmra.mrb[0].mxu1 %v1271_v19  ;;  %v1598_v19 = vrot.slane %v1591_v12, %v3904_v59 }
 0x126   : > { %1452 = vmatmul.mubr.bf16.vlgmr.msra.gmra.mrb[4].mxu0 %v1269_v18  ;;  %2942 = vmatpush3.bf16.msra.mxu1 %v3184_v20  ;;  %v1581_v18 = vrot.slane %v1574_v11, %v3904_v59  ;;  %v1622_v20 = vrot.slane %v1568_v9, %v3904_v59  ;;  %v3204_v9 = vld [vmem:[#allocation6 + $0x1f8] sm:$0xff]  }
 0x127   : > { %2862 = vmatpush3.bf16.msra.mxu0 %v3185_v21  ;;  %2943 = vmatprep.subr.bf16.mxu1 %v3546_v0  ;;  %v1639_v21 = vrot.slane %v1569_v10, %v3904_v59  ;;  %v1607_v37 = vcombine.high %v1598_v19, %v1605_v14 }
 0x128   : > { %2863 = vmatprep.subr.bf16.mxu0 %v3186_v25  ;;  %2957 = vmatprep.mubr.msk.bf16.mxu1 %vm3547_vm0, %v3546_v0  ;;  %v3197_v25 = vld [vmem:[#allocation6 + $0x1a0] sm:$0xff]   ;;  %v1589_v34 = vcombine.low %v1581_v18, %v1588_v13  ;;  %v1590_v35 = vcombine.high %v1581_v18, %v1588_v13 }
 0x129   : > { %v2049_v13 = vld [vmem:[#allocation2 + $0x8] sm:$0x7] }
 0x12a   : > { %2944 = vmatpush3.bf16.msra.mxu1 %v3187_v26  ;;  %v1615_v26 = vrot.slane %v1608_v15, %v3904_v59  ;;  %v1643_v44 = vshrl.u32 %v1589_v34, 16  ;;  %v1646_v45 = vshll.u32 %v1589_v34, 16  ;;  %v1652_v46 = vshll.u32 %v1590_v35, 16  ;;  %v3205_v34 = vld [vmem:[#allocation6 + $0x238] sm:$0xff]  }
 0x12b   : > { %2864 = vmatpush3.bf16.msra.mxu0 %v3188_v31  ;;  %2945 = vmatprep.subr.bf16.mxu1 %v3546_v0  ;;  %v1632_v31 = vrot.slane %v1625_v16, %v3904_v59  ;;  %v2051_v15 = vunpack.c.l.bf16 %v2047_v60  ;;  %v2097_v60 = vld [vmem:[#allocation2 + $0x8] sm:$0xe] }
 0x12c   : > { %2865 = vmatprep.subr.bf16.mxu0 %v3189_v32  ;;  %v2241_v32 = vsub.s32 7, %v3901_v38  ;;  %v1623_v39 = vcombine.low %v1615_v26, %v1622_v20  ;;  %v1645_v55 = vrot.slane %v1643_v44, 6  ;;  %v1648_v56 = vrot.slane %v1646_v45, 7  ;;  %v2065_v45 = vld [vmem:[#allocation2 + $0x8] sm:$0x6]  ;;  %v3221_v38 = vld [vmem:[#allocation12 + $0x30] sm:$0xff]  }
 0x12d   : > { %v1640_v41 = vcombine.low %v1632_v31, %v1639_v21  ;;  %v1641_v42 = vcombine.high %v1632_v31, %v1639_v21  ;;  %v1654_v57 = vrot.slane %v1652_v46, 7  ;;  %v2052_v31 = vunpack.c.l.bf16 %v2048_v8 }
 0x12e   : > { %2946 = vmatpush3.bf16.msra.mxu1 %v3190_v33  ;;  %v3198_v33 = vld [vmem:[#allocation6 + $0x1e8] sm:$0xff]   ;;  %v1671_v53 = vshrl.u32 %v1623_v39, 16  ;;  %v1674_v54 = vshll.u32 %v1623_v39, 16  ;;  %v1649_v4 = vor.u32 %v1648_v56, %v1645_v55  ;;  %v2053_v39 = vunpack.c.l.bf16 %v2049_v13 }
 0x12f   : > { %2866 = vmatpush3.bf16.msra.mxu0 %v3191_v36  ;;  %2947 = vmatprep.subr.bf16.mxu1 %v3546_v0  ;;  %v1606_v36 = vcombine.low %v1598_v19, %v1605_v14  ;;  %v1685_v6 = vshrl.u32 %v1640_v41, 16  ;;  %v1688_v7 = vshll.u32 %v1640_v41, 16  ;;  %v1694_v12 = vshll.u32 %v1641_v42, 16  ;;  %v2050_v14 = vld [vmem:[#allocation2 + $0xc] sm:$0x7]  ;;  %v3206_v41 = vld [vmem:[#allocation6 + $0x1b8] sm:$0xff]  }
 0x130   : > { %2867 = vmatprep.subr.bf16.mxu0 %v3192_v40  ;;  %v1624_v40 = vcombine.high %v1615_v26, %v1622_v20  ;;  %v1673_v1 = vrot.slane %v1671_v53, 6  ;;  %v1676_v2 = vrot.slane %v1674_v54, 7  ;;  %v1650_v16 = vrot.slane %v1649_v4, 2  ;;  %v2063_v20 = vld [vmem:[#allocation2] sm:$0x6] }
 0x131   : > { %v1657_v47 = vshrl.u32 %v1606_v36, 16  ;;  %v1660_v51 = vshll.u32 %v1606_v36, 16  ;;  %v1687_v18 = vrot.slane %v1685_v6, 6  ;;  %v1690_v19 = vrot.slane %v1688_v7, 7  ;;  %v2095_v53 = vld [vmem:[#allocation2] sm:$0xe] }
 0x132   : > { %2948 = vmatpush3.bf16.msra.mxu1 %v3193_v52  ;;  %v1666_v52 = vshll.u32 %v1607_v37, 16  ;;  %v1680_v5 = vshll.u32 %v1624_v40, 16  ;;  %v1677_v11 = vor.u32 %v1676_v2, %v1673_v1  ;;  %v1696_v26 = vrot.slane %v1694_v12, 7  ;;  %v3990_v37 = vld [vmem:[#allocation11] sm:$0xff]  ;;  %v2127_v6 = vld [vmem:[#allocation2 + $0x4] sm:$0x7] }
 0x133   : > { %2868 = vmatpush3.bf16.msra.mxu0 %v3194_v58  ;;  %2949 = vmatprep.subr.bf16.mxu1 %v3546_v0  ;;  %v1659_v58 = vrot.slane %v1657_v47, 6  ;;  %v1662_v62 = vrot.slane %v1660_v51, 7  ;;  %v1655_v35 = vsel %vm3918_vm7, %v1650_v16, %v1654_v57  ;;  %v1691_v36 = vor.u32 %v1690_v19, %v1687_v18  ;;  %v2066_v51 = vld [vmem:[#allocation2 + $0xc] sm:$0x6] }
 0x134   : > { %2869 = vmatprep.subr.bf16.mxu0 %v3195_v63  ;;  %v1668_v63 = vrot.slane %v1666_v52, 7  ;;  %v2054_v40 = vunpack.c.l.bf16 %v2050_v14  ;;  %v2058_v44 = vrot.slane %v3990_v37, %v2057_v22  ;;  %v2067_v46 = vunpack.c.l.bf16 %v2063_v20 }
 0x135   : > { %v1663_v10 = vor.u32 %v1662_v62, %v1659_v58  ;;  %v1692_v47 = vrot.slane %v1691_v36, 2  ;;  %v2096_v58 = vld [vmem:[#allocation2 + $0x4] sm:$0xe]  ;;  %v2069_v1 = vunpack.c.l.bf16 %v2065_v45  ;;  %v2070_v4 = vunpack.c.l.bf16 %v2066_v51 }
 0x136   : > { %2950 = vmatpush3.bf16.msra.mxu1 %v3196_v17  ;;  %v1682_v17 = vrot.slane %v1680_v5, 7  ;;  %v2059_v54 = vmul.f32 %v2058_v44, %v2051_v15  ;;  %v2060_v55 = vmul.f32 %v2058_v44, %v2052_v31  ;;  %v2061_v56 = vmul.f32 %v2058_v44, %v2053_v39 }
 0x137   : > { %2870 = vmatpush3.bf16.msra.mxu0 %v3197_v25  ;;  %2951 = vmatprep.subr.bf16.mxu1 %v3546_v0  ;;  %v1664_v21 = vrot.slane %v1663_v10, 2  ;;  %v1678_v25 = vrot.slane %v1677_v11, 2  ;;  %v2062_v57 = vmul.f32 %v2058_v44, %v2054_v40  ;;  %v1697_v22 = vsel %vm3918_vm7, %v1692_v47, %v1696_v26  ;;  %v2130_v40 = vld [vmem:[#allocation2 + $0x10] sm:$0x7]  ;;  %v3216_v47 = vld [vmem:[#allocation12 + $0x8] sm:$0xff]  }
 0x138   : > { %2871 = vmatprep.subr.bf16.mxu0 %v3198_v33  ;;  %v2064_v33 = vld [vmem:[#allocation2 + $0x4] sm:$0x6]  ;;  %v2074_v5 = vrot.slane %v3990_v37, %v2073_v23  ;;  %v2099_v7 = vunpack.c.l.bf16 %v2095_v53  ;;  %v2100_v8 = vunpack.c.l.bf16 %v2096_v58  ;;  %v2101_v50 = vunpack.c.l.bf16 %v2097_v60  ;;  %v2128_v23 = vld [vmem:[#allocation2 + $0x8] sm:$0x7] }
 0x139   : > { %v1669_v42 = vsel %vm3918_vm7, %v1664_v21, %v1668_v63  ;;  %v2068_v52 = vunpack.c.l.bf16 %v2064_v33  ;;  %v2106_v16 = vrot.slane %v3990_v37, %v2105_v24  ;;  %v3215_v21 = vld [vmem:[#allocation12] sm:$0xff]   ;;  %v2147_v24 = vld [vmem:[#allocation2 + $0x4] sm:$0x6] }
 0x13a   : > { %2952 = vmatpush3.bf16.msra.mxu1 %v3199_v43  ;;  %v1683_v43 = vsel %vm3918_vm7, %v1678_v25, %v1682_v17  ;;  %v2075_v12 = vmul.f32 %v2074_v5, %v2067_v46  ;;  %v2077_v14 = vmul.f32 %v2074_v5, %v2069_v1  ;;  %v2078_v15 = vmul.f32 %v2074_v5, %v2070_v4  ;;  %v2148_v46 = vld [vmem:[#allocation2 + $0x8] sm:$0x6]  ;;  %v3217_v1 = vld [vmem:[#allocation12 + $0x10] sm:$0xff]  }
 0x13b   : > { %2872 = vmatpush3.bf16.msra.mxu0 %v3200_v48  ;;  %2953 = vmatprep.subr.bf16.mxu1 %v3546_v0  ;;  %v1747_v48 = vcombine.low %v1655_v35, %v1669_v42  ;;  %v1749_v2 = vcombine.low %v1683_v43, %v1697_v22  ;;  %v2076_v13 = vmul.f32 %v2074_v5, %v2068_v52  ;;  %v2131_v17 = vunpack.c.l.bf16 %v2127_v6 }
 0x13c   : > { %2873 = vmatprep.subr.bf16.mxu0 %v3201_v49  ;;  %v1748_v49 = vcombine.high %v1655_v35, %v1669_v42  ;;  %v2083_v25 = vrot.slane %v2075_v12, 1  ;;  %v2085_v31 = vrot.slane %v2077_v14, 1  ;;  %v2086_v33 = vrot.slane %v2078_v15, 1 }
 0x13d   : > { %v1757_v62 = vrot.slane %v1747_v48, %v3904_v59  ;;  %v1771_v10 = vrot.slane %v1749_v2, %v3904_v59  ;;  %v2084_v26 = vrot.slane %v2076_v13, 1  ;;  %v2108_v36 = vmul.f32 %v2106_v16, %v2100_v8 }
 0x13e   : > { %2954 = vmatpush3.bf16.msra.mxu1 %v3202_v61  ;;  %v2098_v61 = vld [vmem:[#allocation2 + $0xc] sm:$0xe]  ;;  %v1764_v63 = vrot.slane %v1748_v49, %v3904_v59  ;;  %v2091_v35 = vadd.f32 %v2083_v25, %v2059_v54  ;;  %v2109_v39 = vmul.f32 %v2106_v16, %v2101_v50  ;;  %v2094_v44 = vadd.f32 %v2086_v33, %v2062_v57  ;;  %v2150_v57 = vld [vmem:[#allocation2 + $0x10] sm:$0x6]  ;;  %v2180_v50 = vld [vmem:[#allocation2 + $0x8] sm:$0xe] }
 0x13f   : > { %2874 = vmatpush3.bf16.msra.mxu0 %v3203_v3  ;;  %2955 = vmatprep.subr.bf16.mxu1 %v3546_v0  ;;  %v1750_v3 = vcombine.high %v1683_v43, %v1697_v22  ;;  %v1780_v18 = vcombine.high %v1757_v62, %v1771_v10  ;;  %v1779_v20 = vcombine.low %v1757_v62, %v1771_v10  ;;  %v2116_v49 = vrot.slane %v2108_v36, 2  ;;  %v2182_v10 = vld [vmem:[#allocation2 + $0x10] sm:$0xe] }
 0x140   : > { %2875 = vmatprep.subr.bf16.mxu0 %v3204_v9  ;;  %v2102_v9 = vunpack.c.l.bf16 %v2098_v61  ;;  %v2092_v42 = vadd.f32 %v2084_v26, %v2060_v55  ;;  %v2093_v43 = vadd.f32 %v2085_v31, %v2061_v56  ;;  %v2117_v51 = vrot.slane %v2109_v39, 2  ;;  %v2149_v56 = vld [vmem:[#allocation2 + $0xc] sm:$0x6]  ;;  %v3218_v31 = vld [vmem:[#allocation12 + $0x18] sm:$0xff]  }
 0x141   : > { %v1778_v11 = vrot.slane %v1750_v3, %v3904_v59  ;;  %v2129_v59 = vld [vmem:[#allocation2 + $0xc] sm:$0x7]  ;;  %1961 = vmatprep.mubr.bf16.mxu0 %v1780_v18  ;;  %v2134_v54 = vunpack.c.l.bf16 %v2130_v40  ;;  %v2138_v55 = vrot.slane %v3990_v37, %v2137_v27  ;;  %v2151_v58 = vunpack.c.l.bf16 %v2147_v24  ;;  %v2211_v18 = vld [vmem:[#allocation2 + $0x8] sm:$0x7]  ;;  %v2214_v39 = vld [vmem:[#allocation2 + $0x14] sm:$0x7] }
 0x142   : > { %2956 = vmatpush3.bf16.msra.mxu1 %v3205_v34  ;;  %v2107_v34 = vmul.f32 %v2106_v16, %v2099_v7  ;;  %v2110_v45 = vmul.f32 %v2106_v16, %v2102_v9  ;;  %v2133_v52 = vunpack.c.l.bf16 %v2129_v59  ;;  %v2124_v61 = vadd.f32 %v2116_v49, %v2092_v42  ;;  %v2181_v9 = vld [vmem:[#allocation2 + $0xc] sm:$0xe]  ;;  %v2231_v42 = vld [vmem:[#allocation2 + $0x8] sm:$0x6] }
 0x143   : > { %2876 = vmatpush3.bf16.msra.mxu0 %v3206_v41  ;;  %v1781_v19 = vcombine.low %v1764_v63, %v1778_v11  ;;  %v2132_v41 = vunpack.c.l.bf16 %v2128_v23  ;;  %v2125_v22 = vadd.f32 %v2117_v51, %v2093_v43  ;;  %v2152_v62 = vunpack.c.l.bf16 %v2148_v46  ;;  %v2179_v63 = vld [vmem:[#allocation2 + $0x4] sm:$0xe] }
 0x144   : > { %2961 = vmatprep.subr.bf16.mxu0 %v3546_v0  ;;  %v2115_v48 = vrot.slane %v2107_v34, 2  ;;  %v2118_v53 = vrot.slane %v2110_v45, 2  ;;  %v2139_v3 = vmul.f32 %v2138_v55, %v2131_v17  ;;  %v2141_v5 = vmul.f32 %v2138_v55, %v2133_v52 }
 0x145   : > { %2958 = vmatmul.mubr.bf16.vlgmr.msra.gmra.mrb[0].mxu1 %v1781_v19  ;;  %v2140_v4 = vmul.f32 %v2138_v55, %v2132_v41  ;;  %v2142_v6 = vmul.f32 %v2138_v55, %v2134_v54  ;;  %v2153_v7 = vunpack.c.l.bf16 %v2149_v56  ;;  %v2154_v8 = vunpack.c.l.bf16 %v2150_v57  ;;  %v2212_v19 = vld [vmem:[#allocation2 + $0xc] sm:$0x7]  ;;  %v2233_v56 = vld [vmem:[#allocation2 + $0x10] sm:$0x6] }
 0x146   : > { %1962 = vmatmul.mubr.bf16.vlgmr.msra.gmra.mrb[8].mxu0 %v1779_v20  ;;  %v2123_v60 = vadd.f32 %v2115_v48, %v2091_v35  ;;  %v2126_v2 = vadd.f32 %v2118_v53, %v2094_v44  ;;  %v2158_v27 = vrot.slane %v3990_v37, %v2157_v28  ;;  %v2145_v13 = vadd.f32 %v2141_v5, %v2125_v22  ;;  %v2213_v20 = vld [vmem:[#allocation2 + $0x10] sm:$0x7]  ;;  %v3219_v53 = vld [vmem:[#allocation12 + $0x20] sm:$0xff]   ;;  %v2234_v22 = vld [vmem:[#allocation2 + $0x14] sm:$0x6] }
 0x147   : > { %2962 = vmatpush3.bf16.msra.mxu0 %v3215_v21  ;;  %2977 = vmatprep.mubr.msk.bf16.mxu0 %vm3547_vm0, %v3546_v0  ;;  %v2144_v12 = vadd.f32 %v2140_v4, %v2124_v61  ;;  %v2183_v14 = vunpack.c.l.bf16 %v2179_v63  ;;  %v2184_v25 = vunpack.c.l.bf16 %v2180_v50  ;;  %v2185_v26 = vunpack.c.l.bf16 %v2181_v9  ;;  %v2263_v4 = vld [vmem:[#allocation2 + $0x8] sm:$0xe] }
 0x148   : > { %2963 = vmatprep.subr.bf16.mxu0 %v3546_v0  ;;  %v2143_v11 = vadd.f32 %v2139_v3, %v2123_v60  ;;  %v2146_v15 = vadd.f32 %v2142_v6, %v2126_v2  ;;  %v2159_v16 = vmul.f32 %v2158_v27, %v2151_v58  ;;  %v2160_v23 = vmul.f32 %v2158_v27, %v2152_v62  ;;  %v3220_v5 = vld [vmem:[#allocation12 + $0x28] sm:$0xff]   ;;  %v2774_v6 = vld [vmem:[#allocation11 + $0x8] ss:$0 sm:$0xff] }
 0x149   : > { %v2161_v17 = vmul.f32 %v2158_v27, %v2153_v7  ;;  %v2162_v21 = vmul.f32 %v2158_v27, %v2154_v8  ;;  %v2186_v28 = vunpack.c.l.bf16 %v2182_v10  ;;  %v2190_v35 = vrot.slane %v3990_v37, %v2189_v29 }
 0x14a   : > { %v2167_v33 = vrot.slane %v2159_v16, 1  ;;  %v2168_v34 = vrot.slane %v2160_v23, 1  ;;  %v2215_v40 = vunpack.c.l.bf16 %v2211_v18  ;;  %v2216_v41 = vunpack.c.l.bf16 %v2212_v19 }
 0x14b   : > { %2964 = vmatpush3.bf16.msra.mxu0 %v3216_v47  ;;  %v2169_v59 = vrot.slane %v2161_v17, 1  ;;  %v2170_v36 = vrot.slane %v2162_v21, 1  ;;  %v2217_v24 = vunpack.c.l.bf16 %v2213_v20  ;;  %v2191_v46 = vmul.f32 %v2190_v35, %v2183_v14  ;;  %v2232_v47 = vld [vmem:[#allocation2 + $0xc] sm:$0x6]  ;;  %v2266_v14 = vld [vmem:[#allocation2 + $0x14] sm:$0xe] }
 0x14c   : > { %2965 = vmatprep.subr.bf16.mxu0 %v3546_v0  ;;  %v2175_v43 = vadd.f32 %v2167_v33, %v2143_v11  ;;  %v2176_v44 = vadd.f32 %v2168_v34, %v2144_v12  ;;  %v2192_v49 = vmul.f32 %v2190_v35, %v2184_v25  ;;  %v2193_v51 = vmul.f32 %v2190_v35, %v2185_v26  ;;  %v2264_v12 = vld [vmem:[#allocation2 + $0xc] sm:$0xe] }
 0x14d   : > { %v2177_v45 = vadd.f32 %v2169_v59, %v2145_v13  ;;  %v2178_v48 = vadd.f32 %v2170_v36, %v2146_v15  ;;  %v2194_v52 = vmul.f32 %v2190_v35, %v2186_v28  ;;  %v2199_v29 = vrot.slane %v2191_v46, 2  ;;  %v2265_v13 = vld [vmem:[#allocation2 + $0x10] sm:$0xe]  ;;  %v3222_v46 = vld [vmem:[#allocation12 + $0x38] sm:$0xff]  }
 0x14e   : > { %v2218_v54 = vunpack.c.l.bf16 %v2214_v39  ;;  %v2222_v55 = vrot.slane %v3990_v37, %v2221_v30  ;;  %v2235_v57 = vunpack.c.l.bf16 %v2231_v42  ;;  %v2200_v58 = vrot.slane %v2192_v49, 2 }
 0x14f   : > { %2966 = vmatpush3.bf16.msra.mxu0 %v3217_v1  ;;  %v2201_v60 = vrot.slane %v2193_v51, 2  ;;  %v2202_v61 = vrot.slane %v2194_v52, 2  ;;  %v2236_v62 = vunpack.c.l.bf16 %v2232_v47  ;;  %v2207_v63 = vadd.f32 %v2199_v29, %v2175_v43 }
 0x150   : > { %2967 = vmatprep.subr.bf16.mxu0 %v3546_v0  ;;  %v2223_v1 = vmul.f32 %v2222_v55, %v2215_v40  ;;  %v2224_v2 = vmul.f32 %v2222_v55, %v2216_v41  ;;  %v2225_v3 = vmul.f32 %v2222_v55, %v2217_v24  ;;  %v2208_v7 = vadd.f32 %v2200_v58, %v2176_v44 }
 0x151   : > { %v2209_v8 = vadd.f32 %v2201_v60, %v2177_v45  ;;  %v2210_v27 = vadd.f32 %v2202_v61, %v2178_v48  ;;  %v2226_v30 = vmul.f32 %v2222_v55, %v2218_v54  ;;  %v2237_v9 = vunpack.c.l.bf16 %v2233_v56 }
 0x152   : > { %v2227_v50 = vadd.f32 %v2223_v1, %v2207_v63  ;;  %v2238_v10 = vunpack.c.l.bf16 %v2234_v22  ;;  %v2242_v11 = vrot.slane %v3990_v37, %v2241_v32  ;;  %v2228_v15 = vadd.f32 %v2224_v2, %v2208_v7 }
 0x153   : > { %2968 = vmatpush3.bf16.msra.mxu0 %v3218_v31  ;;  %v2229_v16 = vadd.f32 %v2225_v3, %v2209_v8  ;;  %v2230_v23 = vadd.f32 %v2226_v30, %v2210_v27  ;;  %v2267_v17 = vunpack.c.l.bf16 %v2263_v4  ;;  %v2268_v25 = vunpack.c.l.bf16 %v2264_v12 }
 0x154   : > { %2969 = vmatprep.subr.bf16.mxu0 %v3546_v0  ;;  %v2243_v18 = vmul.f32 %v2242_v11, %v2235_v57  ;;  %v2244_v19 = vmul.f32 %v2242_v11, %v2236_v62  ;;  %v2245_v20 = vmul.f32 %v2242_v11, %v2237_v9  ;;  %v2246_v21 = vmul.f32 %v2242_v11, %v2238_v10 }
 0x155   : > { %v2269_v26 = vunpack.c.l.bf16 %v2265_v13  ;;  %v2270_v28 = vunpack.c.l.bf16 %v2266_v14  ;;  %v2275_v31 = vmul.f32 %v2774_v6, %v2267_v17  ;;  %v2276_v59 = vmul.f32 %v2774_v6, %v2268_v25 }
 0x156   : > { %v2251_v32 = vrot.slane %v2243_v18, 1  ;;  %v2252_v37 = vrot.slane %v2244_v19, 1  ;;  %v2253_v33 = vrot.slane %v2245_v20, 1  ;;  %v2254_v34 = vrot.slane %v2246_v21, 1 }
 0x157   : > { %2970 = vmatpush3.bf16.msra.mxu0 %v3219_v53  ;;  %v2277_v35 = vmul.f32 %v2774_v6, %v2269_v26  ;;  %v2278_v36 = vmul.f32 %v2774_v6, %v2270_v28  ;;  %v2283_v39 = vrot.slane %v2275_v31, 2  ;;  %v2284_v43 = vrot.slane %v2276_v59, 2 }
 0x158   : > { %2971 = vmatprep.subr.bf16.mxu0 %v3546_v0  ;;  %v2259_v40 = vadd.f32 %v2251_v32, %v2227_v50  ;;  %v2260_v41 = vadd.f32 %v2252_v37, %v2228_v15  ;;  %v2261_v24 = vadd.f32 %v2253_v33, %v2229_v16  ;;  %v2262_v42 = vadd.f32 %v2254_v34, %v2230_v23  ;;  %v2772_v32 = vld [vmem:[#allocation8] ss:$0 sm:$0xff]  ;;  %v2773_v34 = vld [vmem:[#allocation9] ss:$0 sm:$0xff] }
 0x159   : > { %v2285_v44 = vrot.slane %v2277_v35, 2  ;;  %v2286_v45 = vrot.slane %v2278_v36, 2 }
 0x15a   : > { %v2291_v47 = vadd.f32 %v2283_v39, %v2259_v40  ;;  %v2292_v48 = vadd.f32 %v2284_v43, %v2260_v41 }
 0x15b   : > { %2972 = vmatpush3.bf16.msra.mxu0 %v3220_v5  ;;  %v2293_v49 = vadd.f32 %v2285_v44, %v2261_v24  ;;  %v2294_v51 = vadd.f32 %v2286_v45, %v2262_v42 }
 0x15c   : > { %2973 = vmatprep.subr.bf16.mxu0 %v3546_v0  ;;  %v2299_v52 = vcombine.high %v2291_v47, %v2291_v47  ;;  %v2775_v53 = vrot.slane %v2291_v47, 9  ;;  %v2300_v29 = vcombine.high %v2292_v48, %v2292_v48  ;;  %v2776_v56 = vrot.slane %v2292_v48, 9 }
 0x15d   : > { %v2301_v54 = vcombine.high %v2293_v49, %v2293_v49  ;;  %v2302_v55 = vcombine.high %v2294_v51, %v2294_v51  ;;  %v2777_v58 = vrot.slane %v2293_v49, 9  ;;  %v2778_v60 = vrot.slane %v2294_v51, 9 }
 0x15e   : > { %v2308_v57 = vrot.slane %v2299_v52, 5  ;;  %v2312_v61 = vrot.slane %v2300_v29, 5 }
 0x15f   : > { %2974 = vmatpush3.bf16.msra.mxu0 %v3221_v38  ;;  %v2316_v22 = vrot.slane %v2301_v54, 5  ;;  %v2320_v62 = vrot.slane %v2302_v55, 5 }
 0x160   : > { %2975 = vmatprep.subr.bf16.mxu0 %v3546_v0  ;;  %v2309_v63 = vsel %vm2305_vm10, %v2775_v53, %v2308_v57  ;;  %v2313_v1 = vsel %vm2305_vm10, %v2776_v56, %v2312_v61 }
 0x161   : > { %v2317_v0 = vsel %vm2305_vm10, %v2777_v58, %v2316_v22  ;;  %v2321_v2 = vsel %vm2305_vm10, %v2778_v60, %v2320_v62  ;;  %v2322_v3 = vcombine.low %v2309_v63, %v2313_v1 }
 0x162   : > { %v2323_v4 = vcombine.low %v2317_v0, %v2321_v2 }
 0x163   : > { %2976 = vmatpush3.bf16.msra.mxu0 %v3222_v46 }
 0x164   : > { %v2326_v5 = vpack.c.bf16 %v2323_v4, %v2322_v3 }
 0x166   : > { %2978 = vmatmul.mubr.bf16.vlgmr.msra.gmra.mrb[12].mxu0 %v2326_v5 }
 0x1d9   : > { %v2815_v6 = vpop.f32.mrb[0].mxu0 }
 0x1da   : > { %v2816_v7 = vpop.f32.mrb[1].mxu0 }
 0x1db   : > { %v2817_v8 = vadd.f32 %v2816_v7, %v2815_v6  ;;  %v2818_v27 = vpop.f32.mrb[2].mxu0 }
 0x1dc   : > { %v2819_v30 = vpop.f32.mrb[3].mxu0 }
 0x1dd   : > { %v2820_v50 = vadd.f32 %v2819_v30, %v2818_v27 }
 0x1f9   : > { %v2846_v9 = vpop.f32.mrb[4].mxu0 }
 0x1fa   : > { %v2847_v10 = vpop.f32.mrb[5].mxu0 }
 0x1fb   : > { %v2848_v11 = vadd.f32 %v2847_v10, %v2846_v9  ;;  %v2849_v12 = vpop.f32.mrb[6].mxu0 }
 0x1fc   : > { %v2850_v13 = vpop.f32.mrb[7].mxu0 }
 0x1fd   : > { %v2981_v14 = vadd.f32 %v2848_v11, %v2817_v8  ;;  %v2851_v15 = vadd.f32 %v2850_v13, %v2849_v12 }
 0x1ff   : > { %v2984_v16 = vadd.f32 %v2851_v15, %v2820_v50 }
 0x218   : > { %v2004_v23 = vpop.f32.mrb[0].mxu1 }
 0x219   : > { %v2877_v17 = vpop.f32.mrb[8].mxu0  ;;  %v2959_v18 = vpop.f32.mrb[1].mxu1 }
 0x21a   : > { %v2878_v19 = vpop.f32.mrb[9].mxu0  ;;  %v2007_v20 = vpop.f32.mrb[2].mxu1 }
 0x21b   : > { %v2879_v21 = vadd.f32 %v2878_v19, %v2877_v17  ;;  %v2880_v25 = vpop.f32.mrb[10].mxu0  ;;  %v2960_v26 = vpop.f32.mrb[3].mxu1 }
 0x21c   : > { %v2881_v28 = vpop.f32.mrb[11].mxu0 }
 0x21d   : > { %v2982_v31 = vadd.f32 %v2981_v14, %v2879_v21  ;;  %v2882_v38 = vadd.f32 %v2881_v28, %v2880_v25 }
 0x21f   : > { %v2983_v37 = vadd.f32 %v2982_v31, %v2004_v23  ;;  %v2985_v33 = vadd.f32 %v2984_v16, %v2882_v38 }
 0x221   : > { %v2020_v59 = vmul.f32 %v2983_v37, %v2772_v32  ;;  %v2986_v35 = vadd.f32 %v2985_v33, %v2007_v20 }
 0x223   : > { %v2029_v36 = vadd.f32 %v2773_v34, %v2020_v59  ;;  %v2021_v39 = vmul.f32 %v2986_v35, %v2772_v32 }
 0x225   : > { %v2033_v40 = vcombine.high %v2029_v36, %v2029_v36  ;;  %v2037_v41 = vpack.c.bf16 %v2029_v36, %v2029_v36  ;;  %v2030_v24 = vadd.f32 %v2773_v34, %v2021_v39 }
 0x227   : > { %v2038_v42 = vpack.c.bf16 %v2033_v40, %v2033_v40  ;;  %2041 = vst [vmem:[%s408_s18] sm:$0x3] %v2037_v41  ;;  %v2034_v43 = vcombine.high %v2030_v24, %v2030_v24  ;;  %v2039_v44 = vpack.c.bf16 %v2030_v24, %v2030_v24 }
 0x229   : > { %2042 = vst [vmem:[%s408_s18 + $0x2] sm:$0x3] %v2038_v42  ;;  %v2040_v45 = vpack.c.bf16 %v2034_v43, %v2034_v43  ;;  %2043 = vst [vmem:[%s408_s18 + $0x4] sm:$0x3] %v2039_v44 }
 0x22b   : > { %2044 = vst [vmem:[%s408_s18 + $0x6] sm:$0x3] %v2040_v45 }
 0x22c   : > { %3434 = shalt.err (!%p3431_p8)
}
 0x22d   : > { %s3435_s20 = scalar_lea.hbm %s4044_s17, 128  ;;  %s3439_s23 = scalar_lea.hbm %s4137_s7, 256 }
 0x22e   : > { %p3436_p4 = scmp.ne.s32.totalorder %s4044_s17, %s3435_s20  ;;  %p3440_p0 = scmp.lt.u32.totalorder %s4044_s17, %s4137_s7 }
 0x22f   : > { %p3441_p5 = scmp.lt.u32.totalorder %s3439_s23, %s3435_s20  ;;  %p3443_p6 = scmp.lt.u32.totalorder %s3435_s20, %s4044_s17 }
 0x230   : > { %p3437_p10 = pnand %p3436_p4, %p4162_p9 }
 0x231   : > { %p3442_p7 = por %p3441_p5, %p3440_p0 }
 0x232   : > { %p3438_p11 = pneg %p3437_p10 }
 0x233   : > { %p3444_p12 = por %p3443_p6, %p3442_p7 }
 0x235   : > { %p3445_p13 = pnand %p3444_p12, %p3438_p11 }
 0x237   : > { %3448 = shalt.err (!%p3445_p13)
}
 0x238   : > { %s3551_s26 = smov 32   ;;  %s3552_s19 = smov 2   ;;  %v2779_v46 = vld [vmem:[#allocation14] ss:$0 sm:$0xff] }
 0x239   : > { %3021 = dma.vmem_to_hbm [thread:$0]  (%p4162_p9), %s4046_s14, 128, %s4044_s17, %s2454_s25, %s3551_s26, %s3551_s26, %s3552_s19   ;;  %v2432_v47 = vpop.f32.mrb[12].mxu0 }
 0x23a   : > { %v2433_v48 = vadd.f32 %v2779_v46, %v2432_v47  ;;  %v2979_v49 = vpop.f32.mrb[13].mxu0  ;;  %s415_s20 = scalar_lea.vmem [#allocation16], %s3864_s22  ;;  %s4083_s22 = scalar_lea.hbm %s4138_s8, %s2797_s12 }
 0x23b   : > { %v2435_v51 = vpop.f32.mrb[14].mxu0  ;;  %s2488_s18 = sshll.u32 %s415_s20, 4  ;;  %s2459_s25 = scalar_lea.sflag [#allocation17], %s3861_s10  ;;  %s4076_s18 = int_to_ptr.vmem [resolvable:$true] %s2488_s18 }
 0x23c   : > { %v2441_v52 = vcombine.high %v2433_v48, %v2433_v48  ;;  %v2445_v53 = vpack.c.bf16 %v2433_v48, %v2433_v48  ;;  %v2436_v29 = vadd.f32 %v2779_v46, %v2435_v51  ;;  %v2980_v54 = vpop.f32.mrb[15].mxu0  ;;  %s3449_s16 = scalar_lea.vmem %s4076_s18, 128  ;;  %s3553_s23 = smov [#allocation16]  }
 0x23d   : > { %p3450_p1 = scmp.ne.s32.totalorder %s4076_s18, %s3449_s16  ;;  %s3453_s9 = sshll.u32 %s3553_s23, 4  ;;  %s3454_s9 = int_to_ptr.vmem [resolvable:$false] %s3453_s9 }
 0x23e   : > { %v2446_v55 = vpack.c.bf16 %v2441_v52, %v2441_v52  ;;  %2449 = vst [vmem:[%s415_s20] sm:$0x3] %v2445_v53  ;;  %v2442_v56 = vcombine.high %v2436_v29, %v2436_v29  ;;  %v2447_v57 = vpack.c.bf16 %v2436_v29, %v2436_v29  ;;  %s3455_s1 = scalar_lea.vmem %s3454_s9, 256  ;;  %p3456_p8 = scmp.lt.s32.totalorder %s4076_s18, %s3454_s9 }
 0x23f   : > { %p3451_p3 = pnand %p3450_p1, %p4162_p9  ;;  %p3457_p4 = scmp.lt.s32.totalorder %s3455_s1, %s3449_s16 }
 0x240   : > { %2450 = vst [vmem:[%s415_s20 + $0x2] sm:$0x3] %v2446_v55  ;;  %v2448_v58 = vpack.c.bf16 %v2442_v56, %v2442_v56  ;;  %2451 = vst [vmem:[%s415_s20 + $0x4] sm:$0x3] %v2447_v57 }
 0x241   : > { %p3452_p2 = pneg %p3451_p3  ;;  %p3458_p10 = por %p3457_p4, %p3456_p8 }
 0x242   : > { %2452 = vst [vmem:[%s415_s20 + $0x6] sm:$0x3] %v2448_v58 }
 0x243   : > { %p3459_p11 = pnand %p3458_p10, %p3452_p2 }
 0x245   : > { %3462 = shalt.err (!%p3459_p11)
}
 0x246   : > { %s3463_s11 = scalar_lea.hbm %s4083_s22, 128  ;;  %s3467_s14 = scalar_lea.hbm %s4138_s8, 256 }
 0x247   : > { %p3464_p0 = scmp.ne.s32.totalorder %s4083_s22, %s3463_s11  ;;  %p3468_p6 = scmp.lt.u32.totalorder %s4083_s22, %s4138_s8 }
 0x248   : > { %p3469_p12 = scmp.lt.u32.totalorder %s3467_s14, %s3463_s11  ;;  %p3471_p1 = scmp.lt.u32.totalorder %s3463_s11, %s4083_s22 }
 0x249   : > { %p3465_p5 = pnand %p3464_p0, %p4162_p9 }
 0x24a   : > { %p3470_p13 = por %p3469_p12, %p3468_p6 }
 0x24b   : > { %p3466_p7 = pneg %p3465_p5 }
 0x24c   : > { %p3472_p3 = por %p3471_p1, %p3470_p13 }
 0x24e   : > { %p3473_p2 = pnand %p3472_p3, %p3466_p7 }
 0x250   : > { %3476 = shalt.err (!%p3473_p2)
}
 0x251   : > { %3022 = dma.vmem_to_hbm [thread:$0]  (%p4162_p9), %s4076_s18, 128, %s4083_s22, %s2459_s25, %s3551_s26, %s3551_s26, %s3552_s19  }
 0x252 PF: > { %s2503_s16 = sand.u32 1, %s3519_s27   ;;  %p4163_p8 = scmp.ne.s32.totalorder %s4151_s24, 0 }
 0x253   : > { %p4164_p4 = scmp.ge.s32.totalorder %s3531_s30, 2  ;;  %s2504_s9 = scalar_lea.sflag [#allocation5], %s2503_s16 }
 0x255   : > { %p3049_p10 = pnand %p4164_p4, %p4163_p8 }
 0x257   : > { %3510 = dma.done.wait (!%p3049_p10), %s2504_s9, 128  }
 0x258   : > { %3512 = vsyncadd (!%p3049_p10), %s2504_s9, 4294967168  ;;  %s2513_s21 = scalar_lea.sflag [#allocation17], %s2503_s16 }
 0x259   : > { %3514 = dma.done.wait (!%p3049_p10), %s2513_s21, 128  }
 0x25a   : > { %3516 = vsyncadd (!%p3049_p10), %s2513_s21, 4294967168  ;;  %p28_p9 = scmp.ge.s32.totalorder %s3782_s15, 4   ;;  %s4165_s27 = smov %s3523_s28 }
 0x25b   : > { %s4166_s28 = smov %s3527_s29  ;;  %s4167_s29 = smov %s3793_s13 }
 0x25c   : > { %s4168_s30 = smov %s3782_s15  ;;  %30 = sbr.rel (!%p28_p9) target bundleno = 12 (0xc), region = 139 }
 0x263   :  { %2518 = vsyncpa [#allocation4], 1 }
 0x264   :  { %2520 = vsyncpa [#allocation4 + $0x1], 1 }
 0x265   :  { %2521 = vsyncpa [#allocation7], 1 }
 0x266   :  { %2522 = vsyncpa [#allocation10], 1 }
 0x267   :  { %2523 = vsyncpa [#allocation13], 1 }
 0x268   :  { %2524 = vsyncpa [#allocation5], 1 }
 0x269   :  { %2526 = vsyncpa [#allocation5 + $0x1], 1 }
 0x26a   :  { %2527 = vsyncpa [#allocation17], 1 }
 0x26b   :  { %2529 = vsyncpa [#allocation17 + $0x1], 1 }

// kernel: bga_forward.3
= control target key start
LH: loop header
LB: loop body
LE: loop exit
PB: predicated region body
PF: predicated region fallthrough
CT: control target
= control target key end

     0   :  { %14 = vsyncpa [#allocation5], 0  ;;  %s5933_s0 = inlined_call_operand.hbm [shape: bf16[2,16,16,128], index: 0, kind: input, shape index: {}]   ;;  %s5934_s1 = inlined_call_operand.hbm [shape: f32[9,128], index: 1, kind: input, shape index: {}]   ;;  %s5935_s2 = inlined_call_operand.hbm [shape: bf16[128,128], index: 2, kind: input, shape index: {}]   ;;  %s5936_s3 = inlined_call_operand.hbm [shape: f32[1,128], index: 3, kind: input, shape index: {}]   ;;  %s5937_s4 = inlined_call_operand.hbm [shape: bf16[3,384,128], index: 4, kind: input, shape index: {}]   ;;  %s5938_s5 = inlined_call_operand.hbm [shape: f32[1,128], index: 5, kind: input, shape index: {}]   ;;  %s5939_s6 = inlined_call_operand.hbm [shape: f32[1,128], index: 6, kind: input, shape index: {}]   ;;  %s5940_s7 = inlined_call_operand.hbm [shape: bf16[2,16,16,128], index: 7, kind: output, shape index: {0}]   ;;  %s5941_s8 = inlined_call_operand.hbm [shape: bf16[2,4,4,128], index: 8, kind: output, shape index: {1}]  }
   0x1   :  { %16 = vsyncpa [#allocation5 + $0x1], 0 }
   0x2   :  { %17 = vsyncpa [#allocation8], 0 }
   0x3   :  { %18 = vsyncpa [#allocation11], 0 }
   0x4   :  { %19 = vsyncpa [#allocation14], 0 }
   0x5   :  { %20 = vsyncpa [#allocation6], 0 }
   0x6   :  { %22 = vsyncpa [#allocation6 + $0x1], 0 }
   0x7   :  { %23 = vsyncpa [#allocation18], 0 }
   0x8   :  { %25 = vsyncpa [#allocation18 + $0x1], 0  ;;  %s4704_s27 = smov 0   ;;  %s4706_s28 = smov 0  }
   0x9   :  { %s4708_s29 = smov 0   ;;  %s4710_s30 = smov 0  }
   0xa LB: > { %s4641_s9 = smov [#allocation7]   ;;  %s4725_s11 = sadd.s32 4294967295, %s4639_s30   ;;  %s4639_s30 = sphi %s4710_s30, %s5971_s30   ;;  %s4635_s29 = sphi %s4708_s29, %s5970_s29   ;;  %s4631_s28 = sphi %s4706_s28, %s5969_s28   ;;  %s4627_s27 = sphi %s4704_s27, %s5968_s27  }
   0xb   : > { %s252_s10 = sshll.u32 %s4641_s9, 4  ;;  %p3435_p0 = scmp.ge.s32.totalorder %s4639_s30, 1  ;;  %s4730_s10 = int_to_ptr.vmem [resolvable:$true] %s252_s10 }
   0xc   : > { %p5942_p1 = scmp.eq.s32.totalorder %s4725_s11, 0  ;;  %p240_p2 = scmp.lt.s32.totalorder %s4639_s30, 3 }
   0xd   : > { %s4642_s13 = smov [#allocation10]   ;;  %s4643_s16 = smov [#allocation13]  }
   0xe   : > { %p4732_p3 = pnand %p3435_p0, %p240_p2  ;;  %s279_s14 = sshll.u32 %s4642_s13, 4  ;;  %s4745_s14 = int_to_ptr.vmem [resolvable:$true] %s279_s14 }
   0xf   : > { %s303_s17 = sshll.u32 %s4643_s16, 4  ;;  %s4331_s20 = scalar_lea.hbm %s5934_s1, 256  ;;  %s4747_s17 = int_to_ptr.vmem [resolvable:$true] %s303_s17 }
  0x10   : > { %s5947_s12 = scalar_select %p4732_p3, 1, 0 }
  0x11   : > { %p4159_p5 = pneg %p4732_p3  ;;  %p4332_p7 = scmp.ne.s32.totalorder %s5934_s1, %s4331_s20 }
  0x12   : > { %p4338_p11 = scmp.lt.u32.totalorder %s4331_s20, %s5934_s1 }
  0x13   : > { %p4741_p6 = pnand %p4159_p5, %p5942_p1 }
  0x15   : > { %p4757_p8 = pneg %p4741_p6 }
  0x17   : > { %p4334_p9 = pnand %p4757_p8, %p4332_p7 }
  0x19   : > { %p4335_p10 = pneg %p4334_p9 }
  0x1b   : > { %p4340_p12 = pnand %p4338_p11, %p4335_p10 }
  0x1d   : > { %4343 = shalt.err (!%p4340_p12)
}
  0x1e   : > { %s4344_s26 = scalar_lea.vmem %s4730_s10, 256  ;;  %p4352_p5 = scmp.lt.s32.totalorder %s4730_s10, %s4730_s10 }
  0x1f   : > { %p4345_p13 = scmp.ne.s32.totalorder %s4730_s10, %s4344_s26  ;;  %p4353_p4 = scmp.lt.s32.totalorder %s4344_s26, %s4344_s26 }
  0x21   : > { %p4347_p0 = pnand %p4345_p13, %p4757_p8  ;;  %p4354_p7 = por %p4353_p4, %p4352_p5 }
  0x23   : > { %p4348_p2 = pneg %p4347_p0 }
  0x25   : > { %p4355_p9 = pnand %p4354_p7, %p4348_p2 }
  0x27   : > { %4358 = shalt.err (!%p4355_p9)
}
  0x28   : > { %s4644_s9 = smov 128   ;;  %s4645_s13 = smov 8  }
  0x29   : > { %4162 = dma.hbm_to_vmem [thread:$0]  (!%p4741_p6), %s5934_s1, 256, %s4730_s10, [#allocation8], %s4644_s9, %s4644_s9, %s4645_s13  }
  0x2a   : > { %s4359_s21 = scalar_lea.hbm %s5936_s3, 16 }
  0x2b   : > { %p4360_p4 = scmp.ne.s32.totalorder %s5936_s3, %s4359_s21  ;;  %p4366_p12 = scmp.lt.u32.totalorder %s4359_s21, %s5936_s3 }
  0x2d   : > { %p4362_p10 = pnand %p4360_p4, %p4757_p8 }
  0x2f   : > { %p4363_p11 = pneg %p4362_p10 }
  0x31   : > { %p4368_p13 = pnand %p4366_p12, %p4363_p11 }
  0x33   : > { %4371 = shalt.err (!%p4368_p13)
}
  0x34   : > { %s4372_s10 = scalar_lea.vmem %s4745_s14, 16  ;;  %s4379_s9 = scalar_lea.vmem %s4745_s14, 32 }
  0x35   : > { %p4373_p0 = scmp.ne.s32.totalorder %s4745_s14, %s4372_s10  ;;  %p4380_p7 = scmp.lt.s32.totalorder %s4745_s14, %s4745_s14 }
  0x36   : > { %p4381_p9 = scmp.lt.s32.totalorder %s4379_s9, %s4372_s10 }
  0x37   : > { %p4375_p2 = pnand %p4373_p0, %p4757_p8 }
  0x38   : > { %p4382_p4 = por %p4381_p9, %p4380_p7 }
  0x39   : > { %p4376_p5 = pneg %p4375_p2 }
  0x3b   : > { %p4383_p10 = pnand %p4382_p4, %p4376_p5 }
  0x3d   : > { %4386 = shalt.err (!%p4383_p10)
}
  0x3e   : > { %4168 = dma.hbm_to_vmem [thread:$0]  (!%p4741_p6), %s5936_s3, 16, %s4745_s14, [#allocation11]  }
  0x3f   : > { %s4387_s20 = scalar_lea.hbm %s5938_s5, 16 }
  0x40   : > { %p4388_p11 = scmp.ne.s32.totalorder %s5938_s5, %s4387_s20  ;;  %p4394_p0 = scmp.lt.u32.totalorder %s4387_s20, %s5938_s5 }
  0x42   : > { %p4390_p12 = pnand %p4388_p11, %p4757_p8 }
  0x44   : > { %p4391_p13 = pneg %p4390_p12 }
  0x46   : > { %p4396_p2 = pnand %p4394_p0, %p4391_p13 }
  0x48   : > { %4399 = shalt.err (!%p4396_p2)
}
  0x49   : > { %s4400_s14 = scalar_lea.vmem %s4747_s17, 16  ;;  %s4407_s26 = scalar_lea.vmem %s4747_s17, 32 }
  0x4a   : > { %p4401_p5 = scmp.ne.s32.totalorder %s4747_s17, %s4400_s14  ;;  %p4408_p4 = scmp.lt.s32.totalorder %s4747_s17, %s4747_s17 }
  0x4b   : > { %p4409_p10 = scmp.lt.s32.totalorder %s4407_s26, %s4400_s14 }
  0x4c   : > { %p4403_p7 = pnand %p4401_p5, %p4757_p8 }
  0x4d   : > { %p4410_p11 = por %p4409_p10, %p4408_p4 }
  0x4e   : > { %p4404_p9 = pneg %p4403_p7 }
  0x50   : > { %p4411_p12 = pnand %p4410_p11, %p4404_p9 }
  0x52   : > { %4414 = shalt.err (!%p4411_p12)
}
  0x53   : > { %4174 = dma.hbm_to_vmem [thread:$0]  (!%p4741_p6), %s5938_s5, 16, %s4747_s17, [#allocation14]  }
  0x54   : > { %s4646_s13 = smov [#allocation9]   ;;  %s4415_s20 = scalar_lea.hbm %s5935_s2, 1024 }
  0x55   : > { %s265_s16 = sshll.u32 %s4646_s13, 4  ;;  %p4416_p13 = scmp.ne.s32.totalorder %s5935_s2, %s4415_s20  ;;  %s266_s16 = int_to_ptr.vmem [resolvable:$true] %s265_s16 }
  0x56   : > { %p4422_p5 = scmp.lt.u32.totalorder %s4415_s20, %s5935_s2 }
  0x57   : > { %p4418_p0 = pnand %p4416_p13, %p4757_p8 }
  0x59   : > { %p4419_p2 = pneg %p4418_p0 }
  0x5b   : > { %p4424_p7 = pnand %p4422_p5, %p4419_p2 }
  0x5d   : > { %4427 = shalt.err (!%p4424_p7)
}
  0x5e   : > { %s4428_s17 = scalar_lea.vmem %s266_s16, 1024  ;;  %p4436_p11 = scmp.lt.s32.totalorder %s266_s16, %s266_s16 }
  0x5f   : > { %p4429_p9 = scmp.ne.s32.totalorder %s266_s16, %s4428_s17  ;;  %p4437_p12 = scmp.lt.s32.totalorder %s4428_s17, %s4428_s17 }
  0x61   : > { %p4431_p4 = pnand %p4429_p9, %p4757_p8  ;;  %p4438_p1 = por %p4437_p12, %p4436_p11 }
  0x63   : > { %p4432_p10 = pneg %p4431_p4 }
  0x65   : > { %p4439_p3 = pnand %p4438_p1, %p4432_p10 }
  0x67   : > { %4442 = shalt.err (!%p4439_p3)
}
  0x68   : > { %s5944_s14 = smov 64   ;;  %s5945_s26 = smov 4  }
  0x69   : > { %4165 = dma.hbm_to_vmem [thread:$0]  (!%p4741_p6), %s5935_s2, 1024, %s266_s16, [#allocation8], %s5944_s14, %s5944_s14, %s5945_s26  }
  0x6a   : > { %s4649_s13 = smov [#allocation12]   ;;  %s4650_s19 = smov [#allocation15]  }
  0x6b   : > { %s289_s18 = sshll.u32 %s4649_s13, 4  ;;  %s314_s20 = sshll.u32 %s4650_s19, 4  ;;  %s290_s18 = int_to_ptr.vmem [resolvable:$true] %s289_s18  ;;  %s4847_s20 = int_to_ptr.vmem [resolvable:$true] %s314_s20 }
  0x6c   : > { %s4443_s24 = scalar_lea.hbm %s5937_s4, 9216 }
  0x6d   : > { %p4444_p1 = scmp.ne.s32.totalorder %s5937_s4, %s4443_s24  ;;  %p4450_p0 = scmp.lt.u32.totalorder %s4443_s24, %s5937_s4 }
  0x6f   : > { %p4446_p3 = pnand %p4444_p1, %p4757_p8 }
  0x71   : > { %p4447_p13 = pneg %p4446_p3 }
  0x73   : > { %p4452_p2 = pnand %p4450_p0, %p4447_p13 }
  0x75   : > { %4455 = shalt.err (!%p4452_p2)
}
  0x76   : > { %s4456_s9 = scalar_lea.vmem %s290_s18, 9216  ;;  %p4464_p4 = scmp.lt.s32.totalorder %s290_s18, %s290_s18 }
  0x77   : > { %p4457_p5 = scmp.ne.s32.totalorder %s290_s18, %s4456_s9  ;;  %p4465_p10 = scmp.lt.s32.totalorder %s4456_s9, %s4456_s9 }
  0x79   : > { %p4459_p7 = pnand %p4457_p5, %p4757_p8  ;;  %p4466_p11 = por %p4465_p10, %p4464_p4 }
  0x7b   : > { %p4460_p9 = pneg %p4459_p7 }
  0x7d   : > { %p4467_p12 = pnand %p4466_p11, %p4460_p9 }
  0x7f   : > { %4470 = shalt.err (!%p4467_p12)
}
  0x80   : > { %4171 = dma.hbm_to_vmem [thread:$0]  (!%p4741_p6), %s5937_s4, 9216, %s290_s18, [#allocation11], %s5944_s14, %s5944_s14, %s5945_s26  }
  0x81   : > { %s4471_s24 = scalar_lea.hbm %s5939_s6, 16 }
  0x82   : > { %p4472_p1 = scmp.ne.s32.totalorder %s5939_s6, %s4471_s24  ;;  %p4478_p0 = scmp.lt.u32.totalorder %s4471_s24, %s5939_s6 }
  0x84   : > { %p4474_p3 = pnand %p4472_p1, %p4757_p8 }
  0x86   : > { %p4475_p13 = pneg %p4474_p3 }
  0x88   : > { %p4480_p2 = pnand %p4478_p0, %p4475_p13 }
  0x8a   : > { %4483 = shalt.err (!%p4480_p2)
}
  0x8b   : > { %s4484_s18 = scalar_lea.vmem %s4847_s20, 16  ;;  %s4491_s9 = scalar_lea.vmem %s4847_s20, 32 }
  0x8c   : > { %p4485_p5 = scmp.ne.s32.totalorder %s4847_s20, %s4484_s18  ;;  %p4492_p4 = scmp.lt.s32.totalorder %s4847_s20, %s4847_s20 }
  0x8d   : > { %p4493_p10 = scmp.lt.s32.totalorder %s4491_s9, %s4484_s18 }
  0x8e   : > { %p4487_p7 = pnand %p4485_p5, %p4757_p8 }
  0x8f   : > { %p4494_p11 = por %p4493_p10, %p4492_p4 }
  0x90   : > { %p4488_p9 = pneg %p4487_p7 }
  0x92   : > { %p4495_p12 = pnand %p4494_p11, %p4488_p9 }
  0x94   : > { %4498 = shalt.err (!%p4495_p12)
}
  0x95   : > { %4177 = dma.hbm_to_vmem [thread:$0]  (!%p4741_p6), %s5939_s6, 16, %s4847_s20, [#allocation14]  }
  0x96   : > { %s3434_s15 = sadd.s32 4294967294, %s4639_s30   ;;  %s4896_s23 = sadd.s32 1, %s4639_s30  }
  0x97   : > { %s35_s21 = ssub.s32 %s4639_s30, %s4896_s23  ;;  %s38_s22 = sadd.s32 1, %s4635_s29 }
  0x98   : > { %p36_p8 = scmp.eq.s32.totalorder %s35_s21, 0  ;;  %p45_p1 = scmp.ne.s32.totalorder %s4635_s29, %s4631_s28 }
  0x99   : > { %p46_p3 = scmp.eq.s32.totalorder %s4639_s30, 0  ;;  %p51_p13 = scmp.ne.s32.totalorder %s4631_s28, %s4627_s27 }
  0x9a   : > { %s4907_s24 = scalar_select %p36_p8, %s4635_s29, %s38_s22  }
  0x9b   : > { %p4909_p0 = por %p46_p3, %p45_p1  ;;  %p5951_p2 = scmp.eq.s32.totalorder %s4725_s11, 0 }
  0x9c   : > { %p201_p5 = scmp.eq.s32.totalorder %s4725_s11, 1  ;;  %p207_p7 = scmp.eq.s32.totalorder %s3434_s15, 1 }
  0x9d   : > { %p4915_p6 = por %p5951_p2, %p51_p13  ;;  %p4195_p9 = scmp.lt.s32.totalorder %s4639_s30, 2 }
  0x9e   : > { %s325_s17 = sand.u32 1, %s4635_s29   ;;  %p4922_p4 = por %p201_p5, %p45_p1 }
  0x9f   : > { %p4926_p10 = por %p207_p7, %p51_p13  ;;  %s3443_s18 = sshll.u32 %s325_s17, 7 }
  0xa0   : > { %s5953_s10 = scalar_select %p4922_p4, 1, 0 }
  0xa1   : > { %s5954_s16 = scalar_select %p4926_p10, 1, 0 }
  0xa2   : > { %s3580_s9 = sshll.u32 %s4639_s30, 11  ;;  %s329_s15 = scalar_lea.vmem [#allocation4], %s3443_s18 }
  0xa3   : > { %s4934_s21 = scalar_lea.hbm %s5933_s0, %s3580_s9  ;;  %s336_s22 = sshll.u32 %s329_s15, 4  ;;  %s4936_s22 = int_to_ptr.vmem [resolvable:$true] %s336_s22 }
  0xa4   : > { %p4940_p11 = pnand %p4195_p9, %p4909_p0  ;;  %s4944_s26 = scalar_lea.sflag [#allocation5], %s325_s17 }
  0xa5   : > { %s4499_s13 = scalar_lea.hbm %s4934_s21, 2048  ;;  %s4504_s25 = scalar_lea.hbm %s5933_s0, 4096 }
  0xa6   : > { %p4500_p12 = scmp.ne.s32.totalorder %s4934_s21, %s4499_s13  ;;  %p4501_p8 = pneg %p4940_p11 }
  0xa7   : > { %p4505_p13 = scmp.lt.u32.totalorder %s4934_s21, %s5933_s0  ;;  %p4506_p0 = scmp.lt.u32.totalorder %s4504_s25, %s4499_s13 }
  0xa8   : > { %p4502_p1 = pnand %p4501_p8, %p4500_p12  ;;  %p4508_p5 = scmp.lt.u32.totalorder %s4499_s13, %s4934_s21 }
  0xa9   : > { %p4507_p2 = por %p4506_p0, %p4505_p13 }
  0xaa   : > { %p4503_p3 = pneg %p4502_p1 }
  0xab   : > { %p4509_p7 = por %p4508_p5, %p4507_p2 }
  0xad   : > { %p4510_p9 = pnand %p4509_p7, %p4503_p3 }
  0xaf   : > { %4513 = shalt.err (!%p4510_p9)
}
  0xb0   : > { %s4514_s17 = scalar_lea.vmem %s4936_s22, 2048  ;;  %s4651_s18 = smov [#allocation4]  }
  0xb1   : > { %p4515_p12 = scmp.ne.s32.totalorder %s4936_s22, %s4514_s17  ;;  %s4519_s9 = sshll.u32 %s4651_s18, 4  ;;  %s4520_s9 = int_to_ptr.vmem [resolvable:$false] %s4519_s9 }
  0xb2   : > { %s4521_s19 = scalar_lea.vmem %s4520_s9, 4096  ;;  %p4522_p4 = scmp.lt.s32.totalorder %s4936_s22, %s4520_s9 }
  0xb3   : > { %p4517_p1 = pnand %p4515_p12, %p4501_p8  ;;  %p4523_p13 = scmp.lt.s32.totalorder %s4521_s19, %s4514_s17 }
  0xb5   : > { %p4518_p10 = pneg %p4517_p1  ;;  %p4524_p0 = por %p4523_p13, %p4522_p4 }
  0xb7   : > { %p4525_p2 = pnand %p4524_p0, %p4518_p10 }
  0xb9   : > { %4528 = shalt.err (!%p4525_p2)
}
  0xba   : > { %s5956_s13 = smov 4   ;;  %s5957_s25 = smov 64  }
  0xbb   : > { %4181 = dma.hbm_to_vmem [thread:$0]  (!%p4940_p11), %s4934_s21, 2048, %s4936_s22, %s4944_s26, %s5957_s25, %s5957_s25, %s5956_s13  }
  0xbc   : > { %p5958_p8 = scmp.ne.s32.totalorder %s5947_s12, 0 }
  0xbd   : > { %s4978_s15 = sand.u32 (!%p5958_p8), 1, %s4631_s28  }
  0xbe   : > { %348 = sbr.rel (%p5958_p8) target bundleno = 719 (0x2cf), region = 48  ;;  %s3447_s17 = sshll.u32 (!%p5958_p8), %s4978_s15, 7 }
  0xbf   : > { %s351_s18 = scalar_lea.sflag (!%p5958_p8), [#allocation5], %s4978_s15  ;;  %s4984_s14 = scalar_lea.vmem (!%p5958_p8), [#allocation4], %s3447_s17 }
  0xc5   : > { %4602 = dma.done.wait (%p4915_p6), %s351_s18, 2048  }
  0xc6   : > { %4604 = vsyncadd (%p4915_p6), %s351_s18, 4294965248  ;;  %p5959_p4 = scmp.eq.s32.totalorder %s4725_s11, 0 }
  0xc8   : > { %4606 = dma.done.wait (%p5959_p4), [#allocation8], 1280   ;;  %p5960_p10 = pmov %p5959_p4 }
  0xc9   : > { %p5961_p11 = pmov %p5959_p4 }
  0xca   : > { %4608 = vsyncadd (%p5960_p10), [#allocation8], 4294966016 }
  0xcb   : > { %4610 = dma.done.wait (%p5961_p11), [#allocation11], 9232   ;;  %p5962_p3 = pmov %p5959_p4 }
  0xcd   : > { %4612 = vsyncadd (%p5962_p3), [#allocation11], 4294958064  ;;  %p5963_p5 = pmov %p5962_p3 }
  0xce   : > { %p5964_p7 = pmov %p5962_p3 }
  0xcf   : > { %4614 = dma.done.wait (%p5963_p5), [#allocation14], 32  }
  0xd0   : > { %4616 = vsyncadd (%p5964_p7), [#allocation14], 4294967264  ;;  %v4652_v0 = vmov 0.0   ;;  %v4250_v1 = vld [vmem:[#allocation9] sm:$0xff]   ;;  %v4253_v4 = vld [vmem:[#allocation9 + $0x8] sm:$0xff]   ;;  %v587_v11 = vlaneseq  ;;  %s5738_s12 = scalar_lea.vmem [#allocation16], %s3447_s17 }
  0xd1   : > { %481 = vst [vmem:[#allocation2] sm:$0xff] %v4652_v0  ;;  %482 = vst [vmem:[#allocation2 + $0x8] sm:$0xff] %v4652_v0  ;;  %v4251_v2 = vld [vmem:[#allocation12 + $0x100] sm:$0xff]   ;;  %3969 = vmatprep.subr.bf16.mxu0 %v4250_v1  ;;  %v4254_v5 = vld [vmem:[#allocation12 + $0x108] sm:$0xff]   ;;  %s3613_s26 = sshll.u32 %s4725_s11, 11  ;;  %s3184_s20 = sshll.u32 %s5738_s12, 4  ;;  %s5801_s20 = int_to_ptr.vmem [resolvable:$true] %s3184_s20 }
  0xd2   : > { %483 = vst [vmem:[#allocation2 + $0x10] sm:$0xf] %v4652_v0  ;;  %485 = vst [vmem:[#allocation2 + $0x198] sm:$0xff] %v4652_v0  ;;  %v4252_v3 = vld [vmem:[#allocation12 + $0xc0] sm:$0xff]   ;;  %3813 = vmatprep.subr.bf16.mxu1 %v4251_v2  ;;  %3970 = vmatpush3.bf16.msra.mxu0 %v4250_v1  ;;  %v4255_v6 = vld [vmem:[#allocation12 + $0xc8] sm:$0xff]   ;;  %v588_v16 = vshrl.u32 %v587_v11, 7  ;;  %s5799_s9 = scalar_lea.hbm %s5940_s7, %s3613_s26 }
  0xd3   : > { %486 = vst [vmem:[#allocation2 + $0x1a0] sm:$0xff] %v4652_v0  ;;  %487 = vst [vmem:[#allocation2 + $0x1a8] sm:$0xf] %v4652_v0  ;;  %3814 = vmatpush3.bf16.msra.mxu1 %v4252_v3  ;;  %3971 = vmatprep.subr.bf16.mxu0 %v4253_v4  ;;  %v4256_v7 = vld [vmem:[#allocation9 + $0x10] sm:$0xff]   ;;  %v4259_v10 = vld [vmem:[#allocation9 + $0x18] sm:$0xff]   ;;  %s3166_s19 = scalar_lea.sflag [#allocation6], %s4978_s15 }
  0xd4   : > { %489 = vst [vmem:[#allocation2 + $0x18] sm:$0x3] %v4652_v0  ;;  %490 = vst [vmem:[#allocation2 + $0x30] sm:$0x3] %v4652_v0  ;;  %3815 = vmatprep.subr.bf16.mxu1 %v4254_v5  ;;  %v4257_v8 = vld [vmem:[#allocation12 + $0x110] sm:$0xff]   ;;  %v4260_v12 = vld [vmem:[#allocation12 + $0x118] sm:$0xff]  }
  0xd5   : > { %491 = vst [vmem:[#allocation2 + $0x48] sm:$0x3] %v4652_v0  ;;  %492 = vst [vmem:[#allocation2 + $0x60] sm:$0x3] %v4652_v0  ;;  %v4258_v9 = vld [vmem:[#allocation12 + $0xd0] sm:$0xff]   ;;  %v4261_v13 = vld [vmem:[#allocation12 + $0xd8] sm:$0xff]  }
  0xd6   : > { %493 = vst [vmem:[#allocation2 + $0x78] sm:$0x3] %v4652_v0  ;;  %494 = vst [vmem:[#allocation2 + $0x90] sm:$0x3] %v4652_v0  ;;  %3972 = vmatpush3.bf16.msra.mxu0 %v4253_v4  ;;  %v4262_v14 = vld [vmem:[#allocation9 + $0x20] sm:$0xff]   ;;  %v4265_v18 = vld [vmem:[#allocation9 + $0x28] sm:$0xff]  }
  0xd7   : > { %495 = vst [vmem:[#allocation2 + $0xa8] sm:$0x3] %v4652_v0  ;;  %496 = vst [vmem:[#allocation2 + $0xc0] sm:$0x3] %v4652_v0  ;;  %3816 = vmatpush3.bf16.msra.mxu1 %v4255_v6  ;;  %3973 = vmatprep.subr.bf16.mxu0 %v4256_v7  ;;  %v4263_v15 = vld [vmem:[#allocation12 + $0x120] sm:$0xff]   ;;  %v4266_v19 = vld [vmem:[#allocation12 + $0x128] sm:$0xff]  }
  0xd8   : > { %497 = vst [vmem:[#allocation2 + $0xd8] sm:$0x3] %v4652_v0  ;;  %498 = vst [vmem:[#allocation2 + $0xf0] sm:$0x3] %v4652_v0  ;;  %3817 = vmatprep.subr.bf16.mxu1 %v4257_v8  ;;  %v4264_v17 = vld [vmem:[#allocation12 + $0xe0] sm:$0xff]   ;;  %v589_v20 = vsub.s32 0, %v588_v16 }
  0xd9   : > { %499 = vst [vmem:[#allocation2 + $0x108] sm:$0x3] %v4652_v0  ;;  %500 = vst [vmem:[#allocation2 + $0x120] sm:$0x3] %v4652_v0  ;;  %v657_v21 = vsub.s32 1, %v588_v16  ;;  %v757_v22 = vsub.s32 2, %v588_v16 }
  0xda   : > { %501 = vst [vmem:[#allocation2 + $0x138] sm:$0x3] %v4652_v0  ;;  %502 = vst [vmem:[#allocation2 + $0x150] sm:$0x3] %v4652_v0  ;;  %3974 = vmatpush3.bf16.msra.mxu0 %v4256_v7  ;;  %v4267_v23 = vld [vmem:[#allocation12 + $0xe8] sm:$0xff]   ;;  %v857_v24 = vsub.s32 3, %v588_v16 }
  0xdb   : > { %503 = vst [vmem:[#allocation2 + $0x168] sm:$0x3] %v4652_v0  ;;  %504 = vst [vmem:[#allocation2 + $0x180] sm:$0x3] %v4652_v0  ;;  %3818 = vmatpush3.bf16.msra.mxu1 %v4258_v9  ;;  %3975 = vmatprep.subr.bf16.mxu0 %v4259_v10  ;;  %v4268_v25 = vld [vmem:[#allocation9 + $0x30] sm:$0xff]   ;;  %v957_v26 = vsub.s32 4, %v588_v16 }
  0xdc   : > { %505 = vst [vmem:[#allocation2 + $0x2a] sm:$0x3] %v4652_v0  ;;  %506 = vst [vmem:[#allocation2 + $0x42] sm:$0x3] %v4652_v0  ;;  %3819 = vmatprep.subr.bf16.mxu1 %v4260_v12  ;;  %v4269_v27 = vld [vmem:[#allocation12 + $0x130] sm:$0xff]   ;;  %v1057_v28 = vsub.s32 5, %v588_v16 }
  0xdd   : > { %507 = vst [vmem:[#allocation2 + $0x5a] sm:$0x3] %v4652_v0  ;;  %508 = vst [vmem:[#allocation2 + $0x72] sm:$0x3] %v4652_v0  ;;  %v4270_v29 = vld [vmem:[#allocation12 + $0xf0] sm:$0xff]   ;;  %v1158_v30 = vsub.s32 6, %v588_v16 }
  0xde   : > { %509 = vst [vmem:[#allocation2 + $0x8a] sm:$0x3] %v4652_v0  ;;  %510 = vst [vmem:[#allocation2 + $0xa2] sm:$0x3] %v4652_v0  ;;  %3976 = vmatpush3.bf16.msra.mxu0 %v4259_v10  ;;  %v4271_v31 = vld [vmem:[#allocation9 + $0x38] sm:$0xff]   ;;  %v1258_v32 = vsub.s32 7, %v588_v16 }
  0xdf   : > { %511 = vst [vmem:[#allocation2 + $0xba] sm:$0x3] %v4652_v0  ;;  %512 = vst [vmem:[#allocation2 + $0xd2] sm:$0x3] %v4652_v0  ;;  %3820 = vmatpush3.bf16.msra.mxu1 %v4261_v13  ;;  %3977 = vmatprep.subr.bf16.mxu0 %v4262_v14  ;;  %v3616_v33 = vld [vmem:[%s4984_s14] sm:$0xff]   ;;  %v3759_v34 = vld [vmem:[%s4984_s14 + $0x8] sm:$0xff]  }
  0xe0   : > { %513 = vst [vmem:[#allocation2 + $0xea] sm:$0x3] %v4652_v0  ;;  %514 = vst [vmem:[#allocation2 + $0x102] sm:$0x3] %v4652_v0  ;;  %3821 = vmatprep.subr.bf16.mxu1 %v4263_v15  ;;  %v553_v35 = vld [vmem:[#allocation7] sm:$0xff]  ;;  %v4272_v36 = vld [vmem:[#allocation12 + $0x138] sm:$0xff]   ;;  %v3617_v37 = vunpack.c.l.bf16 %v3616_v33  ;;  %v3618_v38 = vunpack.c.h.bf16 %v3616_v33  ;;  %v5004_v39 = vunpack.c.l.bf16 %v3759_v34  ;;  %v5006_v40 = vunpack.c.h.bf16 %v3759_v34 }
  0xe1   : > { %515 = vst [vmem:[#allocation2 + $0x11a] sm:$0x3] %v4652_v0  ;;  %516 = vst [vmem:[#allocation2 + $0x132] sm:$0x3] %v4652_v0  ;;  %v555_v41 = vld [vmem:[#allocation2 + $0x1] sm:$0xff]  ;;  %v556_v42 = vld [vmem:[#allocation2 + $0x9] sm:$0xff]  ;;  %v5008_v44 = vrot.slane %v553_v35, %v589_v20  ;;  %v5010_v47 = vrot.slane %v553_v35, %v657_v21  ;;  %v5012_v49 = vrot.slane %v553_v35, %v757_v22 }
  0xe2   : > { %517 = vst [vmem:[#allocation2 + $0x14a] sm:$0x3] %v4652_v0  ;;  %518 = vst [vmem:[#allocation2 + $0x162] sm:$0x3] %v4652_v0  ;;  %3978 = vmatpush3.bf16.msra.mxu0 %v4262_v14  ;;  %v4273_v43 = vld [vmem:[#allocation12 + $0xf8] sm:$0xff]   ;;  %v623_v45 = vld [vmem:[#allocation2 + $0x2] sm:$0xff]  ;;  %v5014_v50 = vrot.slane %v553_v35, %v857_v24  ;;  %v5018_v52 = vrot.slane %v553_v35, %v957_v26  ;;  %v5020_v53 = vrot.slane %v553_v35, %v1057_v28 }
  0xe3   : > { %519 = vst [vmem:[#allocation2 + $0x17a] sm:$0x3] %v4652_v0  ;;  %520 = vst [vmem:[#allocation2 + $0x192] sm:$0x3] %v4652_v0  ;;  %3822 = vmatpush3.bf16.msra.mxu1 %v4264_v17  ;;  %3979 = vmatprep.subr.bf16.mxu0 %v4265_v18  ;;  %v624_v46 = vld [vmem:[#allocation2 + $0xa] sm:$0xff]  ;;  %v5022_v54 = vrot.slane %v553_v35, %v1158_v30  ;;  %v5024_v55 = vrot.slane %v553_v35, %v1258_v32  ;;  %v3760_v56 = vld [vmem:[%s4984_s14 + $0x10] sm:$0xff]  }
  0xe4   : > { %3018 = vst [vmem:[#allocation3] sm:$0xff] %v4652_v0  ;;  %3019 = vst [vmem:[#allocation3 + $0x8] sm:$0xf] %v4652_v0  ;;  %3823 = vmatprep.subr.bf16.mxu1 %v4266_v19  ;;  %v723_v48 = vld [vmem:[#allocation2 + $0x3] sm:$0xff]  ;;  %v724_v51 = vld [vmem:[#allocation2 + $0xb] sm:$0xff]  ;;  %v591_v57 = vmul.f32 %v5008_v44, %v555_v41  ;;  %v592_v58 = vmul.f32 %v5008_v44, %v556_v42  ;;  %v659_v59 = vmul.f32 %v5010_v47, %v623_v45  ;;  %s4529_s13 = scalar_lea.vmem %s5801_s20, 2048 }
  0xe5   : > { %3024 = vst [vmem:[#allocation3 + $0x10] sm:$0x3] %v4652_v0  ;;  %3025 = vst [vmem:[#allocation3 + $0x20] sm:$0x3] %v4652_v0  ;;  %v5030_v60 = vunpack.c.l.bf16 %v3760_v56  ;;  %v5032_v61 = vld [vmem:[#allocation12 + $0x140] sm:$0xff]   ;;  %v660_v62 = vmul.f32 %v5010_v47, %v624_v46  ;;  %v759_v63 = vmul.f32 %v5012_v49, %v723_v48  ;;  %v959_v1 = vmul.f32 %v3617_v37, %v5018_v52  ;;  %p4530_p6 = scmp.ne.s32.totalorder %s5801_s20, %s4529_s13  ;;  %p5965_p9 = scmp.ne.s32.totalorder %s5953_s10, 0 }
  0xe6   : > { %3026 = vst [vmem:[#allocation3 + $0x30] sm:$0x3] %v4652_v0  ;;  %3027 = vst [vmem:[#allocation3 + $0x40] sm:$0x3] %v4652_v0  ;;  %3980 = vmatpush3.bf16.msra.mxu0 %v4265_v18  ;;  %v4275_v2 = vld [vmem:[#allocation12 + $0x40] sm:$0xff]   ;;  %v691_v3 = vadd.f32 %v659_v59, %v591_v57  ;;  %v960_v4 = vmul.f32 %v3618_v38, %v5018_v52  ;;  %v5041_v5 = vmul.f32 %v5004_v39, %v5024_v55  ;;  %s4653_s25 = smov [#allocation16]  }
  0xe7   : > { %3028 = vst [vmem:[#allocation3 + $0x50] sm:$0x3] %v4652_v0  ;;  %3029 = vst [vmem:[#allocation3 + $0x60] sm:$0x3] %v4652_v0  ;;  %3824 = vmatpush3.bf16.msra.mxu1 %v4267_v23  ;;  %3981 = vmatprep.subr.bf16.mxu0 %v4268_v25  ;;  %v5045_v6 = vmul.f32 %v5006_v40, %v5024_v55  ;;  %v692_v7 = vadd.f32 %v660_v62, %v592_v58  ;;  %v5048_v8 = vunpack.c.h.bf16 %v3760_v56  ;;  %v3761_v11 = vld [vmem:[%s4984_s14 + $0x18] sm:$0xff]   ;;  %p4531_p12 = pnand %p4530_p6, %p5965_p9  ;;  %s4533_s17 = sshll.u32 %s4653_s25, 4  ;;  %s4534_s17 = int_to_ptr.vmem [resolvable:$false] %s4533_s17 }
  0xe8   : > { %3030 = vst [vmem:[#allocation3 + $0x70] sm:$0x3] %v4652_v0  ;;  %3031 = vst [vmem:[#allocation3 + $0x80] sm:$0x3] %v4652_v0  ;;  %3825 = vmatprep.subr.bf16.mxu1 %v4269_v27  ;;  %v760_v0 = vmul.f32 %v5012_v49, %v724_v51  ;;  %v661_v9 = vmul.f32 %v3617_v37, %v5010_v47  ;;  %v662_v10 = vmul.f32 %v3618_v38, %v5010_v47  ;;  %v5065_v16 = vld [vmem:[#allocation7 + $0x8] ss:$0 sm:$0xff]  ;;  %p4536_p13 = scmp.lt.s32.totalorder %s5801_s20, %s4534_s17 }
  0xe9   : > { %521 = vst [vmem:[#allocation2 + $0x1a] sm:$0xff] %v3617_v37  ;;  %522 = vst [vmem:[#allocation2 + $0x22] sm:$0xff] %v3618_v38  ;;  %v791_v12 = vadd.f32 %v759_v63, %v691_v3  ;;  %v5055_v13 = vmul.f32 %v5004_v39, %v5018_v52  ;;  %v5059_v14 = vmul.f32 %v5006_v40, %v5018_v52  ;;  %v5073_v19 = vunpack.c.l.bf16 %v3761_v11  ;;  %p4532_p1 = pneg %p4531_p12  ;;  %s4535_s18 = scalar_lea.vmem %s4534_s17, 4096 }
  0xea   : > { %3982 = vmatpush3.bf16.msra.mxu0 %v4268_v25  ;;  %523 = vst [vmem:[#allocation2 + $0x32] sm:$0xff] %v5004_v39  ;;  %524 = vst [vmem:[#allocation2 + $0x3a] sm:$0xff] %v5006_v40  ;;  %v5063_v15 = vmul.f32 %v5030_v60, %v5024_v55  ;;  %v792_v17 = vadd.f32 %v760_v0, %v692_v7  ;;  %v5070_v18 = vmul.f32 %v5048_v8, %v5024_v55  ;;  %p4537_p0 = scmp.lt.s32.totalorder %s4535_s18, %s4529_s13 }
  0xeb   : > { %3826 = vmatpush3.bf16.msra.mxu1 %v4270_v29  ;;  %3983 = vmatprep.subr.bf16.mxu0 %v4271_v31  ;;  %525 = vst [vmem:[#allocation2 + $0x4a] sm:$0xff] %v5030_v60  ;;  %526 = vst [vmem:[#allocation2 + $0x52] sm:$0xff] %v5048_v8  ;;  %v5075_v20 = vunpack.c.h.bf16 %v3761_v11  ;;  %v5079_v24 = vmul.f32 %v5004_v39, %v5010_v47  ;;  %v5083_v25 = vmul.f32 %v5006_v40, %v5010_v47 }
  0xec   : > { %3827 = vmatprep.subr.bf16.mxu1 %v4272_v36  ;;  %v5087_v26 = vmul.f32 %v5030_v60, %v5018_v52  ;;  %v5091_v27 = vmul.f32 %v5048_v8, %v5018_v52  ;;  %527 = vst [vmem:[#allocation2 + $0x62] sm:$0xff] %v5073_v19  ;;  %p4538_p2 = por %p4537_p0, %p4536_p13 }
  0xed   : > { %528 = vst [vmem:[#allocation2 + $0x6a] sm:$0xff] %v5075_v20 }
  0xee   : > { %3984 = vmatpush3.bf16.msra.mxu0 %v4271_v31  ;;  %p4539_p8 = pnand %p4538_p2, %p4532_p1 }
  0xef   : > { %3828 = vmatpush3.bf16.msra.mxu1 %v4273_v43  ;;  %3865 = vmatprep.subr.bf16.mxu0 %v4275_v2 }
  0xf0   : > { %4017 = vmatprep.subr.bf16.mxu1 %v5032_v61  ;;  %v823_v21 = vld [vmem:[#allocation2 + $0x19] sm:$0xff]  ;;  %v824_v22 = vld [vmem:[#allocation2 + $0x21] sm:$0xff] }
  0xf1   : > { %v1023_v23 = vld [vmem:[#allocation2 + $0x1b] sm:$0xff]  ;;  %v859_v28 = vmul.f32 %v5014_v50, %v823_v21  ;;  %v860_v29 = vmul.f32 %v5014_v50, %v824_v22  ;;  %v1024_v30 = vld [vmem:[#allocation2 + $0x23] sm:$0xff]  ;;  %v1124_v32 = vld [vmem:[#allocation2 + $0x31] sm:$0xff]  ;;  %v593_v34 = vmul.f32 %v823_v21, %v5008_v44  ;;  %v594_v40 = vmul.f32 %v824_v22, %v5008_v44 }
  0xf2   : > { %v1059_v31 = vmul.f32 %v5020_v53, %v1023_v23  ;;  %v1125_v33 = vld [vmem:[#allocation2 + $0x39] sm:$0xff]  ;;  %v1060_v35 = vmul.f32 %v5020_v53, %v1024_v30  ;;  %v1160_v36 = vmul.f32 %v5022_v54, %v1124_v32  ;;  %v761_v51 = vmul.f32 %v1023_v23, %v5012_v49  ;;  %v5109_v0 = vld [vmem:[#allocation2 + $0x49] sm:$0xff] }
  0xf3   : > { %v1161_v37 = vmul.f32 %v5022_v54, %v1125_v33  ;;  %v1324_v38 = vld [vmem:[#allocation2 + $0x33] sm:$0xff]  ;;  %v1325_v39 = vld [vmem:[#allocation2 + $0x3b] sm:$0xff]  ;;  %v891_v41 = vadd.f32 %v859_v28, %v791_v12  ;;  %v892_v42 = vadd.f32 %v860_v29, %v792_v17  ;;  %v693_v46 = vadd.f32 %v661_v9, %v593_v34  ;;  %v5115_v11 = vld [vmem:[#allocation2 + $0x4b] sm:$0xff] }
  0xf4   : > { %v1360_v43 = vmul.f32 %v5065_v16, %v1324_v38  ;;  %v1361_v45 = vmul.f32 %v5065_v16, %v1325_v39  ;;  %v694_v48 = vadd.f32 %v662_v10, %v594_v40  ;;  %v762_v56 = vmul.f32 %v1024_v30, %v5012_v49  ;;  %v1957_v57 = vld [vmem:[#allocation2 + $0x1a] ss:$2 sm:$0xff]  ;;  %v5113_v10 = vld [vmem:[#allocation2 + $0x51] sm:$0xff]  ;;  %v1941_v12 = vld [vmem:[#allocation2 + $0x19] ss:$2 sm:$0xff] }
  0xf5   : > { %v991_v58 = vadd.f32 %v959_v1, %v891_v41  ;;  %v992_v59 = vadd.f32 %v960_v4, %v892_v42  ;;  %v861_v62 = vmul.f32 %v1124_v32, %v5014_v50  ;;  %v862_v63 = vmul.f32 %v1125_v33, %v5014_v50  ;;  %v5121_v22 = vld [vmem:[#allocation2 + $0x53] sm:$0xff] }
  0xf6   : > { %v793_v2 = vadd.f32 %v761_v51, %v693_v46  ;;  %v794_v3 = vadd.f32 %v762_v56, %v694_v48  ;;  %v1061_v7 = vmul.f32 %v1324_v38, %v5020_v53  ;;  %v1062_v9 = vmul.f32 %v1325_v39, %v5020_v53  ;;  %v1959_v23 = vld [vmem:[#allocation2 + $0x4a] ss:$2 sm:$0xff]  ;;  %v1943_v28 = vld [vmem:[#allocation2 + $0x49] ss:$2 sm:$0xff] }
  0xf7   : > { %v1091_v17 = vadd.f32 %v1059_v31, %v991_v58  ;;  %v1092_v1 = vadd.f32 %v1060_v35, %v992_v59  ;;  %v1162_v4 = vmul.f32 %v5022_v54, %v5109_v0  ;;  %v1163_v21 = vmul.f32 %v5022_v54, %v5113_v10  ;;  %v4277_v51 = vld [vmem:[#allocation12 + $0x148] sm:$0xff]  }
  0xf8   : > { %v893_v29 = vadd.f32 %v861_v62, %v793_v2  ;;  %v894_v30 = vadd.f32 %v862_v63, %v794_v3  ;;  %v1362_v34 = vmul.f32 %v5065_v16, %v5115_v11  ;;  %v1363_v40 = vmul.f32 %v5065_v16, %v5121_v22 }
  0xf9   : > { %v1192_v31 = vadd.f32 %v1160_v36, %v1091_v17  ;;  %v1193_v35 = vadd.f32 %v1161_v37, %v1092_v1  ;;  %v1989_v41 = vpack.c.bf16 %v1959_v23, %v1957_v57  ;;  %v1988_v42 = vpack.c.bf16 %v1943_v28, %v1941_v12 }
  0xfa   : > { %v993_v46 = vadd.f32 %v5055_v13, %v893_v29  ;;  %v994_v48 = vadd.f32 %v5059_v14, %v894_v30  ;;  %v595_v56 = vmul.f32 %v1124_v32, %v5008_v44  ;;  %v596_v58 = vmul.f32 %v1125_v33, %v5008_v44  ;;  %v5161_v30 = vld [vmem:[#allocation2 + $0x63] sm:$0xff] }
  0xfb   : > { %v1292_v59 = vadd.f32 %v5041_v5, %v1192_v31  ;;  %v1293_v62 = vadd.f32 %v5045_v6, %v1193_v35  ;;  %2225 = vmatprep.mubr.bf16.mxu1 %v1989_v41  ;;  %v763_v63 = vmul.f32 %v1324_v38, %v5012_v49  ;;  %v764_v36 = vmul.f32 %v1325_v39, %v5012_v49 }
  0xfc   : > { %v1093_v37 = vadd.f32 %v1061_v7, %v993_v46  ;;  %v1094_v57 = vadd.f32 %v1062_v9, %v994_v48  ;;  %2226 = vmatmul.mubr.bf16.vlgmr.msra.gmra.mrb[0].mxu1 %v1988_v42  ;;  %v695_v13 = vadd.f32 %v5079_v24, %v595_v56  ;;  %v696_v14 = vadd.f32 %v5083_v25, %v596_v58  ;;  %v5142_v7 = vld [vmem:[#allocation2 + $0x61] sm:$0xff]  ;;  %v3762_v24 = vld [vmem:[%s4984_s14 + $0x20] sm:$0xff]  }
  0xfd   : > { %v1392_v32 = vadd.f32 %v1360_v43, %v1292_v59  ;;  %v1393_v2 = vadd.f32 %v1361_v45, %v1293_v62  ;;  %4018 = vmatpush3.bf16.msra.mxu1 %v5032_v61  ;;  %v863_v5 = vmul.f32 %v5109_v0, %v5014_v50  ;;  %v864_v6 = vmul.f32 %v5113_v10, %v5014_v50  ;;  %v4278_v9 = vld [vmem:[#allocation12 + $0x150] sm:$0xff]   ;;  %v4276_v46 = vld [vmem:[#allocation12] sm:$0xff]   ;;  %v4279_v59 = vld [vmem:[#allocation12 + $0x48] sm:$0xff]  }
  0xfe   : > { %v1194_v33 = vadd.f32 %v1162_v4, %v1093_v37  ;;  %v1195_v38 = vadd.f32 %v1163_v21, %v1094_v57  ;;  %4019 = vmatprep.subr.bf16.mxu1 %v4277_v51  ;;  %v795_v39 = vadd.f32 %v763_v63, %v695_v13  ;;  %v796_v3 = vadd.f32 %v764_v36, %v696_v14  ;;  %v5153_v21 = vld [vmem:[#allocation2 + $0x69] sm:$0xff]  ;;  %v3764_v37 = vld [vmem:[%s4984_s14 + $0x30] sm:$0xff]  }
  0xff   : > { %v1424_v25 = vpack.c.bf16 %v1393_v2, %v1392_v32  ;;  %v1063_v43 = vmul.f32 %v5115_v11, %v5020_v53  ;;  %v1064_v61 = vmul.f32 %v5121_v22, %v5020_v53  ;;  %v1164_v45 = vmul.f32 %v5022_v54, %v5142_v7  ;;  %v5167_v42 = vld [vmem:[#allocation2 + $0x6b] sm:$0xff]  ;;  %v4281_v57 = vld [vmem:[#allocation12 + $0x158] sm:$0xff]  }
 0x100   : > { %v1294_v12 = vadd.f32 %v5063_v15, %v1194_v33  ;;  %v1295_v17 = vadd.f32 %v5070_v18, %v1195_v38  ;;  %v895_v1 = vadd.f32 %v863_v5, %v795_v39  ;;  %v896_v4 = vadd.f32 %v864_v6, %v796_v3  ;;  %v4282_v5 = vld [vmem:[#allocation12 + $0x160] sm:$0xff]   ;;  %v3763_v3 = vld [vmem:[%s4984_s14 + $0x28] sm:$0xff]  }
 0x101   : > { %3985 = vmatprep.mubr.bf16.mxu0 %v1424_v25  ;;  %4020 = vmatpush3.bf16.msra.mxu1 %v4277_v51  ;;  %v1165_v23 = vmul.f32 %v5022_v54, %v5153_v21  ;;  %v1264_v28 = vmul.f32 %v5073_v19, %v5024_v55  ;;  %v1265_v29 = vmul.f32 %v5075_v20, %v5024_v55  ;;  %v5163_v15 = vunpack.c.l.bf16 %v3762_v24 }
 0x102   : > { %v1394_v18 = vadd.f32 %v1362_v34, %v1294_v12  ;;  %v1395_v31 = vadd.f32 %v1363_v40, %v1295_v17  ;;  %v995_v35 = vadd.f32 %v5087_v26, %v895_v1  ;;  %v996_v41 = vadd.f32 %v5091_v27, %v896_v4  ;;  %4021 = vmatprep.subr.bf16.mxu1 %v4278_v9 }
 0x103   : > { %v1364_v48 = vmul.f32 %v5065_v16, %v5161_v30  ;;  %v1365_v51 = vmul.f32 %v5065_v16, %v5167_v42  ;;  %v5173_v56 = vunpack.c.h.bf16 %v3762_v24  ;;  %529 = vst [vmem:[#allocation2 + $0x7a] sm:$0xff] %v5163_v15  ;;  %v597_v26 = vmul.f32 %v5109_v0, %v5008_v44  ;;  %v4283_v24 = vld [vmem:[#allocation12 + $0x50] sm:$0xff]  }
 0x104   : > { %v1425_v34 = vpack.c.bf16 %v1395_v31, %v1394_v18  ;;  %v1095_v27 = vadd.f32 %v1063_v43, %v995_v35  ;;  %v1096_v40 = vadd.f32 %v1064_v61, %v996_v41  ;;  %v598_v58 = vmul.f32 %v5113_v10, %v5008_v44 }
 0x105   : > { %530 = vst [vmem:[#allocation2 + $0x82] sm:$0xff] %v5173_v56  ;;  %v665_v62 = vmul.f32 %v5030_v60, %v5010_v47  ;;  %v666_v63 = vmul.f32 %v5048_v8, %v5010_v47  ;;  %v765_v36 = vmul.f32 %v5115_v11, %v5012_v49  ;;  %v766_v0 = vmul.f32 %v5121_v22, %v5012_v49  ;;  %v4280_v8 = vld [vmem:[#allocation12 + $0x8] sm:$0xff]  }
 0x106   : > { %4022 = vmatpush3.bf16.msra.mxu1 %v4278_v9  ;;  %3986 = vmatmul.mubr.bf16.vlgmr.msra.gmra.mrb[0].mxu0 %v1425_v34  ;;  %v1196_v10 = vadd.f32 %v1164_v45, %v1095_v27  ;;  %v1197_v13 = vadd.f32 %v1165_v23, %v1096_v40  ;;  %v865_v14 = vmul.f32 %v5142_v7, %v5014_v50  ;;  %v5213_v1 = vunpack.c.l.bf16 %v3764_v37 }
 0x107   : > { %v866_v60 = vmul.f32 %v5153_v21, %v5014_v50  ;;  %3866 = vmatpush3.bf16.msra.mxu0 %v4276_v46  ;;  %v697_v32 = vadd.f32 %v665_v62, %v597_v26  ;;  %v698_v11 = vadd.f32 %v666_v63, %v598_v58  ;;  %v965_v22 = vmul.f32 %v5073_v19, %v5018_v52  ;;  %v4284_v26 = vld [vmem:[#allocation12 + $0x10] sm:$0xff]   ;;  %v4285_v62 = vld [vmem:[#allocation12 + $0x168] sm:$0xff]  }
 0x108   : > { %v966_v2 = vmul.f32 %v5075_v20, %v5018_v52  ;;  %v1296_v6 = vadd.f32 %v1264_v28, %v1196_v10  ;;  %v1297_v33 = vadd.f32 %v1265_v29, %v1197_v13  ;;  %v1065_v38 = vmul.f32 %v5161_v30, %v5020_v53  ;;  %3867 = vmatprep.subr.bf16.mxu0 %v4279_v59 }
 0x109   : > { %v1066_v39 = vmul.f32 %v5167_v42, %v5020_v53  ;;  %v797_v9 = vadd.f32 %v765_v36, %v697_v32  ;;  %v798_v25 = vadd.f32 %v766_v0, %v698_v11  ;;  %v5205_v43 = vmul.f32 %v5163_v15, %v5024_v55  ;;  %4023 = vmatprep.subr.bf16.mxu1 %v4281_v57  ;;  %v4286_v0 = vld [vmem:[#allocation12 + $0x170] sm:$0xff]  }
 0x10a   : > { %v5209_v61 = vmul.f32 %v5173_v56, %v5024_v55  ;;  %v1396_v45 = vadd.f32 %v1364_v48, %v1296_v6  ;;  %v1397_v12 = vadd.f32 %v1365_v51, %v1297_v33  ;;  %v5211_v17 = vld [vmem:[#allocation2 + $0x79] sm:$0xff]  ;;  %v5215_v4 = vunpack.c.h.bf16 %v3764_v37  ;;  %4024 = vmatpush3.bf16.msra.mxu1 %v4281_v57  ;;  %533 = vst [vmem:[#allocation2 + $0xaa] sm:$0xff] %v5213_v1 }
 0x10b   : > { %v897_v23 = vadd.f32 %v865_v14, %v797_v9  ;;  %v898_v28 = vadd.f32 %v866_v60, %v798_v25  ;;  %v1166_v29 = vmul.f32 %v5022_v54, %v5211_v17  ;;  %3868 = vmatpush3.bf16.msra.mxu0 %v4280_v8  ;;  %v5219_v18 = vunpack.c.l.bf16 %v3763_v3  ;;  %4025 = vmatprep.subr.bf16.mxu1 %v4282_v5  ;;  %v4287_v37 = vld [vmem:[#allocation12 + $0x58] sm:$0xff]  }
 0x10c   : > { %v1426_v31 = vpack.c.bf16 %v1397_v12, %v1396_v45  ;;  %v5221_v35 = vld [vmem:[#allocation2 + $0x81] sm:$0xff]  ;;  %534 = vst [vmem:[#allocation2 + $0xb2] sm:$0xff] %v5215_v4  ;;  %v5227_v46 = vunpack.c.h.bf16 %v3763_v3  ;;  %v599_v48 = vmul.f32 %v5142_v7, %v5008_v44  ;;  %v600_v51 = vmul.f32 %v5153_v21, %v5008_v44  ;;  %3869 = vmatprep.subr.bf16.mxu0 %v4283_v24 }
 0x10d   : > { %v5223_v41 = vld [vmem:[#allocation2 + $0x7b] sm:$0xff]  ;;  %v997_v34 = vadd.f32 %v965_v22, %v897_v23  ;;  %v998_v27 = vadd.f32 %v966_v2, %v898_v28  ;;  %v1167_v40 = vmul.f32 %v5022_v54, %v5221_v35  ;;  %v5235_v58 = vld [vmem:[#allocation2 + $0x83] sm:$0xff]  ;;  %531 = vst [vmem:[#allocation2 + $0x92] sm:$0xff] %v5219_v18  ;;  %v667_v21 = vmul.f32 %v5073_v19, %v5010_v47 }
 0x10e   : > { %v1366_v59 = vmul.f32 %v5065_v16, %v5223_v41  ;;  %3989 = vmatprep.mubr.bf16.mxu0 %v1426_v31  ;;  %v1367_v7 = vmul.f32 %v5065_v16, %v5235_v58  ;;  %532 = vst [vmem:[#allocation2 + $0x9a] sm:$0xff] %v5227_v46  ;;  %v668_v63 = vmul.f32 %v5075_v20, %v5010_v47  ;;  %v4288_v60 = vld [vmem:[#allocation12 + $0x18] sm:$0xff]  }
 0x10f   : > { %v767_v36 = vmul.f32 %v5161_v30, %v5012_v49  ;;  %v1097_v57 = vadd.f32 %v1065_v38, %v997_v34  ;;  %v1098_v10 = vadd.f32 %v1066_v39, %v998_v27  ;;  %v768_v13 = vmul.f32 %v5167_v42, %v5012_v49  ;;  %4026 = vmatpush3.bf16.msra.mxu1 %v4282_v5  ;;  %v1961_v8 = vld [vmem:[#allocation2 + $0x7a] ss:$2 sm:$0xff]  ;;  %v1945_v2 = vld [vmem:[#allocation2 + $0x79] ss:$2 sm:$0xff] }
 0x110   : > { %v867_v14 = vmul.f32 %v5211_v17, %v5014_v50  ;;  %v699_v19 = vadd.f32 %v667_v21, %v599_v48  ;;  %v700_v32 = vadd.f32 %v668_v63, %v600_v51  ;;  %v868_v20 = vmul.f32 %v5221_v35, %v5014_v50  ;;  %3870 = vmatpush3.bf16.msra.mxu0 %v4284_v26 }
 0x111   : > { %v967_v30 = vmul.f32 %v5163_v15, %v5018_v52  ;;  %v1198_v11 = vadd.f32 %v1166_v29, %v1097_v57  ;;  %v1199_v22 = vadd.f32 %v1167_v40, %v1098_v10  ;;  %v968_v42 = vmul.f32 %v5173_v56, %v5018_v52  ;;  %4027 = vmatprep.subr.bf16.mxu1 %v4285_v62  ;;  %v4290_v57 = vld [vmem:[#allocation12 + $0x60] sm:$0xff]  }
 0x112   : > { %v1067_v5 = vmul.f32 %v5223_v41, %v5020_v53  ;;  %v799_v6 = vadd.f32 %v767_v36, %v699_v19  ;;  %v800_v33 = vadd.f32 %v768_v13, %v700_v32  ;;  %v1068_v38 = vmul.f32 %v5235_v58, %v5020_v53  ;;  %3871 = vmatprep.subr.bf16.mxu0 %v4287_v37  ;;  %v4292_v19 = vld [vmem:[#allocation12 + $0x20] sm:$0xff]  }
 0x113   : > { %v1268_v39 = vmul.f32 %v5219_v18, %v5024_v55  ;;  %v1298_v3 = vadd.f32 %v5205_v43, %v1198_v11  ;;  %v1299_v24 = vadd.f32 %v5209_v61, %v1199_v22  ;;  %v1963_v9 = vld [vmem:[#allocation2 + $0xaa] ss:$2 sm:$0xff]  ;;  %v1947_v25 = vld [vmem:[#allocation2 + $0xa9] ss:$2 sm:$0xff]  ;;  %v1269_v45 = vmul.f32 %v5227_v46, %v5024_v55  ;;  %4028 = vmatpush3.bf16.msra.mxu1 %v4285_v62 }
 0x114   : > { %v601_v12 = vmul.f32 %v5211_v17, %v5008_v44  ;;  %v1992_v23 = vpack.c.bf16 %v1963_v9, %v1961_v8  ;;  %v1991_v28 = vpack.c.bf16 %v1947_v25, %v1945_v2  ;;  %v899_v29 = vadd.f32 %v867_v14, %v799_v6  ;;  %v5271_v48 = vld [vmem:[#allocation2 + $0x91] sm:$0xff]  ;;  %4029 = vmatprep.subr.bf16.mxu1 %v4286_v0  ;;  %v5297_v8 = vld [vmem:[#allocation12 + $0x80] sm:$0xff]  }
 0x115   : > { %v900_v31 = vadd.f32 %v868_v20, %v800_v33  ;;  %v1398_v51 = vadd.f32 %v1366_v59, %v1298_v3  ;;  %v1399_v43 = vadd.f32 %v1367_v7, %v1299_v24  ;;  %v5273_v26 = vld [vmem:[#allocation2 + $0x99] sm:$0xff]  ;;  %v1168_v61 = vmul.f32 %v5022_v54, %v5271_v48  ;;  %3872 = vmatpush3.bf16.msra.mxu0 %v4288_v60  ;;  %v5307_v22 = vld [vmem:[#allocation2 + $0xa9] sm:$0xff] }
 0x116   : > { %v5277_v34 = vld [vmem:[#allocation2 + $0x93] sm:$0xff]  ;;  %v602_v17 = vmul.f32 %v5221_v35, %v5008_v44  ;;  %2233 = vmatprep.mubr.bf16.mxu1 %v1992_v23  ;;  %v999_v27 = vadd.f32 %v967_v30, %v899_v29  ;;  %v1169_v62 = vmul.f32 %v5022_v54, %v5273_v26  ;;  %v5283_v21 = vld [vmem:[#allocation2 + $0x9b] sm:$0xff]  ;;  %v669_v35 = vmul.f32 %v5163_v15, %v5010_v47  ;;  %v4294_v30 = vld [vmem:[#allocation12 + $0x68] sm:$0xff]  }
 0x117   : > { %v1000_v40 = vadd.f32 %v968_v42, %v900_v31  ;;  %v1368_v59 = vmul.f32 %v5065_v16, %v5277_v34  ;;  %v4289_v7 = vld [vmem:[#allocation12 + $0x178] sm:$0xff]   ;;  %v1427_v63 = vpack.c.bf16 %v1399_v43, %v1398_v51  ;;  %2234 = vmatmul.mubr.bf16.gmra.mrb[4].mxu1 %v1991_v28  ;;  %v1369_v36 = vmul.f32 %v5065_v16, %v5283_v21  ;;  %v3766_v2 = vld [vmem:[%s4984_s14 + $0x40] sm:$0xff]  }
 0x118   : > { %v670_v37 = vmul.f32 %v5173_v56, %v5010_v47  ;;  %v1099_v10 = vadd.f32 %v1067_v5, %v999_v27  ;;  %v769_v14 = vmul.f32 %v5223_v41, %v5012_v49  ;;  %v770_v60 = vmul.f32 %v5235_v58, %v5012_v49  ;;  %4030 = vmatpush3.bf16.msra.mxu1 %v4286_v0  ;;  %v5325_v51 = vld [vmem:[#allocation2 + $0xab] sm:$0xff] }
 0x119   : > { %v1100_v13 = vadd.f32 %v1068_v38, %v1000_v40  ;;  %3990 = vmatmul.mubr.bf16.gmra.mrb[4].mxu0 %v1427_v63  ;;  %v701_v32 = vadd.f32 %v669_v35, %v601_v12  ;;  %v869_v56 = vmul.f32 %v5271_v48, %v5014_v50  ;;  %v870_v20 = vmul.f32 %v5273_v26, %v5014_v50  ;;  %v5314_v38 = vld [vmem:[#allocation2 + $0xb1] sm:$0xff]  ;;  %v3768_v12 = vld [vmem:[%s4984_s14 + $0x50] sm:$0xff]  }
 0x11a   : > { %v702_v15 = vadd.f32 %v670_v37, %v602_v17  ;;  %v1200_v11 = vadd.f32 %v1168_v61, %v1099_v10  ;;  %v969_v58 = vmul.f32 %v5219_v18, %v5018_v52  ;;  %v970_v0 = vmul.f32 %v5227_v46, %v5018_v52  ;;  %4031 = vmatprep.subr.bf16.mxu1 %v4289_v7  ;;  %v4296_v35 = vld [vmem:[#allocation12 + $0x28] sm:$0xff]   ;;  %v4298_v10 = vld [vmem:[#allocation12 + $0x70] sm:$0xff]  }
 0x11b   : > { %v1201_v41 = vadd.f32 %v1169_v62, %v1100_v13  ;;  %v801_v42 = vadd.f32 %v769_v14, %v701_v32  ;;  %v1069_v6 = vmul.f32 %v5277_v34, %v5020_v53  ;;  %v1070_v33 = vmul.f32 %v5283_v21, %v5020_v53  ;;  %3873 = vmatprep.subr.bf16.mxu0 %v4290_v57 }
 0x11c   : > { %v802_v5 = vadd.f32 %v770_v60, %v702_v15  ;;  %v1300_v3 = vadd.f32 %v1268_v39, %v1200_v11  ;;  %v1170_v9 = vmul.f32 %v5022_v54, %v5307_v22  ;;  %v1171_v25 = vmul.f32 %v5022_v54, %v5314_v38  ;;  %4032 = vmatpush3.bf16.msra.mxu1 %v4289_v7  ;;  %v5327_v39 = vld [vmem:[#allocation2 + $0xb3] sm:$0xff] }
 0x11d   : > { %v1301_v24 = vadd.f32 %v1269_v45, %v1201_v41  ;;  %v901_v23 = vadd.f32 %v869_v56, %v801_v42  ;;  %v1270_v29 = vmul.f32 %v5213_v1, %v5024_v55  ;;  %v1271_v31 = vmul.f32 %v5215_v4, %v5024_v55  ;;  %v3765_v45 = vld [vmem:[%s4984_s14 + $0x38] sm:$0xff]   ;;  %4041 = vmatprep.subr.bf16.mxu1 %v5297_v8 }
 0x11e   : > { %v902_v28 = vadd.f32 %v870_v20, %v802_v5  ;;  %v1400_v43 = vadd.f32 %v1368_v59, %v1300_v3  ;;  %v1370_v17 = vmul.f32 %v5065_v16, %v5325_v51  ;;  %v1371_v27 = vmul.f32 %v5065_v16, %v5327_v39  ;;  %3874 = vmatpush3.bf16.msra.mxu0 %v4292_v19 }
 0x11f   : > { %v1401_v61 = vadd.f32 %v1369_v36, %v1301_v24  ;;  %v1001_v40 = vadd.f32 %v969_v58, %v901_v23  ;;  %v5335_v7 = vunpack.c.l.bf16 %v3766_v2  ;;  %v5337_v63 = vunpack.c.h.bf16 %v3766_v2  ;;  %3875 = vmatprep.subr.bf16.mxu0 %v4294_v30 }
 0x120   : > { %v1002_v62 = vadd.f32 %v970_v0, %v902_v28  ;;  %v5339_v57 = vunpack.c.l.bf16 %v3768_v12  ;;  %v5341_v59 = vunpack.c.h.bf16 %v3768_v12  ;;  %v5343_v36 = vunpack.c.l.bf16 %v3765_v45  ;;  %v4302_v0 = vld [vmem:[#allocation12 + $0x78] sm:$0xff]  }
 0x121   : > { %v1428_v37 = vpack.c.bf16 %v1401_v61, %v1400_v43  ;;  %v1101_v13 = vadd.f32 %v1069_v6, %v1001_v40  ;;  %537 = vst [vmem:[#allocation2 + $0xda] sm:$0xff] %v5335_v7  ;;  %538 = vst [vmem:[#allocation2 + $0xe2] sm:$0xff] %v5337_v63  ;;  %v5347_v60 = vunpack.c.h.bf16 %v3765_v45  ;;  %v603_v19 = vmul.f32 %v5271_v48, %v5008_v44 }
 0x122   : > { %v1102_v14 = vadd.f32 %v1070_v33, %v1002_v62  ;;  %541 = vst [vmem:[#allocation2 + $0x10a] sm:$0xff] %v5339_v57  ;;  %542 = vst [vmem:[#allocation2 + $0x112] sm:$0xff] %v5341_v59  ;;  %v604_v32 = vmul.f32 %v5273_v26, %v5008_v44  ;;  %v671_v15 = vmul.f32 %v5219_v18, %v5010_v47  ;;  %3876 = vmatpush3.bf16.msra.mxu0 %v4296_v35  ;;  %v4300_v26 = vld [vmem:[#allocation12 + $0x30] sm:$0xff]  }
 0x123   : > { %3993 = vmatprep.mubr.bf16.mxu0 %v1428_v37  ;;  %535 = vst [vmem:[#allocation2 + $0xc2] sm:$0xff] %v5343_v36  ;;  %v672_v56 = vmul.f32 %v5227_v46, %v5010_v47  ;;  %v771_v20 = vmul.f32 %v5277_v34, %v5012_v49  ;;  %v1202_v48 = vadd.f32 %v1170_v9, %v1101_v13  ;;  %536 = vst [vmem:[#allocation2 + $0xca] sm:$0xff] %v5347_v60 }
 0x124   : > { %v1203_v30 = vadd.f32 %v1171_v25, %v1102_v14  ;;  %v772_v11 = vmul.f32 %v5283_v21, %v5012_v49  ;;  %v871_v41 = vmul.f32 %v5307_v22, %v5014_v50  ;;  %v703_v58 = vadd.f32 %v671_v15, %v603_v19  ;;  %3877 = vmatprep.subr.bf16.mxu0 %v4298_v10 }
 0x125   : > { %v704_v18 = vadd.f32 %v672_v56, %v604_v32  ;;  %v872_v46 = vmul.f32 %v5314_v38, %v5014_v50  ;;  %v971_v34 = vmul.f32 %v5213_v1, %v5018_v52  ;;  %v1302_v2 = vadd.f32 %v1270_v29, %v1202_v48 }
 0x126   : > { %v1303_v42 = vadd.f32 %v1271_v31, %v1203_v30  ;;  %v972_v21 = vmul.f32 %v5215_v4, %v5018_v52  ;;  %v1071_v5 = vmul.f32 %v5325_v51, %v5020_v53  ;;  %v803_v6 = vadd.f32 %v771_v20, %v703_v58  ;;  %3878 = vmatpush3.bf16.msra.mxu0 %v4300_v26  ;;  %v4306_v20 = vld [vmem:[#allocation12 + $0x1c0] sm:$0xff]  }
 0x127   : > { %v804_v33 = vadd.f32 %v772_v11, %v704_v18  ;;  %v1072_v3 = vmul.f32 %v5327_v39, %v5020_v53  ;;  %v1272_v24 = vmul.f32 %v5343_v36, %v5024_v55  ;;  %v1402_v9 = vadd.f32 %v1370_v17, %v1302_v2  ;;  %3879 = vmatprep.subr.bf16.mxu0 %v4302_v0  ;;  %v4304_v17 = vld [vmem:[#allocation12 + $0x38] sm:$0xff]  }
 0x128   : > { %v1403_v25 = vadd.f32 %v1371_v27, %v1303_v42  ;;  %v1273_v12 = vmul.f32 %v5347_v60, %v5024_v55  ;;  %v605_v23 = vmul.f32 %v5307_v22, %v5008_v44  ;;  %v1965_v28 = vld [vmem:[#allocation2 + $0xda] ss:$2 sm:$0xff]  ;;  %v1949_v29 = vld [vmem:[#allocation2 + $0xd9] ss:$2 sm:$0xff]  ;;  %v903_v31 = vadd.f32 %v871_v41, %v803_v6  ;;  %v3770_v6 = vld [vmem:[%s4984_s14 + $0x60] sm:$0xff]  }
 0x129   : > { %v904_v45 = vadd.f32 %v872_v46, %v804_v33  ;;  %v606_v43 = vmul.f32 %v5314_v38, %v5008_v44  ;;  %v673_v61 = vmul.f32 %v5213_v1, %v5010_v47  ;;  %v1967_v40 = vld [vmem:[#allocation2 + $0x10a] ss:$2 sm:$0xff]  ;;  %v1951_v62 = vld [vmem:[#allocation2 + $0x109] ss:$2 sm:$0xff]  ;;  %v674_v22 = vmul.f32 %v5215_v4, %v5010_v47  ;;  %v3772_v33 = vld [vmem:[%s4984_s14 + $0x70] sm:$0xff]  }
 0x12a   : > { %v1429_v27 = vpack.c.bf16 %v1403_v25, %v1402_v9  ;;  %v5387_v35 = vld [vmem:[#allocation2 + $0xc1] sm:$0xff]  ;;  %v773_v37 = vmul.f32 %v5325_v51, %v5012_v49  ;;  %v774_v10 = vmul.f32 %v5327_v39, %v5012_v49  ;;  %v1995_v38 = vpack.c.bf16 %v1967_v40, %v1965_v28  ;;  %v1137_v19 = vld [vmem:[#allocation2 + $0xc9] sm:$0xff]  ;;  %3880 = vmatpush3.bf16.msra.mxu0 %v4304_v17 }
 0x12b   : > { %v1994_v13 = vpack.c.bf16 %v1951_v62, %v1949_v29  ;;  %v1003_v14 = vadd.f32 %v971_v34, %v903_v31  ;;  %v1004_v1 = vadd.f32 %v972_v21, %v904_v45  ;;  %v5395_v32 = vld [vmem:[#allocation2 + $0xc3] sm:$0xff]  ;;  %v5397_v15 = vld [vmem:[#allocation2 + $0xcb] sm:$0xff]  ;;  %v1172_v56 = vmul.f32 %v5022_v54, %v5387_v35  ;;  %v5413_v34 = vld [vmem:[#allocation2 + $0xd9] sm:$0xff]  ;;  %3917 = vmatprep.subr.bf16.mxu0 %v4306_v20 }
 0x12c   : > { %3994 = vmatmul.mubr.bf16.gmra.mrb[8].mxu0 %v1429_v27  ;;  %v1173_v4 = vmul.f32 %v5022_v54, %v1137_v19  ;;  %v1372_v51 = vmul.f32 %v5065_v16, %v5395_v32  ;;  %v1373_v39 = vmul.f32 %v5065_v16, %v5397_v15  ;;  %2241 = vmatprep.mubr.bf16.mxu1 %v1995_v38  ;;  %v5427_v28 = vld [vmem:[#allocation2 + $0xdb] sm:$0xff]  ;;  %v5440_v38 = vunpack.c.l.bf16 %v3770_v6 }
 0x12d   : > { %v1103_v48 = vadd.f32 %v1071_v5, %v1003_v14  ;;  %v1104_v30 = vadd.f32 %v1072_v3, %v1004_v1  ;;  %v705_v11 = vadd.f32 %v673_v61, %v605_v23  ;;  %v706_v41 = vadd.f32 %v674_v22, %v606_v43  ;;  %2242 = vmatmul.mubr.bf16.gmra.mrb[8].mxu1 %v1994_v13  ;;  %v5415_v5 = vld [vmem:[#allocation2 + $0xe1] sm:$0xff]  ;;  %v3767_v22 = vld [vmem:[%s4984_s14 + $0x48] sm:$0xff]  }
 0x12e   : > { %v873_v26 = vmul.f32 %v5387_v35, %v5014_v50  ;;  %v874_v58 = vmul.f32 %v1137_v19, %v5014_v50  ;;  %v973_v18 = vmul.f32 %v5343_v36, %v5018_v52  ;;  %v974_v46 = vmul.f32 %v5347_v60, %v5018_v52  ;;  %v5429_v61 = vld [vmem:[#allocation2 + $0xe3] sm:$0xff]  ;;  %545 = vst [vmem:[#allocation2 + $0x13a] sm:$0xff] %v5440_v38 }
 0x12f   : > { %v1204_v0 = vadd.f32 %v1172_v56, %v1103_v48  ;;  %v1205_v2 = vadd.f32 %v1173_v4, %v1104_v30  ;;  %v805_v42 = vadd.f32 %v773_v37, %v705_v11  ;;  %v806_v21 = vadd.f32 %v774_v10, %v706_v41 }
 0x130   : > { %v1073_v3 = vmul.f32 %v5395_v32, %v5020_v53  ;;  %v1074_v9 = vmul.f32 %v5397_v15, %v5020_v53  ;;  %v1174_v25 = vmul.f32 %v5022_v54, %v5413_v34  ;;  %v1175_v23 = vmul.f32 %v5022_v54, %v5415_v5 }
 0x131   : > { %v1304_v29 = vadd.f32 %v1272_v24, %v1204_v0  ;;  %v1305_v31 = vadd.f32 %v1273_v12, %v1205_v2  ;;  %v905_v45 = vadd.f32 %v873_v26, %v805_v42  ;;  %v906_v43 = vadd.f32 %v874_v58, %v806_v21 }
 0x132   : > { %v1274_v17 = vmul.f32 %v5335_v7, %v5024_v55  ;;  %v1275_v27 = vmul.f32 %v5337_v63, %v5024_v55  ;;  %v1374_v40 = vmul.f32 %v5065_v16, %v5427_v28  ;;  %v1375_v62 = vmul.f32 %v5065_v16, %v5429_v61 }
 0x133   : > { %v1404_v37 = vadd.f32 %v1372_v51, %v1304_v29  ;;  %v1405_v24 = vadd.f32 %v1373_v39, %v1305_v31  ;;  %v1005_v12 = vadd.f32 %v973_v18, %v905_v45  ;;  %v1006_v10 = vadd.f32 %v974_v46, %v906_v43 }
 0x134   : > { %v5442_v13 = vunpack.c.h.bf16 %v3770_v6  ;;  %v5444_v14 = vunpack.c.l.bf16 %v3772_v33  ;;  %v5446_v1 = vunpack.c.h.bf16 %v3772_v33  ;;  %v5448_v48 = vunpack.c.l.bf16 %v3767_v22 }
 0x135   : > { %v1430_v56 = vpack.c.bf16 %v1405_v24, %v1404_v37  ;;  %v1105_v4 = vadd.f32 %v1073_v3, %v1005_v12  ;;  %v1106_v20 = vadd.f32 %v1074_v9, %v1006_v10  ;;  %v5454_v16 = vunpack.c.h.bf16 %v3767_v22 }
 0x136   : > { %546 = vst [vmem:[#allocation2 + $0x142] sm:$0xff] %v5442_v13  ;;  %549 = vst [vmem:[#allocation2 + $0x16a] sm:$0xff] %v5444_v14  ;;  %v607_v51 = vmul.f32 %v5387_v35, %v5008_v44  ;;  %v608_v39 = vmul.f32 %v1137_v19, %v5008_v44  ;;  %v675_v30 = vmul.f32 %v5343_v36, %v5010_v47 }
 0x137   : > { %550 = vst [vmem:[#allocation2 + $0x172] sm:$0xff] %v5446_v1  ;;  %3997 = vmatprep.mubr.bf16.mxu0 %v1430_v56  ;;  %v1206_v11 = vadd.f32 %v1174_v25, %v1105_v4  ;;  %v1207_v41 = vadd.f32 %v1175_v23, %v1106_v20  ;;  %539 = vst [vmem:[#allocation2 + $0xf2] sm:$0xff] %v5448_v48  ;;  %v676_v26 = vmul.f32 %v5347_v60, %v5010_v47 }
 0x138   : > { %v775_v58 = vmul.f32 %v5395_v32, %v5012_v49  ;;  %540 = vst [vmem:[#allocation2 + $0xfa] sm:$0xff] %v5454_v16  ;;  %v707_v18 = vadd.f32 %v675_v30, %v607_v51  ;;  %v776_v35 = vmul.f32 %v5397_v15, %v5012_v49  ;;  %v875_v36 = vmul.f32 %v5413_v34, %v5014_v50 }
 0x139   : > { %v876_v19 = vmul.f32 %v5415_v5, %v5014_v50  ;;  %v1306_v46 = vadd.f32 %v1274_v17, %v1206_v11  ;;  %v1307_v0 = vadd.f32 %v1275_v27, %v1207_v41  ;;  %v708_v2 = vadd.f32 %v676_v26, %v608_v39  ;;  %v5503_v41 = vld [vmem:[#allocation7 + $0x8] ss:$0 sm:$0xff] }
 0x13a   : > { %v975_v60 = vmul.f32 %v5335_v7, %v5018_v52  ;;  %v807_v42 = vadd.f32 %v775_v58, %v707_v18  ;;  %v976_v32 = vmul.f32 %v5337_v63, %v5018_v52  ;;  %v1075_v21 = vmul.f32 %v5427_v28, %v5020_v53 }
 0x13b   : > { %v1076_v15 = vmul.f32 %v5429_v61, %v5020_v53  ;;  %v1406_v6 = vadd.f32 %v1374_v40, %v1306_v46  ;;  %v1407_v33 = vadd.f32 %v1375_v62, %v1307_v0  ;;  %v808_v3 = vadd.f32 %v776_v35, %v708_v2  ;;  %v1973_v2 = vld [vmem:[#allocation2 + $0x1b] ss:$2 sm:$0xff] }
 0x13c   : > { %v1276_v9 = vmul.f32 %v5448_v48, %v5024_v55  ;;  %v907_v25 = vadd.f32 %v875_v36, %v807_v42  ;;  %v1277_v23 = vmul.f32 %v5454_v16, %v5024_v55  ;;  %v609_v29 = vmul.f32 %v5413_v34, %v5008_v44 }
 0x13d   : > { %v610_v31 = vmul.f32 %v5415_v5, %v5008_v44  ;;  %v1431_v45 = vpack.c.bf16 %v1407_v33, %v1406_v6  ;;  %v1969_v43 = vld [vmem:[#allocation2 + $0x13a] ss:$2 sm:$0xff]  ;;  %v1953_v27 = vld [vmem:[#allocation2 + $0x139] ss:$2 sm:$0xff]  ;;  %v908_v40 = vadd.f32 %v876_v19, %v808_v3  ;;  %v677_v62 = vmul.f32 %v5335_v7, %v5010_v47  ;;  %v5517_v6 = vld [vmem:[#allocation2 + $0x109] sm:$0xff] }
 0x13e   : > { %v1971_v17 = vld [vmem:[#allocation2 + $0x16a] ss:$2 sm:$0xff]  ;;  %v678_v22 = vmul.f32 %v5337_v63, %v5010_v47  ;;  %v1955_v24 = vld [vmem:[#allocation2 + $0x169] ss:$2 sm:$0xff]  ;;  %v1007_v12 = vadd.f32 %v975_v60, %v907_v25  ;;  %v777_v34 = vmul.f32 %v5427_v28, %v5012_v49  ;;  %v778_v5 = vmul.f32 %v5429_v61, %v5012_v49 }
 0x13f   : > { %v1998_v37 = vpack.c.bf16 %v1971_v17, %v1969_v43  ;;  %v1140_v10 = vld [vmem:[#allocation2 + $0xf1] sm:$0xff]  ;;  %3998 = vmatmul.mubr.bf16.gmra.mrb[12].mxu0 %v1431_v45  ;;  %v1997_v56 = vpack.c.bf16 %v1955_v24, %v1953_v27  ;;  %v1008_v4 = vadd.f32 %v976_v32, %v908_v40  ;;  %v1141_v20 = vld [vmem:[#allocation2 + $0xf9] sm:$0xff]  ;;  %v709_v63 = vadd.f32 %v677_v62, %v609_v29  ;;  %v3769_v29 = vld [vmem:[%s4984_s14 + $0x58] sm:$0xff]  }
 0x140   : > { %v1176_v51 = vmul.f32 %v5022_v54, %v1140_v10  ;;  %v5498_v7 = vld [vmem:[#allocation2 + $0xf3] sm:$0xff]  ;;  %v5500_v39 = vld [vmem:[#allocation2 + $0xfb] sm:$0xff]  ;;  %v1107_v30 = vadd.f32 %v1075_v21, %v1007_v12  ;;  %v1177_v11 = vmul.f32 %v5022_v54, %v1141_v20  ;;  %v710_v58 = vadd.f32 %v678_v22, %v610_v31  ;;  %v5528_v27 = vld [vmem:[#allocation2 + $0x10b] sm:$0xff] }
 0x141   : > { %2249 = vmatprep.mubr.bf16.mxu1 %v1998_v37  ;;  %v1376_v28 = vmul.f32 %v5503_v41, %v5498_v7  ;;  %v1377_v61 = vmul.f32 %v5503_v41, %v5500_v39  ;;  %v1108_v26 = vadd.f32 %v1076_v15, %v1008_v4  ;;  %v809_v18 = vadd.f32 %v777_v34, %v709_v63  ;;  %v1975_v60 = vld [vmem:[#allocation2 + $0x4b] ss:$2 sm:$0xff]  ;;  %v1977_v3 = vld [vmem:[#allocation2 + $0x7b] ss:$2 sm:$0xff] }
 0x142   : > { %2250 = vmatmul.mubr.bf16.gmra.mrb[12].mxu1 %v1997_v56  ;;  %v877_v35 = vmul.f32 %v1140_v10, %v5014_v50  ;;  %v1208_v36 = vadd.f32 %v1176_v51, %v1107_v30  ;;  %v878_v19 = vmul.f32 %v1141_v20, %v5014_v50  ;;  %v977_v46 = vmul.f32 %v5448_v48, %v5018_v52  ;;  %v5519_v33 = vld [vmem:[#allocation2 + $0x111] sm:$0xff] }
 0x143   : > { %v978_v0 = vmul.f32 %v5454_v16, %v5018_v52  ;;  %v1209_v42 = vadd.f32 %v1177_v11, %v1108_v26  ;;  %v810_v32 = vadd.f32 %v778_v5, %v710_v58  ;;  %v1077_v15 = vmul.f32 %v5498_v7, %v5020_v53  ;;  %v1979_v25 = vld [vmem:[#allocation2 + $0xab] ss:$2 sm:$0xff] }
 0x144   : > { %v909_v21 = vadd.f32 %v877_v35, %v809_v18  ;;  %v1308_v31 = vadd.f32 %v1276_v9, %v1208_v36  ;;  %v1078_v45 = vmul.f32 %v5500_v39, %v5020_v53  ;;  %v1178_v43 = vmul.f32 %v5022_v54, %v5517_v6  ;;  %v1343_v24 = vld [vmem:[#allocation2 + $0x113] sm:$0xff]  ;;  %v4293_v30 = vld [vmem:[#allocation12 + $0x88] sm:$0xff]  }
 0x145   : > { %v1179_v17 = vmul.f32 %v5022_v54, %v5519_v33  ;;  %v1309_v40 = vadd.f32 %v1277_v23, %v1209_v42  ;;  %v910_v62 = vadd.f32 %v878_v19, %v810_v32  ;;  %v1278_v37 = vmul.f32 %v5339_v57, %v5024_v55  ;;  %v5543_v58 = vld [vmem:[%s4984_s14 + $0x68] sm:$0xff]  }
 0x146   : > { %v1009_v22 = vadd.f32 %v977_v46, %v909_v21  ;;  %v1408_v9 = vadd.f32 %v1376_v28, %v1308_v31  ;;  %v1279_v12 = vmul.f32 %v5341_v59, %v5024_v55  ;;  %v1378_v34 = vmul.f32 %v5503_v41, %v5528_v27  ;;  %v4295_v32 = vld [vmem:[#allocation12 + $0x90] sm:$0xff]  }
 0x147   : > { %v1379_v5 = vmul.f32 %v5503_v41, %v1343_v24  ;;  %v1409_v56 = vadd.f32 %v1377_v61, %v1309_v40  ;;  %v1010_v4 = vadd.f32 %v978_v0, %v910_v62  ;;  %v1990_v23 = vpack.c.bf16 %v1975_v60, %v1973_v2 }
 0x148   : > { %v1109_v51 = vadd.f32 %v1077_v15, %v1009_v22  ;;  %v1993_v63 = vpack.c.bf16 %v1979_v25, %v1977_v3  ;;  %v5537_v11 = vunpack.c.l.bf16 %v3769_v29  ;;  %v5539_v26 = vunpack.c.h.bf16 %v3769_v29 }
 0x149   : > { %v611_v28 = vmul.f32 %v1140_v10, %v5008_v44  ;;  %v1432_v18 = vpack.c.bf16 %v1409_v56, %v1408_v9  ;;  %v1110_v35 = vadd.f32 %v1078_v45, %v1010_v4  ;;  %4033 = vmatprep.mubr.bf16.mxu1 %v1990_v23  ;;  %v612_v19 = vmul.f32 %v1141_v20, %v5008_v44 }
 0x14a   : > { %v1210_v36 = vadd.f32 %v1178_v43, %v1109_v51  ;;  %4034 = vmatmul.mubr.bf16.vlgmr.msra.gmra.mrb[16].mxu1 %v1993_v63  ;;  %543 = vst [vmem:[#allocation2 + $0x122] sm:$0xff] %v5537_v11  ;;  %544 = vst [vmem:[#allocation2 + $0x12a] sm:$0xff] %v5539_v26  ;;  %v679_v61 = vmul.f32 %v5448_v48, %v5010_v47  ;;  %v680_v46 = vmul.f32 %v5454_v16, %v5010_v47  ;;  %v4297_v51 = vld [vmem:[#allocation12 + $0x98] sm:$0xff]  }
 0x14b   : > { %v779_v10 = vmul.f32 %v5498_v7, %v5012_v49  ;;  %v780_v0 = vmul.f32 %v5500_v39, %v5012_v49  ;;  %4001 = vmatprep.mubr.bf16.mxu0 %v1432_v18  ;;  %v1211_v2 = vadd.f32 %v1179_v17, %v1110_v35  ;;  %4042 = vmatpush3.bf16.msra.mxu1 %v5297_v8  ;;  %v5560_v42 = vunpack.c.l.bf16 %v5543_v58 }
 0x14c   : > { %v1310_v20 = vadd.f32 %v1278_v37, %v1210_v36  ;;  %v879_v60 = vmul.f32 %v5517_v6, %v5014_v50  ;;  %4043 = vmatprep.subr.bf16.mxu1 %v4293_v30  ;;  %v711_v48 = vadd.f32 %v679_v61, %v611_v28  ;;  %v712_v16 = vadd.f32 %v680_v46, %v612_v19 }
 0x14d   : > { %v880_v7 = vmul.f32 %v5519_v33, %v5014_v50  ;;  %v979_v39 = vmul.f32 %v5339_v57, %v5018_v52  ;;  %v1311_v21 = vadd.f32 %v1279_v12, %v1211_v2  ;;  %v980_v8 = vmul.f32 %v5341_v59, %v5018_v52  ;;  %547 = vst [vmem:[#allocation2 + $0x152] sm:$0xff] %v5560_v42 }
 0x14e   : > { %v1410_v15 = vadd.f32 %v1378_v34, %v1310_v20  ;;  %v1079_v3 = vmul.f32 %v5528_v27, %v5020_v53  ;;  %v811_v25 = vadd.f32 %v779_v10, %v711_v48  ;;  %v812_v29 = vadd.f32 %v780_v0, %v712_v16  ;;  %v4299_v48 = vld [vmem:[#allocation12 + $0xa0] sm:$0xff]  }
 0x14f   : > { %v1080_v31 = vmul.f32 %v1343_v24, %v5020_v53  ;;  %v1280_v45 = vmul.f32 %v5537_v11, %v5024_v55  ;;  %v1411_v43 = vadd.f32 %v1379_v5, %v1311_v21  ;;  %4044 = vmatpush3.bf16.msra.mxu1 %v4293_v30  ;;  %v1281_v17 = vmul.f32 %v5539_v26, %v5024_v55  ;;  %v1147_v21 = vld [vmem:[#allocation2 + $0x141] sm:$0xff] }
 0x150   : > { %v613_v40 = vmul.f32 %v5517_v6, %v5008_v44  ;;  %v614_v62 = vmul.f32 %v5519_v33, %v5008_v44  ;;  %v911_v22 = vadd.f32 %v879_v60, %v811_v25  ;;  %v912_v37 = vadd.f32 %v880_v7, %v812_v29  ;;  %4045 = vmatprep.subr.bf16.mxu1 %v4295_v32  ;;  %v5598_v60 = vld [vmem:[#allocation2 + $0x139] sm:$0xff] }
 0x151   : > { %v681_v9 = vmul.f32 %v5339_v57, %v5010_v47  ;;  %v682_v12 = vmul.f32 %v5341_v59, %v5010_v47  ;;  %v1433_v34 = vpack.c.bf16 %v1411_v43, %v1410_v15  ;;  %v1144_v5 = vld [vmem:[#allocation2 + $0x121] sm:$0xff]  ;;  %v1145_v56 = vld [vmem:[#allocation2 + $0x129] sm:$0xff]  ;;  %v781_v4 = vmul.f32 %v5528_v27, %v5012_v49 }
 0x152   : > { %v782_v6 = vmul.f32 %v1343_v24, %v5012_v49  ;;  %v981_v33 = vmul.f32 %v5537_v11, %v5018_v52  ;;  %v1011_v23 = vadd.f32 %v979_v39, %v911_v22  ;;  %v1012_v63 = vadd.f32 %v980_v8, %v912_v37  ;;  %v1344_v59 = vld [vmem:[#allocation2 + $0x123] sm:$0xff]  ;;  %v1345_v28 = vld [vmem:[#allocation2 + $0x12b] sm:$0xff]  ;;  %v5606_v29 = vld [vmem:[#allocation2 + $0x13b] sm:$0xff] }
 0x153   : > { %v1180_v57 = vmul.f32 %v5022_v54, %v1144_v5  ;;  %v1181_v30 = vmul.f32 %v5022_v54, %v1145_v56  ;;  %4002 = vmatmul.mubr.bf16.gmra.mrb[16].mxu0 %v1433_v34  ;;  %v1380_v18 = vmul.f32 %v5503_v41, %v1344_v59  ;;  %v1381_v35 = vmul.f32 %v5503_v41, %v1345_v28 }
 0x154   : > { %v713_v27 = vadd.f32 %v681_v9, %v613_v40  ;;  %v714_v36 = vadd.f32 %v682_v12, %v614_v62  ;;  %v1111_v24 = vadd.f32 %v1079_v3, %v1011_v23  ;;  %v1112_v19 = vadd.f32 %v1080_v31, %v1012_v63  ;;  %4046 = vmatpush3.bf16.msra.mxu1 %v4295_v32  ;;  %v5610_v62 = vld [vmem:[#allocation2 + $0x143] sm:$0xff] }
 0x155   : > { %v881_v61 = vmul.f32 %v1144_v5, %v5014_v50  ;;  %v882_v46 = vmul.f32 %v1145_v56, %v5014_v50  ;;  %v982_v2 = vmul.f32 %v5539_v26, %v5018_v52  ;;  %v1081_v20 = vmul.f32 %v1344_v59, %v5020_v53  ;;  %4047 = vmatprep.subr.bf16.mxu1 %v4297_v51 }
 0x156   : > { %v813_v10 = vadd.f32 %v781_v4, %v713_v27  ;;  %v814_v0 = vadd.f32 %v782_v6, %v714_v36  ;;  %v1212_v16 = vadd.f32 %v1180_v57, %v1111_v24  ;;  %v1213_v7 = vadd.f32 %v1181_v30, %v1112_v19  ;;  %v4303_v24 = vld [vmem:[#allocation12 + $0xb0] sm:$0xff]  }
 0x157   : > { %v1082_v39 = vmul.f32 %v1345_v28, %v5020_v53  ;;  %v1182_v15 = vmul.f32 %v5022_v54, %v5598_v60  ;;  %v1183_v3 = vmul.f32 %v5022_v54, %v1147_v21  ;;  %v1282_v25 = vmul.f32 %v5440_v38, %v5024_v55 }
 0x158   : > { %v913_v32 = vadd.f32 %v881_v61, %v813_v10  ;;  %v914_v8 = vadd.f32 %v882_v46, %v814_v0  ;;  %v1312_v31 = vadd.f32 %v1280_v45, %v1212_v16  ;;  %v1313_v43 = vadd.f32 %v1281_v17, %v1213_v7  ;;  %4048 = vmatpush3.bf16.msra.mxu1 %v4297_v51  ;;  %v4301_v45 = vld [vmem:[#allocation12 + $0xa8] sm:$0xff]  }
 0x159   : > { %v1283_v40 = vmul.f32 %v5442_v13, %v5024_v55  ;;  %v1382_v22 = vmul.f32 %v5503_v41, %v5606_v29  ;;  %v1383_v12 = vmul.f32 %v5503_v41, %v5610_v62  ;;  %v5617_v34 = vunpack.c.h.bf16 %v5543_v58  ;;  %4049 = vmatprep.subr.bf16.mxu1 %v4299_v48  ;;  %v5637_v0 = vld [vmem:[#allocation2 + $0x151] sm:$0xff] }
 0x15a   : > { %v1013_v37 = vadd.f32 %v981_v33, %v913_v32  ;;  %v1014_v9 = vadd.f32 %v982_v2, %v914_v8  ;;  %v1412_v17 = vadd.f32 %v1380_v18, %v1312_v31  ;;  %v1413_v4 = vadd.f32 %v1381_v35, %v1313_v43 }
 0x15b   : > { %v615_v6 = vmul.f32 %v1144_v5, %v5008_v44  ;;  %v616_v23 = vmul.f32 %v1145_v56, %v5008_v44  ;;  %548 = vst [vmem:[#allocation2 + $0x15a] sm:$0xff] %v5617_v34  ;;  %v683_v33 = vmul.f32 %v5537_v11, %v5010_v47  ;;  %v684_v51 = vmul.f32 %v5539_v26, %v5010_v47 }
 0x15c   : > { %v1113_v63 = vadd.f32 %v1081_v20, %v1013_v37  ;;  %v1114_v57 = vadd.f32 %v1082_v39, %v1014_v9  ;;  %v1434_v58 = vpack.c.bf16 %v1413_v4, %v1412_v17  ;;  %v783_v30 = vmul.f32 %v1344_v59, %v5012_v49  ;;  %4050 = vmatpush3.bf16.msra.mxu1 %v4299_v48 }
 0x15d   : > { %v784_v18 = vmul.f32 %v1345_v28, %v5012_v49  ;;  %v883_v5 = vmul.f32 %v5598_v60, %v5014_v50  ;;  %v715_v27 = vadd.f32 %v683_v33, %v615_v6  ;;  %v716_v36 = vadd.f32 %v684_v51, %v616_v23  ;;  %4051 = vmatprep.subr.bf16.mxu1 %v4301_v45 }
 0x15e   : > { %v1214_v56 = vadd.f32 %v1182_v15, %v1113_v63  ;;  %v1215_v35 = vadd.f32 %v1183_v3, %v1114_v57  ;;  %4005 = vmatprep.mubr.bf16.mxu0 %v1434_v58  ;;  %v884_v11 = vmul.f32 %v1147_v21, %v5014_v50  ;;  %v983_v26 = vmul.f32 %v5440_v38, %v5018_v52  ;;  %v5661_v57 = vld [vmem:[#allocation12 + $0x200] sm:$0xff]  }
 0x15f   : > { %v984_v59 = vmul.f32 %v5442_v13, %v5018_v52  ;;  %v1083_v28 = vmul.f32 %v5606_v29, %v5020_v53  ;;  %v815_v46 = vadd.f32 %v783_v30, %v715_v27  ;;  %v816_v10 = vadd.f32 %v784_v18, %v716_v36 }
 0x160   : > { %v1314_v19 = vadd.f32 %v1282_v25, %v1214_v56  ;;  %v1315_v61 = vadd.f32 %v1283_v40, %v1215_v35  ;;  %v1084_v2 = vmul.f32 %v5610_v62, %v5020_v53  ;;  %v1184_v20 = vmul.f32 %v5022_v54, %v5637_v0  ;;  %4052 = vmatpush3.bf16.msra.mxu1 %v4301_v45  ;;  %v4305_v40 = vld [vmem:[#allocation12 + $0xb8] sm:$0xff]  }
 0x161   : > { %v1284_v48 = vmul.f32 %v5560_v42, %v5024_v55  ;;  %v1285_v16 = vmul.f32 %v5617_v34, %v5024_v55  ;;  %v915_v15 = vadd.f32 %v883_v5, %v815_v46  ;;  %v916_v32 = vadd.f32 %v884_v11, %v816_v10  ;;  %4053 = vmatprep.subr.bf16.mxu1 %v4303_v24 }
 0x162   : > { %v1414_v7 = vadd.f32 %v1382_v22, %v1314_v19  ;;  %v1415_v39 = vadd.f32 %v1383_v12, %v1315_v61  ;;  %v1149_v8 = vld [vmem:[#allocation2 + $0x159] sm:$0xff]  ;;  %v617_v3 = vmul.f32 %v5598_v60, %v5008_v44  ;;  %v618_v25 = vmul.f32 %v1147_v21, %v5008_v44  ;;  %v1350_v19 = vld [vmem:[#allocation2 + $0x16b] sm:$0xff] }
 0x163   : > { %v685_v31 = vmul.f32 %v5440_v38, %v5010_v47  ;;  %v686_v43 = vmul.f32 %v5442_v13, %v5010_v47  ;;  %v1015_v9 = vadd.f32 %v983_v26, %v915_v15  ;;  %v1016_v22 = vadd.f32 %v984_v59, %v916_v32  ;;  %v1348_v45 = vld [vmem:[#allocation2 + $0x153] sm:$0xff]  ;;  %v1349_v17 = vld [vmem:[#allocation2 + $0x15b] sm:$0xff]  ;;  %v3773_v61 = vld [vmem:[%s4984_s14 + $0x78] sm:$0xff]  }
 0x164   : > { %v1435_v37 = vpack.c.bf16 %v1415_v39, %v1414_v7  ;;  %v1185_v12 = vmul.f32 %v5022_v54, %v1149_v8  ;;  %v1384_v4 = vmul.f32 %v5503_v41, %v1348_v45  ;;  %v1385_v60 = vmul.f32 %v5503_v41, %v1349_v17  ;;  %4054 = vmatpush3.bf16.msra.mxu1 %v4303_v24 }
 0x165   : > { %v717_v6 = vadd.f32 %v685_v31, %v617_v3  ;;  %v718_v21 = vadd.f32 %v686_v43, %v618_v25  ;;  %v1115_v38 = vadd.f32 %v1083_v28, %v1015_v9  ;;  %v1116_v23 = vadd.f32 %v1084_v2, %v1016_v22  ;;  %4055 = vmatprep.subr.bf16.mxu1 %v4305_v40  ;;  %v1151_v28 = vld [vmem:[#allocation2 + $0x171] sm:$0xff] }
 0x166   : > { %4006 = vmatmul.mubr.bf16.gmra.mrb[20].mxu0 %v1435_v37  ;;  %v785_v13 = vmul.f32 %v5606_v29, %v5012_v49  ;;  %v786_v63 = vmul.f32 %v5610_v62, %v5012_v49  ;;  %v885_v33 = vmul.f32 %v5637_v0, %v5014_v50  ;;  %v886_v51 = vmul.f32 %v1149_v8, %v5014_v50  ;;  %v1150_v62 = vld [vmem:[#allocation2 + $0x169] sm:$0xff]  ;;  %v1351_v37 = vld [vmem:[#allocation2 + $0x173] sm:$0xff] }
 0x167   : > { %v985_v58 = vmul.f32 %v5560_v42, %v5018_v52  ;;  %v986_v30 = vmul.f32 %v5617_v34, %v5018_v52  ;;  %v1216_v18 = vadd.f32 %v1184_v20, %v1115_v38  ;;  %v1217_v29 = vadd.f32 %v1185_v12, %v1116_v23 }
 0x168   : > { %v817_v5 = vadd.f32 %v785_v13, %v717_v6  ;;  %v818_v56 = vadd.f32 %v786_v63, %v718_v21  ;;  %v1085_v35 = vmul.f32 %v1348_v45, %v5020_v53  ;;  %v1086_v27 = vmul.f32 %v1349_v17, %v5020_v53  ;;  %4056 = vmatpush3.bf16.msra.mxu1 %v4305_v40 }
 0x169   : > { %v1186_v36 = vmul.f32 %v5022_v54, %v1150_v62  ;;  %v1316_v24 = vadd.f32 %v1284_v48, %v1216_v18  ;;  %v1317_v11 = vadd.f32 %v1285_v16, %v1217_v29  ;;  %4065 = vmatprep.subr.bf16.mxu1 %v5661_v57  ;;  %v1187_v46 = vmul.f32 %v5022_v54, %v1151_v28 }
 0x16a   : > { %v917_v26 = vadd.f32 %v885_v33, %v817_v5  ;;  %v918_v59 = vadd.f32 %v886_v51, %v818_v56  ;;  %v1286_v10 = vmul.f32 %v5444_v14, %v5024_v55  ;;  %v1287_v2 = vmul.f32 %v5446_v1, %v5024_v55 }
 0x16b   : > { %v1386_v20 = vmul.f32 %v5503_v41, %v1350_v19  ;;  %v1416_v7 = vadd.f32 %v1384_v4, %v1316_v24  ;;  %v1417_v48 = vadd.f32 %v1385_v60, %v1317_v11  ;;  %v3677_v15 = vunpack.c.l.bf16 %v3773_v61 }
 0x16c   : > { %v1017_v16 = vadd.f32 %v985_v58, %v917_v26  ;;  %v1018_v39 = vadd.f32 %v986_v30, %v918_v59  ;;  %v3678_v32 = vunpack.c.h.bf16 %v3773_v61  ;;  %v619_v3 = vmul.f32 %v5637_v0, %v5008_v44 }
 0x16d   : > { %v620_v25 = vmul.f32 %v1149_v8, %v5008_v44  ;;  %v1436_v31 = vpack.c.bf16 %v1417_v48, %v1416_v7  ;;  %v687_v9 = vmul.f32 %v5560_v42, %v5010_v47  ;;  %v1387_v22 = vmul.f32 %v5503_v41, %v1351_v37  ;;  %551 = vst [vmem:[#allocation2 + $0x182] sm:$0xff] %v3677_v15 }
 0x16e   : > { %v1117_v43 = vadd.f32 %v1085_v35, %v1017_v16  ;;  %v1118_v40 = vadd.f32 %v1086_v27, %v1018_v39  ;;  %552 = vst [vmem:[#allocation2 + $0x18a] sm:$0xff] %v3678_v32  ;;  %v688_v12 = vmul.f32 %v5617_v34, %v5010_v47  ;;  %v787_v4 = vmul.f32 %v1348_v45, %v5012_v49 }
 0x16f   : > { %v788_v0 = vmul.f32 %v1349_v17, %v5012_v49  ;;  %4009 = vmatprep.mubr.bf16.mxu0 %v1436_v31  ;;  %v719_v6 = vadd.f32 %v687_v9, %v619_v3  ;;  %v887_v21 = vmul.f32 %v1150_v62, %v5014_v50  ;;  %v888_v42 = vmul.f32 %v1151_v28, %v5014_v50 }
 0x170   : > { %v1218_v8 = vadd.f32 %v1186_v36, %v1117_v43  ;;  %v1219_v60 = vadd.f32 %v1187_v46, %v1118_v40  ;;  %v720_v38 = vadd.f32 %v688_v12, %v620_v25  ;;  %v987_v23 = vmul.f32 %v5444_v14, %v5018_v52  ;;  %v1154_v43 = vld [vmem:[#allocation2 + $0x199] sm:$0xff]  ;;  %v1155_v40 = vld [vmem:[#allocation2 + $0x1a1] sm:$0xff] }
 0x171   : > { %v819_v33 = vadd.f32 %v787_v4, %v719_v6  ;;  %v988_v34 = vmul.f32 %v5446_v1, %v5018_v52  ;;  %v1087_v17 = vmul.f32 %v1350_v19, %v5020_v53  ;;  %v1088_v51 = vmul.f32 %v1351_v37, %v5020_v53  ;;  %v1983_v12 = vld [vmem:[#allocation2 + $0x10b] ss:$2 sm:$0xff]  ;;  %v1985_v6 = vld [vmem:[#allocation2 + $0x13b] ss:$2 sm:$0xff] }
 0x172   : > { %v1318_v13 = vadd.f32 %v1286_v10, %v1218_v8  ;;  %v1319_v63 = vadd.f32 %v1287_v2, %v1219_v60  ;;  %v820_v45 = vadd.f32 %v788_v0, %v720_v38  ;;  %v621_v58 = vmul.f32 %v1150_v62, %v5008_v44 }
 0x173   : > { %v919_v29 = vadd.f32 %v887_v21, %v819_v33  ;;  %v622_v5 = vmul.f32 %v1151_v28, %v5008_v44  ;;  %v1288_v35 = vmul.f32 %v3677_v15, %v5024_v55  ;;  %v689_v27 = vmul.f32 %v5444_v14, %v5010_v47  ;;  %v1987_v21 = vld [vmem:[#allocation2 + $0x16b] ss:$2 sm:$0xff] }
 0x174   : > { %v1418_v30 = vadd.f32 %v1386_v20, %v1318_v13  ;;  %v1419_v18 = vadd.f32 %v1387_v22, %v1319_v63  ;;  %v920_v56 = vadd.f32 %v888_v42, %v820_v45  ;;  %v690_v36 = vmul.f32 %v5446_v1, %v5010_v47  ;;  %v1152_v26 = vld [vmem:[#allocation2 + $0x181] sm:$0xff] }
 0x175   : > { %v1019_v11 = vadd.f32 %v987_v23, %v919_v29  ;;  %v1153_v59 = vld [vmem:[#allocation2 + $0x189] sm:$0xff]  ;;  %v789_v62 = vmul.f32 %v1350_v19, %v5012_v49  ;;  %v790_v61 = vmul.f32 %v1351_v37, %v5012_v49  ;;  %v1188_v44 = vmul.f32 %v5022_v54, %v1152_v26  ;;  %v1867_v13 = vld [vmem:[#allocation2 + $0x33] ss:$2 sm:$0xff] }
 0x176   : > { %v1437_v24 = vpack.c.bf16 %v1419_v18, %v1418_v30  ;;  %v1020_v46 = vadd.f32 %v988_v34, %v920_v56  ;;  %v1189_v28 = vmul.f32 %v5022_v54, %v1153_v59  ;;  %v1289_v10 = vmul.f32 %v3678_v32, %v5024_v55  ;;  %v1352_v2 = vld [vmem:[#allocation2 + $0x183] sm:$0xff]  ;;  %v1353_v48 = vld [vmem:[#allocation2 + $0x18b] sm:$0xff] }
 0x177   : > { %v1119_v14 = vadd.f32 %v1087_v17, %v1019_v11  ;;  %v721_v20 = vadd.f32 %v689_v27, %v621_v58  ;;  %v722_v47 = vadd.f32 %v690_v36, %v622_v5  ;;  %v989_v1 = vmul.f32 %v3677_v15, %v5018_v52  ;;  %v1981_v22 = vld [vmem:[#allocation2 + $0xdb] ss:$2 sm:$0xff] }
 0x178   : > { %4010 = vmatmul.mubr.bf16.gmra.mrb[24].mxu0 %v1437_v24  ;;  %v1120_v7 = vadd.f32 %v1088_v51, %v1020_v46  ;;  %v1388_v19 = vmul.f32 %v5503_v41, %v1352_v2  ;;  %v889_v49 = vmul.f32 %v1152_v26, %v5014_v50  ;;  %v890_v16 = vmul.f32 %v1153_v59, %v5014_v50  ;;  %v1254_v50 = vld [vmem:[#allocation2 + $0x19a] sm:$0xff]  ;;  %v1255_v42 = vld [vmem:[#allocation2 + $0x1a2] sm:$0xff] }
 0x179   : > { %v1220_v39 = vadd.f32 %v1188_v44, %v1119_v14  ;;  %v821_v3 = vadd.f32 %v789_v62, %v721_v20  ;;  %v822_v25 = vadd.f32 %v790_v61, %v722_v47  ;;  %v990_v31 = vmul.f32 %v3678_v32, %v5018_v52  ;;  %v1865_v23 = vld [vmem:[#allocation2 + $0x3] ss:$2 sm:$0xff]  ;;  %v1354_v58 = vld [vmem:[#allocation2 + $0x19b] sm:$0xff] }
 0x17a   : > { %v1221_v37 = vadd.f32 %v1189_v28, %v1120_v7  ;;  %v1389_v9 = vmul.f32 %v5503_v41, %v1353_v48  ;;  %v1089_v15 = vmul.f32 %v1352_v2, %v5020_v53  ;;  %v1090_v60 = vmul.f32 %v1353_v48, %v5020_v53  ;;  %v1355_v53 = vld [vmem:[#allocation2 + $0x1a3] sm:$0xff]  ;;  %v1871_v26 = vld [vmem:[#allocation2 + $0x93] ss:$2 sm:$0xff]  ;;  %v1851_v46 = vld [vmem:[#allocation2 + $0x32] ss:$2 sm:$0xff] }
 0x17b   : > { %v1320_v4 = vadd.f32 %v1288_v35, %v1220_v39  ;;  %v921_v0 = vadd.f32 %v889_v49, %v821_v3  ;;  %v922_v8 = vadd.f32 %v890_v16, %v822_v25  ;;  %v1190_v52 = vmul.f32 %v5022_v54, %v1154_v43  ;;  %v1869_v11 = vld [vmem:[#allocation2 + $0x63] ss:$2 sm:$0xff]  ;;  %v1849_v61 = vld [vmem:[#allocation2 + $0x2] ss:$2 sm:$0xff]  ;;  %v1875_v28 = vld [vmem:[#allocation2 + $0xf3] ss:$2 sm:$0xff] }
 0x17c   : > { %v1321_v38 = vadd.f32 %v1289_v10, %v1221_v37  ;;  %v1191_v32 = vmul.f32 %v5022_v54, %v1155_v40  ;;  %v1996_v45 = vpack.c.bf16 %v1983_v12, %v1981_v22  ;;  %v1290_v51 = vmul.f32 %v5024_v55, %v1254_v50  ;;  %v4310_v20 = vld [vmem:[#allocation12 + $0x208] sm:$0xff]   ;;  %v1879_v7 = vld [vmem:[#allocation2 + $0x153] ss:$2 sm:$0xff]  ;;  %v1855_v39 = vld [vmem:[#allocation2 + $0x92] ss:$2 sm:$0xff] }
 0x17d   : > { %v1420_v63 = vadd.f32 %v1388_v19, %v1320_v4  ;;  %v1021_v33 = vadd.f32 %v989_v1, %v921_v0  ;;  %v1022_v34 = vadd.f32 %v990_v31, %v922_v8  ;;  %v1999_v30 = vpack.c.bf16 %v1987_v21, %v1985_v6  ;;  %v1833_v48 = vld [vmem:[#allocation2 + $0x1] ss:$2 sm:$0xff]  ;;  %v1835_v19 = vld [vmem:[#allocation2 + $0x31] ss:$2 sm:$0xff]  ;;  %v1853_v16 = vld [vmem:[#allocation2 + $0x62] ss:$2 sm:$0xff] }
 0x17e   : > { %v1421_v17 = vadd.f32 %v1389_v9, %v1321_v38  ;;  %v1291_v5 = vmul.f32 %v5024_v55, %v1255_v42  ;;  %4037 = vmatprep.mubr.bf16.mxu1 %v1996_v45  ;;  %v1882_v56 = vpack.c.bf16 %v1867_v13, %v1865_v23  ;;  %v1390_v36 = vmul.f32 %v5503_v41, %v1354_v58  ;;  %v1873_v55 = vld [vmem:[#allocation2 + $0xc3] ss:$2 sm:$0xff]  ;;  %v4313_v49 = vld [vmem:[#allocation12 + $0x210] sm:$0xff]   ;;  %v4317_v42 = vld [vmem:[#allocation12 + $0x198] sm:$0xff]  }
 0x17f   : > { %v1121_v18 = vadd.f32 %v1089_v15, %v1021_v33  ;;  %v1122_v29 = vadd.f32 %v1090_v60, %v1022_v34  ;;  %4038 = vmatmul.mubr.bf16.gmra.mrb[20].mxu1 %v1999_v30  ;;  %v1391_v24 = vmul.f32 %v5503_v41, %v1355_v53  ;;  %v1885_v44 = vpack.c.bf16 %v1871_v26, %v1869_v11  ;;  %v1877_v41 = vld [vmem:[#allocation2 + $0x123] ss:$2 sm:$0xff]  ;;  %v2630_v31 = vld [vmem:[#allocation2 + $0x33] ss:$2 sm:$0xff]  ;;  %v1857_v60 = vld [vmem:[#allocation2 + $0xc2] ss:$2 sm:$0xff] }
 0x180   : > { %v1438_v54 = vpack.c.bf16 %v1421_v17, %v1420_v63  ;;  %4057 = vmatprep.mubr.bf16.mxu1 %v1882_v56  ;;  %v1881_v2 = vpack.c.bf16 %v1851_v46, %v1849_v61  ;;  %v1888_v1 = vpack.c.bf16 %v1875_v28, %v1873_v55  ;;  %v1891_v3 = vpack.c.bf16 %v1879_v7, %v1877_v41  ;;  %v2632_v43 = vld [vmem:[#allocation2 + $0x63] ss:$2 sm:$0xff]  ;;  %v4312_v8 = vld [vmem:[#allocation12 + $0x1d0] sm:$0xff]   ;;  %v1861_v34 = vld [vmem:[#allocation2 + $0x122] ss:$2 sm:$0xff] }
 0x181   : > { %v1222_v35 = vadd.f32 %v1190_v52, %v1121_v18  ;;  %v1223_v27 = vadd.f32 %v1191_v32, %v1122_v29  ;;  %v1880_v25 = vpack.c.bf16 %v1835_v19, %v1833_v48  ;;  %v4308_v40 = vld [vmem:[#allocation12 + $0x180] sm:$0xff]   ;;  %v1884_v37 = vpack.c.bf16 %v1855_v39, %v1853_v16  ;;  %v4309_v9 = vld [vmem:[#allocation12 + $0x1c8] sm:$0xff]   ;;  %v1859_v50 = vld [vmem:[#allocation2 + $0xf2] ss:$2 sm:$0xff] }
 0x182   : > { %4013 = vmatprep.mubr.bf16.mxu0 %v1438_v54  ;;  %v2647_v15 = vpack.c.bf16 %v2632_v43, %v2630_v31  ;;  %v4311_v22 = vld [vmem:[#allocation12 + $0x188] sm:$0xff]   ;;  %v4319_v0 = vld [vmem:[#allocation12 + $0x220] sm:$0xff]   ;;  %v4314_v21 = vld [vmem:[#allocation12 + $0x190] sm:$0xff]   ;;  %v1887_v38 = vpack.c.bf16 %v1859_v50, %v1857_v60 }
 0x183   : > { %v1322_v59 = vadd.f32 %v1290_v51, %v1222_v35  ;;  %v1323_v62 = vadd.f32 %v1291_v5, %v1223_v27  ;;  %v1837_v12 = vld [vmem:[#allocation2 + $0x61] ss:$2 sm:$0xff]  ;;  %v1839_v4 = vld [vmem:[#allocation2 + $0x91] ss:$2 sm:$0xff]  ;;  %v1863_v45 = vld [vmem:[#allocation2 + $0x152] ss:$2 sm:$0xff] }
 0x184   : > { %v1883_v6 = vpack.c.bf16 %v1839_v4, %v1837_v12  ;;  %v4315_v52 = vld [vmem:[#allocation12 + $0x1d8] sm:$0xff]   ;;  %v4322_v32 = vld [vmem:[#allocation12 + $0x228] sm:$0xff]   ;;  %v4325_v63 = vld [vmem:[#allocation12 + $0x230] sm:$0xff]   ;;  %v1890_v58 = vpack.c.bf16 %v1863_v45, %v1861_v34 }
 0x185   : > { %v1422_v10 = vadd.f32 %v1390_v36, %v1322_v59  ;;  %v1423_v14 = vadd.f32 %v1391_v24, %v1323_v62  ;;  %v1841_v23 = vld [vmem:[#allocation2 + $0xc1] ss:$2 sm:$0xff]  ;;  %v1843_v13 = vld [vmem:[#allocation2 + $0xf1] ss:$2 sm:$0xff]  ;;  %v2614_v24 = vld [vmem:[#allocation2 + $0x32] ss:$2 sm:$0xff] }
 0x186   : > { %v4318_v33 = vld [vmem:[#allocation12 + $0x1e0] sm:$0xff]   ;;  %v1886_v17 = vpack.c.bf16 %v1843_v13, %v1841_v23  ;;  %v4321_v53 = vld [vmem:[#allocation12 + $0x1e8] sm:$0xff]   ;;  %v4328_v30 = vld [vmem:[#allocation12 + $0x238] sm:$0xff]  }
 0x187   : > { %v1439_v47 = vpack.c.bf16 %v1423_v14, %v1422_v10  ;;  %4058 = vmatmul.mubr.bf16.vlgmr.msra.gmra.mrb[16].mxu1 %v1885_v44  ;;  %v4320_v51 = vld [vmem:[#allocation12 + $0x1a0] sm:$0xff]   ;;  %v4323_v18 = vld [vmem:[#allocation12 + $0x1a8] sm:$0xff]   ;;  %v2634_v29 = vld [vmem:[#allocation2 + $0x93] ss:$2 sm:$0xff] }
 0x188   : > { %4066 = vmatpush3.bf16.msra.mxu1 %v5661_v57  ;;  %4061 = vmatprep.mubr.bf16.mxu1 %v1888_v1  ;;  %v4316_v57 = vld [vmem:[#allocation12 + $0x218] sm:$0xff]   ;;  %v2636_v5 = vld [vmem:[#allocation2 + $0xc3] ss:$2 sm:$0xff]  ;;  %v4324_v36 = vld [vmem:[#allocation12 + $0x1f0] sm:$0xff]  }
 0x189   : > { %4014 = vmatmul.mubr.bf16.gmra.mrb[28].mxu0 %v1439_v47  ;;  %4067 = vmatprep.subr.bf16.mxu1 %v4310_v20  ;;  %v2638_v56 = vld [vmem:[#allocation2 + $0xf3] ss:$2 sm:$0xff]  ;;  %v2640_v27 = vld [vmem:[#allocation2 + $0x123] ss:$2 sm:$0xff]  ;;  %v2616_v11 = vld [vmem:[#allocation2 + $0x62] ss:$2 sm:$0xff]  ;;  %v2650_v26 = vpack.c.bf16 %v2636_v5, %v2634_v29 }
 0x18a   : > { %2499 = vmatprep.mubr.bf16.mxu0 %v1881_v2  ;;  %v1845_v54 = vld [vmem:[#allocation2 + $0x121] ss:$2 sm:$0xff]  ;;  %v1847_v35 = vld [vmem:[#allocation2 + $0x151] ss:$2 sm:$0xff]  ;;  %v2653_v62 = vpack.c.bf16 %v2640_v27, %v2638_v56  ;;  %v2646_v46 = vpack.c.bf16 %v2616_v11, %v2614_v24  ;;  %v2620_v47 = vld [vmem:[#allocation2 + $0xc2] ss:$2 sm:$0xff] }
 0x18b   : > { %v1889_v59 = vpack.c.bf16 %v1847_v35, %v1845_v54  ;;  %v4326_v61 = vld [vmem:[#allocation12 + $0x1b0] sm:$0xff]   ;;  %v4327_v44 = vld [vmem:[#allocation12 + $0x1f8] sm:$0xff]   ;;  %v2644_v28 = vld [vmem:[#allocation2 + $0x183] ss:$2 sm:$0xff] }
 0x18c   : > { %4068 = vmatpush3.bf16.msra.mxu1 %v4310_v20  ;;  %v2642_v55 = vld [vmem:[#allocation2 + $0x153] ss:$2 sm:$0xff]  ;;  %v2618_v20 = vld [vmem:[#allocation2 + $0x92] ss:$2 sm:$0xff]  ;;  %v2624_v16 = vld [vmem:[#allocation2 + $0x122] ss:$2 sm:$0xff] }
 0x18d   : > { %4069 = vmatprep.subr.bf16.mxu1 %v4313_v49  ;;  %v4329_v10 = vld [vmem:[#allocation12 + $0x1b8] sm:$0xff]   ;;  %v2656_v1 = vpack.c.bf16 %v2644_v28, %v2642_v55  ;;  %v2649_v7 = vpack.c.bf16 %v2620_v47, %v2618_v20 }
 0x18e   : > { %v2598_v14 = vld [vmem:[#allocation2 + $0x31] ss:$2 sm:$0xff]  ;;  %v2600_v2 = vld [vmem:[#allocation2 + $0x61] ss:$2 sm:$0xff]  ;;  %v2626_v43 = vld [vmem:[#allocation2 + $0x152] ss:$2 sm:$0xff] }
 0x18f   : > { %4062 = vmatmul.mubr.bf16.gmra.mrb[20].mxu1 %v1891_v3  ;;  %v2645_v41 = vpack.c.bf16 %v2600_v2, %v2598_v14  ;;  %v2602_v48 = vld [vmem:[#allocation2 + $0x91] ss:$2 sm:$0xff]  ;;  %v2604_v19 = vld [vmem:[#allocation2 + $0xc1] ss:$2 sm:$0xff] }
 0x190   : > { %4070 = vmatpush3.bf16.msra.mxu1 %v4313_v49  ;;  %4081 = vmatprep.mubr.bf16.mxu1 %v2647_v15  ;;  %v2622_v49 = vld [vmem:[#allocation2 + $0xf2] ss:$2 sm:$0xff]  ;;  %v2648_v39 = vpack.c.bf16 %v2604_v19, %v2602_v48  ;;  %v2608_v31 = vld [vmem:[#allocation2 + $0x121] ss:$2 sm:$0xff] }
 0x191   : > { %2500 = vmatmul.mubr.bf16.vlgmr.msra.gmra.mrb[32].mxu0 %v1880_v25  ;;  %4071 = vmatprep.subr.bf16.mxu1 %v4316_v57  ;;  %v2652_v3 = vpack.c.bf16 %v2624_v16, %v2622_v49  ;;  %v2606_v25 = vld [vmem:[#allocation2 + $0xf1] ss:$2 sm:$0xff]  ;;  %v2612_v15 = vld [vmem:[#allocation2 + $0x181] ss:$2 sm:$0xff] }
 0x192   : > { %3918 = vmatpush3.bf16.msra.mxu0 %v4308_v40  ;;  %2507 = vmatprep.mubr.bf16.mxu0 %v1884_v37  ;;  %v2628_v40 = vld [vmem:[#allocation2 + $0x182] ss:$2 sm:$0xff]  ;;  %v2651_v37 = vpack.c.bf16 %v2608_v31, %v2606_v25 }
 0x193   : > { %3919 = vmatprep.subr.bf16.mxu0 %v4309_v9  ;;  %v2655_v9 = vpack.c.bf16 %v2628_v40, %v2626_v43 }
 0x194   : > { %4072 = vmatpush3.bf16.msra.mxu1 %v4316_v57  ;;  %v2610_v57 = vld [vmem:[#allocation2 + $0x151] ss:$2 sm:$0xff] }
 0x195   : > { %4073 = vmatprep.subr.bf16.mxu1 %v4319_v0 }
 0x196   : > { %3920 = vmatpush3.bf16.msra.mxu0 %v4311_v22  ;;  %v2654_v22 = vpack.c.bf16 %v2612_v15, %v2610_v57 }
 0x197   : > { %3921 = vmatprep.subr.bf16.mxu0 %v4312_v8 }
 0x198   : > { %4074 = vmatpush3.bf16.msra.mxu1 %v4319_v0 }
 0x199   : > { %2508 = vmatmul.mubr.bf16.gmra.mrb[36].mxu0 %v1883_v6  ;;  %4075 = vmatprep.subr.bf16.mxu1 %v4322_v32 }
 0x19a   : > { %3922 = vmatpush3.bf16.msra.mxu0 %v4314_v21  ;;  %2515 = vmatprep.mubr.bf16.mxu0 %v1887_v38  ;;  %v5730_v21 = vld [vmem:[#allocation10] ss:$0 sm:$0xff] }
 0x19b   : > { %3923 = vmatprep.subr.bf16.mxu0 %v4315_v52 }
 0x19c   : > { %4076 = vmatpush3.bf16.msra.mxu1 %v4322_v32 }
 0x19d   : > { %4077 = vmatprep.subr.bf16.mxu1 %v4325_v63 }
 0x19e   : > { %3924 = vmatpush3.bf16.msra.mxu0 %v4317_v42 }
 0x19f   : > { %3925 = vmatprep.subr.bf16.mxu0 %v4318_v33 }
 0x1a0   : > { %4078 = vmatpush3.bf16.msra.mxu1 %v4325_v63 }
 0x1a1   : > { %2516 = vmatmul.mubr.bf16.gmra.mrb[40].mxu0 %v1886_v17  ;;  %4079 = vmatprep.subr.bf16.mxu1 %v4328_v30 }
 0x1a2   : > { %3926 = vmatpush3.bf16.msra.mxu0 %v4320_v51  ;;  %2523 = vmatprep.mubr.bf16.mxu0 %v1890_v58 }
 0x1a3   : > { %3927 = vmatprep.subr.bf16.mxu0 %v4321_v53 }
 0x1a4   : > { %4080 = vmatpush3.bf16.msra.mxu1 %v4328_v30 }
 0x1a6   : > { %3928 = vmatpush3.bf16.msra.mxu0 %v4323_v18 }
 0x1a7   : > { %3929 = vmatprep.subr.bf16.mxu0 %v4324_v36  ;;  %4082 = vmatmul.mubr.bf16.vlgmr.msra.gmra.mrb[16].mxu1 %v2650_v26 }
 0x1a8   : > { %4085 = vmatprep.mubr.bf16.mxu1 %v2653_v62 }
 0x1a9   : > { %2524 = vmatmul.mubr.bf16.gmra.mrb[44].mxu0 %v1889_v59 }
 0x1aa   : > { %3930 = vmatpush3.bf16.msra.mxu0 %v4326_v61  ;;  %2882 = vmatprep.mubr.bf16.mxu0 %v2646_v46 }
 0x1ab   : > { %3931 = vmatprep.subr.bf16.mxu0 %v4327_v44 }
 0x1ae   : > { %3932 = vmatpush3.bf16.msra.mxu0 %v4329_v10 }
 0x1af   : > { %4086 = vmatmul.mubr.bf16.gmra.mrb[20].mxu1 %v2656_v1 }
 0x1b1   : > { %2883 = vmatmul.mubr.bf16.vlgmr.msra.gmra.mrb[48].mxu0 %v2645_v41 }
 0x1b2   : > { %2890 = vmatprep.mubr.bf16.mxu0 %v2649_v7 }
 0x1b9   : > { %2891 = vmatmul.mubr.bf16.gmra.mrb[52].mxu0 %v2648_v39 }
 0x1ba   : > { %2898 = vmatprep.mubr.bf16.mxu0 %v2652_v3 }
 0x1c1   : > { %2899 = vmatmul.mubr.bf16.gmra.mrb[56].mxu0 %v2651_v37 }
 0x1c2   : > { %2906 = vmatprep.mubr.bf16.mxu0 %v2655_v9 }
 0x1c9   : > { %2907 = vmatmul.mubr.bf16.gmra.mrb[60].mxu0 %v2654_v22 }
 0x1cf   : > { %v3829_v12 = vpop.f32.mrb[0].mxu1 }
 0x1d0   : > { %v3830_v4 = vpop.f32.mrb[1].mxu1 }
 0x1d1   : > { %v5726_v0 = vadd.f32 %v3830_v4, %v3829_v12  ;;  %v3832_v8 = vpop.f32.mrb[2].mxu1 }
 0x1d2   : > { %v3833_v60 = vpop.f32.mrb[3].mxu1 }
 0x1d3   : > { %v5728_v50 = vadd.f32 %v3833_v60, %v3832_v8 }
 0x1d9   : > { %v3987_v6 = vpop.f32.mrb[0].mxu0 }
 0x1da   : > { %v1545_v38 = vpop.f32.mrb[1].mxu0  ;;  %v1554_v32 = vadd.f32 %v3987_v6, %v5730_v21 }
 0x1db   : > { %v3988_v52 = vpop.f32.mrb[2].mxu0  ;;  %v1546_v13 = vadd.f32 %v5730_v21, %v1545_v38 }
 0x1dc   : > { %v1557_v42 = vadd.f32 %v3988_v52, %v5730_v21  ;;  %v1548_v23 = vpop.f32.mrb[3].mxu0 }
 0x1dd   : > { %v1549_v63 = vadd.f32 %v5730_v21, %v1548_v23 }
 0x1de   : > { %v3687_v33 = vpack.c.bf16 %v1557_v42, %v1554_v32 }
 0x1df   : > { %v3682_v34 = vpack.c.bf16 %v1549_v63, %v1546_v13 }
 0x1e0   : > { %3774 = vst [vmem:[%s5738_s12 + $0x8] sm:$0xff] %v3687_v33  }
 0x1e1   : > { %3683 = vst [vmem:[%s5738_s12] sm:$0xff] %v3682_v34  }
 0x1ea   : > { %v3835_v45 = vpop.f32.mrb[4].mxu1 }
 0x1eb   : > { %v3836_v17 = vpop.f32.mrb[5].mxu1 }
 0x1ec   : > { %v3991_v51 = vpop.f32.mrb[4].mxu0  ;;  %v5742_v58 = vadd.f32 %v3836_v17, %v3835_v45  ;;  %v3838_v53 = vpop.f32.mrb[6].mxu1 }
 0x1ed   : > { %v1561_v30 = vpop.f32.mrb[5].mxu0  ;;  %v3839_v18 = vpop.f32.mrb[7].mxu1  ;;  %v1570_v56 = vadd.f32 %v3991_v51, %v5730_v21 }
 0x1ee   : > { %v3992_v29 = vpop.f32.mrb[6].mxu0  ;;  %v5744_v5 = vadd.f32 %v3839_v18, %v3838_v53  ;;  %v1562_v27 = vadd.f32 %v5730_v21, %v1561_v30 }
 0x1ef   : > { %v1573_v54 = vadd.f32 %v3992_v29, %v5730_v21  ;;  %v1564_v35 = vpop.f32.mrb[7].mxu0 }
 0x1f0   : > { %v1565_v36 = vadd.f32 %v5730_v21, %v1564_v35 }
 0x1f1   : > { %v3697_v24 = vpack.c.bf16 %v1573_v54, %v1570_v56 }
 0x1f2   : > { %v3692_v11 = vpack.c.bf16 %v1565_v36, %v1562_v27 }
 0x1f3   : > { %3776 = vst [vmem:[%s5738_s12 + $0x18] sm:$0xff] %v3697_v24  }
 0x1f4   : > { %3775 = vst [vmem:[%s5738_s12 + $0x10] sm:$0xff] %v3692_v11  }
 0x1ff   : > { %v3995_v26 = vpop.f32.mrb[8].mxu0 }
 0x200   : > { %v1577_v59 = vpop.f32.mrb[9].mxu0  ;;  %v3841_v61 = vpop.f32.mrb[8].mxu1  ;;  %v1586_v46 = vadd.f32 %v3995_v26, %v5730_v21 }
 0x201   : > { %v3996_v62 = vpop.f32.mrb[10].mxu0  ;;  %v3842_v28 = vpop.f32.mrb[9].mxu1  ;;  %v1578_v10 = vadd.f32 %v5730_v21, %v1577_v59 }
 0x202   : > { %v1589_v44 = vadd.f32 %v3996_v62, %v5730_v21  ;;  %v1580_v55 = vpop.f32.mrb[11].mxu0  ;;  %v5756_v2 = vadd.f32 %v3842_v28, %v3841_v61  ;;  %v3844_v20 = vpop.f32.mrb[10].mxu1 }
 0x203   : > { %v1581_v14 = vadd.f32 %v5730_v21, %v1580_v55  ;;  %v3845_v1 = vpop.f32.mrb[11].mxu1 }
 0x204   : > { %v3707_v47 = vpack.c.bf16 %v1589_v44, %v1586_v46  ;;  %v5758_v7 = vadd.f32 %v3845_v1, %v3844_v20 }
 0x205   : > { %v3702_v41 = vpack.c.bf16 %v1581_v14, %v1578_v10 }
 0x206   : > { %3778 = vst [vmem:[%s5738_s12 + $0x28] sm:$0xff] %v3707_v47  }
 0x207   : > { %3777 = vst [vmem:[%s5738_s12 + $0x20] sm:$0xff] %v3702_v41  }
 0x212   : > { %v3999_v48 = vpop.f32.mrb[12].mxu0 }
 0x213   : > { %v1593_v19 = vpop.f32.mrb[13].mxu0  ;;  %v1602_v39 = vadd.f32 %v3999_v48, %v5730_v21 }
 0x214   : > { %v4000_v49 = vpop.f32.mrb[14].mxu0  ;;  %v1594_v43 = vadd.f32 %v5730_v21, %v1593_v19 }
 0x215   : > { %v3847_v16 = vpop.f32.mrb[12].mxu1  ;;  %v1605_v3 = vadd.f32 %v4000_v49, %v5730_v21  ;;  %v1596_v25 = vpop.f32.mrb[15].mxu0 }
 0x216   : > { %v3848_v31 = vpop.f32.mrb[13].mxu1  ;;  %v1597_v40 = vadd.f32 %v5730_v21, %v1596_v25 }
 0x217   : > { %v5766_v37 = vadd.f32 %v3848_v31, %v3847_v16  ;;  %v3850_v9 = vpop.f32.mrb[14].mxu1  ;;  %v3717_v57 = vpack.c.bf16 %v1605_v3, %v1602_v39 }
 0x218   : > { %v3851_v15 = vpop.f32.mrb[15].mxu1  ;;  %v3712_v22 = vpack.c.bf16 %v1597_v40, %v1594_v43 }
 0x219   : > { %v5768_v12 = vadd.f32 %v3851_v15, %v3850_v9  ;;  %3780 = vst [vmem:[%s5738_s12 + $0x38] sm:$0xff] %v3717_v57  }
 0x21a   : > { %3779 = vst [vmem:[%s5738_s12 + $0x30] sm:$0xff] %v3712_v22  }
 0x226   : > { %v4003_v4 = vpop.f32.mrb[16].mxu0 }
 0x227   : > { %v1609_v8 = vpop.f32.mrb[17].mxu0  ;;  %v1618_v6 = vadd.f32 %v4003_v4, %v5730_v21 }
 0x228   : > { %v4004_v60 = vpop.f32.mrb[18].mxu0  ;;  %v1610_v32 = vadd.f32 %v5730_v21, %v1609_v8 }
 0x229   : > { %v1621_v38 = vadd.f32 %v4004_v60, %v5730_v21  ;;  %v1612_v52 = vpop.f32.mrb[19].mxu0 }
 0x22a   : > { %v1613_v42 = vadd.f32 %v5730_v21, %v1612_v52 }
 0x22b   : > { %v3727_v23 = vpack.c.bf16 %v1621_v38, %v1618_v6 }
 0x22c   : > { %v3722_v13 = vpack.c.bf16 %v1613_v42, %v1610_v32 }
 0x22d   : > { %3782 = vst [vmem:[%s5738_s12 + $0x48] sm:$0xff] %v3727_v23  }
 0x22e   : > { %3781 = vst [vmem:[%s5738_s12 + $0x40] sm:$0xff] %v3722_v13  }
 0x239   : > { %v4007_v63 = vpop.f32.mrb[20].mxu0 }
 0x23a   : > { %v1625_v33 = vpop.f32.mrb[21].mxu0  ;;  %v1634_v45 = vadd.f32 %v4007_v63, %v5730_v21 }
 0x23b   : > { %v4008_v34 = vpop.f32.mrb[22].mxu0  ;;  %v1626_v53 = vadd.f32 %v5730_v21, %v1625_v33 }
 0x23c   : > { %v1637_v17 = vadd.f32 %v4008_v34, %v5730_v21  ;;  %v1628_v51 = vpop.f32.mrb[23].mxu0 }
 0x23d   : > { %v1629_v30 = vadd.f32 %v5730_v21, %v1628_v51 }
 0x23e   : > { %v3737_v18 = vpack.c.bf16 %v1637_v17, %v1634_v45 }
 0x23f   : > { %v3732_v29 = vpack.c.bf16 %v1629_v30, %v1626_v53 }
 0x240   : > { %3784 = vst [vmem:[%s5738_s12 + $0x58] sm:$0xff] %v3737_v18  }
 0x241   : > { %3783 = vst [vmem:[%s5738_s12 + $0x50] sm:$0xff] %v3732_v29  }
 0x24b   : > { %v4011_v56 = vpop.f32.mrb[24].mxu0 }
 0x24c   : > { %v1641_v54 = vpop.f32.mrb[25].mxu0  ;;  %v1650_v27 = vadd.f32 %v4011_v56, %v5730_v21 }
 0x24d   : > { %v4012_v35 = vpop.f32.mrb[26].mxu0  ;;  %v1642_v11 = vadd.f32 %v5730_v21, %v1641_v54 }
 0x24e   : > { %v1653_v36 = vadd.f32 %v4012_v35, %v5730_v21  ;;  %v1644_v24 = vpop.f32.mrb[27].mxu0 }
 0x24f   : > { %v1645_v26 = vadd.f32 %v5730_v21, %v1644_v24 }
 0x250   : > { %v3747_v59 = vpack.c.bf16 %v1653_v36, %v1650_v27 }
 0x251   : > { %v3742_v62 = vpack.c.bf16 %v1645_v26, %v1642_v11 }
 0x252   : > { %3786 = vst [vmem:[%s5738_s12 + $0x68] sm:$0xff] %v3747_v59  }
 0x253   : > { %3785 = vst [vmem:[%s5738_s12 + $0x60] sm:$0xff] %v3742_v62  }
 0x25c   : > { %v4015_v61 = vpop.f32.mrb[28].mxu0 }
 0x25d   : > { %v1657_v46 = vpop.f32.mrb[29].mxu0  ;;  %v1666_v55 = vadd.f32 %v4015_v61, %v5730_v21 }
 0x25e   : > { %v4016_v44 = vpop.f32.mrb[30].mxu0  ;;  %v1658_v14 = vadd.f32 %v5730_v21, %v1657_v46 }
 0x25f   : > { %v1669_v28 = vadd.f32 %v4016_v44, %v5730_v21  ;;  %v1660_v10 = vpop.f32.mrb[31].mxu0 }
 0x260   : > { %v1661_v20 = vadd.f32 %v5730_v21, %v1660_v10 }
 0x261   : > { %v3757_v47 = vpack.c.bf16 %v1669_v28, %v1666_v55 }
 0x262   : > { %v3752_v1 = vpack.c.bf16 %v1661_v20, %v1658_v14 }
 0x263   : > { %3788 = vst [vmem:[%s5738_s12 + $0x78] sm:$0xff] %v3757_v47  }
 0x264   : > { %3787 = vst [vmem:[%s5738_s12 + $0x70] sm:$0xff] %v3752_v1   ;;  %v3881_v41 = vpop.f32.mrb[32].mxu0 }
 0x265   : > { %v3882_v48 = vpop.f32.mrb[33].mxu0 }
 0x266   : > { %4542 = shalt.err (!%p4539_p8)
}
 0x267   : > { %s4543_s14 = scalar_lea.hbm %s5799_s9, 2048  ;;  %s4547_s21 = scalar_lea.hbm %s5940_s7, 4096 }
 0x268   : > { %p4544_p4 = scmp.ne.s32.totalorder %s5799_s9, %s4543_s14  ;;  %p4548_p3 = scmp.lt.u32.totalorder %s5799_s9, %s5940_s7 }
 0x269   : > { %p4549_p5 = scmp.lt.u32.totalorder %s4547_s21, %s4543_s14  ;;  %p4551_p6 = scmp.lt.u32.totalorder %s4543_s14, %s5799_s9 }
 0x26a   : > { %p4545_p10 = pnand %p4544_p4, %p5965_p9 }
 0x26b   : > { %p4550_p7 = por %p4549_p5, %p4548_p3 }
 0x26c   : > { %p4546_p11 = pneg %p4545_p10 }
 0x26d   : > { %p4552_p12 = por %p4551_p6, %p4550_p7 }
 0x26f   : > { %p4553_p1 = pnand %p4552_p12, %p4546_p11 }
 0x271   : > { %4556 = shalt.err (!%p4553_p1)
}
 0x272   : > { %s4654_s13 = smov 64   ;;  %s4655_s17 = smov 4   ;;  %v3883_v21 = vadd.f32 %v3882_v48, %v3881_v41  ;;  %v3884_v19 = vpop.f32.mrb[34].mxu0  ;;  %v5849_v24 = vld [vmem:[#allocation13] ss:$0 sm:$0xff] }
 0x273   : > { %4155 = dma.vmem_to_hbm [thread:$0]  (%p5965_p9), %s5801_s20, 2048, %s5799_s9, %s3166_s19, %s4654_s13, %s4654_s13, %s4655_s17   ;;  %v3885_v49 = vpop.f32.mrb[35].mxu0  ;;  %v5851_v26 = vld [vmem:[#allocation15] ss:$0 sm:$0xff] }
 0x274   : > { %v4092_v16 = vadd.f32 %v3883_v21, %v5726_v0  ;;  %v3886_v39 = vadd.f32 %v3885_v49, %v3884_v19  ;;  %v3887_v25 = vpop.f32.mrb[36].mxu0  ;;  %v3049_v59 = vld [vmem:[#allocation3 + $0x1] ss:$2 sm:$0xf]  ;;  %s3455_s20 = sshll.u32 %s4978_s15, 3  ;;  %s3614_s19 = sshll.u32 %s4725_s11, 7 }
 0x275   : > { %v3888_v31 = vpop.f32.mrb[37].mxu0  ;;  %v3057_v46 = vld [vmem:[#allocation3 + $0x2] ss:$2 sm:$0xf]  ;;  %s5876_s9 = scalar_lea.vmem [#allocation17], %s3455_s20  ;;  %s5886_s26 = scalar_lea.hbm %s5941_s8, %s3614_s19 }
 0x276   : > { %v4098_v3 = vadd.f32 %v3886_v39, %v5728_v50  ;;  %v3889_v43 = vadd.f32 %v3888_v31, %v3887_v25  ;;  %v3890_v40 = vpop.f32.mrb[38].mxu0  ;;  %v3064_v47 = vadd.f32 %v3057_v46, %v3049_v59  ;;  %v3069_v21 = vld [vmem:[#allocation3 + $0x3] ss:$2 sm:$0xf]  ;;  %s3200_s18 = sshll.u32 %s5876_s9, 4  ;;  %s3171_s21 = scalar_lea.sflag [#allocation18], %s4978_s15  ;;  %s5888_s18 = int_to_ptr.vmem [resolvable:$true] %s3200_s18 }
 0x277   : > { %v3891_v9 = vpop.f32.mrb[39].mxu0  ;;  %s4557_s22 = scalar_lea.vmem %s5888_s18, 128  ;;  %s4656_s11 = smov [#allocation17]  }
 0x278   : > { %v4089_v57 = vadd.f32 %v3889_v43, %v5742_v58  ;;  %v3892_v15 = vadd.f32 %v3891_v9, %v3890_v40  ;;  %v3893_v4 = vpop.f32.mrb[40].mxu0  ;;  %p4558_p13 = scmp.ne.s32.totalorder %s5888_s18, %s4557_s22  ;;  %s4561_s25 = sshll.u32 %s4656_s11, 4  ;;  %s4562_s25 = int_to_ptr.vmem [resolvable:$false] %s4561_s25 }
 0x279   : > { %v3894_v8 = vpop.f32.mrb[41].mxu0  ;;  %s4563_s13 = scalar_lea.vmem %s4562_s25, 256  ;;  %p4564_p8 = scmp.lt.s32.totalorder %s5888_s18, %s4562_s25 }
 0x27a   : > { %v4095_v22 = vadd.f32 %v3892_v15, %v5744_v5  ;;  %v3895_v60 = vadd.f32 %v3894_v8, %v3893_v4  ;;  %v3896_v6 = vpop.f32.mrb[42].mxu0  ;;  %v4083_v32 = vpop.f32.mrb[16].mxu1  ;;  %p4559_p0 = pnand %p4558_p13, %p5965_p9  ;;  %p4565_p4 = scmp.lt.s32.totalorder %s4563_s13, %s4557_s22 }
 0x27b   : > { %v3897_v38 = vpop.f32.mrb[43].mxu0  ;;  %v2949_v23 = vpop.f32.mrb[17].mxu1 }
 0x27c   : > { %v5834_v0 = vadd.f32 %v3895_v60, %v5756_v2  ;;  %v3898_v52 = vadd.f32 %v3897_v38, %v3896_v6  ;;  %v3899_v42 = vpop.f32.mrb[44].mxu0  ;;  %v4084_v58 = vpop.f32.mrb[18].mxu1  ;;  %p4560_p2 = pneg %p4559_p0  ;;  %p4566_p10 = por %p4565_p4, %p4564_p8 }
 0x27d   : > { %v3900_v13 = vpop.f32.mrb[45].mxu0  ;;  %v2952_v5 = vpop.f32.mrb[19].mxu1 }
 0x27e   : > { %v5837_v50 = vadd.f32 %v3898_v52, %v5758_v7  ;;  %v3901_v63 = vadd.f32 %v3900_v13, %v3899_v42  ;;  %v3902_v33 = vpop.f32.mrb[46].mxu0  ;;  %p4567_p11 = pnand %p4566_p10, %p4560_p2 }
 0x27f   : > { %v3903_v34 = vpop.f32.mrb[47].mxu0 }
 0x280   : > { %v5840_v45 = vadd.f32 %v3901_v63, %v5766_v37  ;;  %v3904_v17 = vadd.f32 %v3903_v34, %v3902_v33 }
 0x282   : > { %v5843_v2 = vadd.f32 %v3904_v17, %v5768_v12  ;;  %v5845_v51 = vpop.f32.mrb[20].mxu1 }
 0x283   : > { %v2965_v53 = vpop.f32.mrb[21].mxu1 }
 0x284   : > { %v3933_v7 = vpop.f32.mrb[48].mxu0  ;;  %v5847_v18 = vpop.f32.mrb[22].mxu1 }
 0x285   : > { %v3934_v30 = vpop.f32.mrb[49].mxu0  ;;  %v2968_v54 = vpop.f32.mrb[23].mxu1 }
 0x286   : > { %v3935_v29 = vadd.f32 %v3934_v30, %v3933_v7  ;;  %v3936_v56 = vpop.f32.mrb[50].mxu0 }
 0x287   : > { %v3937_v35 = vpop.f32.mrb[51].mxu0 }
 0x288   : > { %v4093_v27 = vadd.f32 %v4092_v16, %v3935_v29  ;;  %v3938_v36 = vadd.f32 %v3937_v35, %v3936_v56  ;;  %v3076_v16 = vadd.f32 %v3069_v21, %v3064_v47 }
 0x28a   : > { %v4094_v37 = vadd.f32 %v4093_v27, %v2949_v23  ;;  %v4099_v11 = vadd.f32 %v4098_v3, %v3938_v36 }
 0x28c   : > { %v2995_v12 = vmul.f32 %v4094_v37, %v5849_v24  ;;  %v4100_v62 = vadd.f32 %v4099_v11, %v2952_v5  ;;  %v3939_v61 = vpop.f32.mrb[52].mxu0 }
 0x28d   : > { %v3940_v44 = vpop.f32.mrb[53].mxu0 }
 0x28e   : > { %v3010_v55 = vadd.f32 %v5851_v26, %v2995_v12  ;;  %v2996_v28 = vmul.f32 %v4100_v62, %v5849_v24  ;;  %v3941_v10 = vadd.f32 %v3940_v44, %v3939_v61  ;;  %v3942_v14 = vpop.f32.mrb[54].mxu0 }
 0x28f   : > { %v3943_v20 = vpop.f32.mrb[55].mxu0 }
 0x290   : > { %3040 = vst [vmem:[#allocation3 + $0x12] sm:$0xff] %v3010_v55  ;;  %v3011_v1 = vadd.f32 %v5851_v26, %v2996_v28  ;;  %v4090_v41 = vadd.f32 %v4089_v57, %v3941_v10  ;;  %v3944_v48 = vadd.f32 %v3943_v20, %v3942_v14 }
 0x292   : > { %3041 = vst [vmem:[#allocation3 + $0x22] sm:$0xff] %v3011_v1  ;;  %v4091_v19 = vadd.f32 %v4090_v41, %v4083_v32  ;;  %v4096_v49 = vadd.f32 %v4095_v22, %v3944_v48 }
 0x294   : > { %v2997_v39 = vmul.f32 %v4091_v19, %v5849_v24  ;;  %v4097_v3 = vadd.f32 %v4096_v49, %v4084_v58  ;;  %v3945_v25 = vpop.f32.mrb[56].mxu0 }
 0x295   : > { %v3946_v31 = vpop.f32.mrb[57].mxu0 }
 0x296   : > { %v3012_v43 = vadd.f32 %v5851_v26, %v2997_v39  ;;  %v2998_v40 = vmul.f32 %v4097_v3, %v5849_v24  ;;  %v3947_v9 = vadd.f32 %v3946_v31, %v3945_v25  ;;  %v3948_v15 = vpop.f32.mrb[58].mxu0 }
 0x297   : > { %v3081_v4 = vld [vmem:[#allocation3 + $0x11] ss:$2 sm:$0xf]  ;;  %v3093_v57 = vld [vmem:[#allocation3 + $0x12] ss:$2 sm:$0xf] }
 0x298   : > { %v3088_v8 = vadd.f32 %v3081_v4, %v3076_v16  ;;  %3042 = vst [vmem:[#allocation3 + $0x32] sm:$0xff] %v3012_v43  ;;  %v3013_v60 = vadd.f32 %v5851_v26, %v2998_v40  ;;  %v4105_v22 = vadd.f32 %v5834_v0, %v3947_v9  ;;  %v3949_v6 = vpop.f32.mrb[59].mxu0  ;;  %v3105_v63 = vld [vmem:[#allocation3 + $0x13] ss:$2 sm:$0xf] }
 0x299   : > { %v3051_v38 = vld [vmem:[#allocation3 + $0x21] ss:$2 sm:$0xf]  ;;  %v3059_v52 = vld [vmem:[#allocation3 + $0x22] ss:$2 sm:$0xf]  ;;  %v3950_v32 = vadd.f32 %v3949_v6, %v3948_v15 }
 0x29a   : > { %v3065_v42 = vadd.f32 %v3059_v52, %v3051_v38  ;;  %3043 = vst [vmem:[#allocation3 + $0x42] sm:$0xff] %v3013_v60  ;;  %v4106_v23 = vadd.f32 %v4105_v22, %v2965_v53  ;;  %v3100_v13 = vadd.f32 %v3093_v57, %v3088_v8  ;;  %v3071_v33 = vld [vmem:[#allocation3 + $0x23] ss:$2 sm:$0xf] }
 0x29b   : > { %v4111_v58 = vadd.f32 %v5837_v50, %v3950_v32  ;;  %v3118_v29 = vld [vmem:[#allocation3 + $0x21] ss:$2 sm:$0xf]  ;;  %v3130_v37 = vld [vmem:[#allocation3 + $0x22] ss:$2 sm:$0xf] }
 0x29c   : > { %v2999_v5 = vmul.f32 %v4106_v23, %v5849_v24  ;;  %v3951_v34 = vpop.f32.mrb[60].mxu0  ;;  %v3112_v17 = vadd.f32 %v3105_v63, %v3100_v13  ;;  %v3077_v0 = vadd.f32 %v3071_v33, %v3065_v42  ;;  %v3142_v47 = vld [vmem:[#allocation3 + $0x23] ss:$2 sm:$0xf] }
 0x29d   : > { %v4112_v7 = vadd.f32 %v4111_v58, %v2968_v54  ;;  %v3952_v30 = vpop.f32.mrb[61].mxu0 }
 0x29e   : > { %v3014_v56 = vadd.f32 %v5851_v26, %v2999_v5  ;;  %v3953_v35 = vadd.f32 %v3952_v30, %v3951_v34  ;;  %v3954_v27 = vpop.f32.mrb[62].mxu0  ;;  %v3125_v36 = vadd.f32 %v3118_v29, %v3112_v17 }
 0x29f   : > { %v3000_v53 = vmul.f32 %v4112_v7, %v5849_v24  ;;  %v3955_v11 = vpop.f32.mrb[63].mxu0  ;;  %v3083_v50 = vld [vmem:[#allocation3 + $0x31] ss:$2 sm:$0xf] }
 0x2a0   : > { %3044 = vst [vmem:[#allocation3 + $0x52] sm:$0xff] %v3014_v56  ;;  %v4102_v12 = vadd.f32 %v5840_v45, %v3953_v35  ;;  %v3956_v59 = vadd.f32 %v3955_v11, %v3954_v27  ;;  %v3089_v62 = vadd.f32 %v3083_v50, %v3077_v0  ;;  %v3095_v54 = vld [vmem:[#allocation3 + $0x32] ss:$2 sm:$0xf]  ;;  %v3137_v61 = vadd.f32 %v3130_v37, %v3125_v36 }
 0x2a1   : > { %v3053_v46 = vld [vmem:[#allocation3 + $0x41] ss:$2 sm:$0xf]  ;;  %v3061_v44 = vld [vmem:[#allocation3 + $0x42] ss:$2 sm:$0xf]  ;;  %v3015_v55 = vadd.f32 %v5851_v26, %v3000_v53 }
 0x2a2   : > { %v3066_v28 = vadd.f32 %v3061_v44, %v3053_v46  ;;  %v4103_v10 = vadd.f32 %v4102_v12, %v5845_v51  ;;  %v4108_v14 = vadd.f32 %v5843_v2, %v3956_v59  ;;  %v3101_v20 = vadd.f32 %v3095_v54, %v3089_v62  ;;  %v3107_v1 = vld [vmem:[#allocation3 + $0x33] ss:$2 sm:$0xf]  ;;  %v3073_v45 = vld [vmem:[#allocation3 + $0x43] ss:$2 sm:$0xf] }
 0x2a3   : > { %3045 = vst [vmem:[#allocation3 + $0x62] sm:$0xff] %v3015_v55  ;;  %v3149_v41 = vadd.f32 %v3142_v47, %v3137_v61  ;;  %v3120_v49 = vld [vmem:[#allocation3 + $0x41] ss:$2 sm:$0xf] }
 0x2a4   : > { %v3001_v48 = vmul.f32 %v4103_v10, %v5849_v24  ;;  %v4109_v21 = vadd.f32 %v4108_v14, %v5847_v18  ;;  %v3113_v19 = vadd.f32 %v3107_v1, %v3101_v20  ;;  %v3078_v3 = vadd.f32 %v3073_v45, %v3066_v28  ;;  %v3132_v31 = vld [vmem:[#allocation3 + $0x42] ss:$2 sm:$0xf]  ;;  %v3144_v8 = vld [vmem:[#allocation3 + $0x43] ss:$2 sm:$0xf] }
 0x2a5   : > { %v3153_v16 = vmul.f32 0.11111111, %v3149_v41 }
 0x2a6   : > { %v3016_v39 = vadd.f32 %v5851_v26, %v3001_v48  ;;  %v3002_v51 = vmul.f32 %v4109_v21, %v5849_v24  ;;  %v3126_v2 = vadd.f32 %v3120_v49, %v3113_v19 }
 0x2a7   : > { %v3085_v25 = vld [vmem:[#allocation3 + $0x51] ss:$2 sm:$0xf]  ;;  %v3157_v43 = vpack.c.bf16 %v3153_v16, %v3153_v16  ;;  %v3097_v4 = vld [vmem:[#allocation3 + $0x52] ss:$2 sm:$0xf] }
 0x2a8   : > { %3046 = vst [vmem:[#allocation3 + $0x72] sm:$0xff] %v3016_v39  ;;  %v3017_v40 = vadd.f32 %v5851_v26, %v3002_v51  ;;  %v3090_v9 = vadd.f32 %v3085_v25, %v3078_v3  ;;  %v3138_v15 = vadd.f32 %v3132_v31, %v3126_v2  ;;  %v3109_v6 = vld [vmem:[#allocation3 + $0x53] ss:$2 sm:$0xf] }
 0x2a9   : > { %3161 = vst [vmem:[%s5876_s9] sm:$0x3] %v3157_v43 }
 0x2aa   : > { %v3055_v18 = vld [vmem:[#allocation3 + $0x61] ss:$2 sm:$0xf]  ;;  %v3063_v57 = vld [vmem:[#allocation3 + $0x62] ss:$2 sm:$0xf]  ;;  %v3102_v24 = vadd.f32 %v3097_v4, %v3090_v9  ;;  %v3150_v60 = vadd.f32 %v3144_v8, %v3138_v15 }
 0x2ab   : > { %3047 = vst [vmem:[#allocation3 + $0x82] sm:$0xff] %v3017_v40  ;;  %v3067_v22 = vadd.f32 %v3063_v57, %v3055_v18  ;;  %v3075_v38 = vld [vmem:[#allocation3 + $0x63] ss:$2 sm:$0xf] }
 0x2ac   : > { %v3114_v52 = vadd.f32 %v3109_v6, %v3102_v24  ;;  %v3122_v32 = vld [vmem:[#allocation3 + $0x61] ss:$2 sm:$0xf]  ;;  %v3154_v26 = vmul.f32 0.11111111, %v3150_v60 }
 0x2ad   : > { %v3079_v42 = vadd.f32 %v3075_v38, %v3067_v22  ;;  %v3134_v58 = vld [vmem:[#allocation3 + $0x62] ss:$2 sm:$0xf]  ;;  %v3146_v17 = vld [vmem:[#allocation3 + $0x63] ss:$2 sm:$0xf] }
 0x2ae   : > { %v3127_v23 = vadd.f32 %v3122_v32, %v3114_v52  ;;  %v3158_v63 = vpack.c.bf16 %v3154_v26, %v3154_v26 }
 0x2af   : > { %v3087_v13 = vld [vmem:[#allocation3 + $0x71] ss:$2 sm:$0xf]  ;;  %v3099_v34 = vld [vmem:[#allocation3 + $0x72] ss:$2 sm:$0xf] }
 0x2b0   : > { %v3091_v33 = vadd.f32 %v3087_v13, %v3079_v42  ;;  %v3139_v5 = vadd.f32 %v3134_v58, %v3127_v23  ;;  %3162 = vst [vmem:[%s5876_s9 + $0x2] sm:$0x3] %v3158_v63  ;;  %v3111_v29 = vld [vmem:[#allocation3 + $0x73] ss:$2 sm:$0xf] }
 0x2b2   : > { %v3103_v7 = vadd.f32 %v3099_v34, %v3091_v33  ;;  %v3151_v30 = vadd.f32 %v3146_v17, %v3139_v5  ;;  %v3124_v35 = vld [vmem:[#allocation3 + $0x81] ss:$2 sm:$0xf]  ;;  %v3136_v37 = vld [vmem:[#allocation3 + $0x82] ss:$2 sm:$0xf] }
 0x2b3   : > { %v3148_v11 = vld [vmem:[#allocation3 + $0x83] ss:$2 sm:$0xf] }
 0x2b4   : > { %v3115_v0 = vadd.f32 %v3111_v29, %v3103_v7  ;;  %v3155_v56 = vmul.f32 0.11111111, %v3151_v30 }
 0x2b6   : > { %v3128_v27 = vadd.f32 %v3124_v35, %v3115_v0  ;;  %v3159_v36 = vpack.c.bf16 %v3155_v56, %v3155_v56 }
 0x2b8   : > { %v3140_v53 = vadd.f32 %v3136_v37, %v3128_v27  ;;  %3163 = vst [vmem:[%s5876_s9 + $0x4] sm:$0x3] %v3159_v36 }
 0x2ba   : > { %v3152_v50 = vadd.f32 %v3148_v11, %v3140_v53 }
 0x2bc   : > { %v3156_v12 = vmul.f32 0.11111111, %v3152_v50 }
 0x2be   : > { %v3160_v59 = vpack.c.bf16 %v3156_v12, %v3156_v12 }
 0x2c0   : > { %3164 = vst [vmem:[%s5876_s9 + $0x6] sm:$0x3] %v3160_v59 }
 0x2c1   : > { %4570 = shalt.err (!%p4567_p11)
}
 0x2c2   : > { %s4571_s17 = scalar_lea.hbm %s5886_s26, 128  ;;  %s4575_s19 = scalar_lea.hbm %s5941_s8, 256 }
 0x2c3   : > { %p4572_p3 = scmp.ne.s32.totalorder %s5886_s26, %s4571_s17  ;;  %p4576_p6 = scmp.lt.u32.totalorder %s5886_s26, %s5941_s8 }
 0x2c4   : > { %p4577_p12 = scmp.lt.u32.totalorder %s4575_s19, %s4571_s17  ;;  %p4579_p13 = scmp.lt.u32.totalorder %s4571_s17, %s5886_s26 }
 0x2c5   : > { %p4573_p5 = pnand %p4572_p3, %p5965_p9 }
 0x2c6   : > { %p4578_p1 = por %p4577_p12, %p4576_p6 }
 0x2c7   : > { %p4574_p7 = pneg %p4573_p5 }
 0x2c8   : > { %p4580_p0 = por %p4579_p13, %p4578_p1 }
 0x2ca   : > { %p4581_p2 = pnand %p4580_p0, %p4574_p7 }
 0x2cc   : > { %4584 = shalt.err (!%p4581_p2)
}
 0x2cd   : > { %s4657_s22 = smov 32   ;;  %s4658_s11 = smov 2  }
 0x2ce   : > { %4156 = dma.vmem_to_hbm [thread:$0]  (%p5965_p9), %s5888_s18, 128, %s5886_s26, %s3171_s21, %s4657_s22, %s4657_s22, %s4658_s11  }
 0x2cf PF: > { %s3215_s25 = sand.u32 1, %s4627_s27   ;;  %p5966_p8 = scmp.ne.s32.totalorder %s5954_s16, 0 }
 0x2d0   : > { %p5967_p4 = scmp.ge.s32.totalorder %s4639_s30, 2  ;;  %s3216_s13 = scalar_lea.sflag [#allocation6], %s3215_s25 }
 0x2d2   : > { %p4183_p10 = pnand %p5967_p4, %p5966_p8 }
 0x2d4   : > { %4618 = dma.done.wait (!%p4183_p10), %s3216_s13, 2048  }
 0x2d5   : > { %4620 = vsyncadd (!%p4183_p10), %s3216_s13, 4294965248  ;;  %s3225_s17 = scalar_lea.sflag [#allocation18], %s3215_s25 }
 0x2d6   : > { %4622 = dma.done.wait (!%p4183_p10), %s3225_s17, 128  }
 0x2d7   : > { %4624 = vsyncadd (!%p4183_p10), %s3225_s17, 4294967168  ;;  %p28_p9 = scmp.ge.s32.totalorder %s4896_s23, 4   ;;  %s5968_s27 = smov %s4631_s28 }
 0x2d8   : > { %s5969_s28 = smov %s4635_s29  ;;  %s5970_s29 = smov %s4907_s24 }
 0x2d9   : > { %s5971_s30 = smov %s4896_s23  ;;  %30 = sbr.rel (!%p28_p9) target bundleno = 10 (0xa), region = 250 }
 0x2e0   :  { %3230 = vsyncpa [#allocation5], 1 }
 0x2e1   :  { %3232 = vsyncpa [#allocation5 + $0x1], 1 }
 0x2e2   :  { %3233 = vsyncpa [#allocation8], 1 }
 0x2e3   :  { %3234 = vsyncpa [#allocation11], 1 }
 0x2e4   :  { %3235 = vsyncpa [#allocation14], 1 }
 0x2e5   :  { %3236 = vsyncpa [#allocation6], 1 }
 0x2e6   :  { %3238 = vsyncpa [#allocation6 + $0x1], 1 }
 0x2e7   :  { %3239 = vsyncpa [#allocation18], 1 }
 0x2e8   :  { %3241 = vsyncpa [#allocation18 + $0x1], 1 }

// kernel: bga_forward.5
= control target key start
LH: loop header
LB: loop body
LE: loop exit
PB: predicated region body
PF: predicated region fallthrough
CT: control target
= control target key end

     0   :  { %s10961_s0 = inlined_call_operand.hbm [shape: bf16[2,16,16,128], index: 0, kind: input, shape index: {}]   ;;  %s10962_s1 = inlined_call_operand.hbm [shape: bf16[2,4,4,128], index: 1, kind: input, shape index: {}]   ;;  %s10963_s2 = inlined_call_operand.hbm [shape: bf16[2,4,4,128], index: 2, kind: input, shape index: {}]   ;;  %s10964_s3 = inlined_call_operand.hbm [shape: bf16[2,4,4,128], index: 3, kind: input, shape index: {}]   ;;  %s10965_s4 = inlined_call_operand.hbm [shape: bf16[3,384,128], index: 4, kind: input, shape index: {}]   ;;  %s10966_s5 = inlined_call_operand.hbm [shape: f32[1,128], index: 5, kind: input, shape index: {}]   ;;  %s10967_s6 = inlined_call_operand.hbm [shape: f32[1,128], index: 6, kind: input, shape index: {}]   ;;  %s10968_s7 = inlined_call_operand.hbm [shape: bf16[2,16,16,128], index: 7, kind: output, shape index: {}]  }
   0x1   :  { %10989 = sst [smem:[#allocation68_spill]] %s10962_s1 }
   0x2   :  { %10990 = sst [smem:[#allocation69_spill]] %s10965_s4 }
   0x3   :  { %10991 = sst [smem:[#allocation70_spill]] %s10966_s5 }
   0x4   :  { %10992 = sst [smem:[#allocation71_spill]] %s10968_s7 }
   0x5   :  { %12 = vsyncpa [#allocation4], 0 }
   0x6   :  { %14 = vsyncpa [#allocation4 + $0x1], 0 }
   0x7   :  { %15 = vsyncpa [#allocation7], 0 }
   0x8   :  { %17 = vsyncpa [#allocation7 + $0x1], 0 }
   0x9   :  { %18 = vsyncpa [#allocation10], 0 }
   0xa   :  { %20 = vsyncpa [#allocation10 + $0x1], 0 }
   0xb   :  { %21 = vsyncpa [#allocation13], 0 }
   0xc   :  { %22 = vsyncpa [#allocation5], 0 }
   0xd   :  { %24 = vsyncpa [#allocation5 + $0x1], 0  ;;  %s8867_s24 = smov 0   ;;  %s8869_s25 = smov 0  }
   0xe   :  { %s8871_s26 = smov 0   ;;  %s8873_s27 = smov 0  }
   0xf LB: > { %10993 = sst [smem:[#allocation22_spill]] %s8797_s24  ;;  %s8888_s28 = sadd.s32 4294967295, %s8809_s27   ;;  %s8809_s27 = sphi %s8873_s27, %s11148_s27   ;;  %s8805_s26 = sphi %s8871_s26, %s11150_s26   ;;  %s8801_s25 = sphi %s8869_s25, %s11152_s25   ;;  %s8797_s24 = sphi %s8867_s24, %s11151_s24  }
  0x10   : > { %10994 = sst [smem:[#allocation23_spill]] %s8805_s26  ;;  %s6771_s29 = sadd.s32 4294967294, %s8809_s27  }
  0x11   : > { %s8892_s30 = sadd.s32 1, %s8809_s27   ;;  %s37_s8 = sadd.s32 1, %s8805_s26 }
  0x12   : > { %10995 = sst [smem:[#allocation24_spill]] %s8892_s30  ;;  %s34_s9 = ssub.s32 %s8809_s27, %s8892_s30 }
  0x13   : > { %p44_p0 = scmp.ne.s32.totalorder %s8805_s26, %s8801_s25  ;;  %p35_p1 = scmp.eq.s32.totalorder %s34_s9, 0 }
  0x14   : > { %p45_p2 = scmp.eq.s32.totalorder %s8809_s27, 0  ;;  %p50_p3 = scmp.ne.s32.totalorder %s8801_s25, %s8797_s24 }
  0x15   : > { %p10969_p4 = scmp.eq.s32.totalorder %s8888_s28, 0  ;;  %p215_p7 = scmp.eq.s32.totalorder %s8888_s28, 1 }
  0x16   : > { %s8904_s10 = scalar_select %p35_p1, %s8805_s26, %s37_s8  }
  0x17   : > { %p8906_p5 = por %p45_p2, %p44_p0  ;;  %p8912_p6 = por %p10969_p4, %p50_p3 }
  0x18   : > { %10996 = sst [smem:[#allocation25_spill]] %s8904_s10  ;;  %p221_p8 = scmp.eq.s32.totalorder %s6771_s29, 1 }
  0x19   : > { %s10997_s11 = scalar_select %p8906_p5, 1, 0 }
  0x1a   : > { %s10998_s12 = scalar_select %p8912_p6, 1, 0 }
  0x1b   : > { %p6772_p9 = scmp.ge.s32.totalorder %s8809_s27, 1  ;;  %p228_p10 = scmp.lt.s32.totalorder %s8809_s27, 3 }
  0x1c   : > { %p8919_p11 = por %p215_p7, %p44_p0  ;;  %p8923_p12 = por %p221_p8, %p50_p3 }
  0x1d   : > { %p8927_p13 = pnand %p6772_p9, %p228_p10  ;;  %s8811_s16 = smov [#allocation11]  }
  0x1e   : > { %s10999_s13 = scalar_select %p8919_p11, 1, 0 }
  0x1f   : > { %s11001_s14 = scalar_select %p8923_p12, 1, 0 }
  0x20   : > { %11000 = sst [smem:[#allocation26_spill]] %s10999_s13  ;;  %p8134_p1 = pneg %p8927_p13 }
  0x21   : > { %11002 = sst [smem:[#allocation27_spill]] %s11001_s14  ;;  %s240_s17 = sshll.u32 %s8811_s16, 4  ;;  %s241_s17 = int_to_ptr.vmem [resolvable:$true] %s240_s17 }
  0x22   : > { %s11003_s15 = scalar_select %p8927_p13, 1, 0 }
  0x23   : > { %p8935_p2 = pnand %p8134_p1, %p10969_p4  ;;  %s8812_s19 = smov [#allocation12]  }
  0x24   : > { %s254_s20 = sshll.u32 %s8812_s19, 4  ;;  %s11005_s4 = sld [smem:[#allocation69_spill]]  ;;  %s255_s20 = int_to_ptr.vmem [resolvable:$true] %s254_s20 }
  0x25   : > { %s11004_s18 = scalar_select %p8935_p2, 1, 0 }
  0x26   : > { %p8949_p8 = pneg %p8935_p2 }
  0x28   : > { %s11006_s9 = scalar_select %p8949_p8, 1, 0 }
  0x2a   : > { %s8523_s23 = scalar_lea.hbm %s11005_s4, 9216 }
  0x2b   : > { %p8524_p7 = scmp.ne.s32.totalorder %s11005_s4, %s8523_s23  ;;  %p8530_p1 = scmp.lt.u32.totalorder %s8523_s23, %s11005_s4 }
  0x2d   : > { %p8526_p9 = pnand %p8949_p8, %p8524_p7 }
  0x2f   : > { %p8527_p10 = pneg %p8526_p9 }
  0x31   : > { %p8532_p0 = pnand %p8530_p1, %p8527_p10 }
  0x33   : > { %8535 = shalt.err (!%p8532_p0)
}
  0x34   : > { %s8536_s19 = scalar_lea.vmem %s241_s17, 9216  ;;  %p8544_p11 = scmp.lt.s32.totalorder %s241_s17, %s241_s17 }
  0x35   : > { %p8537_p4 = scmp.ne.s32.totalorder %s241_s17, %s8536_s19  ;;  %p8545_p6 = scmp.lt.s32.totalorder %s8536_s19, %s8536_s19 }
  0x37   : > { %p8539_p3 = pnand %p8537_p4, %p8949_p8  ;;  %p8546_p13 = por %p8545_p6, %p8544_p11 }
  0x39   : > { %p8540_p12 = pneg %p8539_p3 }
  0x3b   : > { %p8547_p5 = pnand %p8546_p13, %p8540_p12 }
  0x3d   : > { %8550 = shalt.err (!%p8547_p5)
}
  0x3e   : > { %s10978_s21 = smov 64   ;;  %s10979_s22 = smov 4  }
  0x3f   : > { %8137 = dma.hbm_to_vmem [thread:$0]  (!%p8935_p2), %s11005_s4, 9216, %s241_s17, [#allocation10], %s10978_s21, %s10978_s21, %s10979_s22  }
  0x40   : > { %s8969_s29 = sand.u32 1, %s8805_s26   ;;  %s11007_s5 = sld [smem:[#allocation70_spill]] }
  0x46   : > { %s8551_s19 = scalar_lea.hbm %s11007_s5, 16 }
  0x47   : > { %p8552_p4 = scmp.ne.s32.totalorder %s11007_s5, %s8551_s19  ;;  %p8558_p11 = scmp.lt.u32.totalorder %s8551_s19, %s11007_s5 }
  0x49   : > { %p8554_p5 = pnand %p8552_p4, %p8949_p8 }
  0x4b   : > { %p8555_p6 = pneg %p8554_p5 }
  0x4d   : > { %p8560_p12 = pnand %p8558_p11, %p8555_p6 }
  0x4f   : > { %8563 = shalt.err (!%p8560_p12)
}
  0x50   : > { %s8564_s17 = scalar_lea.vmem %s255_s20, 16  ;;  %s8571_s10 = scalar_lea.vmem %s255_s20, 32 }
  0x51   : > { %p8565_p13 = scmp.ne.s32.totalorder %s255_s20, %s8564_s17  ;;  %p8572_p7 = scmp.lt.s32.totalorder %s255_s20, %s255_s20 }
  0x52   : > { %p8573_p9 = scmp.lt.s32.totalorder %s8571_s10, %s8564_s17 }
  0x53   : > { %p8567_p0 = pnand %p8565_p13, %p8949_p8 }
  0x54   : > { %p8574_p10 = por %p8573_p9, %p8572_p7 }
  0x55   : > { %p8568_p3 = pneg %p8567_p0 }
  0x57   : > { %p8575_p1 = pnand %p8574_p10, %p8568_p3 }
  0x59   : > { %8578 = shalt.err (!%p8575_p1)
}
  0x5a   : > { %8140 = dma.hbm_to_vmem [thread:$0]  (!%p8935_p2), %s11007_s5, 16, %s255_s20, [#allocation13]  }
  0x5b   : > { %p11008_p4 = scmp.ne.s32.totalorder %s10997_s11, 0  ;;  %p11009_p5 = scmp.lt.s32.totalorder %s8809_s27, 2 }
  0x5c   : > { %s10980_s24 = sand.u32 1, %s8809_s27   ;;  %s8999_s23 = sshll.u32 %s8969_s29, 3 }
  0x5d   : > { %p8993_p6 = pnand %p11009_p5, %p11008_p4  ;;  %s9002_s8 = sshll.u32 %s8809_s27, 7 }
  0x5e   : > { %s301_s16 = scalar_lea.vmem [#allocation6], %s8999_s23  ;;  %s11011_s1 = sld [smem:[#allocation68_spill]] }
  0x5f   : > { %s11010_s7 = scalar_select %p8993_p6, 1, 0 }
  0x60   : > { %s308_s19 = sshll.u32 %s301_s16, 4  ;;  %s9015_s11 = scalar_lea.sflag [#allocation7], %s10980_s24  ;;  %s9011_s19 = int_to_ptr.vmem [resolvable:$true] %s308_s19 }
  0x61   : > { %p9021_p12 = pneg %p8993_p6 }
  0x64   : > { %s9009_s20 = scalar_lea.hbm %s11011_s1, %s9002_s8  ;;  %s8584_s10 = scalar_lea.hbm %s11011_s1, 256 }
  0x65   : > { %s8579_s30 = scalar_lea.hbm %s9009_s20, 128  ;;  %p8585_p3 = scmp.lt.u32.totalorder %s9009_s20, %s11011_s1 }
  0x66   : > { %p8580_p11 = scmp.ne.s32.totalorder %s9009_s20, %s8579_s30  ;;  %p8586_p7 = scmp.lt.u32.totalorder %s8584_s10, %s8579_s30 }
  0x67   : > { %p8588_p10 = scmp.lt.u32.totalorder %s8579_s30, %s9009_s20 }
  0x68   : > { %p8582_p13 = pnand %p9021_p12, %p8580_p11  ;;  %p8587_p9 = por %p8586_p7, %p8585_p3 }
  0x6a   : > { %p8583_p0 = pneg %p8582_p13  ;;  %p8589_p1 = por %p8588_p10, %p8587_p9 }
  0x6c   : > { %p8590_p4 = pnand %p8589_p1, %p8583_p0 }
  0x6e   : > { %8593 = shalt.err (!%p8590_p4)
}
  0x6f   : > { %s8594_s24 = scalar_lea.vmem %s9011_s19, 128  ;;  %s8815_s16 = smov [#allocation6]  }
  0x70   : > { %p8595_p5 = scmp.ne.s32.totalorder %s9011_s19, %s8594_s24  ;;  %s8599_s17 = sshll.u32 %s8815_s16, 4  ;;  %s8600_s17 = int_to_ptr.vmem [resolvable:$false] %s8599_s17 }
  0x71   : > { %s8601_s21 = scalar_lea.vmem %s8600_s17, 256  ;;  %p8602_p2 = scmp.lt.s32.totalorder %s9011_s19, %s8600_s17 }
  0x72   : > { %p8597_p11 = pnand %p8595_p5, %p9021_p12  ;;  %p8603_p8 = scmp.lt.s32.totalorder %s8601_s21, %s8594_s24 }
  0x74   : > { %p8598_p13 = pneg %p8597_p11  ;;  %p8604_p3 = por %p8603_p8, %p8602_p2 }
  0x76   : > { %p8605_p7 = pnand %p8604_p3, %p8598_p13 }
  0x78   : > { %8608 = shalt.err (!%p8605_p7)
}
  0x79   : > { %s8816_s22 = smov 32   ;;  %s8817_s30 = smov 2  }
  0x7a   : > { %8150 = dma.hbm_to_vmem [thread:$0]  (!%p8993_p6), %s9009_s20, 128, %s9011_s19, %s9015_s11, %s8816_s22, %s8816_s22, %s8817_s30  }
  0x7b   : > { %s8818_s10 = smov [#allocation14]   ;;  %s6777_s24 = sshll.u32 %s8969_s29, 7 }
  0x7c   : > { %s265_s16 = sshll.u32 %s8818_s10, 4  ;;  %s8609_s1 = scalar_lea.hbm %s10967_s6, 16  ;;  %s266_s16 = int_to_ptr.vmem [resolvable:$true] %s265_s16 }
  0x7d   : > { %p8610_p2 = scmp.ne.s32.totalorder %s10967_s6, %s8609_s1  ;;  %p11013_p8 = scmp.ne.s32.totalorder %s11006_s9, 0 }
  0x7e   : > { %p8616_p10 = scmp.lt.u32.totalorder %s8609_s1, %s10967_s6 }
  0x7f   : > { %p8612_p0 = pnand %p8610_p2, %p11013_p8 }
  0x81   : > { %p8613_p9 = pneg %p8612_p0 }
  0x83   : > { %p8618_p1 = pnand %p8616_p10, %p8613_p9 }
  0x85   : > { %8621 = shalt.err (!%p8618_p1)
}
  0x86   : > { %s8622_s19 = scalar_lea.vmem %s266_s16, 16  ;;  %s8629_s20 = scalar_lea.vmem %s266_s16, 32 }
  0x87   : > { %p8623_p4 = scmp.ne.s32.totalorder %s266_s16, %s8622_s19  ;;  %p8630_p13 = scmp.lt.s32.totalorder %s266_s16, %s266_s16 }
  0x88   : > { %p8631_p3 = scmp.lt.s32.totalorder %s8629_s20, %s8622_s19 }
  0x89   : > { %p8625_p5 = pnand %p8623_p4, %p11013_p8 }
  0x8a   : > { %p8632_p7 = por %p8631_p3, %p8630_p13 }
  0x8b   : > { %p8626_p11 = pneg %p8625_p5 }
  0x8d   : > { %p8633_p6 = pnand %p8632_p7, %p8626_p11 }
  0x8f   : > { %8636 = shalt.err (!%p8633_p6)
}
  0x90   : > { %p11014_p2 = scmp.ne.s32.totalorder %s11004_s18, 0  ;;  %s7141_s1 = sshll.u32 %s8809_s27, 11 }
  0x91   : > { %s9071_s9 = scalar_lea.hbm %s10961_s0, %s7141_s1  ;;  %s280_s10 = scalar_lea.vmem [#allocation3], %s6777_s24 }
  0x92   : > { %8143 = dma.hbm_to_vmem [thread:$0]  (!%p11014_p2), %s10967_s6, 16, %s266_s16, [#allocation13]  }
  0x93   : > { %s287_s17 = sshll.u32 %s280_s10, 4  ;;  %s277_s18 = scalar_lea.sflag [#allocation4], %s8969_s29  ;;  %s9073_s17 = int_to_ptr.vmem [resolvable:$true] %s287_s17 }
  0x94   : > { %s8637_s21 = scalar_lea.hbm %s9071_s9, 2048  ;;  %s8642_s20 = scalar_lea.hbm %s10961_s0, 4096 }
  0x95   : > { %p8638_p6 = scmp.ne.s32.totalorder %s9071_s9, %s8637_s21  ;;  %p8643_p9 = scmp.lt.u32.totalorder %s9071_s9, %s10961_s0 }
  0x96   : > { %p8644_p10 = scmp.lt.u32.totalorder %s8642_s20, %s8637_s21  ;;  %p8646_p4 = scmp.lt.u32.totalorder %s8637_s21, %s9071_s9 }
  0x97   : > { %p8640_p8 = pnand %p8638_p6, %p9021_p12 }
  0x98   : > { %p8645_p1 = por %p8644_p10, %p8643_p9 }
  0x99   : > { %p8641_p0 = pneg %p8640_p8 }
  0x9a   : > { %p8647_p5 = por %p8646_p4, %p8645_p1 }
  0x9c   : > { %p8648_p11 = pnand %p8647_p5, %p8641_p0 }
  0x9e   : > { %8651 = shalt.err (!%p8648_p11)
}
  0x9f   : > { %s8652_s24 = scalar_lea.vmem %s9073_s17, 2048  ;;  %s8819_s1 = smov [#allocation3]  }
  0xa0   : > { %p8653_p13 = scmp.ne.s32.totalorder %s9073_s17, %s8652_s24  ;;  %s8657_s26 = sshll.u32 %s8819_s1, 4  ;;  %s8658_s26 = int_to_ptr.vmem [resolvable:$false] %s8657_s26 }
  0xa1   : > { %s8659_s13 = scalar_lea.vmem %s8658_s26, 4096  ;;  %p8660_p2 = scmp.lt.s32.totalorder %s9073_s17, %s8658_s26 }
  0xa2   : > { %p8655_p3 = pnand %p8653_p13, %p9021_p12  ;;  %p8661_p6 = scmp.lt.s32.totalorder %s8659_s13, %s8652_s24 }
  0xa4   : > { %p8656_p7 = pneg %p8655_p3  ;;  %p8662_p8 = por %p8661_p6, %p8660_p2 }
  0xa6   : > { %p8663_p9 = pnand %p8662_p8, %p8656_p7 }
  0xa8   : > { %8666 = shalt.err (!%p8663_p9)
}
  0xa9   : > { %p11015_p0 = scmp.ne.s32.totalorder %s11010_s7, 0  ;;  %s11016_s10 = smov 4  }
  0xaa   : > { %s11017_s21 = smov 64   ;;  %s9106_s20 = scalar_lea.hbm %s10963_s2, %s9002_s8 }
  0xab   : > { %8147 = dma.hbm_to_vmem [thread:$0]  (!%p11015_p0), %s9071_s9, 2048, %s9073_s17, %s277_s18, %s11017_s21, %s11017_s21, %s11016_s10  }
  0xac   : > { %s322_s4 = scalar_lea.vmem [#allocation8], %s8999_s23  ;;  %s8667_s29 = scalar_lea.hbm %s9106_s20, 128 }
  0xad   : > { %s329_s5 = sshll.u32 %s322_s4, 4  ;;  %p8668_p10 = scmp.ne.s32.totalorder %s9106_s20, %s8667_s29  ;;  %s9109_s5 = int_to_ptr.vmem [resolvable:$true] %s329_s5 }
  0xae   : > { %s8672_s17 = scalar_lea.hbm %s10963_s2, 256  ;;  %p8673_p5 = scmp.lt.u32.totalorder %s9106_s20, %s10963_s2 }
  0xaf   : > { %p8670_p1 = pnand %p8668_p10, %p9021_p12  ;;  %p8674_p11 = scmp.lt.u32.totalorder %s8672_s17, %s8667_s29 }
  0xb0   : > { %p8676_p3 = scmp.lt.u32.totalorder %s8667_s29, %s9106_s20 }
  0xb1   : > { %p8671_p4 = pneg %p8670_p1  ;;  %p8675_p13 = por %p8674_p11, %p8673_p5 }
  0xb3   : > { %p8677_p7 = por %p8676_p3, %p8675_p13 }
  0xb5   : > { %p8678_p2 = pnand %p8677_p7, %p8671_p4 }
  0xb7   : > { %8681 = shalt.err (!%p8678_p2)
}
  0xb8   : > { %s8682_s26 = scalar_lea.vmem %s9109_s5, 128  ;;  %s8820_s13 = smov [#allocation8]  }
  0xb9   : > { %p8683_p6 = scmp.ne.s32.totalorder %s9109_s5, %s8682_s26  ;;  %s8687_s10 = sshll.u32 %s8820_s13, 4  ;;  %s8688_s10 = int_to_ptr.vmem [resolvable:$false] %s8687_s10 }
  0xba   : > { %s8689_s21 = scalar_lea.vmem %s8688_s10, 256  ;;  %p8690_p10 = scmp.lt.s32.totalorder %s9109_s5, %s8688_s10 }
  0xbb   : > { %p8685_p8 = pnand %p8683_p6, %p9021_p12  ;;  %p8691_p1 = scmp.lt.s32.totalorder %s8689_s21, %s8682_s26 }
  0xbd   : > { %p8686_p9 = pneg %p8685_p8  ;;  %p8692_p5 = por %p8691_p1, %p8690_p10 }
  0xbf   : > { %p8693_p11 = pnand %p8692_p5, %p8686_p9 }
  0xc1   : > { %8696 = shalt.err (!%p8693_p11)
}
  0xc2   : > { %8153 = dma.hbm_to_vmem [thread:$0]  (!%p11015_p0), %s9106_s20, 128, %s9109_s5, %s9015_s11, %s8816_s22, %s8816_s22, %s8817_s30  }
  0xc3   : > { %s9140_s4 = scalar_lea.hbm %s10964_s3, %s9002_s8  ;;  %s343_s29 = scalar_lea.vmem [#allocation9], %s8999_s23 }
  0xc4   : > { %s350_s24 = sshll.u32 %s343_s29, 4  ;;  %s11018_s9 = sand.u32 1, %s8809_s27   ;;  %s9143_s24 = int_to_ptr.vmem [resolvable:$true] %s350_s24 }
  0xc5   : > { %s9147_s17 = scalar_lea.sflag [#allocation10], %s11018_s9  ;;  %s8697_s18 = scalar_lea.hbm %s9140_s4, 128 }
  0xc6   : > { %p8698_p4 = scmp.ne.s32.totalorder %s9140_s4, %s8697_s18  ;;  %s8702_s8 = scalar_lea.hbm %s10964_s3, 256 }
  0xc7   : > { %p8703_p7 = scmp.lt.u32.totalorder %s9140_s4, %s10964_s3  ;;  %p8704_p2 = scmp.lt.u32.totalorder %s8702_s8, %s8697_s18 }
  0xc8   : > { %p8700_p13 = pnand %p8698_p4, %p9021_p12  ;;  %p8706_p8 = scmp.lt.u32.totalorder %s8697_s18, %s9140_s4 }
  0xc9   : > { %p8705_p6 = por %p8704_p2, %p8703_p7 }
  0xca   : > { %p8701_p3 = pneg %p8700_p13 }
  0xcb   : > { %p8707_p9 = por %p8706_p8, %p8705_p6 }
  0xcd   : > { %p8708_p10 = pnand %p8707_p9, %p8701_p3 }
  0xcf   : > { %8711 = shalt.err (!%p8708_p10)
}
  0xd0   : > { %s8712_s23 = scalar_lea.vmem %s9143_s24, 128  ;;  %s8821_s26 = smov [#allocation9]  }
  0xd1   : > { %p8713_p1 = scmp.ne.s32.totalorder %s9143_s24, %s8712_s23  ;;  %s8717_s13 = sshll.u32 %s8821_s26, 4  ;;  %s8718_s13 = int_to_ptr.vmem [resolvable:$false] %s8717_s13 }
  0xd2   : > { %s8719_s10 = scalar_lea.vmem %s8718_s13, 256  ;;  %p8720_p4 = scmp.lt.s32.totalorder %s9143_s24, %s8718_s13 }
  0xd3   : > { %p8715_p5 = pnand %p8713_p1, %p9021_p12  ;;  %p8721_p13 = scmp.lt.s32.totalorder %s8719_s10, %s8712_s23 }
  0xd5   : > { %p8716_p11 = pneg %p8715_p5  ;;  %p8722_p7 = por %p8721_p13, %p8720_p4 }
  0xd7   : > { %p8723_p2 = pnand %p8722_p7, %p8716_p11 }
  0xd9   : > { %8726 = shalt.err (!%p8723_p2)
}
  0xda   : > { %8156 = dma.hbm_to_vmem [thread:$0]  (!%p11015_p0), %s9140_s4, 128, %s9143_s24, %s9147_s17, %s8816_s22, %s8816_s22, %s8817_s30  }
  0xdb   : > { %p11019_p12 = scmp.ne.s32.totalorder %s11003_s15, 0 }
  0xdd   : > { %362 = sbr.rel (%p11019_p12) target bundleno = 1006 (0x3ee), region = 48 }
  0xe4   : > { %s9177_s14 = sand.u32 1, %s8801_s25   ;;  %p11020_p3 = scmp.ne.s32.totalorder %s10998_s12, 0 }
  0xe5   : > { %s6790_s21 = sshll.u32 %s9177_s14, 7  ;;  %s365_s16 = scalar_lea.sflag [#allocation4], %s9177_s14 }
  0xe6   : > { %s9183_s7 = scalar_lea.vmem [#allocation3], %s6790_s21 }
  0xe7   : > { %8772 = dma.done.wait (%p11020_p3), %s365_s16, 2048  }
  0xe8   : > { %8774 = vsyncadd (%p11020_p3), %s365_s16, 4294965248  ;;  %s373_s15 = sand.u32 1, %s8888_s28   ;;  %s6791_s22 = sshll.u32 %s9177_s14, 3 }
  0xe9   : > { %s374_s30 = scalar_lea.sflag [#allocation7], %s373_s15  ;;  %s9191_s19 = scalar_lea.vmem [#allocation6], %s6791_s22 }
  0xea   : > { %8776 = dma.done.wait (%p11020_p3), %s374_s30, 256  }
  0xeb   : > { %8778 = vsyncadd (%p11020_p3), %s374_s30, 4294967040  ;;  %s9197_s4 = scalar_lea.vmem [#allocation8], %s6791_s22  ;;  %s392_s29 = scalar_lea.sflag [#allocation10], %s373_s15 }
  0xec   : > { %s9199_s24 = scalar_lea.vmem [#allocation9], %s6791_s22 }
  0xed   : > { %8780 = dma.done.wait (%p11020_p3), %s392_s29, 128  }
  0xee   : > { %8782 = vsyncadd (%p11020_p3), %s392_s29, 4294967168  ;;  %p11021_p0 = scmp.eq.s32.totalorder %s8888_s28, 0 }
  0xf0   : > { %8784 = dma.done.wait (%p11021_p0), [#allocation10], 9216   ;;  %p11022_p6 = pmov %p11021_p0 }
  0xf1   : > { %p11023_p8 = pmov %p11021_p0 }
  0xf2   : > { %8786 = vsyncadd (%p11022_p6), [#allocation10], 4294958080 }
  0xf3   : > { %8788 = dma.done.wait (%p11023_p8), [#allocation13], 32   ;;  %p11024_p9 = pmov %p11021_p0 }
  0xf4   : > { %v8822_v0 = vmov 0   ;;  %v9213_v1 = vld [vmem:[#allocation11 + $0x140] sm:$0xff]   ;;  %v8215_v4 = vld [vmem:[#allocation11 + $0x148] sm:$0xff]   ;;  %v8218_v7 = vld [vmem:[#allocation11 + $0x150] sm:$0xff]   ;;  %v601_v36 = vlaneseq  ;;  %v8823_v38 = vmov 1966171168  }
  0xf5   : > { %8790 = vsyncadd (%p11024_p9), [#allocation13], 4294967264  ;;  %1034 = vst [vmem:[#allocation2] sm:$0xf] %v8822_v0  ;;  %v8213_v2 = vld [vmem:[#allocation11 + $0x100] sm:$0xff]   ;;  %7936 = vmatprep.subr.bf16.mxu1 %v9213_v1  ;;  %v8216_v5 = vld [vmem:[#allocation11 + $0x108] sm:$0xff]   ;;  %v599_v39 = vunpack.c.l.s4 %v8823_v38 }
  0xf6   : > { %1035 = vst [vmem:[#allocation2 + $0x4] sm:$0xf] %v8822_v0  ;;  %1036 = vst [vmem:[#allocation2 + $0x8] sm:$0x3] %v8822_v0  ;;  %v8214_v3 = vld [vmem:[#allocation11 + $0xc0] sm:$0xff]   ;;  %7944 = vmatpush3.bf16.msra.mxu1 %v9213_v1  ;;  %7384 = vmatprep.subr.bf16.mxu0 %v8213_v2  ;;  %v8217_v6 = vld [vmem:[#allocation11 + $0xc8] sm:$0xff]  }
  0xf7   : > { %1038 = vst [vmem:[#allocation2 + $0xcc] sm:$0xf] %v8822_v0  ;;  %1039 = vst [vmem:[#allocation2 + $0xd0] sm:$0xf] %v8822_v0  ;;  %7385 = vmatpush3.bf16.msra.mxu0 %v8214_v3  ;;  %7937 = vmatprep.subr.bf16.mxu1 %v8215_v4  ;;  %v8219_v8 = vld [vmem:[#allocation11 + $0x110] sm:$0xff]   ;;  %v8221_v10 = vld [vmem:[#allocation11 + $0x158] sm:$0xff]   ;;  %v600_v43 = vunpack.c.0.s8 %v599_v39 }
  0xf8   : > { %1040 = vst [vmem:[#allocation2 + $0xd4] sm:$0x3] %v8822_v0  ;;  %1042 = vst [vmem:[#allocation2 + $0xc] sm:$0x1] %v8822_v0  ;;  %7386 = vmatprep.subr.bf16.mxu0 %v8216_v5  ;;  %v8220_v9 = vld [vmem:[#allocation11 + $0xd0] sm:$0xff]   ;;  %v8222_v11 = vld [vmem:[#allocation11 + $0x118] sm:$0xff]  }
  0xf9   : > { %1043 = vst [vmem:[#allocation2 + $0x18] sm:$0x1] %v8822_v0  ;;  %1044 = vst [vmem:[#allocation2 + $0x24] sm:$0x1] %v8822_v0  ;;  %v8223_v12 = vld [vmem:[#allocation11 + $0xd8] sm:$0xff]   ;;  %v8224_v13 = vld [vmem:[#allocation11 + $0x160] sm:$0xff]  }
  0xfa   : > { %1045 = vst [vmem:[#allocation2 + $0x30] sm:$0x1] %v8822_v0  ;;  %1046 = vst [vmem:[#allocation2 + $0x3c] sm:$0x1] %v8822_v0  ;;  %7945 = vmatpush3.bf16.msra.mxu1 %v8215_v4  ;;  %v8225_v14 = vld [vmem:[#allocation11 + $0x120] sm:$0xff]   ;;  %v8227_v16 = vld [vmem:[#allocation11 + $0x168] sm:$0xff]  }
  0xfb   : > { %1047 = vst [vmem:[#allocation2 + $0x48] sm:$0x1] %v8822_v0  ;;  %1048 = vst [vmem:[#allocation2 + $0x54] sm:$0x1] %v8822_v0  ;;  %7387 = vmatpush3.bf16.msra.mxu0 %v8217_v6  ;;  %7938 = vmatprep.subr.bf16.mxu1 %v8218_v7  ;;  %v8226_v15 = vld [vmem:[#allocation11 + $0xe0] sm:$0xff]   ;;  %v8228_v17 = vld [vmem:[#allocation11 + $0x128] sm:$0xff]  }
  0xfc   : > { %1049 = vst [vmem:[#allocation2 + $0x60] sm:$0x1] %v8822_v0  ;;  %1050 = vst [vmem:[#allocation2 + $0x6c] sm:$0x1] %v8822_v0  ;;  %7388 = vmatprep.subr.bf16.mxu0 %v8219_v8  ;;  %v8229_v18 = vld [vmem:[#allocation11 + $0xe8] sm:$0xff]   ;;  %v8230_v19 = vld [vmem:[#allocation11 + $0x170] sm:$0xff]  }
  0xfd   : > { %1051 = vst [vmem:[#allocation2 + $0x78] sm:$0x1] %v8822_v0  ;;  %1052 = vst [vmem:[#allocation2 + $0x84] sm:$0x1] %v8822_v0  ;;  %v8231_v20 = vld [vmem:[#allocation11 + $0x130] sm:$0xff]   ;;  %v8233_v22 = vld [vmem:[#allocation11 + $0x178] sm:$0xff]  }
  0xfe   : > { %1053 = vst [vmem:[#allocation2 + $0x90] sm:$0x1] %v8822_v0  ;;  %1054 = vst [vmem:[#allocation2 + $0x9c] sm:$0x1] %v8822_v0  ;;  %7946 = vmatpush3.bf16.msra.mxu1 %v8218_v7  ;;  %v8232_v21 = vld [vmem:[#allocation11 + $0xf0] sm:$0xff]   ;;  %v8234_v25 = vld [vmem:[#allocation11 + $0x138] sm:$0xff]  }
  0xff   : > { %1055 = vst [vmem:[#allocation2 + $0xa8] sm:$0x1] %v8822_v0  ;;  %1056 = vst [vmem:[#allocation2 + $0xb4] sm:$0x1] %v8822_v0  ;;  %7389 = vmatpush3.bf16.msra.mxu0 %v8220_v9  ;;  %7939 = vmatprep.subr.bf16.mxu1 %v8221_v10  ;;  %v456_v23 = vld [vmem:[%s9191_s19 + $0x4] sm:$0x3] }
 0x100   : > { %1057 = vst [vmem:[#allocation2 + $0xc0] sm:$0x1] %v8822_v0  ;;  %7390 = vmatprep.subr.bf16.mxu0 %v8222_v11  ;;  %v496_v24 = vld [vmem:[%s9199_s24 + $0x4] sm:$0x3]  ;;  %v460_v26 = vunpack.c.l.bf16 %v456_v23  ;;  %v8240_v31 = vld [vmem:[#allocation11 + $0x40] sm:$0xff]   ;;  %v602_v41 = vshrl.u32 %v601_v36, 7 }
 0x101   : > { %v500_v27 = vunpack.c.l.bf16 %v496_v24  ;;  %v8235_v30 = vld [vmem:[#allocation11 + $0xf8] sm:$0xff]   ;;  %v9223_v42 = vld [vmem:[%s9197_s4 + $0x4] sm:$0x3]  ;;  %v9227_v45 = vld [vmem:[%s9183_s7 + $0x40] sm:$0xff]   ;;  %vm1154_vm0 = vcmask 1040384   ;;  %vm1155_vm1 = vcmask 1044484  }
 0x102   : > { %7947 = vmatpush3.bf16.msra.mxu1 %v8221_v10  ;;  %v6800_v28 = vmul.f32 -1.442695, %v460_v26  ;;  %v454_v32 = vld [vmem:[%s9191_s19] sm:$0x3]  ;;  %v457_v44 = vld [vmem:[%s9191_s19 + $0x6] sm:$0x3]  ;;  %v9244_v58 = vsub.s32 %v600_v43, %v602_v41  ;;  %v492_v61 = vunpack.c.l.bf16 %v9223_v42  ;;  %v7244_v63 = vunpack.c.l.bf16 %v9227_v45  ;;  %vm9386_vm2 = vmor %vm1154_vm0, %vm1155_vm1 }
 0x103   : > { %7391 = vmatpush3.bf16.msra.mxu0 %v8223_v12  ;;  %7940 = vmatprep.subr.bf16.mxu1 %v8224_v13  ;;  %v6804_v29 = vmul.f32 -1.442695, %v500_v27  ;;  %v458_v33 = vunpack.c.l.bf16 %v454_v32  ;;  %v494_v34 = vld [vmem:[%s9199_s24] sm:$0x3]  ;;  %v9229_v46 = vsub.s32 0, %v602_v41  ;;  %v461_v48 = vunpack.c.l.bf16 %v457_v44  ;;  %v9242_v54 = vld [vmem:[%s9183_s7 + $0x50] sm:$0xff]  }
 0x104   : > { %7392 = vmatprep.subr.bf16.mxu0 %v8225_v14  ;;  %8475 = vpow2.f32 %v6800_v28  ;;  %v498_v35 = vunpack.c.l.bf16 %v494_v34  ;;  %v9232_v47 = vld [vmem:[%s9183_s7 + $0x48] sm:$0xff]   ;;  %v9236_v50 = vld [vmem:[%s9197_s4] sm:$0x3]  ;;  %v9239_v53 = vld [vmem:[%s9183_s7] sm:$0xff]   ;;  %v7253_v14 = vunpack.c.h.bf16 %v9242_v54  ;;  %vm1862_vm3 = vcmask 1046528   ;;  %s10803_s12 = scalar_lea.vmem [#allocation15], %s6790_s21 }
 0x105   : > { %8477 = vpow2.f32 %v6804_v29  ;;  %v6798_v37 = vmul.f32 -1.442695, %v458_v33  ;;  %v497_v49 = vld [vmem:[%s9199_s24 + $0x6] sm:$0x3]  ;;  %v6801_v55 = vmul.f32 -1.442695, %v461_v48  ;;  %v7248_v2 = vunpack.c.l.bf16 %v9232_v47 }
 0x106   : > { %7948 = vmatpush3.bf16.msra.mxu1 %v8224_v13  ;;  %v6802_v40 = vmul.f32 -1.442695, %v498_v35  ;;  %v501_v51 = vunpack.c.l.bf16 %v497_v49  ;;  %v9247_v59 = vld [vmem:[%s9183_s7 + $0x58] sm:$0xff]   ;;  %v9252_v0 = vld [vmem:[%s9183_s7 + $0x8] sm:$0xff]   ;;  %v7249_v3 = vunpack.c.h.bf16 %v9232_v47  ;;  %v490_v6 = vunpack.c.l.bf16 %v9236_v50  ;;  %v9264_v9 = vld [vmem:[%s9183_s7 + $0x60] sm:$0xff]   ;;  %s11141_s9 = sld [smem:[#allocation26_spill]] }
 0x107   : > { %7393 = vmatpush3.bf16.msra.mxu0 %v8226_v15  ;;  %7941 = vmatprep.subr.bf16.mxu1 %v8227_v16  ;;  %8479 = vpow2.f32 %v6798_v37  ;;  %v9258_v4 = vld [vmem:[%s9197_s4 + $0x6] sm:$0x3]  ;;  %v7212_v7 = vunpack.c.l.bf16 %v9239_v53  ;;  %v7213_v8 = vunpack.c.h.bf16 %v9239_v53  ;;  %v9267_v10 = vld [vmem:[%s9183_s7 + $0x68] sm:$0xff]   ;;  %v7252_v13 = vunpack.c.l.bf16 %v9242_v54  ;;  %v8280_v38 = vld [vmem:[#allocation2 + $0x8] ss:$0 sps:$4 sm:$0x11]  }
 0x108   : > { %7394 = vmatprep.subr.bf16.mxu0 %v8228_v17  ;;  %8481 = vpow2.f32 %v6802_v40  ;;  %v6805_v60 = vmul.f32 -1.442695, %v501_v51  ;;  %v9272_v15 = vld [vmem:[%s9183_s7 + $0x10] sm:$0xff]   ;;  %v7256_v17 = vunpack.c.l.bf16 %v9247_v59  ;;  %v493_v23 = vunpack.c.l.bf16 %v9258_v4  ;;  %v1334_v33 = vld [vmem:[#allocation2 + $0x4] sm:$0xf]  ;;  %v9302_v41 = vld [vmem:[%s9183_s7 + $0x20] sm:$0xff]  }
 0x109   : > { %8483 = vpow2.f32 %v6801_v55  ;;  %v7260_v24 = vunpack.c.l.bf16 %v9264_v9  ;;  %v7261_v26 = vunpack.c.h.bf16 %v9264_v9  ;;  %v1381_v34 = vld [vmem:[#allocation2] sm:$0xe]  ;;  %vm1589_vm4 = vsmask.f32 7424  ;;  %s7209_s17 = sshll.u32 %s8888_s28, 11  ;;  %s6604_s18 = sshll.u32 %s10803_s12, 4  ;;  %s10916_s18 = int_to_ptr.vmem [resolvable:$true] %s6604_s18 }
 0x10a   : > { %7949 = vmatpush3.bf16.msra.mxu1 %v8227_v16  ;;  %v9299_v39 = vcombine.low %v1381_v34, %v1334_v33  ;;  %v1333_v40 = vld [vmem:[#allocation2] sm:$0xf]  ;;  %s11142_s8 = sld [smem:[#allocation71_spill]]  ;;  %s6591_s1 = scalar_lea.sflag [#allocation5], %s9177_s14 }
 0x10b   : > { %7395 = vmatpush3.bf16.msra.mxu0 %v8229_v18  ;;  %7942 = vmatprep.subr.bf16.mxu1 %v8230_v19  ;;  %v7257_v18 = vunpack.c.h.bf16 %v9247_v59  ;;  %v6838_v44 = vcombine.low %v1333_v40, %v1334_v33  ;;  %v455_v48 = vld [vmem:[%s9191_s19 + $0x2] sm:$0x3]  ;;  %s8727_s23 = scalar_lea.vmem %s10916_s18, 2048  ;;  %s8824_s28 = smov [#allocation15]  }
 0x10c   : > { %7396 = vmatprep.subr.bf16.mxu0 %v8231_v20  ;;  %v9278_v20 = vld [vmem:[%s9183_s7 + $0x70] sm:$0xff]   ;;  %v1591_v55 = vshrl.u32 %v9299_v39, 16  ;;  %p8728_p10 = scmp.ne.s32.totalorder %s10916_s18, %s8727_s23  ;;  %p11143_p1 = scmp.ne.s32.totalorder %s11141_s9, 0 }
 0x10d   : > { %s8731_s26 = sshll.u32 %s8824_s28, 4  ;;  %s8732_s26 = int_to_ptr.vmem [resolvable:$false] %s8731_s26 }
 0x10e   : > { %7950 = vmatpush3.bf16.msra.mxu1 %v8230_v19  ;;  %v8476_v52 = vpop.eup %8475  ;;  %v7216_v19 = vunpack.c.l.bf16 %v9252_v0  ;;  %p8729_p5 = pnand %p8728_p10, %p11143_p1  ;;  %s8733_s13 = scalar_lea.vmem %s8732_s26, 4096 }
 0x10f   : > { %7397 = vmatpush3.bf16.msra.mxu0 %v8232_v21  ;;  %7943 = vmatprep.subr.bf16.mxu1 %v8233_v22  ;;  %v8478_v56 = vpop.eup %8477  ;;  %v476_v57 = vadd.f32 1.0, %v8476_v52  ;;  %v9281_v21 = vld [vmem:[%s9183_s7 + $0x78] sm:$0xff]   ;;  %p8734_p4 = scmp.lt.s32.totalorder %s10916_s18, %s8732_s26  ;;  %p8735_p13 = scmp.lt.s32.totalorder %s8733_s13, %s8727_s23 }
 0x110   : > { %7398 = vmatprep.subr.bf16.mxu0 %v8234_v25  ;;  %v516_v62 = vadd.f32 1.0, %v8478_v56  ;;  %v9287_v25 = vld [vmem:[%s9183_s7 + $0x18] sm:$0xff]   ;;  %v1593_v56 = vshll.u32 %v9299_v39, 16  ;;  %s10914_s5 = scalar_lea.hbm %s11142_s8, %s7209_s17  ;;  %p8730_p11 = pneg %p8729_p5 }
 0x111   : > { %8485 = vrcp.f32 %v476_v57  ;;  %v8480_v5 = vpop.eup %8479  ;;  %v1598_v57 = vshll.u32 %v8280_v38, 16  ;;  %p8736_p7 = por %p8735_p13, %p8734_p4 }
 0x112   : > { %7951 = vmatpush3.bf16.msra.mxu1 %v8233_v22  ;;  %8487 = vrcp.f32 %v516_v62  ;;  %v8482_v11 = vpop.eup %8481  ;;  %v474_v12 = vadd.f32 1.0, %v8480_v5  ;;  %v7217_v22 = vunpack.c.h.bf16 %v9252_v0  ;;  %v1595_v40 = vrot.slane %v1593_v56, 1 }
 0x113   : > { %7399 = vmatpush3.bf16.msra.mxu0 %v8235_v30  ;;  %7520 = vmatprep.subr.bf16.mxu1 %v8240_v31  ;;  %8489 = vpow2.f32 %v6805_v60  ;;  %v514_v16 = vadd.f32 1.0, %v8482_v11  ;;  %v8484_v52 = vpop.eup %8483  ;;  %v1602_v60 = vshrl.u32 %v8280_v38, 16  ;;  %v1912_v11 = vshrl.u32 %v6838_v44, 16  ;;  %p8737_p2 = pnand %p8736_p7, %p8730_p11 }
 0x114   : > { %7792 = vmatprep.subr.bf16.mxu0 %v9213_v1  ;;  %v7245_v1 = vunpack.c.h.bf16 %v9227_v45  ;;  %8491 = vrcp.f32 %v474_v12  ;;  %v477_v5 = vadd.f32 1.0, %v8484_v52  ;;  %v1914_v12 = vshll.u32 %v6838_v44, 16 }
 0x115   : > { %8493 = vrcp.f32 %v514_v16  ;;  %v459_v16 = vunpack.c.l.bf16 %v455_v48  ;;  %v9311_v43 = vrot.slane %v1598_v57, 1  ;;  %v9313_v49 = vshll.u32 %v1602_v60, 16 }
 0x116   : > { %8495 = vrcp.f32 %v477_v5  ;;  %v1916_v36 = vrot.slane %v1914_v12, 1  ;;  %v9318_v48 = vor.u32 %v1595_v40, %v1591_v55 }
 0x117   : > { %v6799_v38 = vmul.f32 -1.442695, %v459_v16 }
 0x118   : > { %v9322_v60 = vor.u32 %v1916_v36, %v1912_v11 }
 0x119   : > { %8497 = vpow2.f32 %v6799_v38 }
 0x11b   : > { %v8486_v62 = vpop.eup %8485 }
 0x11c   : > { %v8488_v34 = vpop.eup %8487  ;;  %v652_v33 = vrot.slane %v8486_v62, %v9244_v58 }
 0x11d   : > { %v8490_v51 = vpop.eup %8489  ;;  %v528_v37 = vmul.f32 %v8488_v34, %v492_v61 }
 0x11e   : > { %v653_v35 = vcombine.high %v652_v33, %v652_v33  ;;  %v660_v52 = vrot.slane %v652_v33, %v9244_v58  ;;  %v517_v44 = vadd.f32 1.0, %v8490_v51  ;;  %v8492_v32 = vpop.eup %8491 }
 0x11f   : > { %v864_v56 = vrot.slane %v528_v37, %v9244_v58  ;;  %v8494_v62 = vpop.eup %8493  ;;  %v604_v12 = vrot.slane %v8492_v32, %v9244_v58 }
 0x120   : > { %v667_v42 = vrot.slane %v653_v35, %v9244_v58  ;;  %v668_v61 = vcombine.high %v660_v52, %v660_v52  ;;  %v729_v5 = vrot.slane %v660_v52, %v9229_v46  ;;  %v526_v55 = vmul.f32 %v8494_v62, %v490_v6 }
 0x121   : > { %v865_v16 = vcombine.high %v864_v56, %v864_v56  ;;  %v872_v51 = vrot.slane %v864_v56, %v9244_v58  ;;  %8499 = vrcp.f32 %v517_v44  ;;  %v605_v35 = vcombine.high %v604_v12, %v604_v12 }
 0x122   : > { %v669_v37 = vcombine.high %v667_v42, %v667_v42  ;;  %v733_v36 = vrot.slane %v667_v42, %v9229_v46  ;;  %v737_v11 = vrot.slane %v668_v61, %v9229_v46  ;;  %v612_v40 = vrot.slane %v604_v12, %v9244_v58 }
 0x123   : > { %v879_v34 = vrot.slane %v865_v16, %v9244_v58  ;;  %v880_v33 = vcombine.high %v872_v51, %v872_v51  ;;  %v941_v32 = vrot.slane %v872_v51, %v9229_v46  ;;  %v619_v6 = vrot.slane %v605_v35, %v9244_v58  ;;  %v9350_v51 = vpop.eup %8495 }
 0x124   : > { %v741_v38 = vrot.slane %v669_v37, %v9229_v46  ;;  %v9336_v50 = vcombine.low %v729_v5, %v733_v36  ;;  %v816_v52 = vrot.slane %v526_v55, %v9244_v58  ;;  %v620_v42 = vcombine.high %v612_v40, %v612_v40 }
 0x125   : > { %v881_v44 = vcombine.high %v879_v34, %v879_v34  ;;  %v945_v56 = vrot.slane %v879_v34, %v9229_v46  ;;  %v949_v62 = vrot.slane %v880_v33, %v9229_v46  ;;  %v621_v16 = vcombine.high %v619_v6, %v619_v6  ;;  %v9365_v33 = vpop.eup %8497 }
 0x126   : > { %v9342_v61 = vcombine.low %v737_v11, %v741_v38  ;;  %v790_v12 = vmul.f32 %v7244_v63, %v9336_v50  ;;  %v792_v5 = vmul.f32 %v7248_v2, %v9336_v50  ;;  %v697_v36 = vrot.slane %v612_v40, %v9229_v46 }
 0x127   : > { %v953_v55 = vrot.slane %v881_v44, %v9229_v46  ;;  %v9353_v37 = vcombine.low %v941_v32, %v945_v56  ;;  %v701_v11 = vrot.slane %v619_v6, %v9229_v46  ;;  %v705_v2 = vrot.slane %v620_v42, %v9229_v46 }
 0x128   : > { %v791_v35 = vmul.f32 %v7245_v1, %v9342_v61  ;;  %v793_v63 = vmul.f32 %v7249_v3, %v9342_v61  ;;  %v709_v34 = vrot.slane %v621_v16, %v9229_v46  ;;  %v817_v45 = vcombine.high %v816_v52, %v816_v52 }
 0x129   : > { %v975_v32 = vcombine.low %v949_v62, %v953_v55  ;;  %v1002_v38 = vadd.f32 %v9353_v37, %v790_v12  ;;  %v1004_v40 = vadd.f32 %v9353_v37, %v792_v5  ;;  %v9369_v6 = vcombine.low %v697_v36, %v701_v11 }
 0x12a   : > { %v9371_v44 = vcombine.low %v705_v2, %v709_v34  ;;  %v824_v1 = vrot.slane %v816_v52, %v9244_v58  ;;  %v794_v47 = vmul.f32 %v7252_v13, %v9336_v50  ;;  %v831_v55 = vrot.slane %v817_v45, %v9244_v58 }
 0x12b   : > { %v8500_v3 = vpop.eup %8499  ;;  %v1003_v56 = vadd.f32 %v975_v32, %v791_v35  ;;  %v7161_v42 = vpack.c.bf16 %v1002_v38, %v1002_v38  ;;  %v1005_v16 = vadd.f32 %v975_v32, %v793_v63  ;;  %v7163_v62 = vpack.c.bf16 %v1004_v40, %v1004_v40 }
 0x12c   : > { %v774_v12 = vmul.f32 %v7212_v7, %v9369_v6  ;;  %v775_v5 = vmul.f32 %v7213_v8, %v9371_v44  ;;  %v832_v52 = vcombine.high %v824_v1, %v824_v1  ;;  %v833_v2 = vcombine.high %v831_v55, %v831_v55 }
 0x12d   : > { %v7162_v36 = vpack.c.bf16 %v1003_v56, %v1003_v56  ;;  %v1197_v11 = vrot.slane %v7161_v42, 7  ;;  %v7164_v35 = vpack.c.bf16 %v1005_v16, %v1005_v16  ;;  %v1202_v63 = vrot.slane %v7163_v62, 7 }
 0x12e   : > { %v909_v7 = vrot.slane %v824_v1, %v9229_v46  ;;  %v913_v34 = vrot.slane %v831_v55, %v9229_v46  ;;  %v917_v53 = vrot.slane %v832_v52, %v9229_v46  ;;  %v921_v56 = vrot.slane %v833_v2, %v9229_v46 }
 0x12f   : > { %v1198_v8 = vrot.slane %v1197_v11, 4  ;;  %v1199_v38 = vrot.slane %v7162_v36, 7  ;;  %1309 = vst [vmem:[#allocation2 + $0x6c] sm:$0xe] %v1197_v11  ;;  %v1203_v40 = vrot.slane %v1202_v63, 4  ;;  %v1204_v45 = vrot.slane %v7164_v35, 7 }
 0x130   : > { %1312 = vst [vmem:[#allocation2 + $0x78] sm:$0xe] %v1202_v63  ;;  %v9394_v57 = vcombine.low %v909_v7, %v913_v34  ;;  %v795_v42 = vmul.f32 %v7253_v14, %v9342_v61  ;;  %v1006_v1 = vadd.f32 %v9353_v37, %v794_v47  ;;  %v9404_v36 = vcombine.low %v917_v53, %v921_v56 }
 0x131   : > { %v1200_v16 = vsel %vm9386_vm2, %v1198_v8, %v1199_v38  ;;  %v1201_v62 = vrot.slane %v1199_v38, 4  ;;  %v1205_v55 = vsel %vm9386_vm2, %v1203_v40, %v1204_v45  ;;  %v1206_v52 = vrot.slane %v1204_v45, 4 }
 0x132   : > { %1310 = vst [vmem:[#allocation2 + $0x70] sm:$0xf] %v1200_v16  ;;  %1313 = vst [vmem:[#allocation2 + $0x7c] sm:$0xf] %v1205_v55  ;;  %v986_v11 = vadd.f32 %v9394_v57, %v774_v12  ;;  %v1007_v35 = vadd.f32 %v975_v32, %v795_v42  ;;  %v7165_v63 = vpack.c.bf16 %v1006_v1, %v1006_v1 }
 0x133   : > { %1311 = vst [vmem:[#allocation2 + $0x74] sm:$0x1] %v1201_v62  ;;  %1314 = vst [vmem:[#allocation2 + $0x80] sm:$0x1] %v1206_v52  ;;  %v796_v54 = vmul.f32 %v7256_v17, %v9336_v50  ;;  %v797_v14 = vmul.f32 %v7257_v18, %v9342_v61  ;;  %v776_v47 = vmul.f32 %v7216_v19, %v9369_v6 }
 0x134   : > { %v777_v12 = vmul.f32 %v7217_v22, %v9371_v44  ;;  %v987_v2 = vadd.f32 %v9404_v36, %v775_v5  ;;  %v7145_v7 = vpack.c.bf16 %v986_v11, %v986_v11  ;;  %v7166_v34 = vpack.c.bf16 %v1007_v35, %v1007_v35 }
 0x135   : > { %v1207_v53 = vrot.slane %v7165_v63, 7  ;;  %v1008_v8 = vadd.f32 %v9353_v37, %v796_v54  ;;  %v1009_v17 = vadd.f32 %v975_v32, %v797_v14  ;;  %v988_v50 = vadd.f32 %v9394_v57, %v776_v47 }
 0x136   : > { %v989_v59 = vadd.f32 %v9404_v36, %v777_v12  ;;  %v7146_v18 = vpack.c.bf16 %v987_v2, %v987_v2  ;;  %v1157_v61 = vrot.slane %v7145_v7, 7  ;;  %v529_v0 = vmul.f32 %v8500_v3, %v493_v23  ;;  %v2575_v19 = vld [vmem:[#allocation2 + $0x6c] sm:$0xe] }
 0x137   : > { %v1208_v38 = vrot.slane %v1207_v53, 4  ;;  %1315 = vst [vmem:[#allocation2 + $0x84] sm:$0xe] %v1207_v53  ;;  %v2576_v22 = vld [vmem:[#allocation2 + $0x78] sm:$0xe]  ;;  %v1209_v5 = vrot.slane %v7166_v34, 7  ;;  %v7167_v40 = vpack.c.bf16 %v1008_v8, %v1008_v8  ;;  %v7168_v45 = vpack.c.bf16 %v1009_v17, %v1009_v17 }
 0x138   : > { %v7147_v56 = vpack.c.bf16 %v988_v50, %v988_v50  ;;  %v1158_v42 = vrot.slane %v1157_v61, 4  ;;  %v1159_v37 = vrot.slane %v7146_v18, 7  ;;  %1285 = vst [vmem:[#allocation2 + $0xc] sm:$0xe] %v1157_v61  ;;  %v7148_v32 = vpack.c.bf16 %v989_v59, %v989_v59 }
 0x139   : > { %v676_v1 = vrot.slane %v9350_v51, %v9244_v58  ;;  %v2544_v16 = vld [vmem:[#allocation2 + $0x70] sm:$0xf]  ;;  %v2547_v62 = vld [vmem:[#allocation2 + $0x7c] sm:$0xf]  ;;  %v1210_v55 = vsel %vm9386_vm2, %v1208_v38, %v1209_v5  ;;  %v1211_v4 = vrot.slane %v1209_v5, 4  ;;  %v1212_v23 = vrot.slane %v7167_v40, 7 }
 0x13a   : > { %v9430_v3 = vrot.slane %v529_v0, %v9244_v58  ;;  %v9432_v52 = vcombine.low %v2575_v19, %v2544_v16  ;;  %v8237_v11 = vld [vmem:[#allocation2 + $0x74] ss:$0 sps:$4 sm:$0x33]   ;;  %v9434_v35 = vcombine.low %v2576_v22, %v2547_v62  ;;  %v1160_v63 = vsel %vm9386_vm2, %v1158_v42, %v1159_v37  ;;  %1316 = vst [vmem:[#allocation2 + $0x88] sm:$0xf] %v1210_v55 }
 0x13b   : > { %v1161_v54 = vrot.slane %v1159_v37, 4  ;;  %v8239_v51 = vld [vmem:[#allocation2 + $0x80] ss:$0 sps:$4 sm:$0x33]   ;;  %1286 = vst [vmem:[#allocation2 + $0x10] sm:$0xf] %v1160_v63  ;;  %v677_v47 = vcombine.high %v676_v1, %v676_v1  ;;  %v9439_v12 = vrot.slane %v676_v1, %v9244_v58 }
 0x13c   : > { %1317 = vst [vmem:[#allocation2 + $0x8c] sm:$0x1] %v1211_v4  ;;  %v1213_v14 = vrot.slane %v1212_v23, 4  ;;  %1318 = vst [vmem:[#allocation2 + $0x90] sm:$0xe] %v1212_v23  ;;  %v3071_v7 = vrot.slane %v9432_v52, 1 }
 0x13d   : > { %v3072_v34 = vrot.slane %v8237_v11, 1  ;;  %v3074_v53 = vrot.slane %v9434_v35, 1  ;;  %1287 = vst [vmem:[#allocation2 + $0x14] sm:$0x1] %v1161_v54  ;;  %v1214_v8 = vrot.slane %v7168_v45, 7  ;;  %v3075_v17 = vrot.slane %v8239_v51, 1 }
 0x13e   : > { %v2577_v50 = vld [vmem:[#allocation2 + $0x84] sm:$0xe]  ;;  %v1162_v59 = vrot.slane %v7147_v56, 7  ;;  %v1164_v18 = vrot.slane %v7148_v32, 7  ;;  %v9446_v61 = vrot.slane %v677_v47, %v9244_v58  ;;  %v692_v63 = vcombine.high %v9439_v12, %v9439_v12 }
 0x13f   : > { %v3073_v38 = vsel %vm1862_vm3, %v3071_v7, %v3072_v34  ;;  %v3379_v0 = vshll.u32 %v3072_v34, 16  ;;  %v1215_v19 = vsel %vm9386_vm2, %v1213_v14, %v1214_v8  ;;  %v1216_v22 = vrot.slane %v1214_v8, 4  ;;  %v2567_v45 = vld [vmem:[#allocation2 + $0xc] sm:$0xe] }
 0x140   : > { %v3372_v5 = vshrl.u32 %v3073_v38, 16  ;;  %v3374_v40 = vshll.u32 %v3073_v38, 16  ;;  %v3076_v42 = vsel %vm1862_vm3, %v3074_v53, %v3075_v17  ;;  %v3411_v37 = vshll.u32 %v3075_v17, 16  ;;  %1319 = vst [vmem:[#allocation2 + $0x94] sm:$0xf] %v1215_v19  ;;  %v8241_v53 = vld [vmem:[#allocation11] sm:$0xff]  }
 0x141   : > { %1288 = vst [vmem:[#allocation2 + $0x18] sm:$0xe] %v1162_v59  ;;  %v3381_v56 = vrot.slane %v3379_v0, 1  ;;  %v3404_v32 = vshrl.u32 %v3076_v42, 16  ;;  %v3406_v1 = vshll.u32 %v3076_v42, 16  ;;  %v1163_v62 = vrot.slane %v1162_v59, 4 }
 0x142   : > { %v2519_v16 = vld [vmem:[#allocation2 + $0xc] sm:$0xf]  ;;  %1320 = vst [vmem:[#allocation2 + $0x98] sm:$0x1] %v1216_v22  ;;  %v3376_v55 = vrot.slane %v3374_v40, 1  ;;  %v3413_v4 = vrot.slane %v3411_v37, 1  ;;  %v693_v7 = vcombine.high %v9446_v61, %v9446_v61  ;;  %v745_v38 = vrot.slane %v9439_v12, %v9229_v46 }
 0x143   : > { %v2550_v23 = vld [vmem:[#allocation2 + $0x88] sm:$0xf]  ;;  %v1166_v11 = vrot.slane %v1164_v18, 4  ;;  %v3408_v54 = vrot.slane %v3406_v1, 1  ;;  %v2520_v51 = vld [vmem:[#allocation2 + $0x10] sm:$0xf]  ;;  %v1165_v47 = vsel %vm9386_vm2, %v1163_v62, %v1164_v18  ;;  %v749_v18 = vrot.slane %v9446_v61, %v9229_v46 }
 0x144   : > { %v9454_v14 = vcombine.low %v2577_v50, %v2550_v23  ;;  %v3377_v34 = vor.u32 %v3376_v55, %v3372_v5  ;;  %v8242_v8 = vld [vmem:[#allocation2 + $0x14] ss:$0 sps:$4 sm:$0x11]   ;;  %v9460_v17 = vcombine.low %v2567_v45, %v2520_v51  ;;  %v6902_v59 = vcombine.low %v2519_v16, %v2520_v51  ;;  %1289 = vst [vmem:[#allocation2 + $0x1c] sm:$0xf] %v1165_v47 }
 0x145   : > { %1290 = vst [vmem:[#allocation2 + $0x20] sm:$0x1] %v1166_v11  ;;  %v3409_v0 = vor.u32 %v3408_v54, %v3404_v32  ;;  %v8248_v50 = vld [vmem:[#allocation2 + $0x8c] ss:$0 sps:$4 sm:$0x33]   ;;  %v9468_v5 = vrot.slane %v692_v63, %v9229_v46  ;;  %v2783_v45 = vshll.u32 %v8242_v8, 16 }
 0x146   : > { %v3077_v19 = vrot.slane %v9454_v14, 1  ;;  %v2578_v22 = vld [vmem:[#allocation2 + $0x90] sm:$0xe]  ;;  %v3382_v40 = vsel %vm1589_vm4, %v3377_v34, %v3381_v56  ;;  %v2776_v42 = vshrl.u32 %v9460_v17, 16  ;;  %v2778_v37 = vshll.u32 %v9460_v17, 16 }
 0x147   : > { %v8245_v1 = vld [vmem:[#allocation11 + $0x48] sm:$0xff]   ;;  %7824 = vmatprep.mubr.bf16.mxu1 %v3382_v40  ;;  %v3414_v12 = vsel %vm1589_vm4, %v3409_v0, %v3413_v4  ;;  %v2787_v32 = vshrl.u32 %v8242_v8, 16  ;;  %v3096_v16 = vshrl.u32 %v6902_v59, 16  ;;  %v3098_v62 = vshll.u32 %v6902_v59, 16 }
 0x148   : > { %v2553_v55 = vld [vmem:[#allocation2 + $0x94] sm:$0xf]  ;;  %7825 = vmatmul.mubr.bf16.vlgmr.msra.gmra.mrb[0].mxu1 %v3414_v12  ;;  %v2780_v61 = vrot.slane %v2778_v37, 1  ;;  %v2785_v23 = vrot.slane %v2783_v45, 1  ;;  %v3078_v11 = vrot.slane %v8248_v50, 1  ;;  %v757_v34 = vrot.slane %v693_v7, %v9229_v46  ;;  %v8251_v37 = vld [vmem:[#allocation11 + $0x50] sm:$0xff]  }
 0x149   : > { %v9474_v63 = vcombine.low %v2578_v22, %v2553_v55  ;;  %7521 = vmatpush3.bf16.msra.mxu1 %v8241_v53  ;;  %v3111_v56 = vshll.u32 %v2787_v32, 16  ;;  %v3100_v54 = vrot.slane %v3098_v62, 1  ;;  %v8246_v51 = vld [vmem:[#allocation11 + $0x8] sm:$0xff]   ;;  %v8250_v47 = vld [vmem:[#allocation2 + $0x98] ss:$0 sps:$4 sm:$0x33]   ;;  %v9477_v40 = vcombine.low %v745_v38, %v749_v18 }
 0x14a   : > { %v2781_v4 = vor.u32 %v2780_v61, %v2776_v42  ;;  %7522 = vmatprep.subr.bf16.mxu1 %v8245_v1  ;;  %v3079_v8 = vsel %vm1862_vm3, %v3077_v19, %v3078_v11  ;;  %v3443_v59 = vshll.u32 %v3078_v11, 16  ;;  %v2568_v50 = vld [vmem:[#allocation2 + $0x18] sm:$0xe]  ;;  %v3081_v38 = vrot.slane %v8250_v47, 1 }
 0x14b   : > { %v3080_v0 = vrot.slane %v9474_v63, 1  ;;  %v3113_v22 = vrot.slane %v3111_v56, 1  ;;  %v3101_v45 = vor.u32 %v3100_v54, %v3096_v16  ;;  %v3436_v53 = vshrl.u32 %v3079_v8, 16  ;;  %v8252_v32 = vld [vmem:[#allocation11 + $0x10] sm:$0xff]  }
 0x14c   : > { %v3438_v12 = vshll.u32 %v3079_v8, 16  ;;  %v2523_v62 = vld [vmem:[#allocation2 + $0x1c] sm:$0xf]  ;;  %v2786_v55 = vsel %vm1589_vm4, %v2781_v4, %v2785_v23  ;;  %v3445_v7 = vrot.slane %v3443_v59, 1  ;;  %v3475_v16 = vshll.u32 %v3081_v38, 16  ;;  %v8256_v59 = vld [vmem:[#allocation11 + $0x58] sm:$0xff]  }
 0x14d   : > { %v9482_v18 = vcombine.low %v2568_v50, %v2523_v62  ;;  %v3104_v42 = vshrl.u32 %v2786_v55, 16  ;;  %v3106_v1 = vshll.u32 %v2786_v55, 16  ;;  %v3102_v19 = vsel %vm1589_vm4, %v3101_v45, %v2785_v23  ;;  %7523 = vmatpush3.bf16.msra.mxu1 %v8246_v51  ;;  %v8253_v11 = vld [vmem:[#allocation2 + $0x20] ss:$0 sps:$4 sm:$0x11]  }
 0x14e   : > { %v3440_v61 = vrot.slane %v3438_v12, 1  ;;  %v3082_v56 = vsel %vm1862_vm3, %v3080_v0, %v3081_v38  ;;  %7524 = vmatprep.subr.bf16.mxu1 %v8251_v37  ;;  %v2522_v4 = vld [vmem:[#allocation2 + $0x18] sm:$0xf]  ;;  %v3477_v55 = vrot.slane %v3475_v16, 1  ;;  %v2797_v23 = vshll.u32 %v8253_v11, 16  ;;  %v8257_v38 = vld [vmem:[#allocation11 + $0x18] sm:$0xff]  }
 0x14f   : > { %v2790_v54 = vshrl.u32 %v9482_v18, 16  ;;  %v2792_v8 = vshll.u32 %v9482_v18, 16  ;;  %v3108_v47 = vrot.slane %v3106_v1, 1  ;;  %v3468_v31 = vshrl.u32 %v3082_v56, 16  ;;  %v8507_v16 = vld [vmem:[#allocation11 + $0x140] sm:$0xff]  }
 0x150   : > { %v3441_v50 = vor.u32 %v3440_v61, %v3436_v53  ;;  %v3470_v30 = vshll.u32 %v3082_v56, 16  ;;  %v2801_v51 = vshrl.u32 %v8253_v11, 16  ;;  %v6904_v37 = vcombine.low %v2522_v4, %v2523_v62 }
 0x151   : > { %v2794_v29 = vrot.slane %v2792_v8, 1  ;;  %v3109_v45 = vor.u32 %v3108_v47, %v3104_v42  ;;  %7525 = vmatpush3.bf16.msra.mxu1 %v8252_v32  ;;  %v2799_v27 = vrot.slane %v2797_v23, 1  ;;  %v9490_v53 = vcombine.low %v9468_v5, %v757_v34  ;;  %v8262_v42 = vld [vmem:[#allocation11 + $0x60] sm:$0xff]  }
 0x152   : > { %v3446_v12 = vsel %vm1589_vm4, %v3441_v50, %v3445_v7  ;;  %v3472_v0 = vrot.slane %v3470_v30, 1  ;;  %v3143_v2 = vshll.u32 %v2801_v51, 16  ;;  %7526 = vmatprep.subr.bf16.mxu1 %v8256_v59  ;;  %v3128_v56 = vshrl.u32 %v6904_v37, 16  ;;  %v8263_v7 = vld [vmem:[#allocation11 + $0x20] sm:$0xff]  }
 0x153   : > { %7828 = vmatprep.mubr.bf16.mxu1 %v3446_v12  ;;  %v2795_v28 = vor.u32 %v2794_v29, %v2790_v54  ;;  %v3114_v1 = vsel %vm1589_vm4, %v3109_v45, %v3113_v22  ;;  %v3130_v11 = vshll.u32 %v6904_v37, 16  ;;  %v798_v29 = vmul.f32 %v7260_v24, %v9477_v40 }
 0x154   : > { %v3473_v61 = vor.u32 %v3472_v0, %v3468_v31  ;;  %3880 = vmatprep.mubr.bf16.mxu0 %v3114_v1  ;;  %v3145_v32 = vrot.slane %v3143_v2, 1  ;;  %v799_v62 = vmul.f32 %v7261_v26, %v9490_v53  ;;  %v11027_v24 = vcombine.high %v9430_v3, %v9430_v3 }
 0x155   : > { %v2800_v30 = vsel %vm1589_vm4, %v2795_v28, %v2799_v27  ;;  %3881 = vmatmul.mubr.bf16.vlgmr.msra.gmra.mrb[0].mxu0 %v3102_v19  ;;  %v3132_v22 = vrot.slane %v3130_v11, 1  ;;  %7527 = vmatpush3.bf16.msra.mxu1 %v8257_v38  ;;  %v896_v28 = vrot.slane %v9430_v3, %v9244_v58  ;;  %v11028_v26 = vunpack.c.l.bf16 %v9267_v10  ;;  %v8267_v19 = vld [vmem:[#allocation11 + $0x68] sm:$0xff]  }
 0x156   : > { %v3478_v5 = vsel %vm1589_vm4, %v3473_v61, %v3477_v55  ;;  %v3136_v34 = vshrl.u32 %v2800_v30, 16  ;;  %v3138_v31 = vshll.u32 %v2800_v30, 16  ;;  %7793 = vmatpush3.bf16.msra.mxu0 %v8507_v16  ;;  %v903_v9 = vrot.slane %v11027_v24, %v9244_v58  ;;  %7528 = vmatprep.subr.bf16.mxu1 %v8262_v42  ;;  %v8508_v3 = vld [vmem:[#allocation11 + $0x148] sm:$0xff]   ;;  %v8273_v42 = vld [vmem:[#allocation11 + $0x70] sm:$0xff]  }
 0x157   : > { %7829 = vmatmul.mubr.bf16.gmra.mrb[4].mxu1 %v3478_v5  ;;  %v800_v2 = vmul.f32 %v11028_v26, %v9477_v40  ;;  %v475_v54 = vadd.f32 1.0, %v9365_v33  ;;  %v3133_v4 = vor.u32 %v3132_v22, %v3128_v56  ;;  %v11029_v59 = vunpack.c.h.bf16 %v9267_v10  ;;  %7794 = vmatprep.subr.bf16.mxu0 %v8508_v3  ;;  %v8268_v33 = vld [vmem:[#allocation11 + $0x28] sm:$0xff]   ;;  %v8509_v22 = vld [vmem:[#allocation11 + $0x150] sm:$0xff]  }
 0x158   : > { %v3140_v8 = vrot.slane %v3138_v31, 1  ;;  %v11030_v50 = vunpack.c.l.bf16 %v9272_v15  ;;  %v904_v23 = vcombine.high %v896_v28, %v896_v28  ;;  %v905_v51 = vcombine.high %v903_v9, %v903_v9  ;;  %v8274_v31 = vld [vmem:[#allocation11 + $0x30] sm:$0xff]  }
 0x159   : > { %v801_v47 = vmul.f32 %v11029_v59, %v9490_v53  ;;  %v957_v45 = vrot.slane %v896_v28, %v9229_v46  ;;  %v961_v12 = vrot.slane %v903_v9, %v9229_v46  ;;  %v3134_v37 = vsel %vm1589_vm4, %v3133_v4, %v2799_v27  ;;  %7529 = vmatpush3.bf16.msra.mxu1 %v8263_v7  ;;  %v8278_v4 = vld [vmem:[#allocation11 + $0x78] sm:$0xff]  }
 0x15a   : > { %v778_v55 = vmul.f32 %v11030_v50, %v9369_v6  ;;  %v3141_v0 = vor.u32 %v3140_v8, %v3136_v34  ;;  %v11031_v10 = vunpack.c.h.bf16 %v9272_v15  ;;  %v965_v61 = vrot.slane %v904_v23, %v9229_v46  ;;  %7795 = vmatpush3.bf16.msra.mxu0 %v8508_v3  ;;  %7530 = vmatprep.subr.bf16.mxu1 %v8267_v19 }
 0x15b   : > { %v969_v56 = vrot.slane %v905_v51, %v9229_v46  ;;  %v976_v11 = vcombine.low %v957_v45, %v961_v12  ;;  %8501 = vrcp.f32 %v475_v54  ;;  %v11032_v15 = vunpack.c.l.bf16 %v9278_v20  ;;  %7796 = vmatprep.subr.bf16.mxu0 %v8509_v22 }
 0x15c   : > { %v779_v38 = vmul.f32 %v11031_v10, %v9371_v44  ;;  %v990_v1 = vadd.f32 %v9394_v57, %v778_v55  ;;  %v3146_v30 = vsel %vm1589_vm4, %v3141_v0, %v3145_v32  ;;  %v11033_v24 = vunpack.c.h.bf16 %v9278_v20  ;;  %v8510_v0 = vld [vmem:[#allocation11 + $0x158] sm:$0xff]  }
 0x15d   : > { %v802_v34 = vmul.f32 %v11032_v15, %v9477_v40  ;;  %3888 = vmatprep.mubr.bf16.mxu0 %v3146_v30  ;;  %v977_v7 = vcombine.low %v965_v61, %v969_v56  ;;  %v1010_v16 = vadd.f32 %v976_v11, %v798_v29  ;;  %v1012_v28 = vadd.f32 %v976_v11, %v800_v2  ;;  %v8279_v10 = vld [vmem:[#allocation11 + $0x38] sm:$0xff]  }
 0x15e   : > { %v991_v27 = vadd.f32 %v9404_v36, %v779_v38  ;;  %v7149_v5 = vpack.c.bf16 %v990_v1, %v990_v1  ;;  %v803_v9 = vmul.f32 %v11033_v24, %v9490_v53  ;;  %3889 = vmatmul.mubr.bf16.gmra.mrb[4].mxu0 %v3134_v37  ;;  %7531 = vmatpush3.bf16.msra.mxu1 %v8268_v33  ;;  %v11034_v54 = vunpack.c.l.bf16 %v9281_v21 }
 0x15f   : > { %v1014_v19 = vadd.f32 %v976_v11, %v802_v34  ;;  %v1011_v59 = vadd.f32 %v977_v7, %v799_v62  ;;  %v7169_v50 = vpack.c.bf16 %v1010_v16, %v1010_v16  ;;  %v1013_v55 = vadd.f32 %v977_v7, %v801_v47  ;;  %7532 = vmatprep.subr.bf16.mxu1 %v8273_v42  ;;  %v9539_v42 = vld [vmem:[#allocation11 + $0x80] sm:$0xff]  }
 0x160   : > { %v7150_v32 = vpack.c.bf16 %v991_v27, %v991_v27  ;;  %v1167_v26 = vrot.slane %v7149_v5, 7  ;;  %v804_v8 = vmul.f32 %v11034_v54, %v9477_v40  ;;  %v7171_v3 = vpack.c.bf16 %v1012_v28, %v1012_v28  ;;  %7797 = vmatpush3.bf16.msra.mxu0 %v8509_v22  ;;  %v1337_v54 = vld [vmem:[#allocation2 + $0x10] sm:$0xf] }
 0x161   : > { %v1015_v20 = vadd.f32 %v977_v7, %v803_v9  ;;  %v7173_v23 = vpack.c.bf16 %v1014_v19, %v1014_v19  ;;  %v7170_v51 = vpack.c.bf16 %v1011_v59, %v1011_v59  ;;  %v1217_v45 = vrot.slane %v7169_v50, 7  ;;  %7798 = vmatprep.subr.bf16.mxu0 %v8510_v0  ;;  %v9549_v9 = vld [vmem:[%s9197_s4 + $0x2] sm:$0x3]  ;;  %v495_v19 = vld [vmem:[%s9199_s24 + $0x2] sm:$0x3] }
 0x162   : > { %v1168_v29 = vrot.slane %v1167_v26, 4  ;;  %v1169_v2 = vrot.slane %v7150_v32, 7  ;;  %1291 = vst [vmem:[#allocation2 + $0x24] sm:$0xe] %v1167_v26  ;;  %v7172_v12 = vpack.c.bf16 %v1013_v55, %v1013_v55  ;;  %v1222_v33 = vrot.slane %v7171_v3, 7  ;;  %7533 = vmatpush3.bf16.msra.mxu1 %v8274_v31  ;;  %v8511_v32 = vld [vmem:[#allocation11 + $0x160] sm:$0xff]  }
 0x163   : > { %v7174_v37 = vpack.c.bf16 %v1015_v20, %v1015_v20  ;;  %v1227_v47 = vrot.slane %v7173_v23, 7  ;;  %v1218_v38 = vrot.slane %v1217_v45, 4  ;;  %v1219_v1 = vrot.slane %v7170_v51, 7  ;;  %1321 = vst [vmem:[#allocation2 + $0x9c] sm:$0xe] %v1217_v45  ;;  %7534 = vmatprep.subr.bf16.mxu1 %v8278_v4 }
 0x164   : > { %v1170_v40 = vsel %vm9386_vm2, %v1168_v29, %v1169_v2  ;;  %v1171_v62 = vrot.slane %v1169_v2, 4  ;;  %v1223_v61 = vrot.slane %v1222_v33, 4  ;;  %v1224_v56 = vrot.slane %v7172_v12, 7  ;;  %1324 = vst [vmem:[#allocation2 + $0xa8] sm:$0xe] %v1222_v33  ;;  %7799 = vmatpush3.bf16.msra.mxu0 %v8510_v0  ;;  %v8512_v12 = vld [vmem:[#allocation11 + $0x168] sm:$0xff]  }
 0x165   : > { %1292 = vst [vmem:[#allocation2 + $0x28] sm:$0xf] %v1170_v40  ;;  %v1228_v30 = vrot.slane %v1227_v47, 4  ;;  %v1229_v27 = vrot.slane %v7174_v37, 7  ;;  %1327 = vst [vmem:[#allocation2 + $0xb4] sm:$0xe] %v1227_v47  ;;  %v11035_v5 = vunpack.c.h.bf16 %v9281_v21  ;;  %v1016_v34 = vadd.f32 %v976_v11, %v804_v8  ;;  %v8502_v31 = vpop.eup %8501  ;;  %7800 = vmatprep.subr.bf16.mxu0 %v8511_v32 }
 0x166   : > { %1293 = vst [vmem:[#allocation2 + $0x2c] sm:$0x1] %v1171_v62  ;;  %v1220_v22 = vsel %vm9386_vm2, %v1218_v38, %v1219_v1  ;;  %v1221_v16 = vrot.slane %v1219_v1, 4  ;;  %v1225_v28 = vsel %vm9386_vm2, %v1223_v61, %v1224_v56  ;;  %v1226_v24 = vrot.slane %v1224_v56, 4  ;;  %7535 = vmatpush3.bf16.msra.mxu1 %v8279_v10  ;;  %v9555_v8 = vld [vmem:[%s9183_s7 + $0x28] sm:$0xff]  }
 0x167   : > { %v805_v15 = vmul.f32 %v11035_v5, %v9490_v53  ;;  %1322 = vst [vmem:[#allocation2 + $0xa0] sm:$0xf] %v1220_v22  ;;  %1325 = vst [vmem:[#allocation2 + $0xac] sm:$0xf] %v1225_v28  ;;  %v1230_v21 = vsel %vm9386_vm2, %v1228_v30, %v1229_v27  ;;  %v1231_v53 = vrot.slane %v1229_v27, 4  ;;  %v7175_v26 = vpack.c.bf16 %v1016_v34, %v1016_v34 }
 0x168   : > { %1323 = vst [vmem:[#allocation2 + $0xa4] sm:$0x1] %v1221_v16  ;;  %1326 = vst [vmem:[#allocation2 + $0xb0] sm:$0x1] %v1226_v24  ;;  %v11036_v59 = vunpack.c.l.bf16 %v9287_v25  ;;  %v11037_v55 = vunpack.c.h.bf16 %v9287_v25  ;;  %v9569_v29 = vsel %vm1589_vm4, %v9322_v60, %v9311_v43  ;;  %7840 = vmatprep.subr.bf16.mxu1 %v9539_v42  ;;  %v1382_v2 = vld [vmem:[#allocation2 + $0xc] sm:$0xe]  ;;  %7801 = vmatpush3.bf16.msra.mxu0 %v8511_v32  ;;  %v499_v60 = vunpack.c.l.bf16 %v495_v19 }
 0x169   : > { %v1017_v11 = vadd.f32 %v977_v7, %v805_v15  ;;  %v2569_v4 = vld [vmem:[#allocation2 + $0x24] sm:$0xe]  ;;  %1328 = vst [vmem:[#allocation2 + $0xb8] sm:$0xf] %v1230_v21  ;;  %v1601_v7 = vsel %vm1589_vm4, %v9318_v48, %v9311_v43  ;;  %v1336_v20 = vld [vmem:[#allocation2 + $0xc] sm:$0xf]  ;;  %v491_v43 = vunpack.c.l.bf16 %v9549_v9  ;;  %7802 = vmatprep.subr.bf16.mxu0 %v8512_v12  ;;  %v628_v62 = vrot.slane %v8502_v31, %v9244_v58 }
 0x16a   : > { %v780_v50 = vmul.f32 %v11036_v59, %v9369_v6  ;;  %v781_v3 = vmul.f32 %v11037_v55, %v9371_v44  ;;  %v2525_v23 = vld [vmem:[#allocation2 + $0x24] sm:$0xf]  ;;  %1329 = vst [vmem:[#allocation2 + $0xbc] sm:$0x1] %v1231_v53  ;;  %v1232_v51 = vrot.slane %v7175_v26, 7  ;;  %v1920_v45 = vshrl.u32 %v1601_v7, 16 }
 0x16b   : > { %v7176_v6 = vpack.c.bf16 %v1017_v11, %v1017_v11  ;;  %v1922_v25 = vshll.u32 %v1601_v7, 16  ;;  %v2579_v33 = vld [vmem:[#allocation2 + $0x9c] sm:$0xe]  ;;  %v2580_v0 = vld [vmem:[#allocation2 + $0xa8] sm:$0xe]  ;;  %v9580_v37 = vcombine.low %v1382_v2, %v1337_v54  ;;  %v9582_v47 = vcombine.low %v1336_v20, %v1337_v54 }
 0x16c   : > { %v9573_v44 = vadd.f32 %v9394_v57, %v780_v50  ;;  %v9576_v48 = vadd.f32 %v9404_v36, %v781_v3  ;;  %v2526_v40 = vld [vmem:[#allocation2 + $0x28] sm:$0xf]  ;;  %1330 = vst [vmem:[#allocation2 + $0xc0] sm:$0xe] %v1232_v51  ;;  %v7232_v57 = vunpack.c.l.bf16 %v9555_v8  ;;  %v1233_v1 = vrot.slane %v1232_v51, 4  ;;  %7803 = vmatpush3.bf16.msra.mxu0 %v8512_v12  ;;  %v8513_v32 = vld [vmem:[#allocation11 + $0x170] sm:$0xff]  }
 0x16d   : > { %v8264_v10 = vld [vmem:[#allocation2 + $0x2c] ss:$0 sps:$4 sm:$0x11]   ;;  %v9585_v36 = vcombine.low %v2569_v4, %v2526_v40  ;;  %v9587_v38 = vcombine.low %v2525_v23, %v2526_v40  ;;  %v9591_v56 = vrot.slane %v7176_v6, 7  ;;  %v1924_v27 = vrot.slane %v1922_v25, 1  ;;  %7804 = vmatprep.subr.bf16.mxu0 %v8513_v32 }
 0x16e   : > { %v7151_v61 = vpack.c.bf16 %v9573_v44, %v9573_v44  ;;  %v7152_v30 = vpack.c.bf16 %v9576_v48, %v9576_v48  ;;  %v6803_v5 = vmul.f32 -1.442695, %v499_v60  ;;  %v9595_v15 = vld [vmem:[#allocation2 + $0xa0] sm:$0xf]  ;;  %v2559_v34 = vld [vmem:[#allocation2 + $0xac] sm:$0xf]  ;;  %v629_v28 = vcombine.high %v628_v62, %v628_v62 }
 0x16f   : > { %v2804_v31 = vshrl.u32 %v9585_v36, 16  ;;  %v2806_v22 = vshll.u32 %v9585_v36, 16  ;;  %v2581_v16 = vld [vmem:[#allocation2 + $0xb4] sm:$0xe]  ;;  %v9600_v24 = vrot.slane %v628_v62, %v9244_v58  ;;  %v9603_v21 = vcombine.low %v2579_v33, %v9595_v15  ;;  %v8514_v60 = vld [vmem:[#allocation11 + $0x178] sm:$0xff]  }
 0x170   : > { %v8259_v53 = vld [vmem:[#allocation2 + $0xa4] ss:$0 sps:$4 sm:$0x33]   ;;  %v9605_v11 = vcombine.low %v2580_v0, %v2559_v34  ;;  %v2811_v26 = vshll.u32 %v8264_v10, 16  ;;  %v1235_v19 = vsel %vm9386_vm2, %v1233_v1, %v9591_v56  ;;  %v9610_v59 = vor.u32 %v1924_v27, %v1920_v45  ;;  %v2562_v20 = vld [vmem:[#allocation2 + $0xb8] sm:$0xf]  ;;  %7805 = vmatpush3.bf16.msra.mxu0 %v8513_v32 }
 0x171   : > { %v8261_v54 = vld [vmem:[#allocation2 + $0xb0] ss:$0 sps:$4 sm:$0x33]   ;;  %v2808_v4 = vrot.slane %v2806_v22, 1  ;;  %1331 = vst [vmem:[#allocation2 + $0xc4] sm:$0xf] %v1235_v19  ;;  %8503 = vpow2.f32 %v6803_v5  ;;  %v9613_v50 = vrot.slane %v629_v28, %v9244_v58  ;;  %7806 = vmatprep.subr.bf16.mxu0 %v8514_v60  ;;  %v9620_v0 = vcombine.low %v2581_v16, %v2562_v20 }
 0x172   : > { %v3083_v55 = vrot.slane %v9603_v21, 1  ;;  %v3084_v3 = vrot.slane %v8259_v53, 1  ;;  %v3086_v7 = vrot.slane %v9605_v11, 1  ;;  %v2813_v2 = vrot.slane %v2811_v26, 1 }
 0x173   : > { %v3087_v23 = vrot.slane %v8261_v54, 1  ;;  %v2809_v6 = vor.u32 %v2808_v4, %v2804_v31  ;;  %v2815_v51 = vshrl.u32 %v8264_v10, 16  ;;  %v3160_v25 = vshrl.u32 %v9587_v38, 16  ;;  %v8270_v5 = vld [vmem:[#allocation2 + $0xbc] ss:$0 sps:$4 sm:$0x33]  }
 0x174   : > { %v3085_v45 = vsel %vm1862_vm3, %v3083_v55, %v3084_v3  ;;  %v3507_v12 = vshll.u32 %v3084_v3, 16  ;;  %v3162_v33 = vshll.u32 %v9587_v38, 16  ;;  %v2582_v28 = vld [vmem:[#allocation2 + $0xc0] sm:$0xe]  ;;  %7807 = vmatpush3.bf16.msra.mxu0 %v8514_v60  ;;  %v3089_v4 = vrot.slane %v9620_v0, 1 }
 0x175   : > { %v3500_v40 = vshrl.u32 %v3085_v45, 16  ;;  %v3502_v62 = vshll.u32 %v3085_v45, 16  ;;  %v3088_v1 = vsel %vm1862_vm3, %v3086_v7, %v3087_v23  ;;  %v3539_v27 = vshll.u32 %v3087_v23, 16 }
 0x176   : > { %v3509_v34 = vrot.slane %v3507_v12, 1  ;;  %v3532_v31 = vshrl.u32 %v3088_v1, 16  ;;  %v3534_v10 = vshll.u32 %v3088_v1, 16  ;;  %v2814_v22 = vsel %vm1589_vm4, %v2809_v6, %v2813_v2 }
 0x177   : > { %v3504_v32 = vrot.slane %v3502_v62, 1  ;;  %v3541_v53 = vrot.slane %v3539_v27, 1  ;;  %v3168_v26 = vshrl.u32 %v2814_v22, 16  ;;  %v3170_v19 = vshll.u32 %v2814_v22, 16 }
 0x178   : > { %v3536_v38 = vrot.slane %v3534_v10, 1  ;;  %v3175_v16 = vshll.u32 %v2815_v51, 16  ;;  %v3164_v54 = vrot.slane %v3162_v33, 1  ;;  %v2565_v55 = vld [vmem:[#allocation2 + $0xc4] sm:$0xf]  ;;  %v3090_v20 = vrot.slane %v8270_v5, 1 }
 0x179   : > { %v3505_v3 = vor.u32 %v3504_v32, %v3500_v40  ;;  %v3172_v7 = vrot.slane %v3170_v19, 1  ;;  %v1236_v23 = vrot.slane %v9591_v56, 4  ;;  %v9626_v1 = vcombine.low %v2582_v28, %v2565_v55 }
 0x17a   : > { %v3537_v45 = vor.u32 %v3536_v38, %v3532_v31  ;;  %v3177_v12 = vrot.slane %v3175_v16, 1  ;;  %v3165_v6 = vor.u32 %v3164_v54, %v3160_v25  ;;  %v3091_v51 = vsel %vm1862_vm3, %v3089_v4, %v3090_v20 }
 0x17b   : > { %v8504_v60 = vpop.eup %8503  ;;  %v3510_v62 = vsel %vm1589_vm4, %v3505_v3, %v3509_v34  ;;  %v3173_v27 = vor.u32 %v3172_v7, %v3168_v26  ;;  %v3571_v33 = vshll.u32 %v3090_v20, 16  ;;  %1332 = vst [vmem:[#allocation2 + $0xc8] sm:$0x1] %v1236_v23  ;;  %v3564_v10 = vshrl.u32 %v3091_v51, 16 }
 0x17c   : > { %7832 = vmatprep.mubr.bf16.mxu1 %v3510_v62  ;;  %v3542_v40 = vsel %vm1589_vm4, %v3537_v45, %v3541_v53  ;;  %v3166_v5 = vsel %vm1589_vm4, %v3165_v6, %v2813_v2  ;;  %v3566_v56 = vshll.u32 %v3091_v51, 16  ;;  %v3092_v22 = vrot.slane %v9626_v1, 1 }
 0x17d   : > { %7833 = vmatmul.mubr.bf16.gmra.mrb[8].mxu1 %v3542_v40  ;;  %v3178_v25 = vsel %vm1589_vm4, %v3173_v27, %v3177_v12  ;;  %v3573_v31 = vrot.slane %v3571_v33, 1  ;;  %v1172_v34 = vrot.slane %v7151_v61, 7  ;;  %v1174_v32 = vrot.slane %v7152_v30, 7  ;;  %v8287_v30 = vld [vmem:[#allocation2 + $0x14] ss:$0 sps:$4 sm:$0x11]  }
 0x17e   : > { %3896 = vmatprep.mubr.bf16.mxu0 %v3178_v25  ;;  %v3568_v28 = vrot.slane %v3566_v56, 1  ;;  %v11038_v2 = vrot.slane %v9313_v49, 1  ;;  %v515_v26 = vadd.f32 1.0, %v8504_v60  ;;  %v644_v44 = vcombine.high %v9600_v24, %v9600_v24  ;;  %v9674_v40 = vld [vmem:[%s9183_s7 + $0x30] sm:$0xff]  }
 0x17f   : > { %3897 = vmatmul.mubr.bf16.gmra.mrb[8].mxu0 %v3166_v5  ;;  %v1173_v19 = vrot.slane %v1172_v34, 4  ;;  %1294 = vst [vmem:[#allocation2 + $0x30] sm:$0xe] %v1172_v34  ;;  %v645_v61 = vcombine.high %v9613_v50, %v9613_v50  ;;  %v713_v48 = vrot.slane %v9600_v24, %v9229_v46  ;;  %v1176_v49 = vrot.slane %v1174_v32, 4  ;;  %v1340_v34 = vld [vmem:[#allocation2 + $0x1c] sm:$0xf] }
 0x180   : > { %v9644_v53 = vsel %vm1589_vm4, %v9610_v59, %v11038_v2  ;;  %v3569_v38 = vor.u32 %v3568_v28, %v3564_v10  ;;  %8505 = vrcp.f32 %v515_v26  ;;  %v717_v59 = vrot.slane %v9613_v50, %v9229_v46  ;;  %v1383_v28 = vld [vmem:[#allocation2 + $0x18] sm:$0xe] }
 0x181   : > { %v1175_v16 = vsel %vm9386_vm2, %v1173_v19, %v1174_v32  ;;  %v721_v54 = vrot.slane %v644_v44, %v9229_v46  ;;  %v725_v4 = vrot.slane %v645_v61, %v9229_v46  ;;  %v1605_v55 = vshrl.u32 %v9580_v37, 16  ;;  %1296 = vst [vmem:[#allocation2 + $0x38] sm:$0x1] %v1176_v49  ;;  %v1339_v44 = vld [vmem:[#allocation2 + $0x18] sm:$0xf] }
 0x182   : > { %v3574_v3 = vsel %vm1589_vm4, %v3569_v38, %v3573_v31  ;;  %v8272_v24 = vld [vmem:[#allocation2 + $0xc8] ss:$0 sps:$4 sm:$0x33]   ;;  %1295 = vst [vmem:[#allocation2 + $0x34] sm:$0xf] %v1175_v16  ;;  %v9660_v7 = vcombine.low %v713_v48, %v717_v59  ;;  %v1607_v20 = vshll.u32 %v9580_v37, 16  ;;  %v7233_v50 = vunpack.c.h.bf16 %v9555_v8 }
 0x183   : > { %7836 = vmatprep.mubr.bf16.mxu1 %v3574_v3  ;;  %v9664_v23 = vcombine.low %v721_v54, %v725_v4  ;;  %v1612_v45 = vshll.u32 %v8287_v30, 16  ;;  %v1616_v12 = vshrl.u32 %v8287_v30, 16  ;;  %v1944_v6 = vshrl.u32 %v9582_v47, 16 }
 0x184   : > { %v3093_v60 = vrot.slane %v8272_v24, 1  ;;  %v11039_v62 = vunpack.c.l.bf16 %v9302_v41  ;;  %v1609_v51 = vrot.slane %v1607_v20, 1  ;;  %v1946_v33 = vshll.u32 %v9582_v47, 16 }
 0x185   : > { %v11040_v5 = vunpack.c.h.bf16 %v9302_v41  ;;  %v1614_v56 = vrot.slane %v1612_v45, 1  ;;  %v9681_v25 = vshll.u32 %v1616_v12, 16  ;;  %v9686_v31 = vmul.f32 %v7232_v57, %v9660_v7 }
 0x186   : > { %v9670_v27 = vmul.f32 %v11039_v62, %v9660_v7  ;;  %v3094_v32 = vsel %vm1862_vm3, %v3092_v22, %v3093_v60  ;;  %v3603_v47 = vshll.u32 %v3093_v60, 16  ;;  %v2570_v2 = vld [vmem:[#allocation2 + $0x30] sm:$0xe]  ;;  %v1610_v26 = vor.u32 %v1609_v51, %v1605_v55  ;;  %v8293_v60 = vld [vmem:[#allocation2 + $0x20] ss:$0 sps:$4 sm:$0x11]  }
 0x187   : > { %v9679_v10 = vmul.f32 %v11040_v5, %v9664_v23  ;;  %v1948_v19 = vrot.slane %v1946_v33, 1  ;;  %v3596_v41 = vshrl.u32 %v3094_v32, 16  ;;  %v3598_v61 = vshll.u32 %v3094_v32, 16  ;;  %v2528_v48 = vld [vmem:[#allocation2 + $0x30] sm:$0xf] }
 0x188   : > { %v1961_v30 = vrot.slane %v9681_v25, 1  ;;  %v9691_v38 = vmul.f32 %v7233_v50, %v9664_v23  ;;  %v3605_v8 = vrot.slane %v3603_v47, 1  ;;  %v1615_v57 = vsel %vm1589_vm4, %v1610_v26, %v1614_v56  ;;  %v8275_v24 = vld [vmem:[#allocation2 + $0x38] ss:$0 sps:$4 sm:$0x11]  }
 0x189   : > { %v1949_v49 = vor.u32 %v1948_v19, %v1944_v6  ;;  %v9694_v59 = vcombine.low %v1383_v28, %v1340_v34  ;;  %v3600_v22 = vrot.slane %v3598_v61, 1  ;;  %v2529_v16 = vld [vmem:[#allocation2 + $0x34] sm:$0xf]  ;;  %v1952_v54 = vshrl.u32 %v1615_v57, 16 }
 0x18a   : > { %v9696_v4 = vcombine.low %v1339_v44, %v1340_v34  ;;  %v7236_v55 = vunpack.c.l.bf16 %v9674_v40  ;;  %v8506_v3 = vpop.eup %8505  ;;  %v9699_v20 = vcombine.low %v2570_v2, %v2529_v16  ;;  %v6908_v45 = vcombine.low %v2528_v48, %v2529_v16 }
 0x18b   : > { %v1954_v50 = vshll.u32 %v1615_v57, 16  ;;  %v9702_v12 = vsel %vm1589_vm4, %v1949_v49, %v1614_v56  ;;  %v3601_v6 = vor.u32 %v3600_v22, %v3596_v41  ;;  %v527_v62 = vmul.f32 %v8506_v3, %v491_v43 }
 0x18c   : > { %v1619_v51 = vshrl.u32 %v9694_v59, 16  ;;  %v1621_v33 = vshll.u32 %v9694_v59, 16  ;;  %v2818_v5 = vshrl.u32 %v9699_v20, 16  ;;  %v2820_v25 = vshll.u32 %v9699_v20, 16 }
 0x18d   : > { %v2825_v34 = vshll.u32 %v8275_v24, 16  ;;  %v2829_v28 = vshrl.u32 %v8275_v24, 16  ;;  %v3606_v32 = vsel %vm1589_vm4, %v3601_v6, %v3605_v8  ;;  %v3192_v47 = vshrl.u32 %v6908_v45, 16 }
 0x18e   : > { %v3194_v56 = vshll.u32 %v6908_v45, 16  ;;  %v840_v2 = vrot.slane %v527_v62, %v9244_v58  ;;  %7837 = vmatmul.mubr.bf16.gmra.mrb[12].mxu1 %v3606_v32  ;;  %v2822_v26 = vrot.slane %v2820_v25, 1  ;;  %v1956_v19 = vrot.slane %v1954_v50, 1 }
 0x18f   : > { %v2827_v9 = vrot.slane %v2825_v34, 1  ;;  %v3207_v43 = vshll.u32 %v2829_v28, 16  ;;  %4346 = vmatprep.mubr.bf16.mxu1 %v9644_v53  ;;  %v1623_v48 = vrot.slane %v1621_v33, 1  ;;  %v1626_v8 = vshll.u32 %v8293_v60, 16 }
 0x190   : > { %v3196_v44 = vrot.slane %v3194_v56, 1  ;;  %v841_v41 = vcombine.high %v840_v2, %v840_v2  ;;  %v848_v61 = vrot.slane %v840_v2, %v9244_v58  ;;  %v2823_v57 = vor.u32 %v2822_v26, %v2818_v5 }
 0x191   : > { %v3209_v49 = vrot.slane %v3207_v43, 1  ;;  %v1957_v22 = vor.u32 %v1956_v19, %v1952_v54  ;;  %v1624_v62 = vor.u32 %v1623_v48, %v1619_v51  ;;  %v1628_v53 = vrot.slane %v1626_v8, 1 }
 0x192   : > { %v3197_v16 = vor.u32 %v3196_v44, %v3192_v47  ;;  %v855_v3 = vrot.slane %v841_v41, %v9244_v58  ;;  %v856_v24 = vcombine.high %v848_v61, %v848_v61  ;;  %v925_v45 = vrot.slane %v848_v61, %v9229_v46  ;;  %v8299_v47 = vld [vmem:[#allocation11 + $0x88] sm:$0xff]   ;;  %v8310_v61 = vld [vmem:[#allocation11 + $0x90] sm:$0xff]  }
 0x193   : > { %v2828_v6 = vsel %vm1589_vm4, %v2823_v57, %v2827_v9  ;;  %v1962_v50 = vsel %vm1589_vm4, %v1957_v22, %v1961_v30  ;;  %v1629_v58 = vsel %vm1589_vm4, %v1624_v62, %v1628_v53  ;;  %v1630_v32 = vshrl.u32 %v8293_v60, 16 }
 0x194   : > { %v3200_v25 = vshrl.u32 %v2828_v6, 16  ;;  %v3202_v34 = vshll.u32 %v2828_v6, 16  ;;  %v3198_v33 = vsel %vm1589_vm4, %v3197_v16, %v2827_v9  ;;  %v857_v5 = vcombine.high %v855_v3, %v855_v3  ;;  %v1343_v6 = vld [vmem:[#allocation2 + $0x28] sm:$0xf] }
 0x195   : > { %v929_v54 = vrot.slane %v855_v3, %v9229_v46  ;;  %v933_v28 = vrot.slane %v856_v24, %v9229_v46  ;;  %v1984_v26 = vshrl.u32 %v1629_v58, 16  ;;  %v1986_v30 = vshll.u32 %v1629_v58, 16 }
 0x196   : > { %v3204_v56 = vrot.slane %v3202_v34, 1  ;;  %v937_v2 = vrot.slane %v857_v5, %v9229_v46  ;;  %4347 = vmatmul.mubr.bf16.vlgmr.msra.gmra.mrb[16].mxu1 %v9569_v29  ;;  %v1991_v43 = vshll.u32 %v1630_v32, 16  ;;  %v1976_v9 = vshrl.u32 %v9696_v4, 16  ;;  %v8321_v32 = vld [vmem:[#allocation11 + $0x98] sm:$0xff]  }
 0x197   : > { %v9724_v51 = vcombine.low %v925_v45, %v929_v54  ;;  %v1978_v19 = vshll.u32 %v9696_v4, 16  ;;  %4354 = vmatprep.mubr.bf16.mxu1 %v1962_v50  ;;  %7841 = vmatpush3.bf16.msra.mxu1 %v9539_v42  ;;  %v1988_v60 = vrot.slane %v1986_v30, 1  ;;  %v7237_v46 = vunpack.c.h.bf16 %v9674_v40  ;;  %v1384_v4 = vld [vmem:[#allocation2 + $0x24] sm:$0xe] }
 0x198   : > { %v3205_v44 = vor.u32 %v3204_v56, %v3200_v25  ;;  %v9728_v41 = vcombine.low %v933_v28, %v937_v2  ;;  %v1993_v57 = vrot.slane %v1991_v43, 1  ;;  %7842 = vmatprep.subr.bf16.mxu1 %v8299_v47  ;;  %v8300_v50 = vld [vmem:[#allocation2 + $0x2c] ss:$0 sps:$4 sm:$0x11]   ;;  %v9751_v58 = vcombine.low %v1384_v4, %v1343_v6 }
 0x199   : > { %v994_v29 = vadd.f32 %v9724_v51, %v9670_v27  ;;  %v996_v48 = vadd.f32 %v9724_v51, %v9686_v31  ;;  %v1980_v22 = vrot.slane %v1978_v19, 1  ;;  %v1989_v3 = vor.u32 %v1988_v60, %v1984_v26  ;;  %v7360_v19 = vld [vmem:[%s9183_s7 + $0x38] sm:$0xff]  }
 0x19a   : > { %v3210_v8 = vsel %vm1589_vm4, %v3205_v44, %v3209_v49  ;;  %v995_v16 = vadd.f32 %v9728_v41, %v9679_v10  ;;  %v997_v42 = vadd.f32 %v9728_v41, %v9691_v38  ;;  %v786_v31 = vmul.f32 %v7236_v55, %v9660_v7 }
 0x19b   : > { %3904 = vmatprep.mubr.bf16.mxu0 %v3210_v8  ;;  %v7153_v24 = vpack.c.bf16 %v994_v29, %v994_v29  ;;  %v7155_v45 = vpack.c.bf16 %v996_v48, %v996_v48  ;;  %v1981_v27 = vor.u32 %v1980_v22, %v1976_v9  ;;  %v1994_v25 = vsel %vm1589_vm4, %v1989_v3, %v1993_v57  ;;  %v1385_v29 = vld [vmem:[#allocation2 + $0x30] sm:$0xe]  ;;  %v2543_v48 = vld [vmem:[#allocation2 + $0x6c] sm:$0xf]  ;;  %v2546_v57 = vld [vmem:[#allocation2 + $0x78] sm:$0xf] }
 0x19c   : > { %3905 = vmatmul.mubr.bf16.gmra.mrb[12].mxu0 %v3198_v33  ;;  %v7154_v62 = vpack.c.bf16 %v995_v16, %v995_v16  ;;  %v7156_v49 = vpack.c.bf16 %v997_v42, %v997_v42  ;;  %v787_v10 = vmul.f32 %v7237_v46, %v9664_v23  ;;  %v998_v54 = vadd.f32 %v9724_v51, %v786_v31  ;;  %v1342_v33 = vld [vmem:[#allocation2 + $0x24] sm:$0xf]  ;;  %v8332_v42 = vld [vmem:[#allocation11 + $0xa0] sm:$0xff]   ;;  %v1346_v31 = vld [vmem:[#allocation2 + $0x34] sm:$0xf] }
 0x19d   : > { %v1177_v34 = vrot.slane %v7153_v24, 7  ;;  %v1182_v38 = vrot.slane %v7155_v45, 7  ;;  %v9747_v5 = vsel %vm1589_vm4, %v1981_v27, %v1628_v53  ;;  %7843 = vmatpush3.bf16.msra.mxu1 %v8299_v47  ;;  %v1640_v26 = vshll.u32 %v8300_v50, 16 }
 0x19e   : > { %v1179_v28 = vrot.slane %v7154_v62, 7  ;;  %v1184_v40 = vrot.slane %v7156_v49, 7  ;;  %v999_v55 = vadd.f32 %v9728_v41, %v787_v10  ;;  %7844 = vmatprep.subr.bf16.mxu1 %v8310_v61  ;;  %4355 = vmatmul.mubr.bf16.gmra.mrb[20].mxu1 %v9702_v12  ;;  %v7157_v53 = vpack.c.bf16 %v998_v54, %v998_v54  ;;  %v1345_v62 = vld [vmem:[#allocation2 + $0x30] sm:$0xf] }
 0x19f   : > { %v1178_v56 = vrot.slane %v1177_v34, 4  ;;  %1297 = vst [vmem:[#allocation2 + $0x3c] sm:$0xe] %v1177_v34  ;;  %v1183_v2 = vrot.slane %v1182_v38, 4  ;;  %1300 = vst [vmem:[#allocation2 + $0x48] sm:$0xe] %v1182_v38  ;;  %4362 = vmatprep.mubr.bf16.mxu1 %v1994_v25  ;;  %v6844_v16 = vcombine.low %v1342_v33, %v1343_v6  ;;  %v7240_v45 = vunpack.c.l.bf16 %v7360_v19 }
 0x1a0   : > { %v1181_v30 = vrot.slane %v1179_v28, 4  ;;  %v1186_v47 = vrot.slane %v1184_v40, 4  ;;  %v7158_v43 = vpack.c.bf16 %v999_v55, %v999_v55  ;;  %v1633_v9 = vshrl.u32 %v9751_v58, 16  ;;  %v2549_v34 = vld [vmem:[#allocation2 + $0x84] sm:$0xf] }
 0x1a1   : > { %v1180_v44 = vsel %vm9386_vm2, %v1178_v56, %v1179_v28  ;;  %v1185_v60 = vsel %vm9386_vm2, %v1183_v2, %v1184_v40  ;;  %v1187_v46 = vrot.slane %v7157_v53, 7  ;;  %v1635_v12 = vshll.u32 %v9751_v58, 16  ;;  %7845 = vmatpush3.bf16.msra.mxu1 %v8310_v61  ;;  %v2552_v28 = vld [vmem:[#allocation2 + $0x90] sm:$0xf]  ;;  %v8353_v40 = vld [vmem:[#allocation11 + $0x1c0] sm:$0xff]  }
 0x1a2   : > { %1298 = vst [vmem:[#allocation2 + $0x40] sm:$0xf] %v1180_v44  ;;  %1299 = vst [vmem:[#allocation2 + $0x44] sm:$0x1] %v1181_v30  ;;  %v1189_v22 = vrot.slane %v7158_v43, 7  ;;  %v9761_v4 = vrot.slane %v1640_v26, 1  ;;  %7846 = vmatprep.subr.bf16.mxu1 %v8321_v32  ;;  %v7241_v27 = vunpack.c.h.bf16 %v7360_v19  ;;  %v788_v6 = vmul.f32 %v7240_v45, %v9660_v7  ;;  %7656 = vmatprep.subr.bf16.mxu0 %v8353_v40 }
 0x1a3   : > { %1301 = vst [vmem:[#allocation2 + $0x4c] sm:$0xf] %v1185_v60  ;;  %1302 = vst [vmem:[#allocation2 + $0x50] sm:$0x1] %v1186_v47  ;;  %v1644_v8 = vshrl.u32 %v8300_v50, 16  ;;  %v1188_v3 = vrot.slane %v1187_v46, 4  ;;  %v9769_v56 = vcombine.low %v1385_v29, %v1346_v31  ;;  %v9771_v2 = vcombine.low %v1345_v62, %v1346_v31 }
 0x1a4   : > { %1303 = vst [vmem:[#allocation2 + $0x54] sm:$0xe] %v1187_v46  ;;  %v1637_v24 = vrot.slane %v1635_v12, 1  ;;  %v1191_v61 = vrot.slane %v1189_v22, 4  ;;  %v2008_v25 = vshrl.u32 %v6844_v16, 16  ;;  %v2010_v10 = vshll.u32 %v6844_v16, 16 }
 0x1a5   : > { %v9763_v49 = vshll.u32 %v1644_v8, 16  ;;  %v1190_v38 = vsel %vm9386_vm2, %v1188_v3, %v1189_v22  ;;  %v789_v54 = vmul.f32 %v7241_v27, %v9664_v23  ;;  %7847 = vmatpush3.bf16.msra.mxu1 %v8321_v32  ;;  %v8515_v53 = vld [vmem:[#allocation2 + $0x70] sm:$0xf]  ;;  %v8516_v30 = vld [vmem:[#allocation2 + $0x7c] sm:$0xf]  ;;  %v9784_v44 = vadd.f32 %v9724_v51, %v788_v6 }
 0x1a6   : > { %v1638_v50 = vor.u32 %v1637_v24, %v1633_v9  ;;  %v2571_v55 = vld [vmem:[#allocation2 + $0x3c] sm:$0xe]  ;;  %1304 = vst [vmem:[#allocation2 + $0x58] sm:$0xf] %v1190_v38  ;;  %1305 = vst [vmem:[#allocation2 + $0x5c] sm:$0x1] %v1191_v61  ;;  %v9773_v26 = vcombine.low %v2543_v48, %v8515_v53  ;;  %v9775_v47 = vcombine.low %v2546_v57, %v8516_v30  ;;  %7848 = vmatprep.subr.bf16.mxu1 %v8332_v42 }
 0x1a7   : > { %v2531_v33 = vld [vmem:[#allocation2 + $0x3c] sm:$0xf]  ;;  %v8343_v7 = vld [vmem:[#allocation11 + $0xa8] sm:$0xff]   ;;  %v2572_v23 = vld [vmem:[#allocation2 + $0x48] sm:$0xe]  ;;  %4363 = vmatmul.mubr.bf16.gmra.mrb[24].mxu1 %v9747_v5  ;;  %v2012_v19 = vrot.slane %v2010_v10, 1  ;;  %v9789_v12 = vadd.f32 %v9728_v41, %v789_v54 }
 0x1a8   : > { %v2534_v32 = vld [vmem:[#allocation2 + $0x48] sm:$0xf]  ;;  %v9780_v43 = vsel %vm1589_vm4, %v1638_v50, %v9761_v4  ;;  %v2555_v29 = vld [vmem:[#allocation2 + $0x9c] sm:$0xf]  ;;  %v8518_v3 = vld [vmem:[#allocation2 + $0x94] sm:$0xf] }
 0x1a9   : > { %v2016_v60 = vshrl.u32 %v9780_v43, 16  ;;  %v2018_v46 = vshll.u32 %v9780_v43, 16  ;;  %v2532_v48 = vld [vmem:[#allocation2 + $0x40] sm:$0xf]  ;;  %v2013_v22 = vor.u32 %v2012_v19, %v2008_v25  ;;  %v8517_v16 = vld [vmem:[#allocation2 + $0x88] sm:$0xf]  ;;  %v9796_v24 = vcombine.low %v2552_v28, %v8518_v3  ;;  %7849 = vmatpush3.bf16.msra.mxu1 %v8332_v42 }
 0x1aa   : > { %v2535_v57 = vld [vmem:[#allocation2 + $0x4c] sm:$0xf]  ;;  %v9794_v51 = vcombine.low %v2549_v34, %v8517_v16  ;;  %v8283_v45 = vld [vmem:[#allocation2 + $0x44] ss:$0 sps:$4 sm:$0x11]   ;;  %v9798_v27 = vcombine.low %v2571_v55, %v2532_v48  ;;  %v6910_v41 = vcombine.low %v2531_v33, %v2532_v48  ;;  %7850 = vmatprep.subr.bf16.mxu1 %v8343_v7  ;;  %v8356_v61 = vld [vmem:[#allocation11 + $0xb0] sm:$0xff]   ;;  %v9809_v42 = vcombine.low %v2555_v29, %v9595_v15 }
 0x1ab   : > { %v9800_v31 = vcombine.low %v2572_v23, %v2535_v57  ;;  %v6912_v62 = vcombine.low %v2534_v32, %v2535_v57  ;;  %v8290_v25 = vld [vmem:[#allocation2 + $0x50] ss:$0 sps:$4 sm:$0x11]   ;;  %v2020_v10 = vrot.slane %v2018_v46, 1  ;;  %v9804_v38 = vsel %vm1589_vm4, %v2013_v22, %v9761_v4  ;;  %v2573_v40 = vld [vmem:[#allocation2 + $0x54] sm:$0xe] }
 0x1ac   : > { %v2832_v50 = vshrl.u32 %v9798_v27, 16  ;;  %v2834_v6 = vshll.u32 %v9798_v27, 16  ;;  %v2839_v54 = vshll.u32 %v8283_v45, 16  ;;  %v2843_v28 = vshrl.u32 %v8283_v45, 16 }
 0x1ad   : > { %v3224_v55 = vshrl.u32 %v6910_v41, 16  ;;  %v3226_v33 = vshll.u32 %v6910_v41, 16  ;;  %v2846_v53 = vshrl.u32 %v9800_v31, 16  ;;  %v2848_v4 = vshll.u32 %v9800_v31, 16  ;;  %v2538_v30 = vld [vmem:[#allocation2 + $0x58] sm:$0xf]  ;;  %7851 = vmatpush3.bf16.msra.mxu1 %v8343_v7 }
 0x1ae   : > { %v2836_v23 = vrot.slane %v2834_v6, 1  ;;  %v2841_v32 = vrot.slane %v2839_v54, 1  ;;  %v3239_v19 = vshll.u32 %v2843_v28, 16  ;;  %v2853_v15 = vshll.u32 %v8290_v25, 16  ;;  %7852 = vmatprep.subr.bf16.mxu1 %v8356_v61 }
 0x1af   : > { %v3228_v46 = vrot.slane %v3226_v33, 1  ;;  %v2850_v29 = vrot.slane %v2848_v4, 1  ;;  %v2857_v48 = vshrl.u32 %v8290_v25, 16  ;;  %v3256_v57 = vshrl.u32 %v6912_v62, 16 }
 0x1b0   : > { %v2837_v22 = vor.u32 %v2836_v23, %v2832_v50  ;;  %v3241_v16 = vrot.slane %v3239_v19, 1  ;;  %v2855_v3 = vrot.slane %v2853_v15, 1  ;;  %v3258_v45 = vshll.u32 %v6912_v62, 16  ;;  %v8296_v41 = vld [vmem:[#allocation2 + $0x5c] ss:$0 sps:$4 sm:$0x11]  }
 0x1b1   : > { %v3229_v5 = vor.u32 %v3228_v46, %v3224_v55  ;;  %v2851_v34 = vor.u32 %v2850_v29, %v2846_v53  ;;  %v3271_v9 = vshll.u32 %v2857_v48, 16  ;;  %v9815_v8 = vcombine.low %v2573_v40, %v2538_v30  ;;  %7853 = vmatpush3.bf16.msra.mxu1 %v8356_v61  ;;  %v2537_v23 = vld [vmem:[#allocation2 + $0x54] sm:$0xf] }
 0x1b2   : > { %v2842_v7 = vsel %vm1589_vm4, %v2837_v22, %v2841_v32  ;;  %v3260_v6 = vrot.slane %v3258_v45, 1  ;;  %v2867_v54 = vshll.u32 %v8296_v41, 16  ;;  %v2871_v28 = vshrl.u32 %v8296_v41, 16  ;;  %v8306_v41 = vld [vmem:[#allocation2 + $0x38] ss:$0 sps:$4 sm:$0x11]  }
 0x1b3   : > { %v3232_v33 = vshrl.u32 %v2842_v7, 16  ;;  %v3234_v4 = vshll.u32 %v2842_v7, 16  ;;  %v3230_v25 = vsel %vm1589_vm4, %v3229_v5, %v2841_v32  ;;  %v2856_v50 = vsel %vm1589_vm4, %v2851_v34, %v2855_v3 }
 0x1b4   : > { %v3264_v62 = vshrl.u32 %v2856_v50, 16  ;;  %v3266_v19 = vshll.u32 %v2856_v50, 16  ;;  %v3273_v55 = vrot.slane %v3271_v9, 1  ;;  %v3261_v53 = vor.u32 %v3260_v6, %v3256_v57 }
 0x1b5   : > { %v3236_v15 = vrot.slane %v3234_v4, 1  ;;  %v2860_v40 = vshrl.u32 %v9815_v8, 16  ;;  %v2862_v61 = vshll.u32 %v9815_v8, 16  ;;  %v2869_v46 = vrot.slane %v2867_v54, 1 }
 0x1b6   : > { %v3268_v29 = vrot.slane %v3266_v19, 1  ;;  %v9823_v48 = vsel %vm1589_vm4, %v3261_v53, %v2855_v3  ;;  %v9825_v22 = vshll.u32 %v2871_v28, 16  ;;  %v6914_v5 = vcombine.low %v2537_v23, %v2538_v30  ;;  %v8309_v53 = vld [vmem:[#allocation2 + $0x74] ss:$0 sps:$4 sm:$0x11]  }
 0x1b7   : > { %v3237_v32 = vor.u32 %v3236_v15, %v3232_v33  ;;  %v2864_v34 = vrot.slane %v2862_v61, 1  ;;  %v2021_v45 = vor.u32 %v2020_v10, %v2016_v60  ;;  %v11041_v9 = vpack.c.bf16 %v9784_v44, %v9784_v44  ;;  %v1386_v61 = vld [vmem:[#allocation2 + $0x3c] sm:$0xe] }
 0x1b8   : > { %v3269_v7 = vor.u32 %v3268_v29, %v3264_v62  ;;  %v3305_v6 = vrot.slane %v9825_v22, 1  ;;  %v3288_v54 = vshrl.u32 %v6914_v5, 16  ;;  %v3290_v4 = vshll.u32 %v6914_v5, 16 }
 0x1b9   : > { %v1192_v57 = vrot.slane %v11041_v9, 7  ;;  %v3242_v3 = vsel %vm1589_vm4, %v3237_v32, %v3241_v16  ;;  %v2865_v28 = vor.u32 %v2864_v34, %v2860_v40  ;;  %v11042_v30 = vrot.slane %v9763_v49, 1  ;;  %v1349_v32 = vld [vmem:[#allocation2 + $0x40] sm:$0xf] }
 0x1ba   : > { %3912 = vmatprep.mubr.bf16.mxu0 %v3242_v3  ;;  %v3274_v43 = vsel %vm1589_vm4, %v3269_v7, %v3273_v55  ;;  %v3292_v44 = vrot.slane %v3290_v4, 1  ;;  %v11043_v60 = vpack.c.bf16 %v9789_v12, %v9789_v12  ;;  %v1649_v23 = vshll.u32 %v9769_v56, 16  ;;  %v8375_v4 = vld [vmem:[#allocation11 + $0xb8] sm:$0xff]  }
 0x1bb   : > { %v2026_v33 = vsel %vm1589_vm4, %v2021_v45, %v11042_v30  ;;  %v1193_v50 = vrot.slane %v1192_v57, 4  ;;  %1306 = vst [vmem:[#allocation2 + $0x60] sm:$0xe] %v1192_v57  ;;  %3913 = vmatmul.mubr.bf16.gmra.mrb[16].mxu0 %v3230_v25  ;;  %v2870_v16 = vsel %vm1589_vm4, %v2865_v28, %v2869_v46  ;;  %v1654_v49 = vshll.u32 %v8306_v41, 16  ;;  %7854 = vmatprep.subr.bf16.mxu1 %v8375_v4 }
 0x1bc   : > { %4370 = vmatprep.mubr.bf16.mxu1 %v2026_v33  ;;  %v1194_v10 = vrot.slane %v11043_v60, 7  ;;  %v1658_v62 = vshrl.u32 %v8306_v41, 16  ;;  %v2040_v19 = vshrl.u32 %v9771_v2, 16  ;;  %3920 = vmatprep.mubr.bf16.mxu0 %v3274_v43  ;;  %v3296_v55 = vshrl.u32 %v2870_v16, 16  ;;  %v1348_v60 = vld [vmem:[#allocation2 + $0x3c] sm:$0xf] }
 0x1bd   : > { %4371 = vmatmul.mubr.bf16.gmra.mrb[28].mxu1 %v9804_v38  ;;  %v3298_v15 = vshll.u32 %v2870_v16, 16  ;;  %v3293_v40 = vor.u32 %v3292_v44, %v3288_v54  ;;  %v1651_v25 = vrot.slane %v1649_v23, 1  ;;  %v1656_v22 = vrot.slane %v1654_v49, 1  ;;  %v9855_v33 = vld [vmem:[#allocation2 + $0x44] ss:$0 sps:$4 sm:$0x11]  }
 0x1be   : > { %v1195_v12 = vsel %vm9386_vm2, %v1193_v50, %v1194_v10  ;;  %v1196_v29 = vrot.slane %v1194_v10, 4  ;;  %v2055_v5 = vshll.u32 %v1658_v62, 16  ;;  %v2042_v45 = vshll.u32 %v9771_v2, 16  ;;  %v9863_v10 = vld [vmem:[#allocation2 + $0x4c] sm:$0xf]  ;;  %7855 = vmatpush3.bf16.msra.mxu1 %v8375_v4 }
 0x1bf   : > { %1307 = vst [vmem:[#allocation2 + $0x64] sm:$0xf] %v1195_v12  ;;  %v3300_v38 = vrot.slane %v3298_v15, 1  ;;  %v9848_v34 = vsel %vm1589_vm4, %v3293_v40, %v2869_v46  ;;  %v2888_v9 = vshrl.u32 %v9432_v52, 16  ;;  %v11044_v57 = vshrl.u32 %v9769_v56, 16 }
 0x1c0   : > { %1308 = vst [vmem:[#allocation2 + $0x68] sm:$0x1] %v1196_v29  ;;  %v2057_v41 = vrot.slane %v2055_v5, 1  ;;  %v2890_v7 = vshll.u32 %v9432_v52, 16  ;;  %v2895_v54 = vshll.u32 %v8309_v53, 16  ;;  %v2044_v28 = vrot.slane %v2042_v45, 1 }
 0x1c1   : > { %v1652_v13 = vor.u32 %v1651_v25, %v11044_v57  ;;  %v3301_v3 = vor.u32 %v3300_v38, %v3296_v55  ;;  %v2899_v30 = vshrl.u32 %v8309_v53, 16  ;;  %v9857_v46 = vcombine.low %v1386_v61, %v1349_v32  ;;  %v1387_v61 = vld [vmem:[#allocation2 + $0x48] sm:$0xe] }
 0x1c2   : > { %v2892_v50 = vrot.slane %v2890_v7, 1  ;;  %v9860_v43 = vrot.slane %v2895_v54, 1  ;;  %v3352_v44 = vshrl.u32 %v9773_v26, 16  ;;  %v2574_v23 = vld [vmem:[#allocation2 + $0x60] sm:$0xe]  ;;  %v2045_v53 = vor.u32 %v2044_v28, %v2040_v19 }
 0x1c3   : > { %v1657_v2 = vsel %vm1589_vm4, %v1652_v13, %v1656_v22  ;;  %v3306_v52 = vsel %vm1589_vm4, %v3301_v3, %v3305_v6  ;;  %v2540_v16 = vld [vmem:[#allocation2 + $0x60] sm:$0xf]  ;;  %3921 = vmatmul.mubr.bf16.gmra.mrb[20].mxu0 %v9823_v48  ;;  %v3367_v15 = vshll.u32 %v2899_v30, 16  ;;  %v3354_v40 = vshll.u32 %v9773_v26, 16 }
 0x1c4   : > { %v2048_v49 = vshrl.u32 %v1657_v2, 16  ;;  %v2050_v62 = vshll.u32 %v1657_v2, 16  ;;  %v2893_v55 = vor.u32 %v2892_v50, %v2888_v9  ;;  %v1661_v12 = vshrl.u32 %v9857_v46, 16  ;;  %3928 = vmatprep.mubr.bf16.mxu0 %v3306_v52 }
 0x1c5   : > { %v2046_v6 = vsel %vm1589_vm4, %v2045_v53, %v1656_v22  ;;  %v1663_v5 = vshll.u32 %v9857_v46, 16  ;;  %v1668_v38 = vshll.u32 %v9855_v33, 16  ;;  %v3369_v9 = vrot.slane %v3367_v15, 1 }
 0x1c6   : > { %v2541_v29 = vld [vmem:[#allocation2 + $0x64] sm:$0xf]  ;;  %v2052_v25 = vrot.slane %v2050_v62, 1  ;;  %v2898_v48 = vsel %vm1589_vm4, %v2893_v55, %v9860_v43  ;;  %v6848_v7 = vcombine.low %v1348_v60, %v1349_v32  ;;  %v9877_v54 = vcombine.low %v1387_v61, %v9863_v10 }
 0x1c7   : > { %v9872_v19 = vcombine.low %v2574_v23, %v2541_v29  ;;  %v6916_v45 = vcombine.low %v2540_v16, %v2541_v29  ;;  %v8303_v26 = vld [vmem:[#allocation2 + $0x68] ss:$0 sps:$4 sm:$0x11]   ;;  %v3360_v13 = vshrl.u32 %v2898_v48, 16  ;;  %v3362_v52 = vshll.u32 %v2898_v48, 16 }
 0x1c8   : > { %v2053_v57 = vor.u32 %v2052_v25, %v2048_v49  ;;  %v2881_v30 = vshll.u32 %v8303_v26, 16  ;;  %v2885_v2 = vshrl.u32 %v8303_v26, 16  ;;  %v3356_v49 = vrot.slane %v3354_v40, 1 }
 0x1c9   : > { %v2874_v22 = vshrl.u32 %v9872_v19, 16  ;;  %v2876_v4 = vshll.u32 %v9872_v19, 16  ;;  %v3320_v3 = vshrl.u32 %v6916_v45, 16  ;;  %v3322_v28 = vshll.u32 %v6916_v45, 16 }
 0x1ca   : > { %v2058_v50 = vsel %vm1589_vm4, %v2053_v57, %v2057_v41  ;;  %v1665_v62 = vrot.slane %v1663_v5, 1  ;;  %v2883_v32 = vrot.slane %v2881_v30, 1  ;;  %v3335_v60 = vshll.u32 %v2885_v2, 16  ;;  %v8314_v45 = vld [vmem:[#allocation2 + $0x80] ss:$0 sps:$4 sm:$0x11]  }
 0x1cb   : > { %v2878_v23 = vrot.slane %v2876_v4, 1  ;;  %v3324_v16 = vrot.slane %v3322_v28, 1  ;;  %4378 = vmatprep.mubr.bf16.mxu1 %v2058_v50  ;;  %v3364_v53 = vrot.slane %v3362_v52, 1  ;;  %v1670_v55 = vrot.slane %v1668_v38, 1  ;;  %3929 = vmatmul.mubr.bf16.gmra.mrb[24].mxu0 %v9848_v34 }
 0x1cc   : > { %4379 = vmatmul.mubr.bf16.gmra.mrb[32].mxu1 %v2046_v6  ;;  %v3357_v29 = vor.u32 %v3356_v49, %v3352_v44  ;;  %v1666_v25 = vor.u32 %v1665_v62, %v1661_v12  ;;  %v3337_v26 = vrot.slane %v3335_v60, 1  ;;  %v1672_v48 = vshrl.u32 %v9855_v33, 16  ;;  %v8316_v28 = vld [vmem:[#allocation2 + $0x50] ss:$0 sps:$4 sm:$0x11]  }
 0x1cd   : > { %v2879_v15 = vor.u32 %v2878_v23, %v2874_v22  ;;  %v3325_v61 = vor.u32 %v3324_v16, %v3320_v3  ;;  %v3365_v41 = vor.u32 %v3364_v53, %v3360_v13  ;;  %v2072_v57 = vshrl.u32 %v6848_v7, 16 }
 0x1ce   : > { %v9888_v6 = vsel %vm1589_vm4, %v3357_v29, %v9860_v43  ;;  %v1671_v34 = vsel %vm1589_vm4, %v1666_v25, %v1670_v55  ;;  %v2087_v13 = vshll.u32 %v1672_v48, 16  ;;  %v2074_v3 = vshll.u32 %v6848_v7, 16  ;;  %v1351_v29 = vld [vmem:[#allocation2 + $0x48] sm:$0xf] }
 0x1cf   : > { %v2884_v40 = vsel %vm1589_vm4, %v2879_v15, %v2883_v32  ;;  %v3326_v5 = vsel %vm1589_vm4, %v3325_v61, %v2883_v32  ;;  %v3370_v44 = vsel %vm1589_vm4, %v3365_v41, %v3369_v9  ;;  %v2080_v12 = vshrl.u32 %v1671_v34, 16  ;;  %v8392_v48 = vld [vmem:[#allocation11 + $0x200] sm:$0xff]  }
 0x1d0   : > { %v3328_v38 = vshrl.u32 %v2884_v40, 16  ;;  %v3330_v22 = vshll.u32 %v2884_v40, 16  ;;  %v2082_v4 = vshll.u32 %v1671_v34, 16  ;;  %v2902_v33 = vshrl.u32 %v9434_v35, 16  ;;  %7888 = vmatprep.subr.bf16.mxu1 %v8392_v48 }
 0x1d1   : > { %v2904_v2 = vshll.u32 %v9434_v35, 16  ;;  %v2909_v50 = vshll.u32 %v8314_v45, 16  ;;  %v2913_v52 = vshrl.u32 %v8314_v45, 16  ;;  %v2089_v23 = vrot.slane %v2087_v13, 1 }
 0x1d2   : > { %v3332_v30 = vrot.slane %v3330_v22, 1  ;;  %v2084_v43 = vrot.slane %v2082_v4, 1  ;;  %v2076_v16 = vrot.slane %v2074_v3, 1  ;;  %v3384_v49 = vshrl.u32 %v9775_v47, 16 }
 0x1d3   : > { %v2906_v32 = vrot.slane %v2904_v2, 1  ;;  %v2911_v9 = vrot.slane %v2909_v50, 1  ;;  %v3399_v60 = vshll.u32 %v2913_v52, 16  ;;  %v3386_v7 = vshll.u32 %v9775_v47, 16 }
 0x1d4   : > { %v3333_v62 = vor.u32 %v3332_v30, %v3328_v38  ;;  %v2085_v53 = vor.u32 %v2084_v43, %v2080_v12  ;;  %v2077_v15 = vor.u32 %v2076_v16, %v2072_v57  ;;  %v1675_v61 = vshrl.u32 %v9877_v54, 16  ;;  %v8319_v4 = vld [vmem:[#allocation2 + $0x8c] ss:$0 sps:$4 sm:$0x11]  }
 0x1d5   : > { %v2907_v25 = vor.u32 %v2906_v32, %v2902_v33  ;;  %v3401_v45 = vrot.slane %v3399_v60, 1  ;;  %v1677_v41 = vshll.u32 %v9877_v54, 16  ;;  %v3388_v38 = vrot.slane %v3386_v7, 1  ;;  %v8322_v16 = vld [vmem:[#allocation2 + $0x5c] ss:$0 sps:$4 sm:$0x11]  }
 0x1d6   : > { %v3338_v35 = vsel %vm1589_vm4, %v3333_v62, %v3337_v26  ;;  %v2090_v40 = vsel %vm1589_vm4, %v2085_v53, %v2089_v23  ;;  %v2078_v34 = vsel %vm1589_vm4, %v2077_v15, %v1670_v55  ;;  %v1682_v22 = vshll.u32 %v8316_v28, 16 }
 0x1d7   : > { %3936 = vmatprep.mubr.bf16.mxu0 %v3338_v35  ;;  %4386 = vmatprep.mubr.bf16.mxu1 %v2090_v40  ;;  %v2912_v47 = vsel %vm1589_vm4, %v2907_v25, %v2911_v9  ;;  %v1679_v57 = vrot.slane %v1677_v41, 1  ;;  %v1686_v12 = vshrl.u32 %v8316_v28, 16  ;;  %v6850_v26 = vcombine.low %v1351_v29, %v9863_v10  ;;  %v1355_v10 = vld [vmem:[#allocation2 + $0x58] sm:$0xf] }
 0x1d8   : > { %3937 = vmatmul.mubr.bf16.gmra.mrb[28].mxu0 %v3326_v5  ;;  %4387 = vmatmul.mubr.bf16.gmra.mrb[36].mxu1 %v2078_v34  ;;  %v3392_v13 = vshrl.u32 %v2912_v47, 16  ;;  %v3394_v3 = vshll.u32 %v2912_v47, 16  ;;  %v3389_v33 = vor.u32 %v3388_v38, %v3384_v49  ;;  %v1684_v30 = vrot.slane %v1682_v22, 1 }
 0x1d9   : > { %3944 = vmatprep.mubr.bf16.mxu0 %v3370_v44  ;;  %v1680_v2 = vor.u32 %v1679_v57, %v1675_v61  ;;  %v2119_v50 = vshll.u32 %v1686_v12, 16  ;;  %v2104_v55 = vshrl.u32 %v6850_v26, 16  ;;  %v2106_v52 = vshll.u32 %v6850_v26, 16  ;;  %v1388_v61 = vld [vmem:[#allocation2 + $0x54] sm:$0xe] }
 0x1da   : > { %v3396_v5 = vrot.slane %v3394_v3, 1  ;;  %v3390_v43 = vsel %vm1589_vm4, %v3389_v33, %v2911_v9  ;;  %v2916_v23 = vshrl.u32 %v9454_v14, 16  ;;  %v2918_v28 = vshll.u32 %v9454_v14, 16  ;;  %v8325_v57 = vld [vmem:[#allocation2 + $0x98] ss:$0 sps:$4 sm:$0x11]  }
 0x1db   : > { %v1685_v44 = vsel %vm1589_vm4, %v1680_v2, %v1684_v30  ;;  %v2121_v62 = vrot.slane %v2119_v50, 1  ;;  %v2108_v32 = vrot.slane %v2106_v52, 1  ;;  %v2923_v49 = vshll.u32 %v8319_v4, 16 }
 0x1dc   : > { %v3397_v60 = vor.u32 %v3396_v5, %v3392_v13  ;;  %v2112_v53 = vshrl.u32 %v1685_v44, 16  ;;  %v2114_v15 = vshll.u32 %v1685_v44, 16  ;;  %v2920_v7 = vrot.slane %v2918_v28, 1  ;;  %v1389_v44 = vld [vmem:[#allocation2 + $0x60] sm:$0xe] }
 0x1dd   : > { %v2109_v29 = vor.u32 %v2108_v32, %v2104_v55  ;;  %v2925_v35 = vrot.slane %v2923_v49, 1  ;;  %v2927_v25 = vshrl.u32 %v8319_v4, 16  ;;  %v3416_v9 = vshrl.u32 %v9794_v51, 16 }
 0x1de   : > { %v3402_v41 = vsel %vm1589_vm4, %v3397_v60, %v3401_v45  ;;  %v2116_v14 = vrot.slane %v2114_v15, 1  ;;  %v2921_v48 = vor.u32 %v2920_v7, %v2916_v23  ;;  %v3418_v40 = vshll.u32 %v9794_v51, 16  ;;  %v1354_v45 = vld [vmem:[#allocation2 + $0x54] sm:$0xf] }
 0x1df   : > { %v2110_v34 = vsel %vm1589_vm4, %v2109_v29, %v1684_v30  ;;  %v3431_v38 = vshll.u32 %v2927_v25, 16  ;;  %v9912_v22 = vcombine.low %v1388_v61, %v1355_v10  ;;  %v1696_v47 = vshll.u32 %v8322_v16, 16 }
 0x1e0   : > { %3945 = vmatmul.mubr.bf16.gmra.mrb[32].mxu0 %v9888_v6  ;;  %v2117_v12 = vor.u32 %v2116_v14, %v2112_v53  ;;  %v2926_v26 = vsel %vm1589_vm4, %v2921_v48, %v2925_v35  ;;  %v3420_v4 = vrot.slane %v3418_v40, 1  ;;  %v1700_v13 = vshrl.u32 %v8322_v16, 16  ;;  %v1358_v53 = vld [vmem:[#allocation2 + $0x64] sm:$0xf] }
 0x1e1   : > { %3952 = vmatprep.mubr.bf16.mxu0 %v3402_v41  ;;  %v3424_v3 = vshrl.u32 %v2926_v26, 16  ;;  %v3426_v33 = vshll.u32 %v2926_v26, 16  ;;  %v3433_v2 = vrot.slane %v3431_v38, 1  ;;  %v1689_v51 = vshrl.u32 %v9912_v22, 16 }
 0x1e2   : > { %v2122_v6 = vsel %vm1589_vm4, %v2117_v12, %v2121_v62  ;;  %v3421_v30 = vor.u32 %v3420_v4, %v3416_v9  ;;  %v1691_v50 = vshll.u32 %v9912_v22, 16  ;;  %v1698_v55 = vrot.slane %v1696_v47, 1  ;;  %v8327_v40 = vld [vmem:[#allocation2 + $0x68] ss:$0 sps:$4 sm:$0x11]  }
 0x1e3   : > { %4394 = vmatprep.mubr.bf16.mxu1 %v2122_v6  ;;  %v3428_v52 = vrot.slane %v3426_v33, 1  ;;  %v2151_v5 = vshll.u32 %v1700_v13, 16  ;;  %v6852_v23 = vcombine.low %v1354_v45, %v1355_v10  ;;  %v2930_v28 = vshrl.u32 %v9474_v63, 16  ;;  %v1357_v12 = vld [vmem:[#allocation2 + $0x60] sm:$0xf] }
 0x1e4   : > { %4395 = vmatmul.mubr.bf16.gmra.mrb[40].mxu1 %v2110_v34  ;;  %v3422_v16 = vsel %vm1589_vm4, %v3421_v30, %v2925_v35  ;;  %v1693_v32 = vrot.slane %v1691_v50, 1  ;;  %v2932_v49 = vshll.u32 %v9474_v63, 16  ;;  %v2937_v60 = vshll.u32 %v8325_v57, 16 }
 0x1e5   : > { %v3429_v62 = vor.u32 %v3428_v52, %v3424_v3  ;;  %v2153_v15 = vrot.slane %v2151_v5, 1  ;;  %v2136_v7 = vshrl.u32 %v6852_v23, 16  ;;  %v2138_v61 = vshll.u32 %v6852_v23, 16  ;;  %v8330_v23 = vld [vmem:[#allocation2 + $0xa4] ss:$0 sps:$4 sm:$0x11]  }
 0x1e6   : > { %v1694_v29 = vor.u32 %v1693_v32, %v1689_v51  ;;  %v2934_v25 = vrot.slane %v2932_v49, 1  ;;  %v2939_v9 = vrot.slane %v2937_v60, 1  ;;  %v2941_v41 = vshrl.u32 %v8325_v57, 16 }
 0x1e7   : > { %v3434_v10 = vsel %vm1589_vm4, %v3429_v62, %v3433_v2  ;;  %v2140_v14 = vrot.slane %v2138_v61, 1  ;;  %v3448_v48 = vshrl.u32 %v9796_v24, 16  ;;  %v3450_v35 = vshll.u32 %v9796_v24, 16 }
 0x1e8   : > { %3953 = vmatmul.mubr.bf16.gmra.mrb[36].mxu0 %v3390_v43  ;;  %v1699_v63 = vsel %vm1589_vm4, %v1694_v29, %v1698_v55  ;;  %v2935_v34 = vor.u32 %v2934_v25, %v2930_v28  ;;  %v3463_v38 = vshll.u32 %v2941_v41, 16  ;;  %v9925_v47 = vcombine.low %v1389_v44, %v1358_v53  ;;  %v1361_v29 = vld [vmem:[#allocation2 + $0x70] sm:$0xf]  ;;  %v1390_v25 = vld [vmem:[#allocation2 + $0x6c] sm:$0xe] }
 0x1e9   : > { %3960 = vmatprep.mubr.bf16.mxu0 %v3434_v10  ;;  %v2144_v26 = vshrl.u32 %v1699_v63, 16  ;;  %v2146_v4 = vshll.u32 %v1699_v63, 16  ;;  %v2141_v57 = vor.u32 %v2140_v14, %v2136_v7  ;;  %v3452_v43 = vrot.slane %v3450_v35, 1 }
 0x1ea   : > { %v2940_v13 = vsel %vm1589_vm4, %v2935_v34, %v2939_v9  ;;  %v3465_v45 = vrot.slane %v3463_v38, 1  ;;  %v1703_v3 = vshrl.u32 %v9925_v47, 16  ;;  %v1705_v24 = vshll.u32 %v9925_v47, 16 }
 0x1eb   : > { %v2148_v33 = vrot.slane %v2146_v4, 1  ;;  %v2142_v2 = vsel %vm1589_vm4, %v2141_v57, %v1698_v55  ;;  %v3456_v51 = vshrl.u32 %v2940_v13, 16  ;;  %v3458_v6 = vshll.u32 %v2940_v13, 16 }
 0x1ec   : > { %v3453_v30 = vor.u32 %v3452_v43, %v3448_v48  ;;  %v1707_v50 = vrot.slane %v1705_v24, 1  ;;  %v1710_v52 = vshll.u32 %v8327_v40, 16  ;;  %v1714_v5 = vshrl.u32 %v8327_v40, 16  ;;  %v8333_v48 = vld [vmem:[#allocation2 + $0x74] ss:$0 sps:$4 sm:$0x11]  }
 0x1ed   : > { %v2149_v28 = vor.u32 %v2148_v33, %v2144_v26  ;;  %v3460_v44 = vrot.slane %v3458_v6, 1  ;;  %v6854_v32 = vcombine.low %v1357_v12, %v1358_v53  ;;  %v2944_v49 = vshrl.u32 %v9603_v21, 16 }
 0x1ee   : > { %v3454_v60 = vsel %vm1589_vm4, %v3453_v30, %v2939_v9  ;;  %v1708_v62 = vor.u32 %v1707_v50, %v1703_v3  ;;  %v1712_v7 = vrot.slane %v1710_v52, 1  ;;  %v2183_v61 = vshll.u32 %v1714_v5, 16  ;;  %v8336_v52 = vld [vmem:[#allocation2 + $0xb0] ss:$0 sps:$4 sm:$0x11]  }
 0x1ef   : > { %v2154_v55 = vsel %vm1589_vm4, %v2149_v28, %v2153_v15  ;;  %v3461_v41 = vor.u32 %v3460_v44, %v3456_v51  ;;  %v2168_v10 = vshrl.u32 %v6854_v32, 16  ;;  %v2170_v14 = vshll.u32 %v6854_v32, 16 }
 0x1f0   : > { %3961 = vmatmul.mubr.bf16.gmra.mrb[40].mxu0 %v3422_v16  ;;  %4402 = vmatprep.mubr.bf16.mxu1 %v2154_v55  ;;  %v1713_v35 = vsel %vm1589_vm4, %v1708_v62, %v1712_v7  ;;  %v2185_v53 = vrot.slane %v2183_v61, 1  ;;  %v2946_v40 = vshll.u32 %v9603_v21, 16  ;;  %v2951_v63 = vshll.u32 %v8330_v23, 16  ;;  %v2558_v61 = vld [vmem:[#allocation2 + $0xa8] sm:$0xf] }
 0x1f1   : > { %4403 = vmatmul.mubr.bf16.gmra.mrb[44].mxu1 %v2142_v2  ;;  %v3466_v9 = vsel %vm1589_vm4, %v3461_v41, %v3465_v45  ;;  %v2176_v34 = vshrl.u32 %v1713_v35, 16  ;;  %v2178_v38 = vshll.u32 %v1713_v35, 16  ;;  %v2172_v12 = vrot.slane %v2170_v14, 1  ;;  %v1360_v45 = vld [vmem:[#allocation2 + $0x6c] sm:$0xf] }
 0x1f2   : > { %3968 = vmatprep.mubr.bf16.mxu0 %v3466_v9  ;;  %v2948_v16 = vrot.slane %v2946_v40, 1  ;;  %v2953_v15 = vrot.slane %v2951_v63, 1  ;;  %v2955_v26 = vshrl.u32 %v8330_v23, 16  ;;  %v3480_v4 = vshrl.u32 %v9809_v42, 16  ;;  %v1391_v40 = vld [vmem:[#allocation2 + $0x78] sm:$0xe] }
 0x1f3   : > { %v2180_v57 = vrot.slane %v2178_v38, 1  ;;  %v2173_v43 = vor.u32 %v2172_v12, %v2168_v10  ;;  %v3482_v13 = vshll.u32 %v9809_v42, 16  ;;  %v9939_v3 = vcombine.low %v1390_v25, %v1361_v29  ;;  %v1364_v10 = vld [vmem:[#allocation2 + $0x7c] sm:$0xf] }
 0x1f4   : > { %v2949_v21 = vor.u32 %v2948_v16, %v2944_v49  ;;  %v3495_v24 = vshll.u32 %v2955_v26, 16  ;;  %v1724_v33 = vshll.u32 %v8333_v48, 16  ;;  %v1728_v2 = vshrl.u32 %v8333_v48, 16 }
 0x1f5   : > { %v2181_v51 = vor.u32 %v2180_v57, %v2176_v34  ;;  %v2174_v6 = vsel %vm1589_vm4, %v2173_v43, %v1712_v7  ;;  %v3484_v30 = vrot.slane %v3482_v13, 1  ;;  %v1717_v50 = vshrl.u32 %v9939_v3, 16  ;;  %v8519_v57 = vld [vmem:[#allocation2 + $0xac] sm:$0xf] }
 0x1f6   : > { %v2954_v5 = vsel %vm1589_vm4, %v2949_v21, %v2953_v15  ;;  %v3497_v23 = vrot.slane %v3495_v24, 1  ;;  %v1719_v28 = vshll.u32 %v9939_v3, 16  ;;  %v1726_v42 = vrot.slane %v1724_v33, 1  ;;  %v8338_v33 = vld [vmem:[#allocation2 + $0x80] ss:$0 sps:$4 sm:$0x11]  }
 0x1f7   : > { %v2186_v44 = vsel %vm1589_vm4, %v2181_v51, %v2185_v53  ;;  %v3488_v32 = vshrl.u32 %v2954_v5, 16  ;;  %v3490_v49 = vshll.u32 %v2954_v5, 16  ;;  %v3485_v62 = vor.u32 %v3484_v30, %v3480_v4 }
 0x1f8   : > { %3969 = vmatmul.mubr.bf16.gmra.mrb[44].mxu0 %v3454_v60  ;;  %4410 = vmatprep.mubr.bf16.mxu1 %v2186_v44  ;;  %v1721_v25 = vrot.slane %v1719_v28, 1  ;;  %v2215_v7 = vshll.u32 %v1728_v2, 16  ;;  %v6856_v55 = vcombine.low %v1360_v45, %v1361_v29  ;;  %v2958_v41 = vshrl.u32 %v9605_v11, 16  ;;  %v1363_v28 = vld [vmem:[#allocation2 + $0x78] sm:$0xf] }
 0x1f9   : > { %4411 = vmatmul.mubr.bf16.gmra.mrb[48].mxu1 %v2174_v6  ;;  %v3492_v14 = vrot.slane %v3490_v49, 1  ;;  %v3486_v48 = vsel %vm1589_vm4, %v3485_v62, %v2953_v15  ;;  %v2960_v35 = vshll.u32 %v9605_v11, 16  ;;  %v2965_v60 = vshll.u32 %v8336_v52, 16 }
 0x1fa   : > { %v1722_v53 = vor.u32 %v1721_v25, %v1717_v50  ;;  %v2217_v63 = vrot.slane %v2215_v7, 1  ;;  %v2200_v9 = vshrl.u32 %v6856_v55, 16  ;;  %v2202_v34 = vshll.u32 %v6856_v55, 16  ;;  %v8341_v55 = vld [vmem:[#allocation2 + $0xbc] ss:$0 sps:$4 sm:$0x11]  }
 0x1fb   : > { %v3493_v38 = vor.u32 %v3492_v14, %v3488_v32  ;;  %v2962_v12 = vrot.slane %v2960_v35, 1  ;;  %v2967_v16 = vrot.slane %v2965_v60, 1  ;;  %v2969_v26 = vshrl.u32 %v8336_v52, 16 }
 0x1fc   : > { %v1727_v29 = vsel %vm1589_vm4, %v1722_v53, %v1726_v42  ;;  %v2204_v4 = vrot.slane %v2202_v34, 1  ;;  %v6928_v43 = vcombine.low %v2558_v61, %v8519_v57  ;;  %v9950_v13 = vcombine.low %v1391_v40, %v1364_v10  ;;  %v1367_v34 = vld [vmem:[#allocation2 + $0x88] sm:$0xf] }
 0x1fd   : > { %v3498_v15 = vsel %vm1589_vm4, %v3493_v38, %v3497_v23  ;;  %v2208_v11 = vshrl.u32 %v1727_v29, 16  ;;  %v2210_v21 = vshll.u32 %v1727_v29, 16  ;;  %v2963_v24 = vor.u32 %v2962_v12, %v2958_v41  ;;  %v8344_v29 = vld [vmem:[#allocation2 + $0x8c] ss:$0 sps:$4 sm:$0x11]  }
 0x1fe   : > { %3976 = vmatprep.mubr.bf16.mxu0 %v3498_v15  ;;  %v2205_v2 = vor.u32 %v2204_v4, %v2200_v9  ;;  %v3527_v45 = vshll.u32 %v2969_v26, 16  ;;  %v3512_v51 = vshrl.u32 %v6928_v43, 16  ;;  %v3514_v6 = vshll.u32 %v6928_v43, 16  ;;  %v2561_v15 = vld [vmem:[#allocation2 + $0xb4] sm:$0xf] }
 0x1ff   : > { %v2212_v30 = vrot.slane %v2210_v21, 1  ;;  %v2968_v50 = vsel %vm1589_vm4, %v2963_v24, %v2967_v16  ;;  %v1731_v52 = vshrl.u32 %v9950_v13, 16  ;;  %v1733_v5 = vshll.u32 %v9950_v13, 16 }
 0x200   : > { %3977 = vmatmul.mubr.bf16.gmra.mrb[48].mxu0 %v3486_v48  ;;  %v2206_v23 = vsel %vm1589_vm4, %v2205_v2, %v1726_v42  ;;  %v3520_v44 = vshrl.u32 %v2968_v50, 16  ;;  %v3522_v32 = vshll.u32 %v2968_v50, 16  ;;  %v3529_v49 = vrot.slane %v3527_v45, 1 }
 0x201   : > { %v2213_v62 = vor.u32 %v2212_v30, %v2208_v11  ;;  %v3516_v61 = vrot.slane %v3514_v6, 1  ;;  %v1735_v25 = vrot.slane %v1733_v5, 1  ;;  %v1738_v7 = vshll.u32 %v8338_v33, 16 }
 0x202   : > { %v3524_v41 = vrot.slane %v3522_v32, 1  ;;  %v1742_v14 = vshrl.u32 %v8338_v33, 16  ;;  %v6858_v48 = vcombine.low %v1363_v28, %v1364_v10  ;;  %v2972_v35 = vshrl.u32 %v9620_v0, 16 }
 0x203   : > { %v2218_v60 = vsel %vm1589_vm4, %v2213_v62, %v2217_v63  ;;  %v3517_v40 = vor.u32 %v3516_v61, %v3512_v51  ;;  %v1736_v53 = vor.u32 %v1735_v25, %v1731_v52  ;;  %v1740_v9 = vrot.slane %v1738_v7, 1  ;;  %v1392_v63 = vld [vmem:[#allocation2 + $0x84] sm:$0xe] }
 0x204   : > { %4418 = vmatprep.mubr.bf16.mxu1 %v2218_v60  ;;  %v3525_v42 = vor.u32 %v3524_v41, %v3520_v44  ;;  %v2247_v38 = vshll.u32 %v1742_v14, 16  ;;  %v2232_v12 = vshrl.u32 %v6858_v48, 16  ;;  %v2234_v26 = vshll.u32 %v6858_v48, 16  ;;  %v1366_v25 = vld [vmem:[#allocation2 + $0x84] sm:$0xf] }
 0x205   : > { %4419 = vmatmul.mubr.bf16.gmra.mrb[52].mxu1 %v2206_v23  ;;  %v3518_v4 = vsel %vm1589_vm4, %v3517_v40, %v2967_v16  ;;  %v1741_v57 = vsel %vm1589_vm4, %v1736_v53, %v1740_v9  ;;  %v2974_v10 = vshll.u32 %v9620_v0, 16  ;;  %v2979_v43 = vshll.u32 %v8341_v55, 16  ;;  %v8520_v16 = vld [vmem:[#allocation2 + $0xb8] sm:$0xf] }
 0x206   : > { %v3530_v11 = vsel %vm1589_vm4, %v3525_v42, %v3529_v49  ;;  %v2240_v21 = vshrl.u32 %v1741_v57, 16  ;;  %v2242_v24 = vshll.u32 %v1741_v57, 16  ;;  %v2249_v33 = vrot.slane %v2247_v38, 1  ;;  %v8347_v53 = vld [vmem:[#allocation2 + $0xc8] ss:$0 sps:$4 sm:$0x11]  }
 0x207   : > { %3984 = vmatprep.mubr.bf16.mxu0 %v3530_v11  ;;  %v2236_v2 = vrot.slane %v2234_v26, 1  ;;  %v2976_v45 = vrot.slane %v2974_v10, 1  ;;  %v2981_v51 = vrot.slane %v2979_v43, 1  ;;  %v2983_v6 = vshrl.u32 %v8341_v55, 16  ;;  %v2564_v10 = vld [vmem:[#allocation2 + $0xc0] sm:$0xf] }
 0x208   : > { %3985 = vmatmul.mubr.bf16.gmra.mrb[52].mxu0 %v3518_v4  ;;  %v2244_v30 = vrot.slane %v2242_v24, 1  ;;  %v6930_v50 = vcombine.low %v2561_v15, %v8520_v16  ;;  %v9963_v52 = vcombine.low %v1392_v63, %v1367_v34  ;;  %v1752_v0 = vshll.u32 %v8344_v29, 16  ;;  %v8521_v16 = vld [vmem:[#allocation2 + $0xc4] sm:$0xf] }
 0x209   : > { %v2237_v5 = vor.u32 %v2236_v2, %v2232_v12  ;;  %v2977_v28 = vor.u32 %v2976_v45, %v2972_v35  ;;  %v3559_v23 = vshll.u32 %v2983_v6, 16  ;;  %v1756_v44 = vshrl.u32 %v8344_v29, 16  ;;  %v8349_v45 = vld [vmem:[#allocation2 + $0x98] ss:$0 sps:$4 sm:$0x11]  }
 0x20a   : > { %v2245_v32 = vor.u32 %v2244_v30, %v2240_v21  ;;  %v3544_v49 = vshrl.u32 %v6930_v50, 16  ;;  %v3546_v62 = vshll.u32 %v6930_v50, 16  ;;  %v1745_v61 = vshrl.u32 %v9963_v52, 16 }
 0x20b   : > { %v2238_v7 = vsel %vm1589_vm4, %v2237_v5, %v1740_v9  ;;  %v2982_v55 = vsel %vm1589_vm4, %v2977_v28, %v2981_v51  ;;  %v3561_v41 = vrot.slane %v3559_v23, 1  ;;  %v1747_v14 = vshll.u32 %v9963_v52, 16  ;;  %v1393_v5 = vld [vmem:[#allocation2 + $0x90] sm:$0xe] }
 0x20c   : > { %v2250_v48 = vsel %vm1589_vm4, %v2245_v32, %v2249_v33  ;;  %v3552_v60 = vshrl.u32 %v2982_v55, 16  ;;  %v3554_v40 = vshll.u32 %v2982_v55, 16  ;;  %v3548_v35 = vrot.slane %v3546_v62, 1 }
 0x20d   : > { %4426 = vmatprep.mubr.bf16.mxu1 %v2250_v48  ;;  %v1749_v42 = vrot.slane %v1747_v14, 1  ;;  %v1754_v38 = vrot.slane %v1752_v0, 1  ;;  %v2279_v12 = vshll.u32 %v1756_v44, 16  ;;  %v6860_v26 = vcombine.low %v1366_v25, %v1367_v34  ;;  %v1370_v0 = vld [vmem:[#allocation2 + $0x94] sm:$0xf] }
 0x20e   : > { %4427 = vmatmul.mubr.bf16.gmra.mrb[56].mxu1 %v2238_v7  ;;  %v3556_v29 = vrot.slane %v3554_v40, 1  ;;  %v3549_v4 = vor.u32 %v3548_v35, %v3544_v49  ;;  %v2986_v9 = vshrl.u32 %v9626_v1, 16  ;;  %v2988_v57 = vshll.u32 %v9626_v1, 16  ;;  %v1369_v14 = vld [vmem:[#allocation2 + $0x90] sm:$0xf] }
 0x20f   : > { %v1750_v43 = vor.u32 %v1749_v42, %v1745_v61  ;;  %v2281_v15 = vrot.slane %v2279_v12, 1  ;;  %v2264_v63 = vshrl.u32 %v6860_v26, 16  ;;  %v2266_v11 = vshll.u32 %v6860_v26, 16  ;;  %v8352_v35 = vld [vmem:[#allocation2 + $0x14] ss:$0 sps:$4 sm:$0x33]  }
 0x210   : > { %v3557_v21 = vor.u32 %v3556_v29, %v3552_v60  ;;  %v3550_v24 = vsel %vm1589_vm4, %v3549_v4, %v2981_v51  ;;  %v2990_v33 = vrot.slane %v2988_v57, 1  ;;  %v2993_v2 = vshll.u32 %v8347_v53, 16 }
 0x211   : > { %v1755_v34 = vsel %vm1589_vm4, %v1750_v43, %v1754_v38  ;;  %v2268_v6 = vrot.slane %v2266_v11, 1  ;;  %v2997_v30 = vshrl.u32 %v8347_v53, 16  ;;  %v6932_v50 = vcombine.low %v2564_v10, %v8521_v16  ;;  %v8354_v11 = vld [vmem:[#allocation2 + $0x20] ss:$0 sps:$4 sm:$0x33]  }
 0x212   : > { %v3562_v1 = vsel %vm1589_vm4, %v3557_v21, %v3561_v41  ;;  %v2272_v28 = vshrl.u32 %v1755_v34, 16  ;;  %v2274_v23 = vshll.u32 %v1755_v34, 16  ;;  %v2991_v44 = vor.u32 %v2990_v33, %v2986_v9  ;;  %v1373_v16 = vld [vmem:[#allocation2 + $0xa0] sm:$0xf] }
 0x213   : > { %3992 = vmatprep.mubr.bf16.mxu0 %v3562_v1  ;;  %v2269_v32 = vor.u32 %v2268_v6, %v2264_v63  ;;  %v2995_v49 = vrot.slane %v2993_v2, 1  ;;  %v3591_v51 = vshll.u32 %v2997_v30, 16  ;;  %v3576_v62 = vshrl.u32 %v6932_v50, 16 }
 0x214   : > { %3993 = vmatmul.mubr.bf16.gmra.mrb[56].mxu0 %v3550_v24  ;;  %v2276_v61 = vrot.slane %v2274_v23, 1  ;;  %v3578_v25 = vshll.u32 %v6932_v50, 16  ;;  %v9975_v7 = vcombine.low %v1393_v5, %v1370_v0  ;;  %v1766_v55 = vshll.u32 %v8349_v45, 16  ;;  %v1394_v50 = vld [vmem:[#allocation2 + $0x9c] sm:$0xe] }
 0x215   : > { %v2270_v48 = vsel %vm1589_vm4, %v2269_v32, %v1754_v38  ;;  %v2996_v60 = vsel %vm1589_vm4, %v2991_v44, %v2995_v49  ;;  %v3593_v41 = vrot.slane %v3591_v51, 1  ;;  %v1770_v40 = vshrl.u32 %v8349_v45, 16 }
 0x216   : > { %v2277_v53 = vor.u32 %v2276_v61, %v2272_v28  ;;  %v3584_v42 = vshrl.u32 %v2996_v60, 16  ;;  %v3586_v12 = vshll.u32 %v2996_v60, 16  ;;  %v3580_v26 = vrot.slane %v3578_v25, 1 }
 0x217   : > { %v1759_v29 = vshrl.u32 %v9975_v7, 16  ;;  %v1761_v4 = vshll.u32 %v9975_v7, 16  ;;  %v1768_v9 = vrot.slane %v1766_v55, 1  ;;  %v9981_v57 = vshll.u32 %v1770_v40, 16 }
 0x218   : > { %v2282_v10 = vsel %vm1589_vm4, %v2277_v53, %v2281_v15  ;;  %v3588_v43 = vrot.slane %v3586_v12, 1  ;;  %v3581_v38 = vor.u32 %v3580_v26, %v3576_v62  ;;  %v6862_v63 = vcombine.low %v1369_v14, %v1370_v0  ;;  %v8358_v62 = vld [vmem:[#allocation2 + $0xa4] ss:$0 sps:$4 sm:$0x11]  }
 0x219   : > { %4434 = vmatprep.mubr.bf16.mxu1 %v2282_v10  ;;  %v1763_v21 = vrot.slane %v1761_v4, 1  ;;  %v2313_v24 = vrot.slane %v9981_v57, 1  ;;  %v3047_v33 = vrot.slane %v9460_v17, 1  ;;  %v3048_v2 = vrot.slane %v8352_v35, 1  ;;  %v1372_v35 = vld [vmem:[#allocation2 + $0x9c] sm:$0xf] }
 0x21a   : > { %4435 = vmatmul.mubr.bf16.gmra.mrb[60].mxu1 %v2270_v48  ;;  %v3589_v45 = vor.u32 %v3588_v43, %v3584_v42  ;;  %v3582_v34 = vsel %vm1589_vm4, %v3581_v38, %v2995_v49  ;;  %v2296_v6 = vshrl.u32 %v6862_v63, 16  ;;  %v2298_v30 = vshll.u32 %v6862_v63, 16 }
 0x21b   : > { %v1764_v15 = vor.u32 %v1763_v21, %v1759_v29  ;;  %v3049_v5 = vsel %vm1862_vm3, %v3047_v33, %v3048_v2  ;;  %v3123_v0 = vshll.u32 %v3048_v2, 16  ;;  %v3050_v1 = vrot.slane %v9482_v18, 1  ;;  %v8362_v29 = vld [vmem:[#allocation2 + $0x2c] ss:$0 sps:$4 sm:$0x33]  }
 0x21c   : > { %v3594_v28 = vsel %vm1589_vm4, %v3589_v45, %v3593_v41  ;;  %v2300_v23 = vrot.slane %v2298_v30, 1  ;;  %v3116_v44 = vshrl.u32 %v3049_v5, 16  ;;  %v3118_v17 = vshll.u32 %v3049_v5, 16  ;;  %v1376_v5 = vld [vmem:[#allocation2 + $0xac] sm:$0xf] }
 0x21d   : > { %4000 = vmatprep.mubr.bf16.mxu0 %v3594_v28  ;;  %v1769_v32 = vsel %vm1589_vm4, %v1764_v15, %v1768_v9  ;;  %v3125_v51 = vrot.slane %v3123_v0, 1  ;;  %v3051_v49 = vrot.slane %v8354_v11, 1  ;;  %v9991_v61 = vcombine.low %v1394_v50, %v1373_v16 }
 0x21e   : > { %4001 = vmatmul.mubr.bf16.gmra.mrb[60].mxu0 %v3582_v34  ;;  %v2304_v25 = vshrl.u32 %v1769_v32, 16  ;;  %v2306_v55 = vshll.u32 %v1769_v32, 16  ;;  %v2301_v14 = vor.u32 %v2300_v23, %v2296_v6  ;;  %v3120_v48 = vrot.slane %v3118_v17, 1  ;;  %v8364_v6 = vld [vmem:[#allocation2 + $0x38] ss:$0 sps:$4 sm:$0x33]  }
 0x21f   : > { %v3052_v18 = vsel %vm1862_vm3, %v3050_v1, %v3051_v49  ;;  %v3155_v60 = vshll.u32 %v3051_v49, 16  ;;  %v1773_v41 = vshrl.u32 %v9991_v61, 16  ;;  %v1775_v40 = vshll.u32 %v9991_v61, 16  ;;  %v8355_v1 = vld [vmem:[#allocation11 + $0x180] sm:$0xff]   ;;  %v8357_v17 = vld [vmem:[#allocation11 + $0x1c8] sm:$0xff]  }
 0x220   : > { %v2308_v53 = vrot.slane %v2306_v55, 1  ;;  %v2302_v42 = vsel %vm1589_vm4, %v2301_v14, %v1768_v9  ;;  %v3121_v12 = vor.u32 %v3120_v48, %v3116_v44  ;;  %v3148_v26 = vshrl.u32 %v3052_v18, 16  ;;  %v1395_v44 = vld [vmem:[#allocation2 + $0xa8] sm:$0xe] }
 0x221   : > { %v3150_v4 = vshll.u32 %v3052_v18, 16  ;;  %v3157_v57 = vrot.slane %v3155_v60, 1  ;;  %v1777_v10 = vrot.slane %v1775_v40, 1  ;;  %v1780_v43 = vshll.u32 %v8358_v62, 16 }
 0x222   : > { %v2309_v38 = vor.u32 %v2308_v53, %v2304_v25  ;;  %v3126_v63 = vsel %vm1589_vm4, %v3121_v12, %v3125_v51  ;;  %v1784_v11 = vshrl.u32 %v8358_v62, 16  ;;  %v6864_v21 = vcombine.low %v1372_v35, %v1373_v16  ;;  %v1375_v12 = vld [vmem:[#allocation2 + $0xa8] sm:$0xf] }
 0x223   : > { %7808 = vmatprep.mubr.bf16.mxu0 %v3126_v63  ;;  %v3152_v33 = vrot.slane %v3150_v4, 1  ;;  %v1778_v2 = vor.u32 %v1777_v10, %v1773_v41  ;;  %v1782_v45 = vrot.slane %v1780_v43, 1  ;;  %v3053_v34 = vrot.slane %v9585_v36, 1  ;;  %v8367_v41 = vld [vmem:[#allocation2 + $0xb0] ss:$0 sps:$4 sm:$0x11]  }
 0x224   : > { %v2314_v9 = vsel %vm1589_vm4, %v2309_v38, %v2313_v24  ;;  %v2343_v30 = vshll.u32 %v1784_v11, 16  ;;  %v2328_v50 = vshrl.u32 %v6864_v21, 16  ;;  %v2330_v15 = vshll.u32 %v6864_v21, 16  ;;  %v8371_v43 = vld [vmem:[#allocation2 + $0x44] ss:$0 sps:$4 sm:$0x33]  }
 0x225   : > { %4442 = vmatprep.mubr.bf16.mxu1 %v2314_v9  ;;  %v3153_v0 = vor.u32 %v3152_v33, %v3148_v26  ;;  %v1783_v28 = vsel %vm1589_vm4, %v1778_v2, %v1782_v45  ;;  %v3054_v23 = vrot.slane %v8362_v29, 1  ;;  %v3056_v16 = vrot.slane %v9699_v20, 1  ;;  %v8360_v20 = vld [vmem:[#allocation11 + $0x188] sm:$0xff]  }
 0x226   : > { %4443 = vmatmul.mubr.bf16.gmra.mrb[64].mxu1 %v2302_v42  ;;  %v2336_v32 = vshrl.u32 %v1783_v28, 16  ;;  %v2338_v36 = vshll.u32 %v1783_v28, 16  ;;  %v2345_v51 = vrot.slane %v2343_v30, 1  ;;  %v2332_v49 = vrot.slane %v2330_v15, 1  ;;  %v8365_v30 = vld [vmem:[#allocation11 + $0x190] sm:$0xff]  }
 0x227   : > { %v3158_v24 = vsel %vm1589_vm4, %v3153_v0, %v3157_v57  ;;  %v3055_v62 = vsel %vm1862_vm3, %v3053_v34, %v3054_v23  ;;  %v3187_v25 = vshll.u32 %v3054_v23, 16  ;;  %v3057_v55 = vrot.slane %v8364_v6, 1  ;;  %v8363_v57 = vld [vmem:[#allocation11 + $0x1d0] sm:$0xff]  }
 0x228   : > { %7809 = vmatmul.mubr.bf16.vlgmr.msra.gmra.mrb[64].mxu0 %v3158_v24  ;;  %v2340_v14 = vrot.slane %v2338_v36, 1  ;;  %v2333_v48 = vor.u32 %v2332_v49, %v2328_v50  ;;  %v3180_v18 = vshrl.u32 %v3055_v62, 16  ;;  %v3182_v60 = vshll.u32 %v3055_v62, 16  ;;  %v10012_v28 = vpop.f32.mrb[0].mxu0 }
 0x229   : > { %7657 = vmatpush3.bf16.msra.mxu0 %v8355_v1  ;;  %v3189_v40 = vrot.slane %v3187_v25, 1  ;;  %v3058_v35 = vsel %vm1862_vm3, %v3056_v16, %v3057_v55  ;;  %v3219_v53 = vshll.u32 %v3057_v55, 16  ;;  %v10005_v42 = vcombine.low %v1395_v44, %v1376_v5  ;;  %v8373_v1 = vld [vmem:[#allocation2 + $0x50] ss:$0 sps:$4 sm:$0x33]   ;;  %v10017_v36 = vpop.f32.mrb[1].mxu0 }
 0x22a   : > { %7658 = vmatprep.subr.bf16.mxu0 %v8357_v17  ;;  %v2341_v26 = vor.u32 %v2340_v14, %v2336_v32  ;;  %v2334_v29 = vsel %vm1589_vm4, %v2333_v48, %v1782_v45  ;;  %v3184_v4 = vrot.slane %v3182_v60, 1  ;;  %v3212_v10 = vshrl.u32 %v3058_v35, 16  ;;  %v8366_v45 = vld [vmem:[#allocation11 + $0x1d8] sm:$0xff]   ;;  %v1379_v32 = vld [vmem:[#allocation2 + $0xb8] sm:$0xf]  ;;  %v10019_v62 = vpop.f32.mrb[2].mxu0 }
 0x22b   : > { %v3214_v38 = vshll.u32 %v3058_v35, 16  ;;  %v3221_v63 = vrot.slane %v3219_v53, 1  ;;  %v1787_v11 = vshrl.u32 %v10005_v42, 16  ;;  %v1789_v21 = vshll.u32 %v10005_v42, 16  ;;  %v10024_v60 = vpop.f32.mrb[3].mxu0 }
 0x22c   : > { %v2346_v33 = vsel %vm1589_vm4, %v2341_v26, %v2345_v51  ;;  %v3185_v2 = vor.u32 %v3184_v4, %v3180_v18  ;;  %v1794_v34 = vshll.u32 %v8367_v41, 16  ;;  %v1798_v6 = vshrl.u32 %v8367_v41, 16  ;;  %v1396_v18 = vld [vmem:[#allocation2 + $0xb4] sm:$0xe] }
 0x22d   : > { %4450 = vmatprep.mubr.bf16.mxu1 %v2346_v33  ;;  %7659 = vmatpush3.bf16.msra.mxu0 %v8360_v20  ;;  %v3216_v9 = vrot.slane %v3214_v38, 1  ;;  %v1791_v50 = vrot.slane %v1789_v21, 1  ;;  %v6866_v15 = vcombine.low %v1375_v12, %v1376_v5  ;;  %v3059_v0 = vrot.slane %v9798_v27, 1  ;;  %v8377_v27 = vld [vmem:[#allocation2 + $0xbc] ss:$0 sps:$4 sm:$0x11]  }
 0x22e   : > { %4451 = vmatmul.mubr.bf16.gmra.mrb[68].mxu1 %v2334_v29  ;;  %v3190_v23 = vsel %vm1589_vm4, %v3185_v2, %v3189_v40  ;;  %7660 = vmatprep.subr.bf16.mxu0 %v8363_v57  ;;  %v1796_v16 = vrot.slane %v1794_v34, 1  ;;  %v10015_v44 = vshll.u32 %v1798_v6, 16  ;;  %v3060_v17 = vrot.slane %v8371_v43, 1  ;;  %v8369_v40 = vld [vmem:[#allocation11 + $0x198] sm:$0xff]   ;;  %v1378_v12 = vld [vmem:[#allocation2 + $0xb4] sm:$0xf] }
 0x22f   : > { %7812 = vmatprep.mubr.bf16.mxu0 %v3190_v23  ;;  %v3217_v51 = vor.u32 %v3216_v9, %v3212_v10  ;;  %v1792_v49 = vor.u32 %v1791_v50, %v1787_v11  ;;  %v2360_v5 = vshrl.u32 %v6866_v15, 16  ;;  %v2362_v24 = vshll.u32 %v6866_v15, 16  ;;  %v8372_v10 = vld [vmem:[#allocation11 + $0x1e0] sm:$0xff]   ;;  %v8381_v6 = vld [vmem:[#allocation2 + $0x5c] ss:$0 sps:$4 sm:$0x33]  }
 0x230   : > { %v2377_v25 = vrot.slane %v10015_v44, 1  ;;  %v3061_v55 = vsel %vm1862_vm3, %v3059_v0, %v3060_v17  ;;  %v3251_v14 = vshll.u32 %v3060_v17, 16  ;;  %v3062_v48 = vrot.slane %v9800_v31, 1  ;;  %v8374_v33 = vld [vmem:[#allocation11 + $0x1a0] sm:$0xff]  }
 0x231   : > { %v3222_v41 = vsel %vm1589_vm4, %v3217_v51, %v3221_v63  ;;  %7661 = vmatpush3.bf16.msra.mxu0 %v8365_v30  ;;  %v1797_v20 = vsel %vm1589_vm4, %v1792_v49, %v1796_v16  ;;  %v2364_v35 = vrot.slane %v2362_v24, 1  ;;  %v3244_v53 = vshrl.u32 %v3061_v55, 16  ;;  %v8383_v15 = vld [vmem:[#allocation2 + $0x68] ss:$0 sps:$4 sm:$0x33]   ;;  %v10033_v0 = vpop.f32.mrb[4].mxu0 }
 0x232   : > { %7813 = vmatmul.mubr.bf16.gmra.mrb[68].mxu0 %v3222_v41  ;;  %7662 = vmatprep.subr.bf16.mxu0 %v8366_v45  ;;  %v2368_v26 = vshrl.u32 %v1797_v20, 16  ;;  %v2370_v29 = vshll.u32 %v1797_v20, 16  ;;  %v3246_v4 = vshll.u32 %v3061_v55, 16  ;;  %v3253_v57 = vrot.slane %v3251_v14, 1  ;;  %v10035_v49 = vpop.f32.mrb[5].mxu0 }
 0x233   : > { %v2365_v31 = vor.u32 %v2364_v35, %v2360_v5  ;;  %v3063_v43 = vrot.slane %v8373_v1, 1  ;;  %v10028_v38 = vcombine.low %v1396_v18, %v1379_v32  ;;  %v1808_v11 = vshll.u32 %v8377_v27, 16  ;;  %v8386_v51 = vld [vmem:[#allocation2 + $0x8] ss:$0 sps:$4 sm:$0x33]   ;;  %v8376_v5 = vld [vmem:[#allocation11 + $0x1e8] sm:$0xff]  }
 0x234   : > { %v2372_v63 = vrot.slane %v2370_v29, 1  ;;  %v3248_v21 = vrot.slane %v3246_v4, 1  ;;  %v1812_v2 = vshrl.u32 %v8377_v27, 16  ;;  %v6868_v34 = vcombine.low %v1378_v12, %v1379_v32  ;;  %v10040_v55 = vpop.f32.mrb[6].mxu0  ;;  %v8379_v29 = vld [vmem:[#allocation11 + $0x1a8] sm:$0xff]  }
 0x235   : > { %7663 = vmatpush3.bf16.msra.mxu0 %v8369_v40  ;;  %v2366_v9 = vsel %vm1589_vm4, %v2365_v31, %v1796_v16  ;;  %v3064_v30 = vsel %vm1862_vm3, %v3062_v48, %v3063_v43  ;;  %v3283_v45 = vshll.u32 %v3063_v43, 16  ;;  %v1801_v50 = vshrl.u32 %v10028_v38, 16  ;;  %v10044_v20 = vpop.f32.mrb[7].mxu0  ;;  %v8382_v43 = vld [vmem:[#allocation11 + $0x1f0] sm:$0xff]  }
 0x236   : > { %v2373_v1 = vor.u32 %v2372_v63, %v2368_v26  ;;  %v3249_v23 = vor.u32 %v3248_v21, %v3244_v53  ;;  %7664 = vmatprep.subr.bf16.mxu0 %v8372_v10  ;;  %v3276_v44 = vshrl.u32 %v3064_v30, 16  ;;  %v3278_v17 = vshll.u32 %v3064_v30, 16 }
 0x237   : > { %v3285_v32 = vrot.slane %v3283_v45, 1  ;;  %v1803_v16 = vshll.u32 %v10028_v38, 16  ;;  %v1810_v24 = vrot.slane %v1808_v11, 1  ;;  %v10038_v27 = vshll.u32 %v1812_v2, 16  ;;  %v8385_v45 = vld [vmem:[#allocation11 + $0x1f8] sm:$0xff]  }
 0x238   : > { %v2378_v14 = vsel %vm1589_vm4, %v2373_v1, %v2377_v25  ;;  %v3254_v48 = vsel %vm1589_vm4, %v3249_v23, %v3253_v57  ;;  %v3280_v18 = vrot.slane %v3278_v17, 1  ;;  %v2392_v41 = vshrl.u32 %v6868_v34, 16 }
 0x239   : > { %4458 = vmatprep.mubr.bf16.mxu1 %v2378_v14  ;;  %7816 = vmatprep.mubr.bf16.mxu0 %v3254_v48  ;;  %v1805_v40 = vrot.slane %v1803_v16, 1  ;;  %v2409_v35 = vrot.slane %v10038_v27, 1  ;;  %v2394_v53 = vshll.u32 %v6868_v34, 16  ;;  %v3065_v12 = vrot.slane %v9815_v8, 1 }
 0x23a   : > { %4459 = vmatmul.mubr.bf16.gmra.mrb[72].mxu1 %v2366_v9  ;;  %v3281_v26 = vor.u32 %v3280_v18, %v3276_v44  ;;  %7665 = vmatpush3.bf16.msra.mxu0 %v8374_v33  ;;  %v3066_v4 = vrot.slane %v8381_v6, 1  ;;  %v3068_v25 = vrot.slane %v9872_v19, 1  ;;  %v3069_v57 = vrot.slane %v8383_v15, 1  ;;  %v8384_v33 = vld [vmem:[#allocation11 + $0x1b0] sm:$0xff]  }
 0x23b   : > { %7666 = vmatprep.subr.bf16.mxu0 %v8376_v5  ;;  %v1806_v10 = vor.u32 %v1805_v40, %v1801_v50  ;;  %v2396_v31 = vrot.slane %v2394_v53, 1  ;;  %v1863_v11 = vrot.slane %v9299_v39, 1  ;;  %v1864_v63 = vrot.slane %v8386_v51, 1  ;;  %v8388_v50 = vld [vmem:[#allocation2 + $0x14] ss:$0 sps:$4 sm:$0x33]  }
 0x23c   : > { %v3286_v21 = vsel %vm1589_vm4, %v3281_v26, %v3285_v32  ;;  %v3067_v2 = vsel %vm1862_vm3, %v3065_v12, %v3066_v4  ;;  %v3315_v8 = vshll.u32 %v3066_v4, 16  ;;  %v3070_v34 = vsel %vm1862_vm3, %v3068_v25, %v3069_v57  ;;  %v4638_v44 = vld [vmem:[#allocation2 + $0x1c] sm:$0xf]  ;;  %v8389_v16 = vld [vmem:[#allocation2 + $0x20] ss:$0 sps:$4 sm:$0x11]  }
 0x23d   : > { %7817 = vmatmul.mubr.bf16.gmra.mrb[72].mxu0 %v3286_v21  ;;  %v1811_v6 = vsel %vm1589_vm4, %v1806_v10, %v1810_v24  ;;  %v2397_v19 = vor.u32 %v2396_v31, %v2392_v41  ;;  %v3308_v9 = vshrl.u32 %v3067_v2, 16  ;;  %v3310_v30 = vshll.u32 %v3067_v2, 16  ;;  %v4685_v41 = vld [vmem:[#allocation2 + $0x18] sm:$0xe]  ;;  %v8387_v31 = vld [vmem:[#allocation11 + $0x1b8] sm:$0xff]  }
 0x23e   : > { %v2400_v15 = vshrl.u32 %v1811_v6, 16  ;;  %v2402_v1 = vshll.u32 %v1811_v6, 16  ;;  %7667 = vmatpush3.bf16.msra.mxu0 %v8379_v29  ;;  %v3317_v39 = vrot.slane %v3315_v8, 1  ;;  %v3340_v23 = vshrl.u32 %v3070_v34, 16 }
 0x23f   : > { %v2398_v17 = vsel %vm1589_vm4, %v2397_v19, %v1810_v24  ;;  %v3312_v51 = vrot.slane %v3310_v30, 1  ;;  %7668 = vmatprep.subr.bf16.mxu0 %v8382_v43  ;;  %v3342_v32 = vshll.u32 %v3070_v34, 16  ;;  %v3347_v5 = vshll.u32 %v3069_v57, 16  ;;  %v8393_v34 = vld [vmem:[#allocation2 + $0x20] ss:$0 sps:$4 sm:$0x33]  }
 0x240   : > { %v2404_v27 = vrot.slane %v2402_v1, 1  ;;  %v1865_v14 = vsel %vm1862_vm3, %v1863_v11, %v1864_v63  ;;  %v1939_v48 = vshll.u32 %v1864_v63, 16  ;;  %v1866_v18 = vrot.slane %v9580_v37, 1  ;;  %v4637_v63 = vld [vmem:[#allocation2 + $0x18] sm:$0xf] }
 0x241   : > { %v3313_v40 = vor.u32 %v3312_v51, %v3308_v9  ;;  %v3344_v53 = vrot.slane %v3342_v32, 1  ;;  %v3349_v12 = vrot.slane %v3347_v5, 1  ;;  %v1932_v26 = vshrl.u32 %v1865_v14, 16 }
 0x242   : > { %v2405_v29 = vor.u32 %v2404_v27, %v2400_v15  ;;  %7669 = vmatpush3.bf16.msra.mxu0 %v8384_v33  ;;  %v1934_v4 = vshll.u32 %v1865_v14, 16  ;;  %v1941_v24 = vrot.slane %v1939_v48, 1  ;;  %v1867_v25 = vrot.slane %v8388_v50, 1  ;;  %v8394_v15 = vld [vmem:[#allocation2 + $0x2c] ss:$0 sps:$4 sm:$0x33]  }
 0x243   : > { %v3318_v10 = vsel %vm1589_vm4, %v3313_v40, %v3317_v39  ;;  %v3345_v57 = vor.u32 %v3344_v53, %v3340_v23  ;;  %7670 = vmatprep.subr.bf16.mxu0 %v8385_v45  ;;  %v10058_v43 = vcombine.low %v4685_v41, %v4638_v44  ;;  %v4901_v11 = vshll.u32 %v8389_v16, 16 }
 0x244   : > { %v2410_v37 = vsel %vm1589_vm4, %v2405_v29, %v2409_v35  ;;  %7820 = vmatprep.mubr.bf16.mxu0 %v3318_v10  ;;  %v1936_v21 = vrot.slane %v1934_v4, 1  ;;  %v1868_v2 = vsel %vm1862_vm3, %v1866_v18, %v1867_v25  ;;  %v1971_v8 = vshll.u32 %v1867_v25, 16  ;;  %v8395_v25 = vld [vmem:[#allocation2 + $0x2c] ss:$0 sps:$4 sm:$0x11]  }
 0x245   : > { %4466 = vmatprep.mubr.bf16.mxu1 %v2410_v37  ;;  %v3350_v33 = vsel %vm1589_vm4, %v3345_v57, %v3349_v12  ;;  %v1964_v6 = vshrl.u32 %v1868_v2, 16  ;;  %v1966_v19 = vshll.u32 %v1868_v2, 16  ;;  %v4894_v9 = vshrl.u32 %v10058_v43, 16 }
 0x246   : > { %4467 = vmatmul.mubr.bf16.gmra.mrb[76].mxu1 %v2398_v17  ;;  %7821 = vmatmul.mubr.bf16.gmra.mrb[76].mxu0 %v3350_v33  ;;  %v1937_v30 = vor.u32 %v1936_v21, %v1932_v26  ;;  %v1973_v45 = vrot.slane %v1971_v8, 1  ;;  %v4896_v50 = vshll.u32 %v10058_v43, 16  ;;  %v4903_v35 = vrot.slane %v4901_v11, 1  ;;  %v8398_v11 = vld [vmem:[#allocation11 + $0x208] sm:$0xff]  }
 0x247   : > { %7671 = vmatpush3.bf16.msra.mxu0 %v8387_v31  ;;  %v1968_v1 = vrot.slane %v1966_v19, 1  ;;  %v4905_v39 = vshrl.u32 %v8389_v16, 16  ;;  %v7014_v23 = vcombine.low %v4637_v63, %v4638_v44  ;;  %v1869_v51 = vrot.slane %v9694_v59, 1  ;;  %v4641_v16 = vld [vmem:[#allocation2 + $0x28] sm:$0xf] }
 0x248   : > { %v1942_v32 = vsel %vm1589_vm4, %v1937_v30, %v1941_v24  ;;  %v4898_v5 = vrot.slane %v4896_v50, 1  ;;  %v1870_v27 = vrot.slane %v8393_v34, 1  ;;  %v1872_v14 = vrot.slane %v9751_v58, 1  ;;  %v4686_v44 = vld [vmem:[#allocation2 + $0x24] sm:$0xe] }
 0x249   : > { %7856 = vmatprep.mubr.bf16.mxu1 %v1942_v32  ;;  %v1969_v17 = vor.u32 %v1968_v1, %v1964_v6  ;;  %v5229_v48 = vshll.u32 %v4905_v39, 16  ;;  %v5214_v18 = vshrl.u32 %v7014_v23, 16  ;;  %v5216_v41 = vshll.u32 %v7014_v23, 16  ;;  %v4640_v19 = vld [vmem:[#allocation2 + $0x24] sm:$0xf] }
 0x24a   : > { %v4899_v40 = vor.u32 %v4898_v5, %v4894_v9  ;;  %v1871_v53 = vsel %vm1862_vm3, %v1869_v51, %v1870_v27  ;;  %v2003_v12 = vshll.u32 %v1870_v27, 16  ;;  %v1873_v26 = vrot.slane %v8394_v15, 1  ;;  %v8399_v1 = vld [vmem:[#allocation2 + $0x38] ss:$0 sps:$4 sm:$0x33]  }
 0x24b   : > { %v1974_v59 = vsel %vm1589_vm4, %v1969_v17, %v1973_v45  ;;  %v5231_v29 = vrot.slane %v5229_v48, 1  ;;  %v5218_v4 = vrot.slane %v5216_v41, 1  ;;  %v1996_v24 = vshrl.u32 %v1871_v53, 16  ;;  %v8522_v45 = vld [vmem:[#allocation11 + $0x200] sm:$0xff]   ;;  %v8404_v5 = vld [vmem:[#allocation11 + $0x210] sm:$0xff]  }
 0x24c   : > { %v4904_v58 = vsel %vm1589_vm4, %v4899_v40, %v4903_v35  ;;  %v1998_v10 = vshll.u32 %v1871_v53, 16  ;;  %v2005_v57 = vrot.slane %v2003_v12, 1  ;;  %v1874_v31 = vsel %vm1862_vm3, %v1872_v14, %v1873_v26  ;;  %v4644_v12 = vld [vmem:[#allocation2 + $0x34] sm:$0xf] }
 0x24d   : > { %v5222_v63 = vshrl.u32 %v4904_v58, 16  ;;  %v5224_v37 = vshll.u32 %v4904_v58, 16  ;;  %v5219_v21 = vor.u32 %v5218_v4, %v5214_v18  ;;  %v2028_v2 = vshrl.u32 %v1874_v31, 16  ;;  %v8400_v18 = vld [vmem:[#allocation2 + $0x44] ss:$0 sps:$4 sm:$0x33]  }
 0x24e   : > { %7857 = vmatmul.mubr.bf16.vlgmr.msra.gmra.mrb[80].mxu1 %v1974_v59  ;;  %v2000_v8 = vrot.slane %v1998_v10, 1  ;;  %v2030_v34 = vshll.u32 %v1874_v31, 16  ;;  %v2035_v33 = vshll.u32 %v1873_v26, 16  ;;  %v10072_v6 = vcombine.low %v4686_v44, %v4641_v16 }
 0x24f   : > { %v5226_v9 = vrot.slane %v5224_v37, 1  ;;  %v5220_v30 = vsel %vm1589_vm4, %v5219_v21, %v4903_v35  ;;  %7889 = vmatpush3.bf16.msra.mxu1 %v8522_v45  ;;  %v4915_v50 = vshll.u32 %v8395_v25, 16  ;;  %v4919_v15 = vshrl.u32 %v8395_v25, 16  ;;  %v8401_v45 = vld [vmem:[#allocation2 + $0x38] ss:$0 sps:$4 sm:$0x11]  }
 0x250   : > { %v2001_v39 = vor.u32 %v2000_v8, %v1996_v24  ;;  %v2032_v23 = vrot.slane %v2030_v34, 1  ;;  %v2037_v51 = vrot.slane %v2035_v33, 1  ;;  %v4908_v32 = vshrl.u32 %v10072_v6, 16  ;;  %7890 = vmatprep.subr.bf16.mxu1 %v8398_v11  ;;  %v4687_v24 = vld [vmem:[#allocation2 + $0x30] sm:$0xe] }
 0x251   : > { %v5227_v27 = vor.u32 %v5226_v9, %v5222_v63  ;;  %v4910_v14 = vshll.u32 %v10072_v6, 16  ;;  %v4917_v17 = vrot.slane %v4915_v50, 1  ;;  %v10077_v48 = vshll.u32 %v4919_v15, 16 }
 0x252   : > { %v2006_v35 = vsel %vm1589_vm4, %v2001_v39, %v2005_v57  ;;  %v2033_v41 = vor.u32 %v2032_v23, %v2028_v2  ;;  %v7016_v40 = vcombine.low %v4640_v19, %v4641_v16  ;;  %v1875_v53 = vrot.slane %v9769_v56, 1  ;;  %v8410_v16 = vld [vmem:[#allocation11 + $0x218] sm:$0xff]   ;;  %v10085_v56 = vpop.f32.mrb[8].mxu0 }
 0x253   : > { %v5232_v26 = vsel %vm1589_vm4, %v5227_v27, %v5231_v29  ;;  %7860 = vmatprep.mubr.bf16.mxu1 %v2006_v35  ;;  %v4912_v44 = vrot.slane %v4910_v14, 1  ;;  %v5263_v59 = vrot.slane %v10077_v48, 1  ;;  %v1876_v4 = vrot.slane %v8399_v1, 1  ;;  %7891 = vmatpush3.bf16.msra.mxu1 %v8398_v11  ;;  %v10088_v21 = vpop.f32.mrb[9].mxu0 }
 0x254   : > { %5998 = vmatprep.mubr.bf16.mxu0 %v5232_v26  ;;  %v2038_v25 = vsel %vm1589_vm4, %v2033_v41, %v2037_v51  ;;  %v5246_v58 = vshrl.u32 %v7016_v40, 16  ;;  %v5248_v10 = vshll.u32 %v7016_v40, 16  ;;  %v1878_v57 = vrot.slane %v9857_v46, 1  ;;  %7892 = vmatprep.subr.bf16.mxu1 %v8404_v5  ;;  %v10092_v33 = vpop.f32.mrb[10].mxu0  ;;  %v4643_v51 = vld [vmem:[#allocation2 + $0x30] sm:$0xf] }
 0x255   : > { %5999 = vmatmul.mubr.bf16.vlgmr.msra.gmra.mrb[80].mxu0 %v5220_v30  ;;  %v4913_v29 = vor.u32 %v4912_v44, %v4908_v32  ;;  %v1877_v31 = vsel %vm1862_vm3, %v1875_v53, %v1876_v4  ;;  %v2067_v63 = vshll.u32 %v1876_v4, 16  ;;  %v1879_v37 = vrot.slane %v8400_v18, 1  ;;  %v10096_v50 = vpop.f32.mrb[11].mxu0  ;;  %v8416_v32 = vld [vmem:[#allocation11 + $0x220] sm:$0xff]  }
 0x256   : > { %7861 = vmatmul.mubr.bf16.gmra.mrb[84].mxu1 %v2038_v25  ;;  %v5250_v11 = vrot.slane %v5248_v10, 1  ;;  %v2060_v2 = vshrl.u32 %v1877_v31, 16  ;;  %v2062_v8 = vshll.u32 %v1877_v31, 16  ;;  %v10090_v34 = vcombine.low %v4687_v24, %v4644_v12  ;;  %v8405_v26 = vld [vmem:[#allocation2 + $0x50] ss:$0 sps:$4 sm:$0x33]  }
 0x257   : > { %v4918_v46 = vsel %vm1589_vm4, %v4913_v29, %v4917_v17  ;;  %v2069_v19 = vrot.slane %v2067_v63, 1  ;;  %v1880_v9 = vsel %vm1862_vm3, %v1878_v57, %v1879_v37  ;;  %v2099_v30 = vshll.u32 %v1879_v37, 16  ;;  %7893 = vmatpush3.bf16.msra.mxu1 %v8404_v5 }
 0x258   : > { %v5254_v15 = vshrl.u32 %v4918_v46, 16  ;;  %v5256_v1 = vshll.u32 %v4918_v46, 16  ;;  %v5251_v39 = vor.u32 %v5250_v11, %v5246_v58  ;;  %v2064_v23 = vrot.slane %v2062_v8, 1  ;;  %7894 = vmatprep.subr.bf16.mxu1 %v8410_v16  ;;  %v8406_v58 = vld [vmem:[#allocation2 + $0x5c] ss:$0 sps:$4 sm:$0x33]  }
 0x259   : > { %v2092_v27 = vshrl.u32 %v1880_v9, 16  ;;  %v2094_v14 = vshll.u32 %v1880_v9, 16  ;;  %v2101_v18 = vrot.slane %v2099_v30, 1  ;;  %v4922_v35 = vshrl.u32 %v10090_v34, 16 }
 0x25a   : > { %v5258_v41 = vrot.slane %v5256_v1, 1  ;;  %v5252_v40 = vsel %vm1589_vm4, %v5251_v39, %v4917_v17  ;;  %v2065_v53 = vor.u32 %v2064_v23, %v2060_v2  ;;  %v4924_v5 = vshll.u32 %v10090_v34, 16  ;;  %v8422_v2 = vld [vmem:[#allocation11 + $0x228] sm:$0xff]   ;;  %v8407_v39 = vld [vmem:[#allocation2 + $0x44] ss:$0 sps:$4 sm:$0x11]  }
 0x25b   : > { %v2096_v44 = vrot.slane %v2094_v14, 1  ;;  %v4929_v4 = vshll.u32 %v8401_v45, 16  ;;  %v4933_v24 = vshrl.u32 %v8401_v45, 16  ;;  %v7018_v25 = vcombine.low %v4643_v51, %v4644_v12  ;;  %7895 = vmatpush3.bf16.msra.mxu1 %v8410_v16  ;;  %v4647_v45 = vld [vmem:[#allocation2 + $0x40] sm:$0xf]  ;;  %v8428_v23 = vld [vmem:[#allocation11 + $0x230] sm:$0xff]  }
 0x25c   : > { %v5259_v10 = vor.u32 %v5258_v41, %v5254_v15  ;;  %v2070_v57 = vsel %vm1589_vm4, %v2065_v53, %v2069_v19  ;;  %v4926_v29 = vrot.slane %v4924_v5, 1  ;;  %v1881_v31 = vrot.slane %v9877_v54, 1  ;;  %7896 = vmatprep.subr.bf16.mxu1 %v8416_v32 }
 0x25d   : > { %7864 = vmatprep.mubr.bf16.mxu1 %v2070_v57  ;;  %v2097_v63 = vor.u32 %v2096_v44, %v2092_v27  ;;  %v4931_v17 = vrot.slane %v4929_v4, 1  ;;  %v5293_v37 = vshll.u32 %v4933_v24, 16  ;;  %v5278_v11 = vshrl.u32 %v7018_v25, 16  ;;  %v4646_v4 = vld [vmem:[#allocation2 + $0x3c] sm:$0xf] }
 0x25e   : > { %v5264_v8 = vsel %vm1589_vm4, %v5259_v10, %v5263_v59  ;;  %v4927_v12 = vor.u32 %v4926_v29, %v4922_v35  ;;  %v5280_v46 = vshll.u32 %v7018_v25, 16  ;;  %v1882_v16 = vrot.slane %v8405_v26, 1  ;;  %v4688_v35 = vld [vmem:[#allocation2 + $0x3c] sm:$0xe] }
 0x25f   : > { %6006 = vmatprep.mubr.bf16.mxu0 %v5264_v8  ;;  %v2102_v19 = vsel %vm1589_vm4, %v2097_v63, %v2101_v18  ;;  %v5295_v9 = vrot.slane %v5293_v37, 1  ;;  %v1884_v54 = vrot.slane %v9912_v22, 1  ;;  %v1885_v30 = vrot.slane %v8406_v58, 1  ;;  %7897 = vmatpush3.bf16.msra.mxu1 %v8416_v32  ;;  %v8411_v57 = vld [vmem:[#allocation2 + $0x68] ss:$0 sps:$4 sm:$0x33]  }
 0x260   : > { %6007 = vmatmul.mubr.bf16.gmra.mrb[84].mxu0 %v5252_v40  ;;  %7865 = vmatmul.mubr.bf16.gmra.mrb[88].mxu1 %v2102_v19  ;;  %v4932_v15 = vsel %vm1589_vm4, %v4927_v12, %v4931_v17  ;;  %v5282_v1 = vrot.slane %v5280_v46, 1  ;;  %v1883_v48 = vsel %vm1862_vm3, %v1881_v31, %v1882_v16  ;;  %v2131_v59 = vshll.u32 %v1882_v16, 16  ;;  %v8434_v8 = vld [vmem:[#allocation11 + $0x238] sm:$0xff]   ;;  %v4650_v19 = vld [vmem:[#allocation2 + $0x4c] sm:$0xf] }
 0x261   : > { %v5286_v51 = vshrl.u32 %v4932_v15, 16  ;;  %v5288_v27 = vshll.u32 %v4932_v15, 16  ;;  %v2124_v14 = vshrl.u32 %v1883_v48, 16  ;;  %v2126_v18 = vshll.u32 %v1883_v48, 16  ;;  %7898 = vmatprep.subr.bf16.mxu1 %v8422_v2 }
 0x262   : > { %v5283_v22 = vor.u32 %v5282_v1, %v5278_v11  ;;  %v2133_v41 = vrot.slane %v2131_v59, 1  ;;  %v1886_v32 = vsel %vm1862_vm3, %v1884_v54, %v1885_v30  ;;  %v2163_v40 = vshll.u32 %v1885_v30, 16  ;;  %v8412_v11 = vld [vmem:[#allocation2 + $0x74] ss:$0 sps:$4 sm:$0x33]  }
 0x263   : > { %v5290_v53 = vrot.slane %v5288_v27, 1  ;;  %v2128_v5 = vrot.slane %v2126_v18, 1  ;;  %v2156_v26 = vshrl.u32 %v1886_v32, 16  ;;  %v2158_v44 = vshll.u32 %v1886_v32, 16  ;;  %7899 = vmatpush3.bf16.msra.mxu1 %v8422_v2  ;;  %v4689_v1 = vld [vmem:[#allocation2 + $0x48] sm:$0xe] }
 0x264   : > { %v5284_v24 = vsel %vm1589_vm4, %v5283_v22, %v4931_v17  ;;  %v2165_v25 = vrot.slane %v2163_v40, 1  ;;  %v10112_v58 = vcombine.low %v4688_v35, %v4647_v45  ;;  %v4943_v10 = vshll.u32 %v8407_v39, 16  ;;  %7900 = vmatprep.subr.bf16.mxu1 %v8428_v23  ;;  %v8413_v48 = vld [vmem:[#allocation2 + $0x50] ss:$0 sps:$4 sm:$0x11]  }
 0x265   : > { %v5291_v29 = vor.u32 %v5290_v53, %v5286_v51  ;;  %v2129_v31 = vor.u32 %v2128_v5, %v2124_v14  ;;  %v2160_v63 = vrot.slane %v2158_v44, 1  ;;  %v4947_v37 = vshrl.u32 %v8407_v39, 16 }
 0x266   : > { %v4936_v12 = vshrl.u32 %v10112_v58, 16  ;;  %v4938_v46 = vshll.u32 %v10112_v58, 16  ;;  %v4945_v16 = vrot.slane %v4943_v10, 1  ;;  %v7020_v2 = vcombine.low %v4646_v4, %v4647_v45 }
 0x267   : > { %v5296_v17 = vsel %vm1589_vm4, %v5291_v29, %v5295_v9  ;;  %v2134_v54 = vsel %vm1589_vm4, %v2129_v31, %v2133_v41  ;;  %v2161_v30 = vor.u32 %v2160_v63, %v2156_v26  ;;  %v10118_v15 = vshll.u32 %v4947_v37, 16  ;;  %7901 = vmatpush3.bf16.msra.mxu1 %v8428_v23 }
 0x268   : > { %6014 = vmatprep.mubr.bf16.mxu0 %v5296_v17  ;;  %7868 = vmatprep.mubr.bf16.mxu1 %v2134_v54  ;;  %v4940_v59 = vrot.slane %v4938_v46, 1  ;;  %v5310_v39 = vshrl.u32 %v7020_v2, 16  ;;  %v5312_v51 = vshll.u32 %v7020_v2, 16  ;;  %v1887_v27 = vrot.slane %v9925_v47, 1 }
 0x269   : > { %6015 = vmatmul.mubr.bf16.gmra.mrb[88].mxu0 %v5284_v24  ;;  %v2166_v45 = vsel %vm1589_vm4, %v2161_v30, %v2165_v25  ;;  %v5327_v9 = vrot.slane %v10118_v15, 1  ;;  %v1888_v14 = vrot.slane %v8411_v57, 1  ;;  %v1890_v18 = vrot.slane %v9939_v3, 1  ;;  %7902 = vmatprep.subr.bf16.mxu1 %v8434_v8  ;;  %v10127_v5 = vpop.f32.mrb[16].mxu1 }
 0x26a   : > { %7869 = vmatmul.mubr.bf16.gmra.mrb[92].mxu1 %v2166_v45  ;;  %v4941_v35 = vor.u32 %v4940_v59, %v4936_v12  ;;  %v5314_v22 = vrot.slane %v5312_v51, 1  ;;  %v1891_v23 = vrot.slane %v8412_v11, 1  ;;  %v10124_v41 = vcombine.low %v4689_v1, %v4650_v19  ;;  %v10130_v24 = vpop.f32.mrb[17].mxu1  ;;  %v4649_v12 = vld [vmem:[#allocation2 + $0x48] sm:$0xf] }
 0x26b   : > { %v1889_v32 = vsel %vm1862_vm3, %v1887_v27, %v1888_v14  ;;  %v2195_v40 = vshll.u32 %v1888_v14, 16  ;;  %v4957_v53 = vshll.u32 %v8413_v48, 16  ;;  %v4961_v47 = vshrl.u32 %v8413_v48, 16  ;;  %7903 = vmatpush3.bf16.msra.mxu1 %v8434_v8  ;;  %v10133_v31 = vpop.f32.mrb[18].mxu1 }
 0x26c   : > { %v4946_v26 = vsel %vm1589_vm4, %v4941_v35, %v4945_v16  ;;  %v5315_v44 = vor.u32 %v5314_v22, %v5310_v39  ;;  %v2188_v4 = vshrl.u32 %v1889_v32, 16  ;;  %v2190_v3 = vshll.u32 %v1889_v32, 16  ;;  %v8417_v46 = vld [vmem:[#allocation2 + $0x80] ss:$0 sps:$4 sm:$0x33]   ;;  %v10136_v17 = vpop.f32.mrb[19].mxu1 }
 0x26d   : > { %v5318_v25 = vshrl.u32 %v4946_v26, 16  ;;  %v5320_v10 = vshll.u32 %v4946_v26, 16  ;;  %v2197_v57 = vrot.slane %v2195_v40, 1  ;;  %v1892_v29 = vsel %vm1862_vm3, %v1890_v18, %v1891_v23  ;;  %v8418_v2 = vld [vmem:[#allocation2 + $0x8c] ss:$0 sps:$4 sm:$0x33]  }
 0x26e   : > { %v5316_v63 = vsel %vm1589_vm4, %v5315_v44, %v4945_v16  ;;  %v2192_v37 = vrot.slane %v2190_v3, 1  ;;  %v2220_v11 = vshrl.u32 %v1892_v29, 16  ;;  %v2222_v8 = vshll.u32 %v1892_v29, 16  ;;  %v4653_v16 = vld [vmem:[#allocation2 + $0x58] sm:$0xf] }
 0x26f   : > { %v5322_v54 = vrot.slane %v5320_v10, 1  ;;  %v2227_v30 = vshll.u32 %v1891_v23, 16  ;;  %v4950_v15 = vshrl.u32 %v10124_v41, 16  ;;  %v4952_v1 = vshll.u32 %v10124_v41, 16  ;;  %v10142_v27 = vpop.f32.mrb[12].mxu0 }
 0x270   : > { %v2193_v48 = vor.u32 %v2192_v37, %v2188_v4  ;;  %v2224_v59 = vrot.slane %v2222_v8, 1  ;;  %v4959_v39 = vrot.slane %v4957_v53, 1  ;;  %v10140_v51 = vshll.u32 %v4961_v47, 16  ;;  %v10144_v22 = vld [vmem:[#allocation2 + $0x5c] ss:$0 sps:$4 sm:$0x11]  }
 0x271   : > { %v5323_v45 = vor.u32 %v5322_v54, %v5318_v25  ;;  %v2229_v14 = vrot.slane %v2227_v30, 1  ;;  %v4954_v18 = vrot.slane %v4952_v1, 1  ;;  %v7022_v35 = vcombine.low %v4649_v12, %v4650_v19  ;;  %v10146_v32 = vpop.f32.mrb[13].mxu0  ;;  %v4690_v47 = vld [vmem:[#allocation2 + $0x54] sm:$0xe]  ;;  %v10156_v29 = vpop.f32.mrb[20].mxu1 }
 0x272   : > { %v2198_v23 = vsel %vm1589_vm4, %v2193_v48, %v2197_v57  ;;  %v2225_v40 = vor.u32 %v2224_v59, %v2220_v11  ;;  %v5359_v26 = vrot.slane %v10140_v51, 1  ;;  %v1893_v53 = vrot.slane %v9950_v13, 1  ;;  %v10151_v44 = vpop.f32.mrb[14].mxu0  ;;  %v10160_v8 = vpop.f32.mrb[21].mxu1 }
 0x273   : > { %v5328_v4 = vsel %vm1589_vm4, %v5323_v45, %v5327_v9  ;;  %7872 = vmatprep.mubr.bf16.mxu1 %v2198_v23  ;;  %v4955_v3 = vor.u32 %v4954_v18, %v4950_v15  ;;  %v5342_v25 = vshrl.u32 %v7022_v35, 16  ;;  %v5344_v19 = vshll.u32 %v7022_v35, 16  ;;  %v10154_v10 = vpop.f32.mrb[15].mxu0  ;;  %v10166_v15 = vpop.f32.mrb[22].mxu1 }
 0x274   : > { %6022 = vmatprep.mubr.bf16.mxu0 %v5328_v4  ;;  %v2230_v57 = vsel %vm1589_vm4, %v2225_v40, %v2229_v14  ;;  %v1894_v37 = vrot.slane %v8417_v46, 1  ;;  %v1896_v11 = vrot.slane %v9963_v52, 1  ;;  %v1897_v13 = vrot.slane %v8418_v2, 1  ;;  %11045 = vst [vmem:[#allocation28_spill] sm:$0xff] %v10166_v15  ;;  %v10169_v52 = vpop.f32.mrb[23].mxu1 }
 0x275   : > { %6023 = vmatmul.mubr.bf16.gmra.mrb[92].mxu0 %v5316_v63  ;;  %7873 = vmatmul.mubr.bf16.gmra.mrb[0].mxu1 %v2230_v57  ;;  %v4960_v9 = vsel %vm1589_vm4, %v4955_v3, %v4959_v39  ;;  %v5346_v12 = vrot.slane %v5344_v19, 1  ;;  %v10163_v54 = vcombine.low %v4690_v47, %v4653_v16  ;;  %v4971_v30 = vshll.u32 %v10144_v22, 16  ;;  %11046 = vst [vmem:[#allocation29_spill] sm:$0xff] %v10169_v52  ;;  %v4652_v40 = vld [vmem:[#allocation2 + $0x54] sm:$0xf] }
 0x276   : > { %v5350_v1 = vshrl.u32 %v4960_v9, 16  ;;  %v5352_v48 = vshll.u32 %v4960_v9, 16  ;;  %v1895_v46 = vsel %vm1862_vm3, %v1893_v53, %v1894_v37  ;;  %v2259_v59 = vshll.u32 %v1894_v37, 16  ;;  %v8423_v47 = vld [vmem:[#allocation2 + $0x98] ss:$0 sps:$4 sm:$0x33]  }
 0x277   : > { %v5347_v2 = vor.u32 %v5346_v12, %v5342_v25  ;;  %v2252_v51 = vshrl.u32 %v1895_v46, 16  ;;  %v2254_v63 = vshll.u32 %v1895_v46, 16  ;;  %v1898_v45 = vsel %vm1862_vm3, %v1896_v11, %v1897_v13  ;;  %v8424_v57 = vld [vmem:[#allocation2 + $0xa4] ss:$0 sps:$4 sm:$0x33]  }
 0x278   : > { %v5354_v14 = vrot.slane %v5352_v48, 1  ;;  %v2261_v18 = vrot.slane %v2259_v59, 1  ;;  %v2284_v35 = vshrl.u32 %v1898_v45, 16  ;;  %v2286_v23 = vshll.u32 %v1898_v45, 16  ;;  %v4656_v46 = vld [vmem:[#allocation2 + $0x64] sm:$0xf] }
 0x279   : > { %v5348_v4 = vsel %vm1589_vm4, %v5347_v2, %v4959_v39  ;;  %v2256_v3 = vrot.slane %v2254_v63, 1  ;;  %v2291_v19 = vshll.u32 %v1897_v13, 16  ;;  %v4964_v53 = vshrl.u32 %v10163_v54, 16  ;;  %v4691_v52 = vld [vmem:[#allocation2 + $0x60] sm:$0xe] }
 0x27a   : > { %v5355_v37 = vor.u32 %v5354_v14, %v5350_v1  ;;  %v2288_v9 = vrot.slane %v2286_v23, 1  ;;  %v4966_v25 = vshll.u32 %v10163_v54, 16  ;;  %v4973_v12 = vrot.slane %v4971_v30, 1  ;;  %v10176_v15 = vpop.f32.mrb[24].mxu1 }
 0x27b   : > { %v2257_v11 = vor.u32 %v2256_v3, %v2252_v51  ;;  %v2293_v48 = vrot.slane %v2291_v19, 1  ;;  %v4975_v59 = vshrl.u32 %v10144_v22, 16  ;;  %v7024_v45 = vcombine.low %v4652_v40, %v4653_v16  ;;  %v8425_v1 = vld [vmem:[#allocation2 + $0x68] ss:$0 sps:$4 sm:$0x11]   ;;  %v10180_v14 = vpop.f32.mrb[25].mxu1 }
 0x27c   : > { %v5360_v39 = vsel %vm1589_vm4, %v5355_v37, %v5359_v26  ;;  %v2289_v13 = vor.u32 %v2288_v9, %v2284_v35  ;;  %v4968_v2 = vrot.slane %v4966_v25, 1  ;;  %v1899_v63 = vrot.slane %v9975_v7, 1  ;;  %v10183_v22 = vpop.f32.mrb[26].mxu1 }
 0x27d   : > { %6030 = vmatprep.mubr.bf16.mxu0 %v5360_v39  ;;  %v2262_v30 = vsel %vm1589_vm4, %v2257_v11, %v2261_v18  ;;  %v5389_v51 = vshll.u32 %v4975_v59, 16  ;;  %v5374_v23 = vshrl.u32 %v7024_v45, 16  ;;  %v5376_v3 = vshll.u32 %v7024_v45, 16  ;;  %v10187_v7 = vpop.f32.mrb[27].mxu1 }
 0x27e   : > { %6031 = vmatmul.mubr.bf16.gmra.mrb[96].mxu0 %v5348_v4  ;;  %7876 = vmatprep.mubr.bf16.mxu1 %v2262_v30  ;;  %v2294_v16 = vsel %vm1589_vm4, %v2289_v13, %v2293_v48  ;;  %v4969_v26 = vor.u32 %v4968_v2, %v4964_v53  ;;  %v1900_v35 = vrot.slane %v8423_v47, 1  ;;  %v1902_v40 = vrot.slane %v9991_v61, 1  ;;  %11047 = vst [vmem:[#allocation30_spill] sm:$0xff] %v10187_v7 }
 0x27f   : > { %7877 = vmatmul.mubr.bf16.gmra.mrb[4].mxu1 %v2294_v16  ;;  %v5391_v19 = vrot.slane %v5389_v51, 1  ;;  %v5378_v37 = vrot.slane %v5376_v3, 1  ;;  %v1903_v9 = vrot.slane %v8424_v57, 1  ;;  %v10189_v18 = vcombine.low %v4691_v52, %v4656_v46  ;;  %v4655_v3 = vld [vmem:[#allocation2 + $0x60] sm:$0xf] }
 0x280   : > { %v4974_v25 = vsel %vm1589_vm4, %v4969_v26, %v4973_v12  ;;  %v1901_v11 = vsel %vm1862_vm3, %v1899_v63, %v1900_v35  ;;  %v2323_v4 = vshll.u32 %v1900_v35, 16  ;;  %v4985_v59 = vshll.u32 %v8425_v1, 16 }
 0x281   : > { %v5382_v45 = vshrl.u32 %v4974_v25, 16  ;;  %v5384_v48 = vshll.u32 %v4974_v25, 16  ;;  %v5379_v53 = vor.u32 %v5378_v37, %v5374_v23  ;;  %v2316_v47 = vshrl.u32 %v1901_v11, 16 }
 0x282   : > { %v2318_v39 = vshll.u32 %v1901_v11, 16  ;;  %v2325_v61 = vrot.slane %v2323_v4, 1  ;;  %v1904_v13 = vsel %vm1862_vm3, %v1902_v40, %v1903_v9  ;;  %v2355_v2 = vshll.u32 %v1903_v9, 16  ;;  %v8429_v4 = vld [vmem:[#allocation2 + $0xb0] ss:$0 sps:$4 sm:$0x33]  }
 0x283   : > { %v5386_v30 = vrot.slane %v5384_v48, 1  ;;  %v5380_v57 = vsel %vm1589_vm4, %v5379_v53, %v4973_v12  ;;  %v2348_v52 = vshrl.u32 %v1904_v13, 16  ;;  %v2350_v51 = vshll.u32 %v1904_v13, 16  ;;  %v8430_v48 = vld [vmem:[#allocation2 + $0xbc] ss:$0 sps:$4 sm:$0x33]  }
 0x284   : > { %v2320_v16 = vrot.slane %v2318_v39, 1  ;;  %v2357_v26 = vrot.slane %v2355_v2, 1  ;;  %v4978_v63 = vshrl.u32 %v10189_v18, 16  ;;  %v4980_v35 = vshll.u32 %v10189_v18, 16 }
 0x285   : > { %v5387_v25 = vor.u32 %v5386_v30, %v5382_v45  ;;  %v2352_v23 = vrot.slane %v2350_v51, 1  ;;  %v4987_v37 = vrot.slane %v4985_v59, 1  ;;  %v4989_v11 = vshrl.u32 %v8425_v1, 16 }
 0x286   : > { %v2321_v7 = vor.u32 %v2320_v16, %v2316_v47  ;;  %v4982_v40 = vrot.slane %v4980_v35, 1  ;;  %v7026_v9 = vcombine.low %v4655_v3, %v4656_v46  ;;  %v10199_v12 = vadd.f32 %v10017_v36, %v10012_v28 }
 0x287   : > { %v5392_v53 = vsel %vm1589_vm4, %v5387_v25, %v5391_v19  ;;  %v2353_v39 = vor.u32 %v2352_v23, %v2348_v52  ;;  %v5421_v13 = vshll.u32 %v4989_v11, 16  ;;  %v1905_v2 = vrot.slane %v10005_v42, 1 }
 0x288   : > { %11048 = vst [vmem:[#allocation31_spill] sm:$0xff] %v10199_v12  ;;  %6038 = vmatprep.mubr.bf16.mxu0 %v5392_v53  ;;  %v2326_v45 = vsel %vm1589_vm4, %v2321_v7, %v2325_v61  ;;  %v4983_v59 = vor.u32 %v4982_v40, %v4978_v63  ;;  %v5406_v1 = vshrl.u32 %v7026_v9, 16  ;;  %v5408_v30 = vshll.u32 %v7026_v9, 16  ;;  %v4659_v7 = vld [vmem:[#allocation2 + $0x70] sm:$0xf] }
 0x289   : > { %6039 = vmatmul.mubr.bf16.gmra.mrb[100].mxu0 %v5380_v57  ;;  %7880 = vmatprep.mubr.bf16.mxu1 %v2326_v45  ;;  %v2358_v46 = vsel %vm1589_vm4, %v2353_v39, %v2357_v26  ;;  %v5423_v47 = vrot.slane %v5421_v13, 1  ;;  %v1906_v28 = vrot.slane %v8429_v4, 1  ;;  %v1908_v36 = vrot.slane %v10028_v38, 1  ;;  %v4692_v61 = vld [vmem:[#allocation2 + $0x6c] sm:$0xe] }
 0x28a   : > { %7881 = vmatmul.mubr.bf16.gmra.mrb[8].mxu1 %v2358_v46  ;;  %v4988_v19 = vsel %vm1589_vm4, %v4983_v59, %v4987_v37  ;;  %v5410_v52 = vrot.slane %v5408_v30, 1  ;;  %v1909_v51 = vrot.slane %v8430_v48, 1  ;;  %v10209_v42 = vadd.f32 %v10024_v60, %v10019_v62  ;;  %v8431_v63 = vld [vmem:[#allocation2 + $0x74] ss:$0 sps:$4 sm:$0x11]  }
 0x28b   : > { %v5414_v3 = vshrl.u32 %v4988_v19, 16  ;;  %v5416_v57 = vshll.u32 %v4988_v19, 16  ;;  %v1907_v16 = vsel %vm1862_vm3, %v1905_v2, %v1906_v28  ;;  %v2387_v26 = vshll.u32 %v1906_v28, 16  ;;  %v4658_v48 = vld [vmem:[#allocation2 + $0x6c] sm:$0xf] }
 0x28c   : > { %11049 = vst [vmem:[#allocation32_spill] sm:$0xff] %v10209_v42  ;;  %v5411_v35 = vor.u32 %v5410_v52, %v5406_v1  ;;  %v2380_v25 = vshrl.u32 %v1907_v16, 16  ;;  %v2382_v38 = vshll.u32 %v1907_v16, 16  ;;  %v1910_v23 = vsel %vm1862_vm3, %v1908_v36, %v1909_v51  ;;  %v8435_v13 = vld [vmem:[#allocation2 + $0x20] ss:$0 sps:$4 sm:$0x33]  }
 0x28d   : > { %v5418_v11 = vrot.slane %v5416_v57, 1  ;;  %v2389_v4 = vrot.slane %v2387_v26, 1  ;;  %v2412_v40 = vshrl.u32 %v1910_v23, 16  ;;  %v2414_v9 = vshll.u32 %v1910_v23, 16 }
 0x28e   : > { %v5412_v62 = vsel %vm1589_vm4, %v5411_v35, %v4987_v37  ;;  %v2384_v60 = vrot.slane %v2382_v38, 1  ;;  %v2419_v53 = vshll.u32 %v1909_v51, 16  ;;  %v10214_v39 = vcombine.low %v4692_v61, %v4659_v7  ;;  %v8436_v30 = vld [vmem:[#allocation2 + $0x2c] ss:$0 sps:$4 sm:$0x33]   ;;  %v10216_v46 = vpop.f32.mrb[16].mxu0 }
 0x28f   : > { %v5419_v2 = vor.u32 %v5418_v11, %v5414_v3  ;;  %v2416_v45 = vrot.slane %v2414_v9, 1  ;;  %v4999_v59 = vshll.u32 %v8431_v63, 16  ;;  %v5003_v1 = vshrl.u32 %v8431_v63, 16  ;;  %v10222_v57 = vpop.f32.mrb[17].mxu0 }
 0x290   : > { %v10218_v28 = vpop.f32.mrb[28].mxu1  ;;  %v2385_v36 = vor.u32 %v2384_v60, %v2380_v25  ;;  %v2421_v19 = vrot.slane %v2419_v53, 1  ;;  %v4992_v52 = vshrl.u32 %v10214_v39, 16  ;;  %v4994_v37 = vshll.u32 %v10214_v39, 16  ;;  %v10229_v63 = vpop.f32.mrb[18].mxu0 }
 0x291   : > { %v10224_v51 = vpop.f32.mrb[29].mxu1  ;;  %v5424_v61 = vsel %vm1589_vm4, %v5419_v2, %v5423_v47  ;;  %v2417_v3 = vor.u32 %v2416_v45, %v2412_v40  ;;  %v5001_v16 = vrot.slane %v4999_v59, 1  ;;  %v10227_v26 = vshll.u32 %v5003_v1, 16  ;;  %v10238_v9 = vpop.f32.mrb[19].mxu0 }
 0x292   : > { %v10231_v35 = vpop.f32.mrb[30].mxu1  ;;  %6046 = vmatprep.mubr.bf16.mxu0 %v5424_v61  ;;  %v2390_v25 = vsel %vm1589_vm4, %v2385_v36, %v2389_v4  ;;  %v4996_v38 = vrot.slane %v4994_v37, 1  ;;  %v7028_v23 = vcombine.low %v4658_v48, %v4659_v7  ;;  %v10236_v11 = vadd.f32 %v10035_v49, %v10033_v0  ;;  %v4662_v49 = vld [vmem:[#allocation2 + $0x7c] sm:$0xf] }
 0x293   : > { %v10240_v47 = vpop.f32.mrb[31].mxu1  ;;  %6047 = vmatmul.mubr.bf16.gmra.mrb[104].mxu0 %v5412_v62  ;;  %7884 = vmatprep.mubr.bf16.mxu1 %v2390_v25  ;;  %v2422_v40 = vsel %vm1589_vm4, %v2417_v3, %v2421_v19  ;;  %v5455_v60 = vrot.slane %v10227_v26, 1  ;;  %v5165_v53 = vrot.slane %v10058_v43, 1  ;;  %v5166_v2 = vrot.slane %v8435_v13, 1 }
 0x294   : > { %11050 = vst [vmem:[#allocation33_spill] sm:$0xff] %v10236_v11  ;;  %11051 = vst [vmem:[#allocation34_spill] sm:$0xff] %v10240_v47  ;;  %7885 = vmatmul.mubr.bf16.gmra.mrb[12].mxu1 %v2422_v40  ;;  %v4997_v4 = vor.u32 %v4996_v38, %v4992_v52  ;;  %v5438_v7 = vshrl.u32 %v7028_v23, 16  ;;  %v5440_v48 = vshll.u32 %v7028_v23, 16  ;;  %v5168_v0 = vrot.slane %v10072_v6, 1 }
 0x295   : > { %v5167_v45 = vsel %vm1862_vm3, %v5165_v53, %v5166_v2  ;;  %v5241_v59 = vshll.u32 %v5166_v2, 16  ;;  %v5169_v1 = vrot.slane %v8436_v30, 1  ;;  %v10249_v62 = vadd.f32 %v10044_v20, %v10040_v55  ;;  %v8437_v36 = vld [vmem:[#allocation2 + $0x80] ss:$0 sps:$4 sm:$0x11]  }
 0x296   : > { %v5002_v19 = vsel %vm1589_vm4, %v4997_v4, %v5001_v16  ;;  %v5442_v43 = vrot.slane %v5440_v48, 1  ;;  %v5234_v13 = vshrl.u32 %v5167_v45, 16  ;;  %v5236_v37 = vshll.u32 %v5167_v45, 16  ;;  %v4693_v52 = vld [vmem:[#allocation2 + $0x78] sm:$0xe]  ;;  %v10253_v25 = vpop.f32.mrb[20].mxu0 }
 0x297   : > { %11052 = vst [vmem:[#allocation35_spill] sm:$0xff] %v10249_v62  ;;  %v5446_v61 = vshrl.u32 %v5002_v19, 16  ;;  %v5448_v3 = vshll.u32 %v5002_v19, 16  ;;  %v5243_v26 = vrot.slane %v5241_v59, 1  ;;  %v5170_v6 = vsel %vm1862_vm3, %v5168_v0, %v5169_v1  ;;  %v10255_v55 = vpop.f32.mrb[21].mxu0 }
 0x298   : > { %v5443_v38 = vor.u32 %v5442_v43, %v5438_v7  ;;  %v5238_v30 = vrot.slane %v5236_v37, 1  ;;  %v5266_v23 = vshrl.u32 %v5170_v6, 16  ;;  %v5268_v40 = vshll.u32 %v5170_v6, 16  ;;  %v4661_v48 = vld [vmem:[#allocation2 + $0x78] sm:$0xf]  ;;  %v10259_v45 = vpop.f32.mrb[22].mxu0 }
 0x299   : > { %v5450_v20 = vrot.slane %v5448_v3, 1  ;;  %v5273_v53 = vshll.u32 %v5169_v1, 16  ;;  %v10257_v2 = vcombine.low %v4693_v52, %v4662_v49  ;;  %v5013_v4 = vshll.u32 %v8437_v36, 16  ;;  %v8440_v62 = vld [vmem:[#allocation2 + $0x38] ss:$0 sps:$4 sm:$0x33]  }
 0x29a   : > { %v5444_v59 = vsel %vm1589_vm4, %v5443_v38, %v5001_v16  ;;  %v5239_v19 = vor.u32 %v5238_v30, %v5234_v13  ;;  %v5270_v0 = vrot.slane %v5268_v40, 1  ;;  %v5017_v42 = vshrl.u32 %v8437_v36, 16  ;;  %v10262_v7 = vpop.f32.mrb[23].mxu0  ;;  %v8441_v47 = vld [vmem:[#allocation2 + $0x44] ss:$0 sps:$4 sm:$0x33]  }
 0x29b   : > { %v5451_v43 = vor.u32 %v5450_v20, %v5446_v61  ;;  %v5275_v37 = vrot.slane %v5273_v53, 1  ;;  %v5006_v6 = vshrl.u32 %v10257_v2, 16  ;;  %v5008_v1 = vshll.u32 %v10257_v2, 16 }
 0x29c   : > { %v5244_v52 = vsel %vm1589_vm4, %v5239_v19, %v5243_v26  ;;  %v5271_v3 = vor.u32 %v5270_v0, %v5266_v23  ;;  %v5015_v12 = vrot.slane %v5013_v4, 1  ;;  %v10267_v11 = vshll.u32 %v5017_v42, 16  ;;  %v8442_v42 = vld [vmem:[#allocation2 + $0x8c] ss:$0 sps:$4 sm:$0x11]  }
 0x29d   : > { %v5456_v16 = vsel %vm1589_vm4, %v5451_v43, %v5455_v60  ;;  %7904 = vmatprep.mubr.bf16.mxu1 %v5244_v52  ;;  %v5010_v36 = vrot.slane %v5008_v1, 1  ;;  %v7030_v13 = vcombine.low %v4661_v48, %v4662_v49  ;;  %v10272_v61 = vadd.f32 %v10088_v21, %v10085_v56  ;;  %v4665_v56 = vld [vmem:[#allocation2 + $0x88] sm:$0xf] }
 0x29e   : > { %6054 = vmatprep.mubr.bf16.mxu0 %v5456_v16  ;;  %v5276_v38 = vsel %vm1589_vm4, %v5271_v3, %v5275_v37  ;;  %v5487_v30 = vrot.slane %v10267_v11, 1  ;;  %v5171_v26 = vrot.slane %v10090_v34, 1  ;;  %v5172_v23 = vrot.slane %v8440_v62, 1  ;;  %v10280_v21 = vpop.f32.mrb[24].mxu0 }
 0x29f   : > { %11053 = vst [vmem:[#allocation36_spill] sm:$0xff] %v10272_v61  ;;  %v10277_v40 = vpop.f32.mrb[32].mxu1  ;;  %6055 = vmatmul.mubr.bf16.gmra.mrb[108].mxu0 %v5444_v59  ;;  %7905 = vmatmul.mubr.bf16.vlgmr.msra.gmra.mrb[80].mxu1 %v5276_v38  ;;  %v5011_v60 = vor.u32 %v5010_v36, %v5006_v6  ;;  %v5470_v20 = vshrl.u32 %v7030_v13, 16  ;;  %v5472_v49 = vshll.u32 %v7030_v13, 16  ;;  %v5174_v53 = vrot.slane %v10112_v58, 1  ;;  %v10289_v19 = vpop.f32.mrb[25].mxu0 }
 0x2a0   : > { %11054 = vst [vmem:[#allocation37_spill] sm:$0xff] %v10277_v40  ;;  %v10282_v4 = vpop.f32.mrb[33].mxu1  ;;  %v5173_v11 = vsel %vm1862_vm3, %v5171_v26, %v5172_v23  ;;  %v5305_v48 = vshll.u32 %v5172_v23, 16  ;;  %v5175_v34 = vrot.slane %v8441_v47, 1  ;;  %v10287_v62 = vadd.f32 %v10096_v50, %v10092_v33  ;;  %v4694_v59 = vld [vmem:[#allocation2 + $0x84] sm:$0xe] }
 0x2a1   : > { %11055 = vst [vmem:[#allocation38_spill] sm:$0xff] %v10282_v4  ;;  %v10291_v0 = vpop.f32.mrb[34].mxu1  ;;  %v5016_v58 = vsel %vm1589_vm4, %v5011_v60, %v5015_v12  ;;  %v5474_v43 = vrot.slane %v5472_v49, 1  ;;  %v5298_v37 = vshrl.u32 %v5173_v11, 16  ;;  %v5300_v6 = vshll.u32 %v5173_v11, 16  ;;  %v10294_v1 = vpop.f32.mrb[26].mxu0 }
 0x2a2   : > { %11056 = vst [vmem:[#allocation39_spill] sm:$0xff] %v10287_v62  ;;  %11057 = vst [vmem:[#allocation40_spill] sm:$0xff] %v10291_v0  ;;  %v10296_v52 = vpop.f32.mrb[35].mxu1  ;;  %v5478_v3 = vshrl.u32 %v5016_v58, 16  ;;  %v5480_v47 = vshll.u32 %v5016_v58, 16  ;;  %v5307_v16 = vrot.slane %v5305_v48, 1  ;;  %v5176_v33 = vsel %vm1862_vm3, %v5174_v53, %v5175_v34 }
 0x2a3   : > { %11058 = vst [vmem:[#allocation41_spill] sm:$0xff] %v10296_v52  ;;  %v10299_v50 = vpop.f32.mrb[27].mxu0  ;;  %v5475_v36 = vor.u32 %v5474_v43, %v5470_v20  ;;  %v5302_v13 = vrot.slane %v5300_v6, 1  ;;  %v5330_v38 = vshrl.u32 %v5176_v33, 16  ;;  %v5332_v26 = vshll.u32 %v5176_v33, 16 }
 0x2a4   : > { %v5482_v23 = vrot.slane %v5480_v47, 1  ;;  %v5337_v60 = vshll.u32 %v5175_v34, 16  ;;  %v10301_v49 = vcombine.low %v4694_v59, %v4665_v56  ;;  %v5027_v11 = vshll.u32 %v8442_v42, 16  ;;  %v4664_v62 = vld [vmem:[#allocation2 + $0x84] sm:$0xf] }
 0x2a5   : > { %v5476_v61 = vsel %vm1589_vm4, %v5475_v36, %v5015_v12  ;;  %v5303_v52 = vor.u32 %v5302_v13, %v5298_v37  ;;  %v5334_v0 = vrot.slane %v5332_v26, 1  ;;  %v5031_v58 = vshrl.u32 %v8442_v42, 16  ;;  %v8445_v48 = vld [vmem:[#allocation2 + $0x50] ss:$0 sps:$4 sm:$0x33]  }
 0x2a6   : > { %v5483_v4 = vor.u32 %v5482_v23, %v5478_v3  ;;  %v5339_v53 = vrot.slane %v5337_v60, 1  ;;  %v5020_v40 = vshrl.u32 %v10301_v49, 16  ;;  %v5022_v20 = vshll.u32 %v10301_v49, 16  ;;  %v8446_v47 = vld [vmem:[#allocation2 + $0x5c] ss:$0 sps:$4 sm:$0x33]  }
 0x2a7   : > { %v5308_v43 = vsel %vm1589_vm4, %v5303_v52, %v5307_v16  ;;  %v5335_v6 = vor.u32 %v5334_v0, %v5330_v38  ;;  %v5029_v34 = vrot.slane %v5027_v11, 1  ;;  %v10307_v59 = vshll.u32 %v5031_v58, 16  ;;  %v8447_v16 = vld [vmem:[#allocation2 + $0x98] ss:$0 sps:$4 sm:$0x11]  }
 0x2a8   : > { %v5488_v33 = vsel %vm1589_vm4, %v5483_v4, %v5487_v30  ;;  %7908 = vmatprep.mubr.bf16.mxu1 %v5308_v43  ;;  %v5024_v12 = vrot.slane %v5022_v20, 1  ;;  %v7032_v37 = vcombine.low %v4664_v62, %v4665_v56  ;;  %v10312_v42 = vadd.f32 %v10146_v32, %v10142_v27  ;;  %v4668_v62 = vld [vmem:[#allocation2 + $0x94] sm:$0xf] }
 0x2a9   : > { %6062 = vmatprep.mubr.bf16.mxu0 %v5488_v33  ;;  %v5340_v3 = vsel %vm1589_vm4, %v5335_v6, %v5339_v53  ;;  %v5519_v36 = vrot.slane %v10307_v59, 1  ;;  %v5177_v0 = vrot.slane %v10124_v41, 1  ;;  %v5178_v52 = vrot.slane %v8445_v48, 1  ;;  %v4695_v41 = vld [vmem:[#allocation2 + $0x90] sm:$0xe] }
 0x2aa   : > { %11059 = vst [vmem:[#allocation42_spill] sm:$0xff] %v10312_v42  ;;  %6063 = vmatmul.mubr.bf16.gmra.mrb[112].mxu0 %v5476_v61  ;;  %7909 = vmatmul.mubr.bf16.gmra.mrb[84].mxu1 %v5340_v3  ;;  %v5025_v13 = vor.u32 %v5024_v12, %v5020_v40  ;;  %v5502_v30 = vshrl.u32 %v7032_v37, 16  ;;  %v5504_v4 = vshll.u32 %v7032_v37, 16  ;;  %v5180_v56 = vrot.slane %v10163_v54, 1 }
 0x2ab   : > { %v10318_v38 = vpop.f32.mrb[28].mxu0  ;;  %v5179_v27 = vsel %vm1862_vm3, %v5177_v0, %v5178_v52  ;;  %v5369_v32 = vshll.u32 %v5178_v52, 16  ;;  %v5181_v26 = vrot.slane %v8446_v47, 1  ;;  %v10323_v23 = vadd.f32 %v10154_v10, %v10151_v44  ;;  %v10327_v61 = vpop.f32.mrb[36].mxu1 }
 0x2ac   : > { %v10325_v60 = vpop.f32.mrb[29].mxu0  ;;  %v5030_v40 = vsel %vm1589_vm4, %v5025_v13, %v5029_v34  ;;  %v5506_v11 = vrot.slane %v5504_v4, 1  ;;  %v5362_v54 = vshrl.u32 %v5179_v27, 16  ;;  %v5364_v58 = vshll.u32 %v5179_v27, 16  ;;  %v10332_v53 = vpop.f32.mrb[37].mxu1 }
 0x2ad   : > { %11060 = vst [vmem:[#allocation43_spill] sm:$0xff] %v10323_v23  ;;  %v10330_v48 = vpop.f32.mrb[30].mxu0  ;;  %11061 = vst [vmem:[#allocation44_spill] sm:$0xff] %v10332_v53  ;;  %v5510_v20 = vshrl.u32 %v5030_v40, 16  ;;  %v5512_v43 = vshll.u32 %v5030_v40, 16  ;;  %v5371_v6 = vrot.slane %v5369_v32, 1  ;;  %v5182_v44 = vsel %vm1862_vm3, %v5180_v56, %v5181_v26 }
 0x2ae   : > { %v10335_v10 = vpop.f32.mrb[31].mxu0  ;;  %v10337_v59 = vpop.f32.mrb[38].mxu1  ;;  %v5507_v47 = vor.u32 %v5506_v11, %v5502_v30  ;;  %v5366_v33 = vrot.slane %v5364_v58, 1  ;;  %v5394_v12 = vshrl.u32 %v5182_v44, 16  ;;  %v5396_v37 = vshll.u32 %v5182_v44, 16 }
 0x2af   : > { %11062 = vst [vmem:[#allocation45_spill] sm:$0xff] %v10337_v59  ;;  %v10339_v3 = vpop.f32.mrb[39].mxu1  ;;  %v5514_v0 = vrot.slane %v5512_v43, 1  ;;  %v5401_v52 = vshll.u32 %v5181_v26, 16  ;;  %v10341_v13 = vcombine.low %v4695_v41, %v4668_v62  ;;  %v5041_v4 = vshll.u32 %v8447_v16, 16 }
 0x2b0   : > { %11063 = vst [vmem:[#allocation46_spill] sm:$0xff] %v10339_v3  ;;  %v4667_v27 = vld [vmem:[#allocation2 + $0x90] sm:$0xf]  ;;  %v5508_v32 = vsel %vm1589_vm4, %v5507_v47, %v5029_v34  ;;  %v5367_v40 = vor.u32 %v5366_v33, %v5362_v54  ;;  %v5398_v56 = vrot.slane %v5396_v37, 1  ;;  %v5045_v23 = vshrl.u32 %v8447_v16, 16 }
 0x2b1   : > { %v8450_v42 = vld [vmem:[#allocation2 + $0x68] ss:$0 sps:$4 sm:$0x33]   ;;  %v5515_v53 = vor.u32 %v5514_v0, %v5510_v20  ;;  %v5403_v59 = vrot.slane %v5401_v52, 1  ;;  %v5034_v30 = vshrl.u32 %v10341_v13, 16  ;;  %v5036_v11 = vshll.u32 %v10341_v13, 16 }
 0x2b2   : > { %v5372_v58 = vsel %vm1589_vm4, %v5367_v40, %v5371_v6  ;;  %v5399_v43 = vor.u32 %v5398_v56, %v5394_v12  ;;  %v5043_v26 = vrot.slane %v5041_v4, 1  ;;  %v10347_v41 = vshll.u32 %v5045_v23, 16  ;;  %v8451_v44 = vld [vmem:[#allocation2 + $0x74] ss:$0 sps:$4 sm:$0x33]  }
 0x2b3   : > { %v10349_v3 = vpop.f32.mrb[32].mxu0  ;;  %v5520_v34 = vsel %vm1589_vm4, %v5515_v53, %v5519_v36  ;;  %7912 = vmatprep.mubr.bf16.mxu1 %v5372_v58  ;;  %v5038_v16 = vrot.slane %v5036_v11, 1  ;;  %v7034_v54 = vcombine.low %v4667_v27, %v4668_v62  ;;  %v10354_v20 = vadd.f32 %v10222_v57, %v10216_v46  ;;  %v4671_v56 = vld [vmem:[#allocation2 + $0xa0] sm:$0xf] }
 0x2b4   : > { %v10356_v47 = vpop.f32.mrb[33].mxu0  ;;  %6070 = vmatprep.mubr.bf16.mxu0 %v5520_v34  ;;  %v5404_v6 = vsel %vm1589_vm4, %v5399_v43, %v5403_v59  ;;  %v5551_v23 = vrot.slane %v10347_v41, 1  ;;  %v5183_v33 = vrot.slane %v10189_v18, 1  ;;  %v5184_v12 = vrot.slane %v8450_v42, 1  ;;  %v4696_v43 = vld [vmem:[#allocation2 + $0x9c] sm:$0xe] }
 0x2b5   : > { %11064 = vst [vmem:[#allocation47_spill] sm:$0xff] %v10354_v20  ;;  %v10361_v37 = vpop.f32.mrb[34].mxu0  ;;  %6071 = vmatmul.mubr.bf16.gmra.mrb[116].mxu0 %v5508_v32  ;;  %7913 = vmatmul.mubr.bf16.gmra.mrb[88].mxu1 %v5404_v6  ;;  %v5039_v36 = vor.u32 %v5038_v16, %v5034_v30  ;;  %v5534_v62 = vshrl.u32 %v7034_v54, 16  ;;  %v5536_v53 = vshll.u32 %v7034_v54, 16  ;;  %v10365_v46 = vadd.f32 %v10130_v24, %v10127_v5 }
 0x2b6   : > { %v10367_v57 = vpop.f32.mrb[35].mxu0  ;;  %v5185_v59 = vsel %vm1862_vm3, %v5183_v33, %v5184_v12  ;;  %v5433_v0 = vshll.u32 %v5184_v12, 16  ;;  %v5186_v52 = vrot.slane %v10214_v39, 1  ;;  %v5187_v18 = vrot.slane %v8451_v44, 1 }
 0x2b7   : > { %11065 = vst [vmem:[#allocation48_spill] sm:$0xff] %v10365_v46  ;;  %v8452_v42 = vld [vmem:[#allocation2 + $0xa4] ss:$0 sps:$4 sm:$0x11]   ;;  %v5044_v4 = vsel %vm1589_vm4, %v5039_v36, %v5043_v26  ;;  %v5538_v27 = vrot.slane %v5536_v53, 1  ;;  %v5426_v32 = vshrl.u32 %v5185_v59, 16  ;;  %v10381_v12 = vadd.f32 %v10238_v9, %v10229_v63 }
 0x2b8   : > { %v5428_v40 = vshll.u32 %v5185_v59, 16  ;;  %v10372_v30 = vpop.f32.mrb[40].mxu1  ;;  %v5542_v11 = vshrl.u32 %v5044_v4, 16  ;;  %v5544_v5 = vshll.u32 %v5044_v4, 16  ;;  %v5435_v24 = vrot.slane %v5433_v0, 1 }
 0x2b9   : > { %v5188_v58 = vsel %vm1862_vm3, %v5186_v52, %v5187_v18  ;;  %v10375_v41 = vpop.f32.mrb[41].mxu1  ;;  %v5539_v34 = vor.u32 %v5538_v27, %v5534_v62  ;;  %v5465_v33 = vshll.u32 %v5187_v18, 16  ;;  %11066 = vst [vmem:[#allocation49_spill] sm:$0xff] %v10381_v12  ;;  %v10385_v36 = vadd.f32 %v10136_v17, %v10133_v31  ;;  %v4670_v53 = vld [vmem:[#allocation2 + $0x9c] sm:$0xf] }
 0x2ba   : > { %v5430_v39 = vrot.slane %v5428_v40, 1  ;;  %v5458_v44 = vshrl.u32 %v5188_v58, 16  ;;  %v5460_v16 = vshll.u32 %v5188_v58, 16  ;;  %v10377_v54 = vpop.f32.mrb[42].mxu1  ;;  %v5546_v6 = vrot.slane %v5544_v5, 1 }
 0x2bb   : > { %11067 = vst [vmem:[#allocation50_spill] sm:$0xff] %v10385_v36  ;;  %v10387_v59 = vpop.f32.mrb[36].mxu0  ;;  %v10389_v0 = vpop.f32.mrb[43].mxu1  ;;  %v5540_v62 = vsel %vm1589_vm4, %v5539_v34, %v5043_v26  ;;  %v10392_v27 = vcombine.low %v4696_v43, %v4671_v56  ;;  %v8455_v18 = vld [vmem:[#allocation2 + $0x80] ss:$0 sps:$4 sm:$0x33]  }
 0x2bc   : > { %v5431_v52 = vor.u32 %v5430_v39, %v5426_v32  ;;  %v5462_v4 = vrot.slane %v5460_v16, 1  ;;  %v10394_v40 = vpop.f32.mrb[37].mxu0  ;;  %v5547_v63 = vor.u32 %v5546_v6, %v5542_v11  ;;  %v5467_v9 = vrot.slane %v5465_v33, 1  ;;  %v8456_v32 = vld [vmem:[#allocation2 + $0x8c] ss:$0 sps:$4 sm:$0x33]  }
 0x2bd   : > { %v5055_v5 = vshll.u32 %v8452_v42, 16  ;;  %v5059_v58 = vshrl.u32 %v8452_v42, 16  ;;  %v10396_v31 = vpop.f32.mrb[38].mxu0  ;;  %v5048_v20 = vshrl.u32 %v10392_v27, 16  ;;  %v5050_v26 = vshll.u32 %v10392_v27, 16 }
 0x2be   : > { %v5436_v17 = vsel %vm1589_vm4, %v5431_v52, %v5435_v24  ;;  %v5463_v12 = vor.u32 %v5462_v4, %v5458_v44  ;;  %v10401_v34 = vpop.f32.mrb[39].mxu0  ;;  %v5552_v43 = vsel %vm1589_vm4, %v5547_v63, %v5551_v23  ;;  %v7036_v16 = vcombine.low %v4670_v53, %v4671_v56 }
 0x2bf   : > { %7916 = vmatprep.mubr.bf16.mxu1 %v5436_v17  ;;  %v5057_v39 = vrot.slane %v5055_v5, 1  ;;  %v10404_v11 = vshll.u32 %v5059_v58, 16  ;;  %6078 = vmatprep.mubr.bf16.mxu0 %v5552_v43  ;;  %v5052_v6 = vrot.slane %v5050_v26, 1  ;;  %v10409_v24 = vadd.f32 %v10255_v55, %v10253_v25  ;;  %v4697_v5 = vld [vmem:[#allocation2 + $0xa8] sm:$0xe] }
 0x2c0   : > { %v5468_v42 = vsel %vm1589_vm4, %v5463_v12, %v5467_v9  ;;  %v5189_v44 = vrot.slane %v10257_v2, 1  ;;  %6079 = vmatmul.mubr.bf16.gmra.mrb[120].mxu0 %v5540_v62  ;;  %v5566_v23 = vshrl.u32 %v7036_v16, 16  ;;  %v5568_v52 = vshll.u32 %v7036_v16, 16  ;;  %v4674_v9 = vld [vmem:[#allocation2 + $0xac] sm:$0xf] }
 0x2c1   : > { %11068 = vst [vmem:[#allocation51_spill] sm:$0xff] %v10409_v24  ;;  %7917 = vmatmul.mubr.bf16.gmra.mrb[92].mxu1 %v5468_v42  ;;  %v5583_v33 = vrot.slane %v10404_v11, 1  ;;  %v5190_v4 = vrot.slane %v8455_v18, 1  ;;  %v5053_v63 = vor.u32 %v5052_v6, %v5048_v20  ;;  %v10415_v56 = vadd.f32 %v10160_v8, %v10156_v29 }
 0x2c2   : > { %v5192_v12 = vrot.slane %v10301_v49, 1  ;;  %v5193_v53 = vrot.slane %v8456_v32, 1  ;;  %v5570_v25 = vrot.slane %v5568_v52, 1  ;;  %v10421_v62 = vadd.f32 %v10262_v7, %v10259_v45  ;;  %v8457_v49 = vld [vmem:[#allocation2 + $0xb0] ss:$0 sps:$4 sm:$0x11]  }
 0x2c3   : > { %11069 = vst [vmem:[#allocation52_spill] sm:$0xff] %v10415_v56  ;;  %v5191_v55 = vsel %vm1862_vm3, %v5189_v44, %v5190_v4  ;;  %v5497_v2 = vshll.u32 %v5190_v4, 16  ;;  %v10423_v58 = vpop.f32.mrb[40].mxu0  ;;  %v5058_v20 = vsel %vm1589_vm4, %v5053_v63, %v5057_v39  ;;  %v8460_v56 = vld [vmem:[#allocation2 + $0x98] ss:$0 sps:$4 sm:$0x33]  }
 0x2c4   : > { %11070 = vst [vmem:[#allocation53_spill] sm:$0xff] %v10421_v62  ;;  %v5490_v18 = vshrl.u32 %v5191_v55, 16  ;;  %v5492_v29 = vshll.u32 %v5191_v55, 16  ;;  %v5194_v8 = vsel %vm1862_vm3, %v5192_v12, %v5193_v53  ;;  %v10427_v17 = vpop.f32.mrb[41].mxu0  ;;  %v5574_v26 = vshrl.u32 %v5058_v20, 16  ;;  %v10431_v45 = vpop.f32.mrb[44].mxu1 }
 0x2c5   : > { %v5576_v32 = vshll.u32 %v5058_v20, 16  ;;  %v5571_v43 = vor.u32 %v5570_v25, %v5566_v23  ;;  %v5499_v11 = vrot.slane %v5497_v2, 1  ;;  %v10429_v16 = vpop.f32.mrb[42].mxu0  ;;  %v5522_v42 = vshrl.u32 %v5194_v8, 16  ;;  %v10435_v4 = vpop.f32.mrb[45].mxu1  ;;  %v11072_v55 = vld [vmem:[#allocation28_spill] sm:$0xff] }
 0x2c6   : > { %v5494_v7 = vrot.slane %v5492_v29, 1  ;;  %v5524_v6 = vshll.u32 %v5194_v8, 16  ;;  %v5529_v44 = vshll.u32 %v5193_v53, 16  ;;  %v10433_v52 = vpop.f32.mrb[43].mxu0  ;;  %11071 = vst [vmem:[#allocation54_spill] sm:$0xff] %v10435_v4  ;;  %v11073_v62 = vld [vmem:[#allocation29_spill] sm:$0xff]  ;;  %v10442_v23 = vcombine.low %v4697_v5, %v4674_v9 }
 0x2c7   : > { %v5578_v63 = vrot.slane %v5576_v32, 1  ;;  %v5572_v12 = vsel %vm1589_vm4, %v5571_v43, %v5057_v39  ;;  %v10440_v20 = vadd.f32 %v11073_v62, %v11072_v55  ;;  %v4673_v25 = vld [vmem:[#allocation2 + $0xa8] sm:$0xf]  ;;  %v10444_v2 = vpop.f32.mrb[46].mxu1  ;;  %v5069_v53 = vshll.u32 %v8457_v49, 16 }
 0x2c8   : > { %v5495_v29 = vor.u32 %v5494_v7, %v5490_v18  ;;  %v5526_v24 = vrot.slane %v5524_v6, 1  ;;  %v5531_v8 = vrot.slane %v5529_v44, 1  ;;  %v10446_v36 = vpop.f32.mrb[47].mxu1  ;;  %v5062_v32 = vshrl.u32 %v10442_v23, 16 }
 0x2c9   : > { %11074 = vst [vmem:[#allocation28_spill] sm:$0xff] %v10440_v20  ;;  %v5579_v46 = vor.u32 %v5578_v63, %v5574_v26  ;;  %v5064_v39 = vshll.u32 %v10442_v23, 16  ;;  %v5073_v43 = vshrl.u32 %v8457_v49, 16  ;;  %v5071_v55 = vrot.slane %v5069_v53, 1 }
 0x2ca   : > { %v5500_v62 = vsel %vm1589_vm4, %v5495_v29, %v5499_v11  ;;  %v5527_v5 = vor.u32 %v5526_v24, %v5522_v42  ;;  %v7038_v20 = vcombine.low %v4673_v25, %v4674_v9  ;;  %v8461_v4 = vld [vmem:[#allocation2 + $0xa4] ss:$0 sps:$4 sm:$0x33]   ;;  %v10456_v26 = vadd.f32 %v10289_v19, %v10280_v21 }
 0x2cb   : > { %v5584_v18 = vsel %vm1589_vm4, %v5579_v46, %v5583_v33  ;;  %7920 = vmatprep.mubr.bf16.mxu1 %v5500_v62  ;;  %v5066_v7 = vrot.slane %v5064_v39, 1  ;;  %v10452_v6 = vshll.u32 %v5073_v43, 16  ;;  %v10458_v44 = vpop.f32.mrb[44].mxu0  ;;  %v5195_v9 = vrot.slane %v10341_v13, 1  ;;  %v11080_v39 = vld [vmem:[#allocation30_spill] sm:$0xff] }
 0x2cc   : > { %11075 = vst [vmem:[#allocation29_spill] sm:$0xff] %v10456_v26  ;;  %6086 = vmatprep.mubr.bf16.mxu0 %v5584_v18  ;;  %v5532_v49 = vsel %vm1589_vm4, %v5527_v5, %v5531_v8  ;;  %v5598_v11 = vshrl.u32 %v7038_v20, 16  ;;  %v5600_v24 = vshll.u32 %v7038_v20, 16  ;;  %v10462_v42 = vpop.f32.mrb[45].mxu0  ;;  %v5196_v63 = vrot.slane %v8460_v56, 1  ;;  %v10471_v25 = vpop.f32.mrb[48].mxu1 }
 0x2cd   : > { %6087 = vmatmul.mubr.bf16.gmra.mrb[124].mxu0 %v5572_v12  ;;  %7921 = vmatmul.mubr.bf16.gmra.mrb[0].mxu1 %v5532_v49  ;;  %v5067_v46 = vor.u32 %v5066_v7, %v5062_v32  ;;  %v5615_v33 = vrot.slane %v10452_v6, 1  ;;  %v10467_v21 = vadd.f32 %v10180_v14, %v10176_v15  ;;  %v10469_v19 = vpop.f32.mrb[46].mxu0  ;;  %11077 = vst [vmem:[#allocation56_spill] sm:$0xff] %v10471_v25  ;;  %v5198_v20 = vrot.slane %v10392_v27, 1  ;;  %v4677_v8 = vld [vmem:[#allocation2 + $0xb8] sm:$0xf] }
 0x2ce   : > { %v5602_v29 = vrot.slane %v5600_v24, 1  ;;  %v5199_v13 = vrot.slane %v8461_v4, 1  ;;  %v10476_v12 = vadd.f32 %v10299_v50, %v10294_v1  ;;  %v10478_v53 = vpop.f32.mrb[47].mxu0  ;;  %v10480_v56 = vpop.f32.mrb[49].mxu1  ;;  %v5197_v14 = vsel %vm1862_vm3, %v5195_v9, %v5196_v63  ;;  %v4698_v18 = vld [vmem:[#allocation2 + $0xb4] sm:$0xe] }
 0x2cf   : > { %11076 = vst [vmem:[#allocation55_spill] sm:$0xff] %v10467_v21  ;;  %11079 = vst [vmem:[#allocation58_spill] sm:$0xff] %v10480_v56  ;;  %v5072_v15 = vsel %vm1589_vm4, %v5067_v46, %v5071_v55  ;;  %v5561_v32 = vshll.u32 %v5196_v63, 16  ;;  %v10486_v43 = vadd.f32 %v11080_v39, %v10183_v22  ;;  %v8462_v27 = vld [vmem:[#allocation2 + $0xbc] ss:$0 sps:$4 sm:$0x11]   ;;  %v7059_v21 = vcombine.low %v4698_v18, %v4677_v8 }
 0x2d0   : > { %11078 = vst [vmem:[#allocation57_spill] sm:$0xff] %v10476_v12  ;;  %v10488_v4 = vpop.f32.mrb[50].mxu1  ;;  %v5606_v62 = vshrl.u32 %v5072_v15, 16  ;;  %v5608_v1 = vshll.u32 %v5072_v15, 16  ;;  %v5603_v50 = vor.u32 %v5602_v29, %v5598_v11  ;;  %v5554_v5 = vshrl.u32 %v5197_v14, 16 }
 0x2d1   : > { %11081 = vst [vmem:[#allocation30_spill] sm:$0xff] %v10486_v43  ;;  %11082 = vst [vmem:[#allocation59_spill] sm:$0xff] %v10488_v4  ;;  %v10490_v7 = vpop.f32.mrb[51].mxu1  ;;  %v5556_v6 = vshll.u32 %v5197_v14, 16  ;;  %v5563_v49 = vrot.slane %v5561_v32, 1  ;;  %v5200_v24 = vsel %vm1862_vm3, %v5198_v20, %v5199_v13  ;;  %v5593_v9 = vshll.u32 %v5199_v13, 16 }
 0x2d2   : > { %11083 = vst [vmem:[#allocation60_spill] sm:$0xff] %v10490_v7  ;;  %v4676_v46 = vld [vmem:[#allocation2 + $0xb4] sm:$0xf]  ;;  %v5610_v63 = vrot.slane %v5608_v1, 1  ;;  %v5604_v22 = vsel %vm1589_vm4, %v5603_v50, %v5071_v55  ;;  %v5586_v39 = vshrl.u32 %v5200_v24, 16  ;;  %v5588_v12 = vshll.u32 %v5200_v24, 16 }
 0x2d3   : > { %v5558_v26 = vrot.slane %v5556_v6, 1  ;;  %v5595_v43 = vrot.slane %v5593_v9, 1  ;;  %v5083_v15 = vshll.u32 %v8462_v27, 16  ;;  %v10494_v11 = vpop.f32.mrb[48].mxu0  ;;  %v5087_v7 = vshrl.u32 %v8462_v27, 16 }
 0x2d4   : > { %v5611_v29 = vor.u32 %v5610_v63, %v5606_v62  ;;  %v5590_v4 = vrot.slane %v5588_v12, 1  ;;  %v7040_v14 = vcombine.low %v4676_v46, %v4677_v8  ;;  %v8465_v32 = vld [vmem:[#allocation2 + $0xb0] ss:$0 sps:$4 sm:$0x33]   ;;  %v10496_v56 = vpop.f32.mrb[49].mxu0  ;;  %v5076_v13 = vshrl.u32 %v7059_v21, 16 }
 0x2d5   : > { %v5559_v20 = vor.u32 %v5558_v26, %v5554_v5  ;;  %v5078_v1 = vshll.u32 %v7059_v21, 16  ;;  %v5085_v25 = vrot.slane %v5083_v15, 1  ;;  %v10498_v55 = vpop.f32.mrb[50].mxu0  ;;  %v10501_v18 = vshll.u32 %v5087_v7, 16  ;;  %v4680_v15 = vld [vmem:[#allocation2 + $0xc4] sm:$0xf] }
 0x2d6   : > { %v5616_v50 = vsel %vm1589_vm4, %v5611_v29, %v5615_v33  ;;  %v5591_v6 = vor.u32 %v5590_v4, %v5586_v39  ;;  %v5630_v24 = vshrl.u32 %v7040_v14, 16  ;;  %v8466_v9 = vld [vmem:[#allocation2 + $0xbc] ss:$0 sps:$4 sm:$0x33]   ;;  %v10503_v62 = vpop.f32.mrb[51].mxu0  ;;  %v5632_v27 = vshll.u32 %v7040_v14, 16 }
 0x2d7   : > { %6094 = vmatprep.mubr.bf16.mxu0 %v5616_v50  ;;  %v5564_v12 = vsel %vm1589_vm4, %v5559_v20, %v5563_v49  ;;  %v5080_v8 = vrot.slane %v5078_v1, 1  ;;  %v10508_v26 = vadd.f32 %v10325_v60, %v10318_v38  ;;  %v5647_v4 = vrot.slane %v10501_v18, 1 }
 0x2d8   : > { %6095 = vmatmul.mubr.bf16.gmra.mrb[128].mxu0 %v5604_v22  ;;  %7924 = vmatprep.mubr.bf16.mxu1 %v5564_v12  ;;  %v5596_v33 = vsel %vm1589_vm4, %v5591_v6, %v5595_v43  ;;  %v5201_v5 = vrot.slane %v10442_v23, 1  ;;  %v5202_v7 = vrot.slane %v8465_v32, 1  ;;  %v5634_v63 = vrot.slane %v5632_v27, 1  ;;  %v10517_v38 = vpop.f32.mrb[52].mxu1  ;;  %v4699_v23 = vld [vmem:[#allocation2 + $0xc0] sm:$0xe] }
 0x2d9   : > { %11084 = vst [vmem:[#allocation61_spill] sm:$0xff] %v10508_v26  ;;  %7925 = vmatmul.mubr.bf16.gmra.mrb[4].mxu1 %v5596_v33  ;;  %v5081_v46 = vor.u32 %v5080_v8, %v5076_v13  ;;  %v10515_v49 = vadd.f32 %v10224_v51, %v10218_v28  ;;  %v5204_v39 = vrot.slane %v7059_v21, 1  ;;  %v5205_v43 = vrot.slane %v8466_v9, 1  ;;  %v10524_v14 = vpop.f32.mrb[53].mxu1 }
 0x2da   : > { %v5203_v60 = vsel %vm1862_vm3, %v5201_v5, %v5202_v7  ;;  %v5625_v22 = vshll.u32 %v5202_v7, 16  ;;  %v10522_v29 = vadd.f32 %v10335_v10, %v10330_v48  ;;  %v5635_v20 = vor.u32 %v5634_v63, %v5630_v24  ;;  %v8467_v21 = vld [vmem:[#allocation2 + $0xc8] ss:$0 sps:$4 sm:$0x11]   ;;  %v10527_v13 = vpop.f32.mrb[54].mxu1  ;;  %v11088_v7 = vld [vmem:[#allocation34_spill] sm:$0xff] }
 0x2db   : > { %11085 = vst [vmem:[#allocation62_spill] sm:$0xff] %v10515_v49  ;;  %v5086_v32 = vsel %vm1589_vm4, %v5081_v46, %v5085_v25  ;;  %v5618_v28 = vshrl.u32 %v5203_v60, 16  ;;  %v5620_v51 = vshll.u32 %v5203_v60, 16  ;;  %v5206_v18 = vsel %vm1862_vm3, %v5204_v39, %v5205_v43  ;;  %v10530_v9 = vpop.f32.mrb[52].mxu0  ;;  %v10532_v48 = vpop.f32.mrb[55].mxu1 }
 0x2dc   : > { %11086 = vst [vmem:[#allocation63_spill] sm:$0xff] %v10522_v29  ;;  %v5638_v1 = vshrl.u32 %v5086_v32, 16  ;;  %v5640_v50 = vshll.u32 %v5086_v32, 16  ;;  %v5627_v6 = vrot.slane %v5625_v22, 1  ;;  %v5636_v10 = vsel %vm1589_vm4, %v5635_v20, %v5085_v25  ;;  %v10535_v24 = vpop.f32.mrb[53].mxu0 }
 0x2dd   : > { %v5622_v12 = vrot.slane %v5620_v51, 1  ;;  %v5650_v8 = vshrl.u32 %v5206_v18, 16  ;;  %v5652_v27 = vshll.u32 %v5206_v18, 16  ;;  %11087 = vst [vmem:[#allocation64_spill] sm:$0xff] %v10535_v24  ;;  %v5657_v5 = vshll.u32 %v5205_v43, 16  ;;  %v10541_v39 = vpop.f32.mrb[54].mxu0 }
 0x2de   : > { %v5642_v33 = vrot.slane %v5640_v50, 1  ;;  %v10539_v46 = vadd.f32 %v11088_v7, %v10231_v35  ;;  %v7060_v63 = vcombine.low %v4699_v23, %v4680_v15  ;;  %v8470_v60 = vld [vmem:[#allocation2 + $0xc8] ss:$0 sps:$4 sm:$0x33]   ;;  %v5097_v29 = vshll.u32 %v8467_v21, 16  ;;  %v10543_v20 = vpop.f32.mrb[55].mxu0 }
 0x2df   : > { %v5623_v22 = vor.u32 %v5622_v12, %v5618_v28  ;;  %v5654_v32 = vrot.slane %v5652_v27, 1  ;;  %v5101_v26 = vshrl.u32 %v8467_v21, 16  ;;  %v4679_v25 = vld [vmem:[#allocation2 + $0xc0] sm:$0xf]  ;;  %v5659_v18 = vrot.slane %v5657_v5, 1 }
 0x2e0   : > { %11089 = vst [vmem:[#allocation34_spill] sm:$0xff] %v10539_v46  ;;  %v5643_v51 = vor.u32 %v5642_v33, %v5638_v1  ;;  %v5090_v49 = vshrl.u32 %v7060_v63, 16  ;;  %v5092_v50 = vshll.u32 %v7060_v63, 16  ;;  %v5099_v35 = vrot.slane %v5097_v29, 1  ;;  %v4683_v1 = vld [vmem:[#allocation2 + $0xd0] sm:$0xf] }
 0x2e1   : > { %v5628_v43 = vsel %vm1589_vm4, %v5623_v22, %v5627_v6  ;;  %v5655_v24 = vor.u32 %v5654_v32, %v5650_v8  ;;  %v10546_v7 = vshll.u32 %v5101_v26, 16  ;;  %v8472_v23 = vld [vmem:[#allocation2 + $0xd4] ss:$0 sps:$4 sm:$0x33]   ;;  %v7042_v12 = vcombine.low %v4679_v25, %v4680_v15  ;;  %v4700_v27 = vld [vmem:[#allocation2 + $0xcc] sm:$0xe] }
 0x2e2   : > { %v5648_v46 = vsel %vm1589_vm4, %v5643_v51, %v5647_v4  ;;  %7928 = vmatprep.mubr.bf16.mxu1 %v5628_v43  ;;  %v5094_v28 = vrot.slane %v5092_v50, 1  ;;  %v10551_v21 = vadd.f32 %v10356_v47, %v10349_v3  ;;  %v10553_v33 = vpop.f32.mrb[56].mxu1  ;;  %v5207_v29 = vrot.slane %v7060_v63, 1  ;;  %v11091_v3 = vld [vmem:[#allocation37_spill] sm:$0xff]  ;;  %v11092_v47 = vld [vmem:[#allocation38_spill] sm:$0xff] }
 0x2e3   : > { %6102 = vmatprep.mubr.bf16.mxu0 %v5648_v46  ;;  %v5660_v6 = vsel %vm1589_vm4, %v5655_v24, %v5659_v18  ;;  %v5679_v26 = vrot.slane %v10546_v7, 1  ;;  %v5208_v8 = vrot.slane %v8470_v60, 1  ;;  %v10557_v5 = vpop.f32.mrb[57].mxu1  ;;  %v5662_v15 = vshrl.u32 %v7042_v12, 16 }
 0x2e4   : > { %11090 = vst [vmem:[#allocation65_spill] sm:$0xff] %v10557_v5  ;;  %6103 = vmatmul.mubr.bf16.gmra.mrb[132].mxu0 %v5636_v10  ;;  %7929 = vmatmul.mubr.bf16.gmra.mrb[8].mxu1 %v5660_v6  ;;  %v5095_v4 = vor.u32 %v5094_v28, %v5090_v49  ;;  %v5664_v22 = vshll.u32 %v7042_v12, 16  ;;  %v10561_v32 = vadd.f32 %v11092_v47, %v11091_v3  ;;  %v10563_v25 = vpop.f32.mrb[58].mxu1  ;;  %v5211_v18 = vrot.slane %v8472_v23, 1 }
 0x2e5   : > { %11094 = vst [vmem:[#allocation38_spill] sm:$0xff] %v10563_v25  ;;  %v5209_v46 = vsel %vm1862_vm3, %v5207_v29, %v5208_v8  ;;  %v5689_v24 = vshll.u32 %v5208_v8, 16  ;;  %v7061_v51 = vcombine.low %v4700_v27, %v4683_v1  ;;  %v10566_v63 = vpop.f32.mrb[59].mxu1  ;;  %v8473_v43 = vld [vmem:[#allocation2 + $0xd4] ss:$0 sps:$4 sm:$0x11]   ;;  %v10571_v29 = vadd.f32 %v10367_v57, %v10361_v37 }
 0x2e6   : > { %11093 = vst [vmem:[#allocation37_spill] sm:$0xff] %v10561_v32  ;;  %11095 = vst [vmem:[#allocation66_spill] sm:$0xff] %v10566_v63  ;;  %v5100_v60 = vsel %vm1589_vm4, %v5095_v4, %v5099_v35  ;;  %v5666_v10 = vrot.slane %v5664_v22, 1  ;;  %v5682_v50 = vshrl.u32 %v5209_v46, 16  ;;  %v5684_v49 = vshll.u32 %v5209_v46, 16  ;;  %v11097_v4 = vld [vmem:[#allocation40_spill] sm:$0xff] }
 0x2e7   : > { %v5670_v7 = vshrl.u32 %v5100_v60, 16  ;;  %v5672_v28 = vshll.u32 %v5100_v60, 16  ;;  %v5691_v12 = vrot.slane %v5689_v24, 1  ;;  %v5210_v6 = vrot.slane %v7061_v51, 1  ;;  %v10573_v23 = vpop.f32.mrb[56].mxu0  ;;  %v11098_v22 = vld [vmem:[#allocation41_spill] sm:$0xff] }
 0x2e8   : > { %v5667_v3 = vor.u32 %v5666_v10, %v5662_v15  ;;  %v5686_v47 = vrot.slane %v5684_v49, 1  ;;  %v5721_v32 = vshll.u32 %v5211_v18, 16  ;;  %11096 = vst [vmem:[#allocation67_spill] sm:$0xff] %v10573_v23  ;;  %v10578_v46 = vadd.f32 %v11098_v22, %v11097_v4  ;;  %v4682_v60 = vld [vmem:[#allocation2 + $0xcc] sm:$0xf]  ;;  %v10580_v24 = vpop.f32.mrb[57].mxu0 }
 0x2e9   : > { %v5674_v27 = vrot.slane %v5672_v28, 1  ;;  %v5212_v8 = vsel %vm1862_vm3, %v5210_v6, %v5211_v18  ;;  %v5104_v63 = vshrl.u32 %v7061_v51, 16  ;;  %11100 = vst [vmem:[#allocation41_spill] sm:$0xff] %v10580_v24  ;;  %v10583_v37 = vpop.f32.mrb[58].mxu0  ;;  %v5106_v28 = vshll.u32 %v7061_v51, 16 }
 0x2ea   : > { %11099 = vst [vmem:[#allocation40_spill] sm:$0xff] %v10578_v46  ;;  %v5668_v15 = vsel %vm1589_vm4, %v5667_v3, %v5099_v35  ;;  %v5687_v10 = vor.u32 %v5686_v47, %v5682_v50  ;;  %v5714_v49 = vshrl.u32 %v5212_v8, 16  ;;  %v5716_v25 = vshll.u32 %v5212_v8, 16  ;;  %v10585_v18 = vpop.f32.mrb[59].mxu0 }
 0x2eb   : > { %v5675_v57 = vor.u32 %v5674_v27, %v5670_v7  ;;  %v5723_v23 = vrot.slane %v5721_v32, 1  ;;  %v5111_v5 = vshll.u32 %v8473_v43, 16  ;;  %v5115_v22 = vshrl.u32 %v8473_v43, 16 }
 0x2ec   : > { %v5692_v6 = vsel %vm1589_vm4, %v5687_v10, %v5691_v12  ;;  %v5718_v4 = vrot.slane %v5716_v25, 1  ;;  %v7044_v46 = vcombine.low %v4682_v60, %v4683_v1  ;;  %v5108_v35 = vrot.slane %v5106_v28, 1  ;;  %v11101_v25 = vld [vmem:[#allocation44_spill] sm:$0xff]  ;;  %v11104_v28 = vld [vmem:[#allocation54_spill] sm:$0xff] }
 0x2ed   : > { %v5680_v24 = vsel %vm1589_vm4, %v5675_v57, %v5679_v26  ;;  %7932 = vmatprep.mubr.bf16.mxu1 %v5692_v6  ;;  %v5113_v50 = vrot.slane %v5111_v5, 1  ;;  %v7456_v3 = vadd.f32 %v10394_v40, %v10387_v59  ;;  %v5709_v32 = vshll.u32 %v5115_v22, 16  ;;  %v7602_v27 = vpop.f32.mrb[60].mxu1  ;;  %v11102_v26 = vld [vmem:[#allocation45_spill] sm:$0xff]  ;;  %v11103_v5 = vld [vmem:[#allocation46_spill] sm:$0xff] }
 0x2ee   : > { %6110 = vmatprep.mubr.bf16.mxu0 %v5680_v24  ;;  %v5719_v7 = vor.u32 %v5718_v4, %v5714_v49  ;;  %v5694_v51 = vshrl.u32 %v7044_v46, 16  ;;  %v5696_v47 = vshll.u32 %v7044_v46, 16  ;;  %v5109_v8 = vor.u32 %v5108_v35, %v5104_v63  ;;  %v7603_v59 = vpop.f32.mrb[61].mxu1 }
 0x2ef   : > { %6111 = vmatmul.mubr.bf16.gmra.mrb[136].mxu0 %v5668_v15  ;;  %v10593_v43 = vadd.f32 %v11101_v25, %v10327_v61  ;;  %v7459_v1 = vadd.f32 %v10401_v34, %v10396_v31  ;;  %v10599_v12 = vadd.f32 %v11103_v5, %v11102_v26  ;;  %v5711_v60 = vrot.slane %v5709_v32, 1  ;;  %v7605_v63 = vpop.f32.mrb[62].mxu1 }
 0x2f0   : > { %v5724_v40 = vsel %vm1589_vm4, %v5719_v7, %v5723_v23  ;;  %v5698_v24 = vrot.slane %v5696_v47, 1  ;;  %v7462_v46 = vadd.f32 %v10427_v17, %v10423_v58  ;;  %v5114_v61 = vsel %vm1589_vm4, %v5109_v8, %v5113_v50  ;;  %v7606_v23 = vpop.f32.mrb[63].mxu1  ;;  %v11114_v25 = vld [vmem:[#allocation41_spill] sm:$0xff] }
 0x2f1   : > { %7933 = vmatmul.mubr.bf16.gmra.mrb[12].mxu1 %v5724_v40  ;;  %v10607_v15 = vadd.f32 %v10375_v41, %v10372_v30  ;;  %v7465_v31 = vadd.f32 %v10433_v52, %v10429_v16  ;;  %v10613_v34 = vadd.f32 %v10389_v0, %v10377_v54  ;;  %v5702_v10 = vshrl.u32 %v5114_v61, 16  ;;  %v7490_v17 = vpop.f32.mrb[60].mxu0  ;;  %v11105_v54 = vld [vmem:[#allocation56_spill] sm:$0xff]  ;;  %v11106_v0 = vld [vmem:[#allocation58_spill] sm:$0xff] }
 0x2f2   : > { %v5704_v49 = vshll.u32 %v5114_v61, 16  ;;  %v5699_v57 = vor.u32 %v5698_v24, %v5694_v51  ;;  %v7468_v58 = vadd.f32 %v10462_v42, %v10458_v44  ;;  %v10619_v6 = vadd.f32 %v11104_v28, %v10431_v45  ;;  %v7491_v52 = vpop.f32.mrb[61].mxu0  ;;  %v11107_v44 = vld [vmem:[#allocation59_spill] sm:$0xff]  ;;  %v11108_v42 = vld [vmem:[#allocation60_spill] sm:$0xff] }
 0x2f3   : > { %v7471_v30 = vadd.f32 %v10478_v53, %v10469_v19  ;;  %v10625_v41 = vadd.f32 %v10446_v36, %v10444_v2  ;;  %v7586_v16 = vadd.f32 %v11106_v0, %v11105_v54  ;;  %v7589_v35 = vadd.f32 %v11108_v42, %v11107_v44  ;;  %v7493_v7 = vpop.f32.mrb[62].mxu0  ;;  %v11118_v54 = vld [vmem:[#allocation35_spill] sm:$0xff]  ;;  %v11121_v42 = vld [vmem:[#allocation28_spill] sm:$0xff] }
 0x2f4   : > { %v5706_v4 = vrot.slane %v5704_v49, 1  ;;  %v5700_v22 = vsel %vm1589_vm4, %v5699_v57, %v5113_v50  ;;  %v7474_v45 = vadd.f32 %v10496_v56, %v10494_v11  ;;  %v7477_v36 = vadd.f32 %v10503_v62, %v10498_v55  ;;  %v7494_v50 = vpop.f32.mrb[63].mxu0  ;;  %v11109_v56 = vld [vmem:[#allocation64_spill] sm:$0xff]  ;;  %v11110_v62 = vld [vmem:[#allocation65_spill] sm:$0xff] }
 0x2f5   : > { %v10635_v19 = vadd.f32 %v7586_v16, %v10551_v21  ;;  %v7592_v2 = vadd.f32 %v10524_v14, %v10517_v38  ;;  %v7595_v53 = vadd.f32 %v10532_v48, %v10527_v13  ;;  %v10644_v51 = vadd.f32 %v7589_v35, %v10571_v29  ;;  %v11111_v14 = vld [vmem:[#allocation38_spill] sm:$0xff]  ;;  %v11113_v29 = vld [vmem:[#allocation67_spill] sm:$0xff] }
 0x2f6   : > { %v5707_v32 = vor.u32 %v5706_v4, %v5702_v10  ;;  %v7480_v11 = vadd.f32 %v11109_v56, %v10530_v9  ;;  %v7483_v21 = vadd.f32 %v10543_v20, %v10541_v39  ;;  %v7598_v38 = vadd.f32 %v11110_v62, %v10553_v33  ;;  %v11112_v13 = vld [vmem:[#allocation66_spill] sm:$0xff] }
 0x2f7   : > { %v10650_v47 = vadd.f32 %v7592_v2, %v7456_v3  ;;  %v10652_v55 = vadd.f32 %v7595_v53, %v7459_v1  ;;  %v7601_v48 = vadd.f32 %v11112_v13, %v11111_v14  ;;  %v7486_v26 = vadd.f32 %v11114_v25, %v11113_v29  ;;  %v11123_v14 = vld [vmem:[#allocation42_spill] sm:$0xff]  ;;  %v11124_v29 = vld [vmem:[#allocation36_spill] sm:$0xff] }
 0x2f8   : > { %v5712_v8 = vsel %vm1589_vm4, %v5707_v32, %v5711_v60  ;;  %v10663_v9 = vadd.f32 %v10585_v18, %v10583_v37  ;;  %v7604_v39 = vadd.f32 %v7603_v59, %v7602_v27  ;;  %v10665_v20 = vadd.f32 %v7598_v38, %v7462_v46  ;;  %v11115_v59 = vld [vmem:[#allocation33_spill] sm:$0xff] }
 0x2f9   : > { %6118 = vmatprep.mubr.bf16.mxu0 %v5712_v8  ;;  %v10667_v3 = vadd.f32 %v7601_v48, %v7465_v31  ;;  %v7607_v1 = vadd.f32 %v7606_v23, %v7605_v63  ;;  %v10669_v33 = vadd.f32 %v7491_v52, %v7490_v17  ;;  %v10673_v40 = vadd.f32 %v7494_v50, %v7493_v7  ;;  %v7608_v60 = vpop.f32.mrb[64].mxu1  ;;  %v11116_v23 = vld [vmem:[#allocation31_spill] sm:$0xff]  ;;  %v11117_v17 = vld [vmem:[#allocation52_spill] sm:$0xff] }
 0x2fa   : > { %6119 = vmatmul.mubr.bf16.gmra.mrb[140].mxu0 %v5700_v22  ;;  %v10671_v5 = vadd.f32 %v7604_v39, %v7468_v58  ;;  %v7609_v61 = vpop.f32.mrb[65].mxu1  ;;  %v11119_v52 = vld [vmem:[#allocation48_spill] sm:$0xff] }
 0x2fb   : > { %v10675_v24 = vadd.f32 %v7607_v1, %v7471_v30  ;;  %v7610_v37 = vadd.f32 %v7609_v61, %v7608_v60  ;;  %v7611_v18 = vpop.f32.mrb[66].mxu1  ;;  %v7810_v27 = vpop.f32.mrb[64].mxu0  ;;  %v11120_v22 = vld [vmem:[#allocation32_spill] sm:$0xff]  ;;  %v11125_v1 = vld [vmem:[#allocation62_spill] sm:$0xff]  ;;  %v11126_v61 = vld [vmem:[#allocation43_spill] sm:$0xff] }
 0x2fc   : > { %v4052_v46 = vadd.f32 %v7810_v27, %v11115_v59  ;;  %v7612_v10 = vpop.f32.mrb[67].mxu1  ;;  %v4043_v31 = vpop.f32.mrb[65].mxu0  ;;  %v11127_v27 = vld [vmem:[#allocation55_spill] sm:$0xff] }
 0x2fd   : > { %v10678_v49 = vadd.f32 %v7610_v37, %v7474_v45  ;;  %v7613_v63 = vadd.f32 %v7612_v10, %v7611_v18  ;;  %v4044_v57 = vadd.f32 %v11116_v23, %v4043_v31  ;;  %v7811_v58 = vpop.f32.mrb[66].mxu0  ;;  %v11122_v45 = vld [vmem:[#allocation50_spill] sm:$0xff] }
 0x2fe   : > { %v10682_v28 = vadd.f32 %v11117_v17, %v4052_v46  ;;  %v4055_v30 = vadd.f32 %v7811_v58, %v11118_v54  ;;  %v4046_v0 = vpop.f32.mrb[67].mxu0  ;;  %v11129_v10 = vld [vmem:[#allocation34_spill] sm:$0xff] }
 0x2ff   : > { %v10685_v16 = vadd.f32 %v7613_v63, %v7477_v36  ;;  %v10688_v4 = vadd.f32 %v11119_v52, %v4044_v57  ;;  %v4047_v44 = vadd.f32 %v11120_v22, %v4046_v0  ;;  %v11130_v63 = vld [vmem:[#allocation30_spill] sm:$0xff]  ;;  %v11131_v52 = vld [vmem:[#allocation51_spill] sm:$0xff] }
 0x300   : > { %v10692_v35 = vadd.f32 %v11121_v42, %v4055_v30 }
 0x301   : > { %v10695_v7 = vadd.f32 %v11122_v45, %v4047_v44  ;;  %v7614_v2 = vpop.f32.mrb[68].mxu1  ;;  %v11132_v45 = vld [vmem:[#allocation47_spill] sm:$0xff] }
 0x302   : > { %v7615_v53 = vpop.f32.mrb[69].mxu1 }
 0x303   : > { %v7616_v50 = vadd.f32 %v7615_v53, %v7614_v2  ;;  %v7617_v32 = vpop.f32.mrb[70].mxu1 }
 0x304   : > { %v7618_v56 = vpop.f32.mrb[71].mxu1 }
 0x305   : > { %v10697_v62 = vadd.f32 %v7616_v50, %v7480_v11  ;;  %v7814_v36 = vpop.f32.mrb[68].mxu0  ;;  %v7619_v38 = vadd.f32 %v7618_v56, %v7617_v32  ;;  %v11128_v11 = vld [vmem:[#allocation39_spill] sm:$0xff]  ;;  %v11133_v56 = vld [vmem:[#allocation53_spill] sm:$0xff] }
 0x306   : > { %v4068_v13 = vadd.f32 %v7814_v36, %v11123_v14  ;;  %v4059_v48 = vpop.f32.mrb[69].mxu0  ;;  %v11134_v14 = vld [vmem:[#allocation37_spill] sm:$0xff] }
 0x307   : > { %v10700_v8 = vadd.f32 %v7619_v38, %v7483_v21  ;;  %v4060_v25 = vadd.f32 %v11124_v29, %v4059_v48  ;;  %v7815_v39 = vpop.f32.mrb[70].mxu0 }
 0x308   : > { %v10704_v60 = vadd.f32 %v11125_v1, %v4068_v13  ;;  %v4071_v37 = vadd.f32 %v7815_v39, %v11126_v61  ;;  %v4062_v18 = vpop.f32.mrb[71].mxu0 }
 0x309   : > { %v10708_v59 = vadd.f32 %v11127_v27, %v4060_v25  ;;  %v4063_v46 = vadd.f32 %v11128_v11, %v4062_v18  ;;  %v11136_v25 = vld [vmem:[#allocation40_spill] sm:$0xff] }
 0x30a   : > { %v10712_v31 = vadd.f32 %v11129_v10, %v4071_v37 }
 0x30b   : > { %v10715_v21 = vadd.f32 %v11130_v63, %v4063_v46  ;;  %v11138_v46 = vld [vmem:[#allocation29_spill] sm:$0xff] }
 0x30d   : > { %v7620_v23 = vpop.f32.mrb[72].mxu1 }
 0x30e   : > { %v7621_v57 = vpop.f32.mrb[73].mxu1 }
 0x30f   : > { %v7622_v58 = vadd.f32 %v7621_v57, %v7620_v23  ;;  %v7623_v17 = vpop.f32.mrb[74].mxu1 }
 0x310   : > { %v7818_v54 = vpop.f32.mrb[72].mxu0  ;;  %v7624_v30 = vpop.f32.mrb[75].mxu1 }
 0x311   : > { %v10717_v0 = vadd.f32 %v7622_v58, %v7486_v26  ;;  %v4084_v22 = vadd.f32 %v7818_v54, %v11131_v52  ;;  %v7625_v44 = vadd.f32 %v7624_v30, %v7623_v17  ;;  %v4075_v42 = vpop.f32.mrb[73].mxu0  ;;  %v11135_v26 = vld [vmem:[#allocation49_spill] sm:$0xff]  ;;  %v11139_v58 = vld [vmem:[#allocation63_spill] sm:$0xff] }
 0x312   : > { %v4076_v2 = vadd.f32 %v11132_v45, %v4075_v42  ;;  %v7819_v53 = vpop.f32.mrb[74].mxu0 }
 0x313   : > { %v10722_v50 = vadd.f32 %v10593_v43, %v4084_v22  ;;  %v10725_v32 = vadd.f32 %v7625_v44, %v10663_v9  ;;  %v4087_v36 = vadd.f32 %v7819_v53, %v11133_v56  ;;  %v4078_v38 = vpop.f32.mrb[75].mxu0  ;;  %v11137_v43 = vld [vmem:[#allocation61_spill] sm:$0xff] }
 0x314   : > { %v4381_v13 = vadd.f32 %v11134_v14, %v4076_v2  ;;  %v4079_v48 = vadd.f32 %v11135_v26, %v4078_v38  ;;  %v11140_v22 = vld [vmem:[#allocation57_spill] sm:$0xff] }
 0x315   : > { %v10731_v29 = vadd.f32 %v10599_v12, %v4087_v36 }
 0x316   : > { %v4384_v39 = vadd.f32 %v11136_v25, %v4079_v48 }
 0x319   : > { %v7626_v1 = vpop.f32.mrb[76].mxu1  ;;  %v7822_v61 = vpop.f32.mrb[76].mxu0 }
 0x31a   : > { %v7627_v37 = vpop.f32.mrb[77].mxu1  ;;  %v4100_v18 = vadd.f32 %v7822_v61, %v11137_v43  ;;  %v4091_v27 = vpop.f32.mrb[77].mxu0 }
 0x31b   : > { %v7628_v9 = vadd.f32 %v7627_v37, %v7626_v1  ;;  %v7629_v11 = vpop.f32.mrb[78].mxu1  ;;  %v4092_v10 = vadd.f32 %v11138_v46, %v4091_v27  ;;  %v7823_v63 = vpop.f32.mrb[78].mxu0 }
 0x31c   : > { %v10737_v23 = vadd.f32 %v10619_v6, %v4100_v18  ;;  %v7630_v57 = vpop.f32.mrb[79].mxu1  ;;  %v4103_v12 = vadd.f32 %v7823_v63, %v11139_v58  ;;  %v4094_v17 = vpop.f32.mrb[79].mxu0 }
 0x31d   : > { %v10741_v54 = vadd.f32 %v7628_v9, %v10669_v33  ;;  %v7631_v30 = vadd.f32 %v7630_v57, %v7629_v11  ;;  %v4397_v52 = vadd.f32 %v10607_v15, %v4092_v10  ;;  %v4095_v44 = vadd.f32 %v11140_v22, %v4094_v17 }
 0x31e   : > { %v10746_v42 = vadd.f32 %v10625_v41, %v4103_v12 }
 0x31f   : > { %v10749_v45 = vadd.f32 %v7631_v30, %v10673_v40  ;;  %v4400_v6 = vadd.f32 %v10613_v34, %v4095_v44 }
 0x328   : > { %v7672_v2 = vpop.f32.mrb[80].mxu0 }
 0x329   : > { %v7673_v53 = vpop.f32.mrb[81].mxu0 }
 0x32a   : > { %v7674_v56 = vadd.f32 %v7673_v53, %v7672_v2  ;;  %v7675_v36 = vpop.f32.mrb[82].mxu0 }
 0x32b   : > { %v7676_v38 = vpop.f32.mrb[83].mxu0 }
 0x32c   : > { %v7677_v33 = vadd.f32 %v7676_v38, %v7675_v36  ;;  %v7958_v14 = vadd.f32 %v7674_v56, %v10688_v4 }
 0x32e   : > { %v10754_v15 = vadd.f32 %v7677_v33, %v10695_v7 }
 0x333   : > { %v7678_v26 = vpop.f32.mrb[84].mxu0 }
 0x334   : > { %v7679_v48 = vpop.f32.mrb[85].mxu0 }
 0x335   : > { %v7680_v41 = vadd.f32 %v7679_v48, %v7678_v26  ;;  %v7681_v25 = vpop.f32.mrb[86].mxu0 }
 0x336   : > { %v7682_v1 = vpop.f32.mrb[87].mxu0 }
 0x337   : > { %v7683_v40 = vadd.f32 %v7682_v1, %v7681_v25  ;;  %v7954_v61 = vadd.f32 %v7680_v41, %v10682_v28 }
 0x339   : > { %v7962_v34 = vadd.f32 %v7683_v40, %v10692_v35 }
 0x33c   : > { %v7684_v37 = vpop.f32.mrb[88].mxu0 }
 0x33d   : > { %v7685_v43 = vpop.f32.mrb[89].mxu0 }
 0x33e   : > { %v7686_v18 = vadd.f32 %v7685_v43, %v7684_v37  ;;  %v7687_v27 = vpop.f32.mrb[90].mxu0 }
 0x33f   : > { %v7688_v9 = vpop.f32.mrb[91].mxu0 }
 0x340   : > { %v7689_v11 = vadd.f32 %v7688_v9, %v7687_v27  ;;  %v10759_v4 = vadd.f32 %v7686_v18, %v10708_v59  ;;  %v10782_v9 = vld [vmem:[#allocation12] ss:$0 sm:$0xff] }
 0x342   : > { %v10762_v7 = vadd.f32 %v7689_v11, %v10715_v21 }
 0x348   : > { %v7690_v46 = vpop.f32.mrb[92].mxu0 }
 0x349   : > { %v7691_v10 = vpop.f32.mrb[93].mxu0 }
 0x34a   : > { %v7692_v63 = vadd.f32 %v7691_v10, %v7690_v46  ;;  %v7693_v57 = vpop.f32.mrb[94].mxu0 }
 0x34b   : > { %v7694_v58 = vpop.f32.mrb[95].mxu0 }
 0x34c   : > { %v7695_v28 = vadd.f32 %v7694_v58, %v7693_v57  ;;  %v7970_v35 = vadd.f32 %v7692_v63, %v10704_v60  ;;  %v10784_v63 = vld [vmem:[#allocation14] ss:$0 sm:$0xff] }
 0x34e   : > { %v10766_v12 = vadd.f32 %v7695_v28, %v10712_v31 }
 0x351   : > { %v7696_v17 = vpop.f32.mrb[96].mxu0 }
 0x352   : > { %v7697_v30 = vpop.f32.mrb[97].mxu0 }
 0x353   : > { %v7698_v22 = vadd.f32 %v7697_v30, %v7696_v17  ;;  %v7699_v44 = vpop.f32.mrb[98].mxu0 }
 0x354   : > { %v7700_v59 = vpop.f32.mrb[99].mxu0 }
 0x355   : > { %v7701_v2 = vadd.f32 %v7700_v59, %v7699_v44  ;;  %v10768_v53 = vadd.f32 %v7698_v22, %v4381_v13 }
 0x357   : > { %v10770_v21 = vadd.f32 %v7701_v2, %v4384_v39 }
 0x35c   : > { %v7702_v56 = vpop.f32.mrb[100].mxu0 }
 0x35d   : > { %v7703_v36 = vpop.f32.mrb[101].mxu0 }
 0x35e   : > { %v7704_v38 = vadd.f32 %v7703_v36, %v7702_v56  ;;  %v7705_v33 = vpop.f32.mrb[102].mxu0 }
 0x35f   : > { %v7706_v26 = vpop.f32.mrb[103].mxu0 }
 0x360   : > { %v7707_v48 = vadd.f32 %v7706_v26, %v7705_v33  ;;  %v10773_v60 = vadd.f32 %v7704_v38, %v10722_v50 }
 0x362   : > { %v10776_v31 = vadd.f32 %v7707_v48, %v10731_v29 }
 0x366   : > { %v7708_v41 = vpop.f32.mrb[104].mxu0 }
 0x367   : > { %v7709_v25 = vpop.f32.mrb[105].mxu0 }
 0x368   : > { %v7710_v1 = vadd.f32 %v7709_v25, %v7708_v41  ;;  %v7711_v40 = vpop.f32.mrb[106].mxu0 }
 0x369   : > { %v7712_v13 = vpop.f32.mrb[107].mxu0 }
 0x36a   : > { %v7713_v37 = vadd.f32 %v7712_v13, %v7711_v40  ;;  %v10778_v39 = vadd.f32 %v7710_v1, %v4397_v52 }
 0x36c   : > { %v10780_v43 = vadd.f32 %v7713_v37, %v4400_v6 }
 0x372   : > { %v7714_v18 = vpop.f32.mrb[108].mxu0  ;;  %v7906_v27 = vpop.f32.mrb[80].mxu1 }
 0x373   : > { %v7715_v11 = vpop.f32.mrb[109].mxu0  ;;  %v7955_v50 = vadd.f32 %v7954_v61, %v7906_v27  ;;  %v6161_v46 = vpop.f32.mrb[81].mxu1 }
 0x374   : > { %v7716_v10 = vadd.f32 %v7715_v11, %v7714_v18  ;;  %v7717_v29 = vpop.f32.mrb[110].mxu0  ;;  %v7959_v57 = vadd.f32 %v7958_v14, %v6161_v46  ;;  %v7907_v58 = vpop.f32.mrb[82].mxu1 }
 0x375   : > { %v7718_v28 = vpop.f32.mrb[111].mxu0  ;;  %v6329_v17 = vmul.f32 %v7955_v50, %v10782_v9  ;;  %v7963_v52 = vadd.f32 %v7962_v34, %v7907_v58  ;;  %v6164_v30 = vpop.f32.mrb[83].mxu1 }
 0x376   : > { %v7719_v6 = vadd.f32 %v7718_v28, %v7717_v29  ;;  %v6327_v22 = vmul.f32 %v7959_v57, %v10782_v9  ;;  %v7967_v44 = vadd.f32 %v10754_v15, %v6164_v30  ;;  %v10790_v59 = vadd.f32 %v7716_v10, %v10737_v23 }
 0x377   : > { %v6368_v61 = vadd.f32 %v10784_v63, %v6329_v17  ;;  %v6330_v2 = vmul.f32 %v7963_v52, %v10782_v9 }
 0x378   : > { %v6366_v14 = vadd.f32 %v10784_v63, %v6327_v22  ;;  %v6328_v56 = vmul.f32 %v7967_v44, %v10782_v9  ;;  %v10797_v34 = vadd.f32 %v7719_v6, %v10746_v42 }
 0x379   : > { %v6369_v36 = vadd.f32 %v10784_v63, %v6330_v2  ;;  %v6400_v15 = vmax.f32 %v6368_v61, 0.0 }
 0x37a   : > { %v6367_v38 = vadd.f32 %v10784_v63, %v6328_v56  ;;  %v6398_v23 = vmax.f32 %v6366_v14, 0.0 }
 0x37b   : > { %v6401_v33 = vmax.f32 %v6369_v36, 0.0 }
 0x37c   : > { %v6399_v26 = vmax.f32 %v6367_v38, 0.0 }
 0x37d   : > { %v7282_v48 = vpack.c.bf16 %v6401_v33, %v6400_v15  ;;  %v7720_v41 = vpop.f32.mrb[112].mxu0  ;;  %v7910_v25 = vpop.f32.mrb[84].mxu1 }
 0x37e   : > { %v7277_v1 = vpack.c.bf16 %v6399_v26, %v6398_v23  ;;  %v7721_v40 = vpop.f32.mrb[113].mxu0  ;;  %v7971_v13 = vadd.f32 %v7970_v35, %v7910_v25  ;;  %v6177_v37 = vpop.f32.mrb[85].mxu1 }
 0x37f   : > { %7369 = vst [vmem:[%s10803_s12 + $0x8] sm:$0xff] %v7282_v48   ;;  %v7722_v42 = vadd.f32 %v7721_v40, %v7720_v41  ;;  %v7723_v18 = vpop.f32.mrb[114].mxu0  ;;  %v7975_v27 = vadd.f32 %v10759_v4, %v6177_v37  ;;  %v7911_v11 = vpop.f32.mrb[86].mxu1 }
 0x380   : > { %7278 = vst [vmem:[%s10803_s12] sm:$0xff] %v7277_v1   ;;  %v7724_v50 = vpop.f32.mrb[115].mxu0  ;;  %v6333_v46 = vmul.f32 %v7971_v13, %v10782_v9  ;;  %v7979_v10 = vadd.f32 %v10766_v12, %v7911_v11  ;;  %v6180_v29 = vpop.f32.mrb[87].mxu1 }
 0x381   : > { %v7725_v35 = vadd.f32 %v7724_v50, %v7723_v18  ;;  %v6331_v57 = vmul.f32 %v7975_v27, %v10782_v9  ;;  %v7983_v58 = vadd.f32 %v10762_v7, %v6180_v29  ;;  %v10813_v28 = vadd.f32 %v10635_v19, %v7722_v42 }
 0x382   : > { %v6372_v17 = vadd.f32 %v10784_v63, %v6333_v46  ;;  %v6334_v4 = vmul.f32 %v7979_v10, %v10782_v9 }
 0x383   : > { %v6370_v52 = vadd.f32 %v10784_v63, %v6331_v57  ;;  %v6332_v30 = vmul.f32 %v7983_v58, %v10782_v9  ;;  %v10820_v12 = vadd.f32 %v10644_v51, %v7725_v35 }
 0x384   : > { %v6373_v6 = vadd.f32 %v10784_v63, %v6334_v4  ;;  %v6404_v7 = vmax.f32 %v6372_v17, 0.0 }
 0x385   : > { %v6371_v22 = vadd.f32 %v10784_v63, %v6332_v30  ;;  %v6402_v44 = vmax.f32 %v6370_v52, 0.0 }
 0x386   : > { %v6405_v19 = vmax.f32 %v6373_v6, 0.0 }
 0x387   : > { %v6403_v61 = vmax.f32 %v6371_v22, 0.0 }
 0x388   : > { %v7292_v2 = vpack.c.bf16 %v6405_v19, %v6404_v7  ;;  %v7726_v14 = vpop.f32.mrb[116].mxu0  ;;  %v7914_v56 = vpop.f32.mrb[88].mxu1 }
 0x389   : > { %v7287_v36 = vpack.c.bf16 %v6403_v61, %v6402_v44  ;;  %v7727_v38 = vpop.f32.mrb[117].mxu0  ;;  %v7987_v15 = vadd.f32 %v10773_v60, %v7914_v56  ;;  %v6193_v33 = vpop.f32.mrb[89].mxu1 }
 0x38a   : > { %7371 = vst [vmem:[%s10803_s12 + $0x18] sm:$0xff] %v7292_v2   ;;  %v7728_v51 = vadd.f32 %v7727_v38, %v7726_v14  ;;  %v7729_v23 = vpop.f32.mrb[118].mxu0  ;;  %v7991_v26 = vadd.f32 %v10768_v53, %v6193_v33  ;;  %v7915_v48 = vpop.f32.mrb[90].mxu1 }
 0x38b   : > { %7370 = vst [vmem:[%s10803_s12 + $0x10] sm:$0xff] %v7287_v36   ;;  %v7730_v41 = vpop.f32.mrb[119].mxu0  ;;  %v6337_v25 = vmul.f32 %v7987_v15, %v10782_v9  ;;  %v7995_v1 = vadd.f32 %v10776_v31, %v7915_v48  ;;  %v6196_v40 = vpop.f32.mrb[91].mxu1 }
 0x38c   : > { %v7731_v13 = vadd.f32 %v7730_v41, %v7729_v23  ;;  %v6335_v37 = vmul.f32 %v7991_v26, %v10782_v9  ;;  %v7999_v42 = vadd.f32 %v10770_v21, %v6196_v40  ;;  %v8017_v60 = vadd.f32 %v10650_v47, %v7728_v51 }
 0x38d   : > { %v6376_v18 = vadd.f32 %v10784_v63, %v6337_v25  ;;  %v6338_v27 = vmul.f32 %v7995_v1, %v10782_v9 }
 0x38e   : > { %v6374_v53 = vadd.f32 %v10784_v63, %v6335_v37  ;;  %v6336_v11 = vmul.f32 %v7999_v42, %v10782_v9  ;;  %v8023_v50 = vadd.f32 %v10652_v55, %v7731_v13 }
 0x38f   : > { %v6377_v31 = vadd.f32 %v10784_v63, %v6338_v27  ;;  %v6408_v10 = vmax.f32 %v6376_v18, 0.0 }
 0x390   : > { %v6375_v46 = vadd.f32 %v10784_v63, %v6336_v11  ;;  %v6406_v29 = vmax.f32 %v6374_v53, 0.0 }
 0x391   : > { %v6409_v21 = vmax.f32 %v6377_v31, 0.0 }
 0x392   : > { %v6407_v47 = vmax.f32 %v6375_v46, 0.0 }
 0x393   : > { %v7302_v35 = vpack.c.bf16 %v6409_v21, %v6408_v10  ;;  %v7732_v57 = vpop.f32.mrb[120].mxu0 }
 0x394   : > { %v7918_v58 = vpop.f32.mrb[92].mxu1  ;;  %v7297_v17 = vpack.c.bf16 %v6407_v47, %v6406_v29  ;;  %v7733_v4 = vpop.f32.mrb[121].mxu0 }
 0x395   : > { %v8003_v52 = vadd.f32 %v10790_v59, %v7918_v58  ;;  %v6209_v30 = vpop.f32.mrb[93].mxu1  ;;  %7373 = vst [vmem:[%s10803_s12 + $0x28] sm:$0xff] %v7302_v35   ;;  %v7734_v6 = vadd.f32 %v7733_v4, %v7732_v57  ;;  %v7735_v55 = vpop.f32.mrb[122].mxu0 }
 0x396   : > { %v8007_v22 = vadd.f32 %v10778_v39, %v6209_v30  ;;  %v7919_v7 = vpop.f32.mrb[94].mxu1  ;;  %7372 = vst [vmem:[%s10803_s12 + $0x20] sm:$0xff] %v7297_v17   ;;  %v7736_v19 = vpop.f32.mrb[123].mxu0 }
 0x397   : > { %v6341_v44 = vmul.f32 %v8003_v52, %v10782_v9  ;;  %v8011_v61 = vadd.f32 %v10797_v34, %v7919_v7  ;;  %v6212_v2 = vpop.f32.mrb[95].mxu1  ;;  %v7737_v14 = vadd.f32 %v7736_v19, %v7735_v55  ;;  %v8032_v59 = vadd.f32 %v10665_v20, %v7734_v6 }
 0x398   : > { %v6339_v56 = vmul.f32 %v8007_v22, %v10782_v9  ;;  %v8015_v36 = vadd.f32 %v10780_v43, %v6212_v2 }
 0x399   : > { %v6380_v38 = vadd.f32 %v10784_v63, %v6341_v44  ;;  %v6342_v39 = vmul.f32 %v8011_v61, %v10782_v9  ;;  %v8038_v34 = vadd.f32 %v10667_v3, %v7737_v14 }
 0x39a   : > { %v6378_v15 = vadd.f32 %v10784_v63, %v6339_v56  ;;  %v6340_v33 = vmul.f32 %v8015_v36, %v10782_v9 }
 0x39b   : > { %v6381_v51 = vadd.f32 %v10784_v63, %v6342_v39  ;;  %v6412_v26 = vmax.f32 %v6380_v38, 0.0 }
 0x39c   : > { %v6379_v23 = vadd.f32 %v10784_v63, %v6340_v33  ;;  %v6410_v48 = vmax.f32 %v6378_v15, 0.0 }
 0x39d   : > { %v6413_v43 = vmax.f32 %v6381_v51, 0.0 }
 0x39e   : > { %v6411_v20 = vmax.f32 %v6379_v23, 0.0 }
 0x39f   : > { %v7312_v41 = vpack.c.bf16 %v6413_v43, %v6412_v26 }
 0x3a0   : > { %v7738_v25 = vpop.f32.mrb[124].mxu0  ;;  %v7307_v1 = vpack.c.bf16 %v6411_v20, %v6410_v48  ;;  %v7922_v40 = vpop.f32.mrb[0].mxu1 }
 0x3a1   : > { %7375 = vst [vmem:[%s10803_s12 + $0x38] sm:$0xff] %v7312_v41   ;;  %v7739_v13 = vpop.f32.mrb[125].mxu0  ;;  %v8018_v37 = vadd.f32 %v8017_v60, %v7922_v40  ;;  %v6225_v42 = vpop.f32.mrb[1].mxu1 }
 0x3a2   : > { %7374 = vst [vmem:[%s10803_s12 + $0x30] sm:$0xff] %v7307_v1   ;;  %v7740_v18 = vadd.f32 %v7739_v13, %v7738_v25  ;;  %v7741_v27 = vpop.f32.mrb[126].mxu0  ;;  %v8021_v3 = vadd.f32 %v10813_v28, %v6225_v42  ;;  %v7923_v53 = vpop.f32.mrb[2].mxu1 }
 0x3a3   : > { %v7742_v11 = vpop.f32.mrb[127].mxu0  ;;  %v6345_v31 = vmul.f32 %v8018_v37, %v10782_v9  ;;  %v8024_v46 = vadd.f32 %v8023_v50, %v7923_v53  ;;  %v6228_v10 = vpop.f32.mrb[3].mxu1 }
 0x3a4   : > { %v7743_v21 = vadd.f32 %v7742_v11, %v7741_v27  ;;  %v6343_v29 = vmul.f32 %v8021_v3, %v10782_v9  ;;  %v8027_v47 = vadd.f32 %v10820_v12, %v6228_v10  ;;  %v8029_v35 = vadd.f32 %v10671_v5, %v7740_v18 }
 0x3a5   : > { %v6384_v60 = vadd.f32 %v10784_v63, %v6345_v31  ;;  %v6346_v57 = vmul.f32 %v8024_v46, %v10782_v9 }
 0x3a6   : > { %v6382_v28 = vadd.f32 %v10784_v63, %v6343_v29  ;;  %v6344_v58 = vmul.f32 %v8027_v47, %v10782_v9  ;;  %v8035_v17 = vadd.f32 %v10675_v24, %v7743_v21 }
 0x3a7   : > { %v6385_v50 = vadd.f32 %v10784_v63, %v6346_v57  ;;  %v6416_v52 = vmax.f32 %v6384_v60, 0.0 }
 0x3a8   : > { %v6383_v4 = vadd.f32 %v10784_v63, %v6344_v58  ;;  %v6414_v30 = vmax.f32 %v6382_v28, 0.0 }
 0x3a9   : > { %v6417_v12 = vmax.f32 %v6385_v50, 0.0 }
 0x3aa   : > { %v6415_v5 = vmax.f32 %v6383_v4, 0.0 }
 0x3ab   : > { %v7322_v6 = vpack.c.bf16 %v6417_v12, %v6416_v52  ;;  %v7744_v55 = vpop.f32.mrb[128].mxu0 }
 0x3ac   : > { %v7317_v22 = vpack.c.bf16 %v6415_v5, %v6414_v30  ;;  %v7745_v7 = vpop.f32.mrb[129].mxu0  ;;  %v7926_v19 = vpop.f32.mrb[4].mxu1 }
 0x3ad   : > { %7377 = vst [vmem:[%s10803_s12 + $0x48] sm:$0xff] %v7322_v6   ;;  %v7746_v44 = vadd.f32 %v7745_v7, %v7744_v55  ;;  %v7747_v61 = vpop.f32.mrb[130].mxu0  ;;  %v8030_v2 = vadd.f32 %v8029_v35, %v7926_v19  ;;  %v6241_v14 = vpop.f32.mrb[5].mxu1 }
 0x3ae   : > { %7376 = vst [vmem:[%s10803_s12 + $0x40] sm:$0xff] %v7317_v22   ;;  %v7748_v24 = vpop.f32.mrb[131].mxu0  ;;  %v8033_v56 = vadd.f32 %v8032_v59, %v6241_v14  ;;  %v7927_v36 = vpop.f32.mrb[6].mxu1 }
 0x3af   : > { %v7749_v38 = vadd.f32 %v7748_v24, %v7747_v61  ;;  %v6349_v39 = vmul.f32 %v8030_v2, %v10782_v9  ;;  %v8036_v15 = vadd.f32 %v8035_v17, %v7927_v36  ;;  %v6244_v33 = vpop.f32.mrb[7].mxu1  ;;  %v8044_v51 = vadd.f32 %v10678_v49, %v7746_v44 }
 0x3b0   : > { %v6347_v23 = vmul.f32 %v8033_v56, %v10782_v9  ;;  %v8039_v26 = vadd.f32 %v8038_v34, %v6244_v33 }
 0x3b1   : > { %v6388_v43 = vadd.f32 %v10784_v63, %v6349_v39  ;;  %v6350_v48 = vmul.f32 %v8036_v15, %v10782_v9  ;;  %v8050_v20 = vadd.f32 %v10685_v16, %v7749_v38 }
 0x3b2   : > { %v6386_v59 = vadd.f32 %v10784_v63, %v6347_v23  ;;  %v6348_v41 = vmul.f32 %v8039_v26, %v10782_v9 }
 0x3b3   : > { %v6389_v25 = vadd.f32 %v10784_v63, %v6350_v48  ;;  %v6420_v49 = vmax.f32 %v6388_v43, 0.0 }
 0x3b4   : > { %v6387_v1 = vadd.f32 %v10784_v63, %v6348_v41  ;;  %v6418_v13 = vmax.f32 %v6386_v59, 0.0 }
 0x3b5   : > { %v6421_v40 = vmax.f32 %v6389_v25, 0.0 }
 0x3b6   : > { %v6419_v34 = vmax.f32 %v6387_v1, 0.0 }
 0x3b7   : > { %v7332_v37 = vpack.c.bf16 %v6421_v40, %v6420_v49  ;;  %v7750_v42 = vpop.f32.mrb[132].mxu0  ;;  %v7930_v18 = vpop.f32.mrb[8].mxu1 }
 0x3b8   : > { %v7327_v27 = vpack.c.bf16 %v6419_v34, %v6418_v13  ;;  %v7751_v3 = vpop.f32.mrb[133].mxu0  ;;  %v6257_v53 = vpop.f32.mrb[9].mxu1 }
 0x3b9   : > { %7379 = vst [vmem:[%s10803_s12 + $0x58] sm:$0xff] %v7332_v37   ;;  %v7752_v16 = vadd.f32 %v7751_v3, %v7750_v42  ;;  %v7753_v11 = vpop.f32.mrb[134].mxu0  ;;  %v8045_v31 = vadd.f32 %v8044_v51, %v6257_v53  ;;  %v7931_v46 = vpop.f32.mrb[10].mxu1 }
 0x3ba   : > { %7378 = vst [vmem:[%s10803_s12 + $0x50] sm:$0xff] %v7327_v27   ;;  %v7754_v10 = vpop.f32.mrb[135].mxu0  ;;  %v6260_v21 = vpop.f32.mrb[11].mxu1 }
 0x3bb   : > { %v7755_v29 = vadd.f32 %v7754_v10, %v7753_v11  ;;  %v8041_v47 = vadd.f32 %v10697_v62, %v7752_v16  ;;  %v6351_v35 = vmul.f32 %v8045_v31, %v10782_v9  ;;  %v8051_v60 = vadd.f32 %v8050_v20, %v6260_v21 }
 0x3bd   : > { %v8042_v57 = vadd.f32 %v8041_v47, %v7930_v18  ;;  %v6390_v28 = vadd.f32 %v10784_v63, %v6351_v35  ;;  %v8047_v58 = vadd.f32 %v10700_v8, %v7755_v29  ;;  %v6352_v17 = vmul.f32 %v8051_v60, %v10782_v9 }
 0x3bf   : > { %v6353_v50 = vmul.f32 %v8042_v57, %v10782_v9  ;;  %v8048_v4 = vadd.f32 %v8047_v58, %v7931_v46  ;;  %v6391_v52 = vadd.f32 %v10784_v63, %v6352_v17  ;;  %v6422_v30 = vmax.f32 %v6390_v28, 0.0 }
 0x3c1   : > { %v6392_v12 = vadd.f32 %v10784_v63, %v6353_v50  ;;  %v6354_v62 = vmul.f32 %v8048_v4, %v10782_v9  ;;  %v6423_v5 = vmax.f32 %v6391_v52, 0.0 }
 0x3c2   : > { %v7756_v6 = vpop.f32.mrb[136].mxu0 }
 0x3c3   : > { %v6393_v55 = vadd.f32 %v10784_v63, %v6354_v62  ;;  %v7337_v22 = vpack.c.bf16 %v6423_v5, %v6422_v30  ;;  %v7757_v7 = vpop.f32.mrb[137].mxu0  ;;  %v6424_v61 = vmax.f32 %v6392_v12, 0.0 }
 0x3c4   : > { %v7758_v8 = vadd.f32 %v7757_v7, %v7756_v6  ;;  %v7759_v19 = vpop.f32.mrb[138].mxu0  ;;  %v7934_v44 = vpop.f32.mrb[12].mxu1 }
 0x3c5   : > { %v6425_v2 = vmax.f32 %v6393_v55, 0.0  ;;  %7380 = vst [vmem:[%s10803_s12 + $0x60] sm:$0xff] %v7337_v22   ;;  %v7760_v14 = vpop.f32.mrb[139].mxu0  ;;  %v6273_v24 = vpop.f32.mrb[13].mxu1 }
 0x3c6   : > { %v7761_v56 = vadd.f32 %v7760_v14, %v7759_v19  ;;  %v8056_v36 = vadd.f32 %v10717_v0, %v7758_v8  ;;  %v7935_v38 = vpop.f32.mrb[14].mxu1 }
 0x3c7   : > { %v7342_v39 = vpack.c.bf16 %v6425_v2, %v6424_v61  ;;  %v6276_v15 = vpop.f32.mrb[15].mxu1 }
 0x3c8   : > { %v8057_v33 = vadd.f32 %v8056_v36, %v6273_v24  ;;  %v8062_v51 = vadd.f32 %v10725_v32, %v7761_v56 }
 0x3c9   : > { %7381 = vst [vmem:[%s10803_s12 + $0x68] sm:$0xff] %v7342_v39  }
 0x3ca   : > { %v6355_v23 = vmul.f32 %v8057_v33, %v10782_v9  ;;  %v8063_v26 = vadd.f32 %v8062_v51, %v6276_v15 }
 0x3cc   : > { %v6394_v43 = vadd.f32 %v10784_v63, %v6355_v23  ;;  %v6356_v48 = vmul.f32 %v8063_v26, %v10782_v9 }
 0x3cd   : > { %v7762_v20 = vpop.f32.mrb[140].mxu0 }
 0x3ce   : > { %v6395_v59 = vadd.f32 %v10784_v63, %v6356_v48  ;;  %v7763_v41 = vpop.f32.mrb[141].mxu0  ;;  %v6426_v1 = vmax.f32 %v6394_v43, 0.0 }
 0x3cf   : > { %v7764_v0 = vadd.f32 %v7763_v41, %v7762_v20  ;;  %v7765_v25 = vpop.f32.mrb[142].mxu0 }
 0x3d0   : > { %v6427_v49 = vmax.f32 %v6395_v59, 0.0  ;;  %v7766_v32 = vpop.f32.mrb[143].mxu0 }
 0x3d1   : > { %v8053_v40 = vadd.f32 %v10741_v54, %v7764_v0  ;;  %v7767_v13 = vadd.f32 %v7766_v32, %v7765_v25 }
 0x3d2   : > { %v7347_v34 = vpack.c.bf16 %v6427_v49, %v6426_v1 }
 0x3d3   : > { %v8054_v37 = vadd.f32 %v8053_v40, %v7934_v44  ;;  %v8059_v42 = vadd.f32 %v10749_v45, %v7767_v13 }
 0x3d4   : > { %7382 = vst [vmem:[%s10803_s12 + $0x70] sm:$0xff] %v7347_v34  }
 0x3d5   : > { %v6357_v18 = vmul.f32 %v8054_v37, %v10782_v9  ;;  %v8060_v27 = vadd.f32 %v8059_v42, %v7935_v38 }
 0x3d7   : > { %v6396_v3 = vadd.f32 %v10784_v63, %v6357_v18  ;;  %v6358_v53 = vmul.f32 %v8060_v27, %v10782_v9 }
 0x3d9   : > { %v6397_v16 = vadd.f32 %v10784_v63, %v6358_v53  ;;  %v6428_v54 = vmax.f32 %v6396_v3, 0.0 }
 0x3db   : > { %v6429_v11 = vmax.f32 %v6397_v16, 0.0 }
 0x3dd   : > { %v7352_v45 = vpack.c.bf16 %v6429_v11, %v6428_v54 }
 0x3df   : > { %7383 = vst [vmem:[%s10803_s12 + $0x78] sm:$0xff] %v7352_v45  }
 0x3e0   : > { %8740 = shalt.err (!%p8737_p2)
}
 0x3e1   : > { %s8741_s10 = scalar_lea.hbm %s10914_s5, 2048  ;;  %s8745_s7 = scalar_lea.hbm %s11142_s8, 4096 }
 0x3e2   : > { %p8742_p12 = scmp.ne.s32.totalorder %s10914_s5, %s8741_s10  ;;  %p8746_p6 = scmp.lt.u32.totalorder %s10914_s5, %s11142_s8 }
 0x3e3   : > { %p8747_p8 = scmp.lt.u32.totalorder %s8745_s7, %s8741_s10  ;;  %p8749_p10 = scmp.lt.u32.totalorder %s8741_s10, %s10914_s5 }
 0x3e4   : > { %p8743_p3 = pnand %p8742_p12, %p11143_p1 }
 0x3e5   : > { %p8748_p9 = por %p8747_p8, %p8746_p6 }
 0x3e6   : > { %p8744_p0 = pneg %p8743_p3 }
 0x3e7   : > { %p8750_p5 = por %p8749_p10, %p8748_p9 }
 0x3e9   : > { %p8751_p11 = pnand %p8750_p5, %p8744_p0 }
 0x3eb   : > { %8754 = shalt.err (!%p8751_p11)
}
 0x3ec   : > { %s8825_s30 = smov 64   ;;  %s8826_s19 = smov 4  }
 0x3ed   : > { %8132 = dma.vmem_to_hbm [thread:$0]  (%p11143_p1), %s10916_s18, 2048, %s10914_s5, %s6591_s1, %s8825_s30, %s8825_s30, %s8826_s19  }
 0x3ee PF: > { %s11144_s4 = sld [smem:[#allocation22_spill]]  ;;  %s11145_s29 = sld [smem:[#allocation27_spill]] }
 0x3ef   : > { %p11147_p13 = scmp.ge.s32.totalorder %s8809_s27, 2 }
 0x3f4   : > { %s6619_s24 = sand.u32 1, %s11144_s4   ;;  %p11146_p4 = scmp.ne.s32.totalorder %s11145_s29, 0 }
 0x3f5   : > { %s6620_s12 = scalar_lea.sflag [#allocation5], %s6619_s24 }
 0x3f6   : > { %p8158_p7 = pnand %p11147_p13, %p11146_p4 }
 0x3f8   : > { %8792 = dma.done.wait (!%p8158_p7), %s6620_s12, 2048  }
 0x3f9   : > { %8794 = vsyncadd (!%p8158_p7), %s6620_s12, 4294965248  ;;  %s11148_s27 = sld [smem:[#allocation24_spill]]  ;;  %s11149_s17 = sld [smem:[#allocation23_spill]] }
 0x3fa   : > { %s11150_s26 = sld [smem:[#allocation25_spill]]  ;;  %s11151_s24 = smov %s8801_s25 }
 0x3ff   : > { %p27_p2 = scmp.ge.s32.totalorder %s11148_s27, 4   ;;  %s11152_s25 = smov %s11149_s17 }
 0x401   :  { %29 = sbr.rel (!%p27_p2) target bundleno = 15 (0xf), region = 147 }
 0x408   :  { %6625 = vsyncpa [#allocation4], 1 }
 0x409   :  { %6627 = vsyncpa [#allocation4 + $0x1], 1 }
 0x40a   :  { %6628 = vsyncpa [#allocation7], 1 }
 0x40b   :  { %6630 = vsyncpa [#allocation7 + $0x1], 1 }
 0x40c   :  { %6631 = vsyncpa [#allocation10], 1 }
 0x40d   :  { %6633 = vsyncpa [#allocation10 + $0x1], 1 }
 0x40e   :  { %6634 = vsyncpa [#allocation13], 1 }
 0x40f   :  { %6635 = vsyncpa [#allocation5], 1 }
 0x410   :  { %6637 = vsyncpa [#allocation5 + $0x1], 1 }

</bundles_post_ra>
